<compile_context>
chip_gen: v6e
topology: v6e:2x2x1
jax: 0.10.0
libtpu: 0.0.40
codegen_flags: <defaults>
</compile_context>

<pallas_src>
import functools

import jax
import jax.numpy as jnp
from jax.experimental import pallas as pl
from jax.experimental.pallas import tpu as pltpu


_PROP_TM = 512                    # propagation row-slab tile (nodes)
_PROP_TK = 512                    # propagation reduction tile (nodes)
_FUSED_VMEM_BUDGET = 40 << 20     # keep VMEM-resident H within v7x's 64 MiB physical VMEM


def _round_up(x, m):
    return ((x + m - 1) // m) * m


def _pick_tile(dim, target):
    """Largest multiple of 128 <= min(target, dim) that divides dim (dim % 128 == 0)."""
    assert dim % 128 == 0 and dim >= 128
    t = max(128, min(target, dim))
    t -= t % 128
    while dim % t:
        t -= 128
    return t


def _vmem_limit(est_bytes):
    return int(min(max(est_bytes + (8 << 20), 32 << 20), 64 << 20))


# ----------------------------------------------------------------------------
# Kernel 1: general tiled matmul (bf16 operands, f32 accumulator),
# optional fused bias + ReLU epilogue on the last K step.  Used for h @ W.
# ----------------------------------------------------------------------------
def _mm_kernel(a_ref, b_ref, o_ref, acc_ref, *, apply_relu):
    @pl.when(pl.program_id(2) == 0)
    def _():
        acc_ref[...] = jnp.zeros_like(acc_ref)

    acc_ref[...] += jnp.dot(a_ref[...], b_ref[...], preferred_element_type=jnp.float32)

    @pl.when(pl.program_id(2) == pl.num_programs(2) - 1)
    def _():
        out = acc_ref[...]
        if apply_relu:
            out = jnp.maximum(out, 0.0)
        o_ref[...] = out.astype(o_ref.dtype)


def _mm_bias_kernel(a_ref, b_ref, bias_ref, o_ref, acc_ref, *, apply_relu):
    @pl.when(pl.program_id(2) == 0)
    def _():
        acc_ref[...] = jnp.zeros_like(acc_ref)

    acc_ref[...] += jnp.dot(a_ref[...], b_ref[...], preferred_element_type=jnp.float32)

    @pl.when(pl.program_id(2) == pl.num_programs(2) - 1)
    def _():
        out = acc_ref[...] + bias_ref[...]          # (1, tn) f32 broadcast over rows
        if apply_relu:
            out = jnp.maximum(out, 0.0)
        o_ref[...] = out.astype(o_ref.dtype)


def matmul_padded(a_p, b_p, bias_p=None, *, apply_relu=False,
                  out_dtype=jnp.bfloat16, tm=512, tk=1024, tn=256):
    """relu?(a_p @ b_p (+ bias)) on pre-padded, 128-aligned operands; returns padded output."""
    Mp, Kp = a_p.shape
    Kp2, Np = b_p.shape
    assert Kp == Kp2
    tm = _pick_tile(Mp, tm)
    tk = _pick_tile(Kp, tk)
    tn = _pick_tile(Np, tn)
    grid = (Mp // tm, Np // tn, Kp // tk)

    if bias_p is None:
        kernel = functools.partial(_mm_kernel, apply_relu=apply_relu)
        in_specs = [pl.BlockSpec((tm, tk), lambda i, j, k: (i, k)),
                    pl.BlockSpec((tk, tn), lambda i, j, k: (k, j))]
        args = (a_p, b_p)
    else:
        kernel = functools.partial(_mm_bias_kernel, apply_relu=apply_relu)
        in_specs = [pl.BlockSpec((tm, tk), lambda i, j, k: (i, k)),
                    pl.BlockSpec((tk, tn), lambda i, j, k: (k, j)),
                    pl.BlockSpec((1, tn), lambda i, j, k: (0, j))]
        args = (a_p, b_p, bias_p)

    est = (2 * (tm * tk + tk * tn) * a_p.dtype.itemsize
           + 2 * tm * tn * jnp.dtype(out_dtype).itemsize
           + tm * tn * 4 + 2 * tn * 4)

    return pl.pallas_call(
        kernel,
        out_shape=jax.ShapeDtypeStruct((Mp, Np), out_dtype),
        grid_spec=pltpu.PrefetchScalarGridSpec(
            num_scalar_prefetch=0,
            grid=grid,
            in_specs=in_specs,
            out_specs=pl.BlockSpec((tm, tn), lambda i, j, k: (i, j)),
            scratch_shapes=[pltpu.VMEM((tm, tn), jnp.float32)],
        ),
        compiler_params=pltpu.CompilerParams(
            dimension_semantics=("parallel", "parallel", "arbitrary"),
            vmem_limit_bytes=_vmem_limit(est),
        ),
    )(*args)


# ----------------------------------------------------------------------------
# Kernel 2: fused k-step propagation  H <- A_norm^k @ H  (+ bias, relu on last step).
# H stays VMEM-resident across all k steps (ping-pong scratch); only A tiles stream from HBM.
# Grid: (k, Mp//tm, Mp//tk)  — sequential (step s+1 depends on step s).
# ----------------------------------------------------------------------------
def _prop_body(a_ref, h_in_ref, bias_ref, o_ref, h_scr, acc_ref, apply_relu):
    s = pl.program_id(0)
    i = pl.program_id(1)
    kk = pl.program_id(2)
    ns = pl.num_programs(0)
    nk = pl.num_programs(2)
    tm, tk = a_ref.shape

    # One-time load of the feature panel into the ping-pong scratch (slot 0).
    @pl.when((s == 0) & (i == 0) & (kk == 0))
    def _():
        h_scr[0, :, :] = h_in_ref[...]

    @pl.when(kk == 0)
    def _():
        acc_ref[...] = jnp.zeros_like(acc_ref)

    src = s % 2
    koff = pl.multiple_of(kk * tk, 128)
    acc_ref[...] += jnp.dot(
        a_ref[...], h_scr[src, pl.ds(koff, tk), :],
        preferred_element_type=jnp.float32)

    @pl.when(kk == nk - 1)
    def _():
        @pl.when(s < ns - 1)            # intermediate step: write next-H row slab to scratch
        def _():
            dst = (s + 1) % 2
            ioff = pl.multiple_of(i * tm, 128)
            h_scr[dst, pl.ds(ioff, tm), :] = acc_ref[...].astype(h_scr.dtype)

        @pl.when(s == ns - 1)           # last step: fused bias / ReLU epilogue to HBM
        def _():
            out = acc_ref[...]
            if bias_ref is not None:
                out = out + bias_ref[...]
            if apply_relu:
                out = jnp.maximum(out, 0.0)
            o_ref[...] = out.astype(o_ref.dtype)


def _prop_kernel(a_ref, h_in_ref, o_ref, h_scr, acc_ref, *, apply_relu):
    _prop_body(a_ref, h_in_ref, None, o_ref, h_scr, acc_ref, apply_relu)


def _prop_bias_kernel(a_ref, h_in_ref, bias_ref, o_ref, h_scr, acc_ref, *, apply_relu):
    _prop_body(a_ref, h_in_ref, bias_ref, o_ref, h_scr, acc_ref, apply_relu)


def _propagate_k_fused(a_p, h_p, k, bias_p, apply_relu, out_dtype, tm, tk, vmem_est):
    Mp, Nh = h_p.shape
    grid = (k, Mp // tm, Mp // tk)

    a_spec = pl.BlockSpec((tm, tk), lambda s, i, kk: (i, kk))       # A streamed per step
    h_spec = pl.BlockSpec((Mp, Nh), lambda s, i, kk: (0, 0))        # H fetched once, resident

    if bias_p is None:
        kernel = functools.partial(_prop_kernel, apply_relu=apply_relu)
        in_specs = [a_spec, h_spec]
        args = (a_p, h_p)
    else:
        kernel = functools.partial(_prop_bias_kernel, apply_relu=apply_relu)
        in_specs = [a_spec, h_spec, pl.BlockSpec((1, Nh), lambda s, i, kk: (0, 0))]
        args = (a_p, h_p, bias_p)

    return pl.pallas_call(
        kernel,
        out_shape=jax.ShapeDtypeStruct((Mp, Nh), out_dtype),
        grid_spec=pltpu.PrefetchScalarGridSpec(
            num_scalar_prefetch=0,
            grid=grid,
            in_specs=in_specs,
            out_specs=pl.BlockSpec((tm, Nh), lambda s, i, kk: (i, 0)),
            scratch_shapes=[pltpu.VMEM((2, Mp, Nh), jnp.bfloat16),   # ping-pong H panel
                            pltpu.VMEM((tm, Nh), jnp.float32)],      # f32 accumulator
        ),
        compiler_params=pltpu.CompilerParams(
            # step s+1 reads the VMEM panel written at step s -> must be sequential
            dimension_semantics=("arbitrary", "arbitrary", "arbitrary"),
            vmem_limit_bytes=_vmem_limit(vmem_est),
        ),
    )(*args)


def propagate_k(a_p, h_p, k, bias_p=None, *, apply_relu=False, out_dtype=jnp.bfloat16):
    """H <- A_norm^k @ H (+ bias, relu on last step) on padded operands."""
    assert k >= 1
    Mp = a_p.shape[0]
    Nh = h_p.shape[1]
    assert a_p.shape == (Mp, Mp) and h_p.shape == (Mp, Nh)
    tm = _pick_tile(Mp, _PROP_TM)
    tk = _pick_tile(Mp, _PROP_TK)
    out_isz = jnp.dtype(out_dtype).itemsize
    est = (2 * Mp * Nh * 2          # resident H input (double-buffered, conservative)
           + 2 * Mp * Nh * 2        # ping-pong H scratch
           + 2 * tm * tk * 2        # A tiles (double-buffered)
           + tm * Nh * 4            # f32 accumulator
           + 2 * tm * Nh * out_isz  # output tiles
           + 2 * Nh * 4)            # bias
    if est <= _FUSED_VMEM_BUDGET:
        return _propagate_k_fused(a_p, h_p, k, bias_p, apply_relu, out_dtype, tm, tk, est)

    # TODO(synk): resident-B / emit_pipeline fallback for graphs whose feature panel
    # exceeds the VMEM budget; for now stream H per step with the plain tiled kernel.
    h = h_p
    for s in range(k):
        last = s == k - 1
        h = matmul_padded(a_p, h, bias_p if last else None,
                          apply_relu=apply_relu and last,
                          out_dtype=out_dtype if last else jnp.bfloat16,
                          tm=tm, tk=tk, tn=Nh)
    return h


# ----------------------------------------------------------------------------
# SGC model (padded/bf16 internal representation)
# ----------------------------------------------------------------------------
def sgconv_padded(a_p, h_p, w_p, b_p, k, *, apply_relu, out_dtype):
    """DGL SGConv fc(A^k h) on padded operands.  Reassociated to A^k (h W) + b when the
    linear layer does not widen the (padded) features, so propagation runs at width 128."""
    kin_p, nout_p = w_p.shape
    assert h_p.shape[1] == kin_p
    if nout_p <= kin_p:
        ht = matmul_padded(h_p, w_p, None, apply_relu=False, out_dtype=jnp.bfloat16)
        return propagate_k(a_p, ht, k, bias_p=b_p, apply_relu=apply_relu, out_dtype=out_dtype)
    else:
        ht = propagate_k(a_p, h_p, k, bias_p=None, apply_relu=False, out_dtype=jnp.bfloat16)
        return matmul_padded(ht, w_p, b_p, apply_relu=apply_relu, out_dtype=out_dtype)


def sgc_forward(params, a_norm, features, n_layers):
    w1, b1, w2, b2, w3, b3 = params
    M = a_norm.shape[0]
    n_classes = w3.shape[1]

    # --- hoisted, one-time prep: pad + cast everything to the kernel's native layout ---
    T = min(_PROP_TM, _round_up(M, 128))
    Mp = _round_up(M, T)
    a_p = jnp.pad(a_norm.astype(jnp.bfloat16), ((0, Mp - M), (0, Mp - M)))

    def pad_w(w):
        i, o = w.shape
        return jnp.pad(w.astype(jnp.bfloat16),
                       ((0, _round_up(i, 128) - i), (0, _round_up(o, 128) - o)))

    def pad_b(b):
        o = b.shape[0]
        return jnp.pad(b.astype(jnp.float32), (0, _round_up(o, 128) - o)).reshape(1, -1)

    in_feats = features.shape[1]
    h = jnp.pad(features.astype(jnp.bfloat16),
                ((0, Mp - M), (0, _round_up(in_feats, 128) - in_feats)))

    # layer 0: SGConv(in_feats, n_hidden, k=1) -> relu -> dropout(identity)
    h = sgconv_padded(a_p, h, pad_w(w1), pad_b(b1), 1, apply_relu=True, out_dtype=jnp.bfloat16)
    # layer 1: SGConv(n_hidden, n_hidden, k=n_layers) -> relu -> dropout(identity)
    h = sgconv_padded(a_p, h, pad_w(w2), pad_b(b2), n_layers, apply_relu=True,
                      out_dtype=jnp.bfloat16)
    # layer 2: SGConv(n_hidden, n_classes, k=1)
    h = sgconv_padded(a_p, h, pad_w(w3), pad_b(b3), 1, apply_relu=False, out_dtype=jnp.float32)

    return h[:M, :n_classes]


def build_normalized_adj(key, n_nodes):
    """Dense symmetric-normalized adjacency with self loops: D^-1/2 (A+I) D^-1/2."""
    a = jax.random.bernoulli(key, p=0.05, shape=(n_nodes, n_nodes)).astype(jnp.float32)
    a = jnp.maximum(a, a.T)                                    # symmetrize
    a = jnp.maximum(a, jnp.eye(n_nodes, dtype=jnp.float32))    # add self loops
    deg = jnp.sum(a, axis=1)
    d_inv_sqrt = 1.0 / jnp.sqrt(deg)
    return a * d_inv_sqrt[:, None] * d_inv_sqrt[None, :]


if __name__ == "__main__":
    # Small deterministic shapes consistent with the module; 600 nodes exercises
    # multiple row/reduction tiles, node padding, and the fused multi-step path.
    n_nodes = 600
    in_feats = 64
    n_hidden = 32
    n_classes = 16
    n_layers = 2  # k of the middle SGConv

    key = jax.random.PRNGKey(0)
    k_adj, k_x, k_w1, k_w2, k_w3 = jax.random.split(key, 5)

    a_norm = build_normalized_adj(k_adj, n_nodes)
    features = jax.random.normal(k_x, (n_nodes, in_feats), dtype=jnp.float32)

    # Deterministic parameter init (W stored as (in, out) == PyTorch W^T).
    w1 = jax.random.normal(k_w1, (in_feats, n_hidden), dtype=jnp.float32) * 0.1
    b1 = jnp.zeros((n_hidden,), dtype=jnp.float32)
    w2 = jax.random.normal(k_w2, (n_hidden, n_hidden), dtype=jnp.float32) * 0.1
    b2 = jnp.zeros((n_hidden,), dtype=jnp.float32)
    w3 = jax.random.normal(k_w3, (n_hidden, n_classes), dtype=jnp.float32) * 0.1
    b3 = jnp.zeros((n_classes,), dtype=jnp.float32)
    params = (w1, b1, w2, b2, w3, b3)

    fwd = jax.jit(functools.partial(sgc_forward, n_layers=n_layers))
    out = fwd(params, a_norm, features)
    out = jax.block_until_ready(out)

    # Pure-JAX f32 reference in the original (un-reassociated) order.
    def ref_sgconv(h, w, b, k):
        for _ in range(k):
            h = a_norm @ h
        return h @ w + b

    h_ref = jnp.maximum(ref_sgconv(features, w1, b1, 1), 0.0)
    h_ref = jnp.maximum(ref_sgconv(h_ref, w2, b2, n_layers), 0.0)
    h_ref = ref_sgconv(h_ref, w3, b3, 1)

    assert out.shape == (n_nodes, n_classes)
    # bf16 operands / f32 accumulation + fp reassociation -> loosened tolerance.
    assert jnp.allclose(out, h_ref, atol=5e-2, rtol=5e-2)

    print("KERNEL_OK")
</pallas_src>

<mosaic_0001>
module attributes {stable_mosaic.version = 11 : i64} {
  func.func @_mm_kernel(%arg0: i32, %arg1: i32, %arg2: i32, %arg3: memref<512x128xbf16, #tpu.memory_space<vmem>>, %arg4: memref<128x128xbf16, #tpu.memory_space<vmem>>, %arg5: memref<512x128xbf16, #tpu.memory_space<vmem>>, %arg6: memref<512x128xf32, #tpu.memory_space<vmem>>) attributes {dimension_semantics = [#tpu.dimension_semantics<parallel>, #tpu.dimension_semantics<parallel>, #tpu.dimension_semantics<arbitrary>], iteration_bounds = array<i64: 2, 1, 1>, scalar_prefetch = 0 : i64, scratch_operands = 1 : i64, tpu.core_type = #tpu.core_type<tc>, window_params = [{transform_indices = @transform_0, window_bounds = array<i64: 512, 128>}, {transform_indices = @transform_1, window_bounds = array<i64: 128, 128>}, {transform_indices = @transform_2, window_bounds = array<i64: 512, 128>}]} {
    %c0_i32 = arith.constant 0 : i32
    %0 = arith.cmpi eq, %arg2, %c0_i32 : i32
    %1 = arith.extui %0 : i1 to i32
    %c0_i32_0 = arith.constant 0 : i32
    %2 = arith.cmpi ne, %1, %c0_i32_0 : i32
    scf.if %2 {
      %cst_10 = arith.constant 0.000000e+00 : f32
      %12 = vector.broadcast %cst_10 : f32 to vector<512x128xf32>
      %c0_11 = arith.constant 0 : index
      %c0_12 = arith.constant 0 : index
      %13 = vector.load %arg6[%c0_11, %c0_12] : memref<512x128xf32, #tpu.memory_space<vmem>>, vector<512x128xf32>
      tpu.vector_store %arg6[%c0_11, %c0_12], %12 {strides = array<i32>} : memref<512x128xf32, #tpu.memory_space<vmem>>, vector<512x128xf32>,
    } else {
    }
    %c0 = arith.constant 0 : index
    %c0_1 = arith.constant 0 : index
    %3 = vector.load %arg6[%c0, %c0_1] : memref<512x128xf32, #tpu.memory_space<vmem>>, vector<512x128xf32>
    %c0_2 = arith.constant 0 : index
    %c0_3 = arith.constant 0 : index
    %4 = vector.load %arg3[%c0_2, %c0_3] : memref<512x128xbf16, #tpu.memory_space<vmem>>, vector<512x128xbf16>
    %c0_4 = arith.constant 0 : index
    %c0_5 = arith.constant 0 : index
    %5 = vector.load %arg4[%c0_4, %c0_5] : memref<128x128xbf16, #tpu.memory_space<vmem>>, vector<128x128xbf16>
    %cst = arith.constant dense<0.000000e+00> : vector<512x128xf32>
    %6 = tpu.matmul %4, %5, %cst {dimension_numbers = #tpu.dot_dimension_numbers<[1], [0], [0], [1], [0, 0, 1, 1], [], []>} : vector<512x128xbf16>, vector<128x128xbf16>, vector<512x128xf32> -> vector<512x128xf32>
    %7 = arith.addf %3, %6 : vector<512x128xf32>
    %c0_6 = arith.constant 0 : index
    %c0_7 = arith.constant 0 : index
    %8 = vector.load %arg6[%c0_6, %c0_7] : memref<512x128xf32, #tpu.memory_space<vmem>>, vector<512x128xf32>
    tpu.vector_store %arg6[%c0_6, %c0_7], %7 {strides = array<i32>} : memref<512x128xf32, #tpu.memory_space<vmem>>, vector<512x128xf32>,
    %c0_i32_8 = arith.constant 0 : i32
    %9 = arith.cmpi eq, %arg2, %c0_i32_8 : i32
    %10 = arith.extui %9 : i1 to i32
    %c0_i32_9 = arith.constant 0 : i32
    %11 = arith.cmpi ne, %10, %c0_i32_9 : i32
    scf.if %11 {
      %c0_10 = arith.constant 0 : index
      %c0_11 = arith.constant 0 : index
      %12 = vector.load %arg6[%c0_10, %c0_11] : memref<512x128xf32, #tpu.memory_space<vmem>>, vector<512x128xf32>
      %13 = arith.truncf %12 : vector<512x128xf32> to vector<512x128xbf16>
      %c0_12 = arith.constant 0 : index
      %c0_13 = arith.constant 0 : index
      %14 = vector.load %arg5[%c0_12, %c0_13] : memref<512x128xbf16, #tpu.memory_space<vmem>>, vector<512x128xbf16>
      tpu.vector_store %arg5[%c0_12, %c0_13], %13 {strides = array<i32>} : memref<512x128xbf16, #tpu.memory_space<vmem>>, vector<512x128xbf16>,
    } else {
    }
    return
  }
  func.func @transform_0(%arg0: i32, %arg1: i32, %arg2: i32) -> (i32, i32) {
    %c0_i32 = arith.constant 0 : i32
    return %arg0, %arg2 : i32, i32
  }
  func.func @transform_1(%arg0: i32, %arg1: i32, %arg2: i32) -> (i32, i32) {
    %c0_i32 = arith.constant 0 : i32
    return %arg2, %arg1 : i32, i32
  }
  func.func @transform_2(%arg0: i32, %arg1: i32, %arg2: i32) -> (i32, i32) {
    %c0_i32 = arith.constant 0 : i32
    return %arg0, %arg1 : i32, i32
  }
}

module attributes {stable_mosaic.version = 11 : i64} {
  func.func @_prop_bias_kernel(%arg0: i32, %arg1: i32, %arg2: i32, %arg3: memref<512x512xbf16, #tpu.memory_space<vmem>>, %arg4: memref<1024x128xbf16, #tpu.memory_space<vmem>>, %arg5: memref<1x128xf32, #tpu.memory_space<vmem>>, %arg6: memref<512x128xbf16, #tpu.memory_space<vmem>>, %arg7: memref<2x1024x128xbf16, #tpu.memory_space<vmem>>, %arg8: memref<512x128xf32, #tpu.memory_space<vmem>>) attributes {dimension_semantics = [#tpu.dimension_semantics<arbitrary>, #tpu.dimension_semantics<arbitrary>, #tpu.dimension_semantics<arbitrary>], iteration_bounds = array<i64: 1, 2, 2>, scalar_prefetch = 0 : i64, scratch_operands = 2 : i64, tpu.core_type = #tpu.core_type<tc>, window_params = [{transform_indices = @transform_0, window_bounds = array<i64: 512, 512>}, {pipeline_mode = #tpu.pipeline_mode<synchronous>, transform_indices = @transform_1, window_bounds = array<i64: 1024, 128>}, {pipeline_mode = #tpu.pipeline_mode<synchronous>, transform_indices = @transform_2, window_bounds = array<i64: 1, 128>}, {transform_indices = @transform_3, window_bounds = array<i64: 512, 128>}]} {
    %c0_i32 = arith.constant 0 : i32
    %0 = arith.cmpi eq, %arg0, %c0_i32 : i32
    %c0_i32_0 = arith.constant 0 : i32
    %1 = arith.cmpi eq, %arg1, %c0_i32_0 : i32
    %2 = arith.andi %0, %1 : i1
    %c0_i32_1 = arith.constant 0 : i32
    %3 = arith.cmpi eq, %arg2, %c0_i32_1 : i32
    %4 = arith.andi %2, %3 : i1
    %5 = arith.extui %4 : i1 to i32
    %c0_i32_2 = arith.constant 0 : i32
    %6 = arith.cmpi ne, %5, %c0_i32_2 : i32
    scf.if %6 {
      %c0_17 = arith.constant 0 : index
      %c0_18 = arith.constant 0 : index
      %34 = vector.load %arg4[%c0_17, %c0_18] : memref<1024x128xbf16, #tpu.memory_space<vmem>>, vector<1024x128xbf16>
      %c0_19 = arith.constant 0 : index
      %c0_20 = arith.constant 0 : index
      %c0_21 = arith.constant 0 : index
      %35 = vector.load %arg7[%c0_19, %c0_20, %c0_21] : memref<2x1024x128xbf16, #tpu.memory_space<vmem>>, vector<1x1024x128xbf16>
      %36 = vector.shape_cast %35 : vector<1x1024x128xbf16> to vector<1024x128xbf16>
      %37 = vector.shape_cast %34 : vector<1024x128xbf16> to vector<1x1024x128xbf16>
      tpu.vector_store %arg7[%c0_19, %c0_20, %c0_21], %37 {strides = array<i32>} : memref<2x1024x128xbf16, #tpu.memory_space<vmem>>, vector<1x1024x128xbf16>,
    } else {
    }
    %c0_i32_3 = arith.constant 0 : i32
    %7 = arith.cmpi eq, %arg2, %c0_i32_3 : i32
    %8 = arith.extui %7 : i1 to i32
    %c0_i32_4 = arith.constant 0 : i32
    %9 = arith.cmpi ne, %8, %c0_i32_4 : i32
    scf.if %9 {
      %cst_17 = arith.constant 0.000000e+00 : f32
      %34 = vector.broadcast %cst_17 : f32 to vector<512x128xf32>
      %c0_18 = arith.constant 0 : index
      %c0_19 = arith.constant 0 : index
      %35 = vector.load %arg8[%c0_18, %c0_19] : memref<512x128xf32, #tpu.memory_space<vmem>>, vector<512x128xf32>
      tpu.vector_store %arg8[%c0_18, %c0_19], %34 {strides = array<i32>} : memref<512x128xf32, #tpu.memory_space<vmem>>, vector<512x128xf32>,
    } else {
    }
    %c2_i32 = arith.constant 2 : i32
    %c0_i32_5 = arith.constant 0 : i32
    %10 = arith.cmpi eq, %c2_i32, %c0_i32_5 : i32
    %c1_i32 = arith.constant 1 : i32
    %11 = arith.select %10, %c1_i32, %c2_i32 : i32
    %12 = arith.remsi %arg0, %11 : i32
    %c0_i32_6 = arith.constant 0 : i32
    %13 = arith.cmpi ne, %12, %c0_i32_6 : i32
    %c0_i32_7 = arith.constant 0 : i32
    %14 = arith.cmpi slt, %12, %c0_i32_7 : i32
    %c0_i32_8 = arith.constant 0 : i32
    %15 = arith.cmpi slt, %11, %c0_i32_8 : i32
    %16 = arith.xori %14, %15 : i1
    %17 = arith.andi %16, %13 : i1
    %18 = arith.addi %12, %11 : i32
    %19 = arith.select %17, %18, %12 : i32
    %c512_i32 = arith.constant 512 : i32
    %20 = arith.muli %arg2, %c512_i32 : i32
    %21 = tpu.assume_multiple %20, 128 : i32
    %c0 = arith.constant 0 : index
    %c0_9 = arith.constant 0 : index
    %22 = vector.load %arg8[%c0, %c0_9] : memref<512x128xf32, #tpu.memory_space<vmem>>, vector<512x128xf32>
    %c0_10 = arith.constant 0 : index
    %c0_11 = arith.constant 0 : index
    %23 = vector.load %arg3[%c0_10, %c0_11] : memref<512x512xbf16, #tpu.memory_space<vmem>>, vector<512x512xbf16>
    %24 = arith.index_cast %19 : i32 to index
    %25 = arith.index_cast %21 : i32 to index
    %c0_12 = arith.constant 0 : index
    %26 = vector.load %arg7[%24, %25, %c0_12] : memref<2x1024x128xbf16, #tpu.memory_space<vmem>>, vector<1x512x128xbf16>
    %27 = vector.shape_cast %26 : vector<1x512x128xbf16> to vector<512x128xbf16>
    %cst = arith.constant dense<0.000000e+00> : vector<512x128xf32>
    %28 = tpu.matmul %23, %27, %cst {dimension_numbers = #tpu.dot_dimension_numbers<[1], [0], [0], [1], [0, 0, 1, 1], [], []>} : vector<512x512xbf16>, vector<512x128xbf16>, vector<512x128xf32> -> vector<512x128xf32>
    %29 = arith.addf %22, %28 : vector<512x128xf32>
    %c0_13 = arith.constant 0 : index
    %c0_14 = arith.constant 0 : index
    %30 = vector.load %arg8[%c0_13, %c0_14] : memref<512x128xf32, #tpu.memory_space<vmem>>, vector<512x128xf32>
    tpu.vector_store %arg8[%c0_13, %c0_14], %29 {strides = array<i32>} : memref<512x128xf32, #tpu.memory_space<vmem>>, vector<512x128xf32>,
    %c1_i32_15 = arith.constant 1 : i32
    %31 = arith.cmpi eq, %arg2, %c1_i32_15 : i32
    %32 = arith.extui %31 : i1 to i32
    %c0_i32_16 = arith.constant 0 : i32
    %33 = arith.cmpi ne, %32, %c0_i32_16 : i32
    scf.if %33 {
      %c0_i32_17 = arith.constant 0 : i32
      %34 = arith.cmpi slt, %arg0, %c0_i32_17 : i32
      %35 = arith.extui %34 : i1 to i32
      %c0_i32_18 = arith.constant 0 : i32
      %36 = arith.cmpi ne, %35, %c0_i32_18 : i32
      scf.if %36 {
        %c1_i32_21 = arith.constant 1 : i32
        %40 = arith.addi %arg0, %c1_i32_21 : i32
        %c2_i32_22 = arith.constant 2 : i32
        %c0_i32_23 = arith.constant 0 : i32
        %41 = arith.cmpi eq, %c2_i32_22, %c0_i32_23 : i32
        %c1_i32_24 = arith.constant 1 : i32
        %42 = arith.select %41, %c1_i32_24, %c2_i32_22 : i32
        %43 = arith.remsi %40, %42 : i32
        %c0_i32_25 = arith.constant 0 : i32
        %44 = arith.cmpi ne, %43, %c0_i32_25 : i32
        %c0_i32_26 = arith.constant 0 : i32
        %45 = arith.cmpi slt, %43, %c0_i32_26 : i32
        %c0_i32_27 = arith.constant 0 : i32
        %46 = arith.cmpi slt, %42, %c0_i32_27 : i32
        %47 = arith.xori %45, %46 : i1
        %48 = arith.andi %47, %44 : i1
        %49 = arith.addi %43, %42 : i32
        %50 = arith.select %48, %49, %43 : i32
        %c512_i32_28 = arith.constant 512 : i32
        %51 = arith.muli %arg1, %c512_i32_28 : i32
        %52 = tpu.assume_multiple %51, 128 : i32
        %c0_29 = arith.constant 0 : index
        %c0_30 = arith.constant 0 : index
        %53 = vector.load %arg8[%c0_29, %c0_30] : memref<512x128xf32, #tpu.memory_space<vmem>>, vector<512x128xf32>
        %54 = arith.truncf %53 : vector<512x128xf32> to vector<512x128xbf16>
        %55 = arith.index_cast %50 : i32 to index
        %56 = arith.index_cast %52 : i32 to index
        %c0_31 = arith.constant 0 : index
        %57 = vector.load %arg7[%55, %56, %c0_31] : memref<2x1024x128xbf16, #tpu.memory_space<vmem>>, vector<1x512x128xbf16>
        %58 = vector.shape_cast %57 : vector<1x512x128xbf16> to vector<512x128xbf16>
        %59 = vector.shape_cast %54 : vector<512x128xbf16> to vector<1x512x128xbf16>
        tpu.vector_store %arg7[%55, %56, %c0_31], %59 {strides = array<i32>} : memref<2x1024x128xbf16, #tpu.memory_space<vmem>>, vector<1x512x128xbf16>,
      } else {
      }
      %c0_i32_19 = arith.constant 0 : i32
      %37 = arith.cmpi eq, %arg0, %c0_i32_19 : i32
      %38 = arith.extui %37 : i1 to i32
      %c0_i32_20 = arith.constant 0 : i32
      %39 = arith.cmpi ne, %38, %c0_i32_20 : i32
      scf.if %39 {
        %c0_21 = arith.constant 0 : index
        %c0_22 = arith.constant 0 : index
        %40 = vector.load %arg8[%c0_21, %c0_22] : memref<512x128xf32, #tpu.memory_space<vmem>>, vector<512x128xf32>
        %c0_23 = arith.constant 0 : index
        %c0_24 = arith.constant 0 : index
        %41 = vector.load %arg5[%c0_23, %c0_24] : memref<1x128xf32, #tpu.memory_space<vmem>>, vector<1x128xf32>
        %42 = vector.broadcast %41 : vector<1x128xf32> to vector<512x128xf32>
        %43 = arith.addf %40, %42 : vector<512x128xf32>
        %cst_25 = arith.constant 0.000000e+00 : f32
        %44 = vector.broadcast %cst_25 : f32 to vector<512x128xf32>
        %45 = arith.maximumf %43, %44 : vector<512x128xf32>
        %46 = arith.truncf %45 : vector<512x128xf32> to vector<512x128xbf16>
        %c0_26 = arith.constant 0 : index
        %c0_27 = arith.constant 0 : index
        %47 = vector.load %arg6[%c0_26, %c0_27] : memref<512x128xbf16, #tpu.memory_space<vmem>>, vector<512x128xbf16>
        tpu.vector_store %arg6[%c0_26, %c0_27], %46 {strides = array<i32>} : memref<512x128xbf16, #tpu.memory_space<vmem>>, vector<512x128xbf16>,
      } else {
      }
    } else {
    }
    return
  }
  func.func @transform_0(%arg0: i32, %arg1: i32, %arg2: i32) -> (i32, i32) {
    %c0_i32 = arith.constant 0 : i32
    return %arg1, %arg2 : i32, i32
  }
  func.func @transform_1(%arg0: i32, %arg1: i32, %arg2: i32) -> (i32, i32) {
    %c0_i32 = arith.constant 0 : i32
    %c0_i32_0 = arith.constant 0 : i32
    %c0_i32_1 = arith.constant 0 : i32
    return %c0_i32, %c0_i32_0 : i32, i32
  }
  func.func @transform_2(%arg0: i32, %arg1: i32, %arg2: i32) -> (i32, i32) {
    %c0_i32 = arith.constant 0 : i32
    %c0_i32_0 = arith.constant 0 : i32
    %c0_i32_1 = arith.constant 0 : i32
    return %c0_i32, %c0_i32_0 : i32, i32
  }
  func.func @transform_3(%arg0: i32, %arg1: i32, %arg2: i32) -> (i32, i32) {
    %c0_i32 = arith.constant 0 : i32
    %c0_i32_0 = arith.constant 0 : i32
    return %arg1, %c0_i32 : i32, i32
  }
}

module attributes {stable_mosaic.version = 11 : i64} {
  func.func @_prop_bias_kernel(%arg0: i32, %arg1: i32, %arg2: i32, %arg3: memref<512x512xbf16, #tpu.memory_space<vmem>>, %arg4: memref<1024x128xbf16, #tpu.memory_space<vmem>>, %arg5: memref<1x128xf32, #tpu.memory_space<vmem>>, %arg6: memref<512x128xbf16, #tpu.memory_space<vmem>>, %arg7: memref<2x1024x128xbf16, #tpu.memory_space<vmem>>, %arg8: memref<512x128xf32, #tpu.memory_space<vmem>>) attributes {dimension_semantics = [#tpu.dimension_semantics<arbitrary>, #tpu.dimension_semantics<arbitrary>, #tpu.dimension_semantics<arbitrary>], iteration_bounds = array<i64: 2, 2, 2>, scalar_prefetch = 0 : i64, scratch_operands = 2 : i64, tpu.core_type = #tpu.core_type<tc>, window_params = [{transform_indices = @transform_0, window_bounds = array<i64: 512, 512>}, {pipeline_mode = #tpu.pipeline_mode<synchronous>, transform_indices = @transform_1, window_bounds = array<i64: 1024, 128>}, {pipeline_mode = #tpu.pipeline_mode<synchronous>, transform_indices = @transform_2, window_bounds = array<i64: 1, 128>}, {transform_indices = @transform_3, window_bounds = array<i64: 512, 128>}]} {
    %c0_i32 = arith.constant 0 : i32
    %0 = arith.cmpi eq, %arg0, %c0_i32 : i32
    %c0_i32_0 = arith.constant 0 : i32
    %1 = arith.cmpi eq, %arg1, %c0_i32_0 : i32
    %2 = arith.andi %0, %1 : i1
    %c0_i32_1 = arith.constant 0 : i32
    %3 = arith.cmpi eq, %arg2, %c0_i32_1 : i32
    %4 = arith.andi %2, %3 : i1
    %5 = arith.extui %4 : i1 to i32
    %c0_i32_2 = arith.constant 0 : i32
    %6 = arith.cmpi ne, %5, %c0_i32_2 : i32
    scf.if %6 {
      %c0_17 = arith.constant 0 : index
      %c0_18 = arith.constant 0 : index
      %34 = vector.load %arg4[%c0_17, %c0_18] : memref<1024x128xbf16, #tpu.memory_space<vmem>>, vector<1024x128xbf16>
      %c0_19 = arith.constant 0 : index
      %c0_20 = arith.constant 0 : index
      %c0_21 = arith.constant 0 : index
      %35 = vector.load %arg7[%c0_19, %c0_20, %c0_21] : memref<2x1024x128xbf16, #tpu.memory_space<vmem>>, vector<1x1024x128xbf16>
      %36 = vector.shape_cast %35 : vector<1x1024x128xbf16> to vector<1024x128xbf16>
      %37 = vector.shape_cast %34 : vector<1024x128xbf16> to vector<1x1024x128xbf16>
      tpu.vector_store %arg7[%c0_19, %c0_20, %c0_21], %37 {strides = array<i32>} : memref<2x1024x128xbf16, #tpu.memory_space<vmem>>, vector<1x1024x128xbf16>,
    } else {
    }
    %c0_i32_3 = arith.constant 0 : i32
    %7 = arith.cmpi eq, %arg2, %c0_i32_3 : i32
    %8 = arith.extui %7 : i1 to i32
    %c0_i32_4 = arith.constant 0 : i32
    %9 = arith.cmpi ne, %8, %c0_i32_4 : i32
    scf.if %9 {
      %cst_17 = arith.constant 0.000000e+00 : f32
      %34 = vector.broadcast %cst_17 : f32 to vector<512x128xf32>
      %c0_18 = arith.constant 0 : index
      %c0_19 = arith.constant 0 : index
      %35 = vector.load %arg8[%c0_18, %c0_19] : memref<512x128xf32, #tpu.memory_space<vmem>>, vector<512x128xf32>
      tpu.vector_store %arg8[%c0_18, %c0_19], %34 {strides = array<i32>} : memref<512x128xf32, #tpu.memory_space<vmem>>, vector<512x128xf32>,
    } else {
    }
    %c2_i32 = arith.constant 2 : i32
    %c0_i32_5 = arith.constant 0 : i32
    %10 = arith.cmpi eq, %c2_i32, %c0_i32_5 : i32
    %c1_i32 = arith.constant 1 : i32
    %11 = arith.select %10, %c1_i32, %c2_i32 : i32
    %12 = arith.remsi %arg0, %11 : i32
    %c0_i32_6 = arith.constant 0 : i32
    %13 = arith.cmpi ne, %12, %c0_i32_6 : i32
    %c0_i32_7 = arith.constant 0 : i32
    %14 = arith.cmpi slt, %12, %c0_i32_7 : i32
    %c0_i32_8 = arith.constant 0 : i32
    %15 = arith.cmpi slt, %11, %c0_i32_8 : i32
    %16 = arith.xori %14, %15 : i1
    %17 = arith.andi %16, %13 : i1
    %18 = arith.addi %12, %11 : i32
    %19 = arith.select %17, %18, %12 : i32
    %c512_i32 = arith.constant 512 : i32
    %20 = arith.muli %arg2, %c512_i32 : i32
    %21 = tpu.assume_multiple %20, 128 : i32
    %c0 = arith.constant 0 : index
    %c0_9 = arith.constant 0 : index
    %22 = vector.load %arg8[%c0, %c0_9] : memref<512x128xf32, #tpu.memory_space<vmem>>, vector<512x128xf32>
    %c0_10 = arith.constant 0 : index
    %c0_11 = arith.constant 0 : index
    %23 = vector.load %arg3[%c0_10, %c0_11] : memref<512x512xbf16, #tpu.memory_space<vmem>>, vector<512x512xbf16>
    %24 = arith.index_cast %19 : i32 to index
    %25 = arith.index_cast %21 : i32 to index
    %c0_12 = arith.constant 0 : index
    %26 = vector.load %arg7[%24, %25, %c0_12] : memref<2x1024x128xbf16, #tpu.memory_space<vmem>>, vector<1x512x128xbf16>
    %27 = vector.shape_cast %26 : vector<1x512x128xbf16> to vector<512x128xbf16>
    %cst = arith.constant dense<0.000000e+00> : vector<512x128xf32>
    %28 = tpu.matmul %23, %27, %cst {dimension_numbers = #tpu.dot_dimension_numbers<[1], [0], [0], [1], [0, 0, 1, 1], [], []>} : vector<512x512xbf16>, vector<512x128xbf16>, vector<512x128xf32> -> vector<512x128xf32>
    %29 = arith.addf %22, %28 : vector<512x128xf32>
    %c0_13 = arith.constant 0 : index
    %c0_14 = arith.constant 0 : index
    %30 = vector.load %arg8[%c0_13, %c0_14] : memref<512x128xf32, #tpu.memory_space<vmem>>, vector<512x128xf32>
    tpu.vector_store %arg8[%c0_13, %c0_14], %29 {strides = array<i32>} : memref<512x128xf32, #tpu.memory_space<vmem>>, vector<512x128xf32>,
    %c1_i32_15 = arith.constant 1 : i32
    %31 = arith.cmpi eq, %arg2, %c1_i32_15 : i32
    %32 = arith.extui %31 : i1 to i32
    %c0_i32_16 = arith.constant 0 : i32
    %33 = arith.cmpi ne, %32, %c0_i32_16 : i32
    scf.if %33 {
      %c1_i32_17 = arith.constant 1 : i32
      %34 = arith.cmpi slt, %arg0, %c1_i32_17 : i32
      %35 = arith.extui %34 : i1 to i32
      %c0_i32_18 = arith.constant 0 : i32
      %36 = arith.cmpi ne, %35, %c0_i32_18 : i32
      scf.if %36 {
        %c1_i32_21 = arith.constant 1 : i32
        %40 = arith.addi %arg0, %c1_i32_21 : i32
        %c2_i32_22 = arith.constant 2 : i32
        %c0_i32_23 = arith.constant 0 : i32
        %41 = arith.cmpi eq, %c2_i32_22, %c0_i32_23 : i32
        %c1_i32_24 = arith.constant 1 : i32
        %42 = arith.select %41, %c1_i32_24, %c2_i32_22 : i32
        %43 = arith.remsi %40, %42 : i32
        %c0_i32_25 = arith.constant 0 : i32
        %44 = arith.cmpi ne, %43, %c0_i32_25 : i32
        %c0_i32_26 = arith.constant 0 : i32
        %45 = arith.cmpi slt, %43, %c0_i32_26 : i32
        %c0_i32_27 = arith.constant 0 : i32
        %46 = arith.cmpi slt, %42, %c0_i32_27 : i32
        %47 = arith.xori %45, %46 : i1
        %48 = arith.andi %47, %44 : i1
        %49 = arith.addi %43, %42 : i32
        %50 = arith.select %48, %49, %43 : i32
        %c512_i32_28 = arith.constant 512 : i32
        %51 = arith.muli %arg1, %c512_i32_28 : i32
        %52 = tpu.assume_multiple %51, 128 : i32
        %c0_29 = arith.constant 0 : index
        %c0_30 = arith.constant 0 : index
        %53 = vector.load %arg8[%c0_29, %c0_30] : memref<512x128xf32, #tpu.memory_space<vmem>>, vector<512x128xf32>
        %54 = arith.truncf %53 : vector<512x128xf32> to vector<512x128xbf16>
        %55 = arith.index_cast %50 : i32 to index
        %56 = arith.index_cast %52 : i32 to index
        %c0_31 = arith.constant 0 : index
        %57 = vector.load %arg7[%55, %56, %c0_31] : memref<2x1024x128xbf16, #tpu.memory_space<vmem>>, vector<1x512x128xbf16>
        %58 = vector.shape_cast %57 : vector<1x512x128xbf16> to vector<512x128xbf16>
        %59 = vector.shape_cast %54 : vector<512x128xbf16> to vector<1x512x128xbf16>
        tpu.vector_store %arg7[%55, %56, %c0_31], %59 {strides = array<i32>} : memref<2x1024x128xbf16, #tpu.memory_space<vmem>>, vector<1x512x128xbf16>,
      } else {
      }
      %c1_i32_19 = arith.constant 1 : i32
      %37 = arith.cmpi eq, %arg0, %c1_i32_19 : i32
      %38 = arith.extui %37 : i1 to i32
      %c0_i32_20 = arith.constant 0 : i32
      %39 = arith.cmpi ne, %38, %c0_i32_20 : i32
      scf.if %39 {
        %c0_21 = arith.constant 0 : index
        %c0_22 = arith.constant 0 : index
        %40 = vector.load %arg8[%c0_21, %c0_22] : memref<512x128xf32, #tpu.memory_space<vmem>>, vector<512x128xf32>
        %c0_23 = arith.constant 0 : index
        %c0_24 = arith.constant 0 : index
        %41 = vector.load %arg5[%c0_23, %c0_24] : memref<1x128xf32, #tpu.memory_space<vmem>>, vector<1x128xf32>
        %42 = vector.broadcast %41 : vector<1x128xf32> to vector<512x128xf32>
        %43 = arith.addf %40, %42 : vector<512x128xf32>
        %cst_25 = arith.constant 0.000000e+00 : f32
        %44 = vector.broadcast %cst_25 : f32 to vector<512x128xf32>
        %45 = arith.maximumf %43, %44 : vector<512x128xf32>
        %46 = arith.truncf %45 : vector<512x128xf32> to vector<512x128xbf16>
        %c0_26 = arith.constant 0 : index
        %c0_27 = arith.constant 0 : index
        %47 = vector.load %arg6[%c0_26, %c0_27] : memref<512x128xbf16, #tpu.memory_space<vmem>>, vector<512x128xbf16>
        tpu.vector_store %arg6[%c0_26, %c0_27], %46 {strides = array<i32>} : memref<512x128xbf16, #tpu.memory_space<vmem>>, vector<512x128xbf16>,
      } else {
      }
    } else {
    }
    return
  }
  func.func @transform_0(%arg0: i32, %arg1: i32, %arg2: i32) -> (i32, i32) {
    %c0_i32 = arith.constant 0 : i32
    return %arg1, %arg2 : i32, i32
  }
  func.func @transform_1(%arg0: i32, %arg1: i32, %arg2: i32) -> (i32, i32) {
    %c0_i32 = arith.constant 0 : i32
    %c0_i32_0 = arith.constant 0 : i32
    %c0_i32_1 = arith.constant 0 : i32
    return %c0_i32, %c0_i32_0 : i32, i32
  }
  func.func @transform_2(%arg0: i32, %arg1: i32, %arg2: i32) -> (i32, i32) {
    %c0_i32 = arith.constant 0 : i32
    %c0_i32_0 = arith.constant 0 : i32
    %c0_i32_1 = arith.constant 0 : i32
    return %c0_i32, %c0_i32_0 : i32, i32
  }
  func.func @transform_3(%arg0: i32, %arg1: i32, %arg2: i32) -> (i32, i32) {
    %c0_i32 = arith.constant 0 : i32
    %c0_i32_0 = arith.constant 0 : i32
    return %arg1, %c0_i32 : i32, i32
  }
}

module attributes {stable_mosaic.version = 11 : i64} {
  func.func @_prop_bias_kernel(%arg0: i32, %arg1: i32, %arg2: i32, %arg3: memref<512x512xbf16, #tpu.memory_space<vmem>>, %arg4: memref<1024x128xbf16, #tpu.memory_space<vmem>>, %arg5: memref<1x128xf32, #tpu.memory_space<vmem>>, %arg6: memref<512x128xf32, #tpu.memory_space<vmem>>, %arg7: memref<2x1024x128xbf16, #tpu.memory_space<vmem>>, %arg8: memref<512x128xf32, #tpu.memory_space<vmem>>) attributes {dimension_semantics = [#tpu.dimension_semantics<arbitrary>, #tpu.dimension_semantics<arbitrary>, #tpu.dimension_semantics<arbitrary>], iteration_bounds = array<i64: 1, 2, 2>, scalar_prefetch = 0 : i64, scratch_operands = 2 : i64, tpu.core_type = #tpu.core_type<tc>, window_params = [{transform_indices = @transform_0, window_bounds = array<i64: 512, 512>}, {pipeline_mode = #tpu.pipeline_mode<synchronous>, transform_indices = @transform_1, window_bounds = array<i64: 1024, 128>}, {pipeline_mode = #tpu.pipeline_mode<synchronous>, transform_indices = @transform_2, window_bounds = array<i64: 1, 128>}, {transform_indices = @transform_3, window_bounds = array<i64: 512, 128>}]} {
    %c0_i32 = arith.constant 0 : i32
    %0 = arith.cmpi eq, %arg0, %c0_i32 : i32
    %c0_i32_0 = arith.constant 0 : i32
    %1 = arith.cmpi eq, %arg1, %c0_i32_0 : i32
    %2 = arith.andi %0, %1 : i1
    %c0_i32_1 = arith.constant 0 : i32
    %3 = arith.cmpi eq, %arg2, %c0_i32_1 : i32
    %4 = arith.andi %2, %3 : i1
    %5 = arith.extui %4 : i1 to i32
    %c0_i32_2 = arith.constant 0 : i32
    %6 = arith.cmpi ne, %5, %c0_i32_2 : i32
    scf.if %6 {
      %c0_17 = arith.constant 0 : index
      %c0_18 = arith.constant 0 : index
      %34 = vector.load %arg4[%c0_17, %c0_18] : memref<1024x128xbf16, #tpu.memory_space<vmem>>, vector<1024x128xbf16>
      %c0_19 = arith.constant 0 : index
      %c0_20 = arith.constant 0 : index
      %c0_21 = arith.constant 0 : index
      %35 = vector.load %arg7[%c0_19, %c0_20, %c0_21] : memref<2x1024x128xbf16, #tpu.memory_space<vmem>>, vector<1x1024x128xbf16>
      %36 = vector.shape_cast %35 : vector<1x1024x128xbf16> to vector<1024x128xbf16>
      %37 = vector.shape_cast %34 : vector<1024x128xbf16> to vector<1x1024x128xbf16>
      tpu.vector_store %arg7[%c0_19, %c0_20, %c0_21], %37 {strides = array<i32>} : memref<2x1024x128xbf16, #tpu.memory_space<vmem>>, vector<1x1024x128xbf16>,
    } else {
    }
    %c0_i32_3 = arith.constant 0 : i32
    %7 = arith.cmpi eq, %arg2, %c0_i32_3 : i32
    %8 = arith.extui %7 : i1 to i32
    %c0_i32_4 = arith.constant 0 : i32
    %9 = arith.cmpi ne, %8, %c0_i32_4 : i32
    scf.if %9 {
      %cst_17 = arith.constant 0.000000e+00 : f32
      %34 = vector.broadcast %cst_17 : f32 to vector<512x128xf32>
      %c0_18 = arith.constant 0 : index
      %c0_19 = arith.constant 0 : index
      %35 = vector.load %arg8[%c0_18, %c0_19] : memref<512x128xf32, #tpu.memory_space<vmem>>, vector<512x128xf32>
      tpu.vector_store %arg8[%c0_18, %c0_19], %34 {strides = array<i32>} : memref<512x128xf32, #tpu.memory_space<vmem>>, vector<512x128xf32>,
    } else {
    }
    %c2_i32 = arith.constant 2 : i32
    %c0_i32_5 = arith.constant 0 : i32
    %10 = arith.cmpi eq, %c2_i32, %c0_i32_5 : i32
    %c1_i32 = arith.constant 1 : i32
    %11 = arith.select %10, %c1_i32, %c2_i32 : i32
    %12 = arith.remsi %arg0, %11 : i32
    %c0_i32_6 = arith.constant 0 : i32
    %13 = arith.cmpi ne, %12, %c0_i32_6 : i32
    %c0_i32_7 = arith.constant 0 : i32
    %14 = arith.cmpi slt, %12, %c0_i32_7 : i32
    %c0_i32_8 = arith.constant 0 : i32
    %15 = arith.cmpi slt, %11, %c0_i32_8 : i32
    %16 = arith.xori %14, %15 : i1
    %17 = arith.andi %16, %13 : i1
    %18 = arith.addi %12, %11 : i32
    %19 = arith.select %17, %18, %12 : i32
    %c512_i32 = arith.constant 512 : i32
    %20 = arith.muli %arg2, %c512_i32 : i32
    %21 = tpu.assume_multiple %20, 128 : i32
    %c0 = arith.constant 0 : index
    %c0_9 = arith.constant 0 : index
    %22 = vector.load %arg8[%c0, %c0_9] : memref<512x128xf32, #tpu.memory_space<vmem>>, vector<512x128xf32>
    %c0_10 = arith.constant 0 : index
    %c0_11 = arith.constant 0 : index
    %23 = vector.load %arg3[%c0_10, %c0_11] : memref<512x512xbf16, #tpu.memory_space<vmem>>, vector<512x512xbf16>
    %24 = arith.index_cast %19 : i32 to index
    %25 = arith.index_cast %21 : i32 to index
    %c0_12 = arith.constant 0 : index
    %26 = vector.load %arg7[%24, %25, %c0_12] : memref<2x1024x128xbf16, #tpu.memory_space<vmem>>, vector<1x512x128xbf16>
    %27 = vector.shape_cast %26 : vector<1x512x128xbf16> to vector<512x128xbf16>
    %cst = arith.constant dense<0.000000e+00> : vector<512x128xf32>
    %28 = tpu.matmul %23, %27, %cst {dimension_numbers = #tpu.dot_dimension_numbers<[1], [0], [0], [1], [0, 0, 1, 1], [], []>} : vector<512x512xbf16>, vector<512x128xbf16>, vector<512x128xf32> -> vector<512x128xf32>
    %29 = arith.addf %22, %28 : vector<512x128xf32>
    %c0_13 = arith.constant 0 : index
    %c0_14 = arith.constant 0 : index
    %30 = vector.load %arg8[%c0_13, %c0_14] : memref<512x128xf32, #tpu.memory_space<vmem>>, vector<512x128xf32>
    tpu.vector_store %arg8[%c0_13, %c0_14], %29 {strides = array<i32>} : memref<512x128xf32, #tpu.memory_space<vmem>>, vector<512x128xf32>,
    %c1_i32_15 = arith.constant 1 : i32
    %31 = arith.cmpi eq, %arg2, %c1_i32_15 : i32
    %32 = arith.extui %31 : i1 to i32
    %c0_i32_16 = arith.constant 0 : i32
    %33 = arith.cmpi ne, %32, %c0_i32_16 : i32
    scf.if %33 {
      %c0_i32_17 = arith.constant 0 : i32
      %34 = arith.cmpi slt, %arg0, %c0_i32_17 : i32
      %35 = arith.extui %34 : i1 to i32
      %c0_i32_18 = arith.constant 0 : i32
      %36 = arith.cmpi ne, %35, %c0_i32_18 : i32
      scf.if %36 {
        %c1_i32_21 = arith.constant 1 : i32
        %40 = arith.addi %arg0, %c1_i32_21 : i32
        %c2_i32_22 = arith.constant 2 : i32
        %c0_i32_23 = arith.constant 0 : i32
        %41 = arith.cmpi eq, %c2_i32_22, %c0_i32_23 : i32
        %c1_i32_24 = arith.constant 1 : i32
        %42 = arith.select %41, %c1_i32_24, %c2_i32_22 : i32
        %43 = arith.remsi %40, %42 : i32
        %c0_i32_25 = arith.constant 0 : i32
        %44 = arith.cmpi ne, %43, %c0_i32_25 : i32
        %c0_i32_26 = arith.constant 0 : i32
        %45 = arith.cmpi slt, %43, %c0_i32_26 : i32
        %c0_i32_27 = arith.constant 0 : i32
        %46 = arith.cmpi slt, %42, %c0_i32_27 : i32
        %47 = arith.xori %45, %46 : i1
        %48 = arith.andi %47, %44 : i1
        %49 = arith.addi %43, %42 : i32
        %50 = arith.select %48, %49, %43 : i32
        %c512_i32_28 = arith.constant 512 : i32
        %51 = arith.muli %arg1, %c512_i32_28 : i32
        %52 = tpu.assume_multiple %51, 128 : i32
        %c0_29 = arith.constant 0 : index
        %c0_30 = arith.constant 0 : index
        %53 = vector.load %arg8[%c0_29, %c0_30] : memref<512x128xf32, #tpu.memory_space<vmem>>, vector<512x128xf32>
        %54 = arith.truncf %53 : vector<512x128xf32> to vector<512x128xbf16>
        %55 = arith.index_cast %50 : i32 to index
        %56 = arith.index_cast %52 : i32 to index
        %c0_31 = arith.constant 0 : index
        %57 = vector.load %arg7[%55, %56, %c0_31] : memref<2x1024x128xbf16, #tpu.memory_space<vmem>>, vector<1x512x128xbf16>
        %58 = vector.shape_cast %57 : vector<1x512x128xbf16> to vector<512x128xbf16>
        %59 = vector.shape_cast %54 : vector<512x128xbf16> to vector<1x512x128xbf16>
        tpu.vector_store %arg7[%55, %56, %c0_31], %59 {strides = array<i32>} : memref<2x1024x128xbf16, #tpu.memory_space<vmem>>, vector<1x512x128xbf16>,
      } else {
      }
      %c0_i32_19 = arith.constant 0 : i32
      %37 = arith.cmpi eq, %arg0, %c0_i32_19 : i32
      %38 = arith.extui %37 : i1 to i32
      %c0_i32_20 = arith.constant 0 : i32
      %39 = arith.cmpi ne, %38, %c0_i32_20 : i32
      scf.if %39 {
        %c0_21 = arith.constant 0 : index
        %c0_22 = arith.constant 0 : index
        %40 = vector.load %arg8[%c0_21, %c0_22] : memref<512x128xf32, #tpu.memory_space<vmem>>, vector<512x128xf32>
        %c0_23 = arith.constant 0 : index
        %c0_24 = arith.constant 0 : index
        %41 = vector.load %arg5[%c0_23, %c0_24] : memref<1x128xf32, #tpu.memory_space<vmem>>, vector<1x128xf32>
        %42 = vector.broadcast %41 : vector<1x128xf32> to vector<512x128xf32>
        %43 = arith.addf %40, %42 : vector<512x128xf32>
        %c0_25 = arith.constant 0 : index
        %c0_26 = arith.constant 0 : index
        %44 = vector.load %arg6[%c0_25, %c0_26] : memref<512x128xf32, #tpu.memory_space<vmem>>, vector<512x128xf32>
        tpu.vector_store %arg6[%c0_25, %c0_26], %43 {strides = array<i32>} : memref<512x128xf32, #tpu.memory_space<vmem>>, vector<512x128xf32>,
      } else {
      }
    } else {
    }
    return
  }
  func.func @transform_0(%arg0: i32, %arg1: i32, %arg2: i32) -> (i32, i32) {
    %c0_i32 = arith.constant 0 : i32
    return %arg1, %arg2 : i32, i32
  }
  func.func @transform_1(%arg0: i32, %arg1: i32, %arg2: i32) -> (i32, i32) {
    %c0_i32 = arith.constant 0 : i32
    %c0_i32_0 = arith.constant 0 : i32
    %c0_i32_1 = arith.constant 0 : i32
    return %c0_i32, %c0_i32_0 : i32, i32
  }
  func.func @transform_2(%arg0: i32, %arg1: i32, %arg2: i32) -> (i32, i32) {
    %c0_i32 = arith.constant 0 : i32
    %c0_i32_0 = arith.constant 0 : i32
    %c0_i32_1 = arith.constant 0 : i32
    return %c0_i32, %c0_i32_0 : i32, i32
  }
  func.func @transform_3(%arg0: i32, %arg1: i32, %arg2: i32) -> (i32, i32) {
    %c0_i32 = arith.constant 0 : i32
    %c0_i32_0 = arith.constant 0 : i32
    return %arg1, %c0_i32 : i32, i32
  }
}

</mosaic_0001>

<bundles_post_ra>
// kernel: sgc_forward.6
= control target key start
LH: loop header
LB: loop body
LE: loop exit
PB: predicated region body
PF: predicated region fallthrough
CT: control target
= control target key end

     0   :  { %s2184_s9 = smov 0   ;;  %s2186_s10 = smov 0   ;;  %s2316_s0 = inlined_call_operand.vmem [shape: bf16[1024,128], index: 0, kind: input, shape index: {}]   ;;  %s2317_s1 = inlined_call_operand.vmem [shape: bf16[128,128], index: 1, kind: input, shape index: {}]   ;;  %s2318_s2 = inlined_call_operand.vmem [shape: bf16[1024,128], index: 2, kind: output, shape index: {}]  }
   0x1   :  { %s2188_s11 = smov 0  }
   0x2 LB: > { %s31_s12 = sadd.s32 1, %s2163_s10  ;;  %p1579_p0 = scmp.ge.s32.totalorder %s2167_s11, 1  ;;  %s2167_s11 = sphi %s2188_s11, %s12_s11   ;;  %s2163_s10 = sphi %s2186_s10, %s2320_s10   ;;  %s2159_s9 = sphi %s2184_s9, %s2319_s9  }
   0x3   : > { %p33_p1 = scmp.ge.s32.totalorder %s31_s12, 2  ;;  %p155_p2 = scmp.lt.s32.totalorder %s2167_s11, 3 }
   0x5   : > { %s2322_s12 = smov (%p33_p1, %s31_s12), 0  ;;  %p156_p3 = pnand %p1579_p0, %p155_p2 }
   0x6   : > { %s1580_s15 = sshll.u32 (!%p156_p3), %s2159_s9, 6 }
   0x7   : > { %159 = sbr.rel (%p156_p3) target bundleno = 303 (0x12f), region = 28  ;;  %p192_p4 = scmp.lt.s32.totalorder (!%p156_p3), %s1580_s15, 127 }
   0xc   : > { %v2105_v0 = vld [vmem:[%s2317_s1 + $0x38] sm:$0xff]   ;;  %v2106_v1 = vld [vmem:[%s2317_s1 + $0x30] sm:$0xff]   ;;  %s2324_s15 = smov (!%p192_p4, %s1580_s15), 127  ;;  %v2107_v2 = vld [vmem:[%s2317_s1 + $0x28] sm:$0xff]  }
   0xd   : > { %1985 = vmatprep.subr.bf16.mxu0 %v2105_v0  ;;  %2065 = vmatprep.subr.bf16.mxu1 %v2105_v0  ;;  %s1581_s20 = sshll.u32 %s2324_s15, 2  ;;  %v2108_v3 = vld [vmem:[%s2317_s1 + $0x20] sm:$0xff]   ;;  %v2109_v6 = vld [vmem:[%s2317_s1 + $0x18] sm:$0xff]   ;;  %v2110_v7 = vld [vmem:[%s2317_s1 + $0x10] sm:$0xff]  }
   0xe   : > { %1986 = vmatpush3.bf16.msra.mxu0 %v2105_v0  ;;  %2073 = vmatpush3.bf16.msra.mxu1 %v2105_v0  ;;  %s2219_s23 = scalar_lea.vmem %s2316_s0, %s1581_s20  ;;  %v2111_v8 = vld [vmem:[%s2317_s1 + $0x8] sm:$0xff]   ;;  %v2112_v9 = vld [vmem:[%s2317_s1] sm:$0xff]   ;;  %s2273_s8 = scalar_lea.vmem %s2318_s2, %s1581_s20 }
   0xf   : > { %1987 = vmatprep.subr.bf16.mxu0 %v2106_v1  ;;  %2066 = vmatprep.subr.bf16.mxu1 %v2106_v1  ;;  %v2113_v4 = vld [vmem:[%s2219_s23] sm:$0xff]   ;;  %v2115_v10 = vld [vmem:[%s2219_s23 + $0x8] sm:$0xff]   ;;  %v2117_v12 = vld [vmem:[%s2219_s23 + $0x10] sm:$0xff]  }
  0x10   : > { %v2114_v5 = vld [vmem:[%s2219_s23 + $0x80] sm:$0xff]   ;;  %2001 = vmatprep.mubr.bf16.mxu0 %v2113_v4  ;;  %v2116_v11 = vld [vmem:[%s2219_s23 + $0x88] sm:$0xff]   ;;  %v2118_v13 = vld [vmem:[%s2219_s23 + $0x90] sm:$0xff]  }
  0x11   : > { %2033 = vmatprep.mubr.bf16.mxu1 %v2114_v5  ;;  %v2119_v14 = vld [vmem:[%s2219_s23 + $0x18] sm:$0xff]   ;;  %v2121_v16 = vld [vmem:[%s2219_s23 + $0x20] sm:$0xff]   ;;  %v2123_v18 = vld [vmem:[%s2219_s23 + $0x28] sm:$0xff]  }
  0x12   : > { %1988 = vmatpush3.bf16.msra.mxu0 %v2106_v1  ;;  %2074 = vmatpush3.bf16.msra.mxu1 %v2106_v1  ;;  %v2120_v15 = vld [vmem:[%s2219_s23 + $0x98] sm:$0xff]   ;;  %v2122_v17 = vld [vmem:[%s2219_s23 + $0xa0] sm:$0xff]   ;;  %v2124_v19 = vld [vmem:[%s2219_s23 + $0xa8] sm:$0xff]  }
  0x13   : > { %1989 = vmatprep.subr.bf16.mxu0 %v2107_v2  ;;  %2067 = vmatprep.subr.bf16.mxu1 %v2107_v2  ;;  %v2125_v20 = vld [vmem:[%s2219_s23 + $0x30] sm:$0xff]   ;;  %v2127_v22 = vld [vmem:[%s2219_s23 + $0x38] sm:$0xff]   ;;  %v2129_v24 = vld [vmem:[%s2219_s23 + $0x40] sm:$0xff]  }
  0x14   : > { %v2126_v21 = vld [vmem:[%s2219_s23 + $0xb0] sm:$0xff]   ;;  %v2128_v23 = vld [vmem:[%s2219_s23 + $0xb8] sm:$0xff]   ;;  %v2130_v25 = vld [vmem:[%s2219_s23 + $0xc0] sm:$0xff]  }
  0x15   : > { %v2131_v26 = vld [vmem:[%s2219_s23 + $0x48] sm:$0xff]   ;;  %v2133_v28 = vld [vmem:[%s2219_s23 + $0x50] sm:$0xff]   ;;  %v2135_v30 = vld [vmem:[%s2219_s23 + $0x58] sm:$0xff]  }
  0x16   : > { %1990 = vmatpush3.bf16.msra.mxu0 %v2107_v2  ;;  %2075 = vmatpush3.bf16.msra.mxu1 %v2107_v2  ;;  %v2132_v27 = vld [vmem:[%s2219_s23 + $0xc8] sm:$0xff]   ;;  %v2134_v29 = vld [vmem:[%s2219_s23 + $0xd0] sm:$0xff]   ;;  %v2136_v31 = vld [vmem:[%s2219_s23 + $0xd8] sm:$0xff]  }
  0x17   : > { %1991 = vmatprep.subr.bf16.mxu0 %v2108_v3  ;;  %2068 = vmatprep.subr.bf16.mxu1 %v2108_v3  ;;  %v2137_v32 = vld [vmem:[%s2219_s23 + $0x60] sm:$0xff]   ;;  %v2139_v34 = vld [vmem:[%s2219_s23 + $0x68] sm:$0xff]   ;;  %v2141_v36 = vld [vmem:[%s2219_s23 + $0x70] sm:$0xff]  }
  0x18   : > { %v2138_v33 = vld [vmem:[%s2219_s23 + $0xe0] sm:$0xff]   ;;  %v2140_v35 = vld [vmem:[%s2219_s23 + $0xe8] sm:$0xff]   ;;  %v2142_v37 = vld [vmem:[%s2219_s23 + $0xf0] sm:$0xff]  }
  0x19   : > { %v2143_v38 = vld [vmem:[%s2219_s23 + $0x78] sm:$0xff]  }
  0x1a   : > { %1992 = vmatpush3.bf16.msra.mxu0 %v2108_v3  ;;  %2076 = vmatpush3.bf16.msra.mxu1 %v2108_v3  ;;  %v2144_v39 = vld [vmem:[%s2219_s23 + $0xf8] sm:$0xff]  }
  0x1b   : > { %1993 = vmatprep.subr.bf16.mxu0 %v2109_v6  ;;  %2069 = vmatprep.subr.bf16.mxu1 %v2109_v6 }
  0x1e   : > { %1994 = vmatpush3.bf16.msra.mxu0 %v2109_v6  ;;  %2077 = vmatpush3.bf16.msra.mxu1 %v2109_v6 }
  0x1f   : > { %1995 = vmatprep.subr.bf16.mxu0 %v2110_v7  ;;  %2070 = vmatprep.subr.bf16.mxu1 %v2110_v7 }
  0x22   : > { %1996 = vmatpush3.bf16.msra.mxu0 %v2110_v7  ;;  %2078 = vmatpush3.bf16.msra.mxu1 %v2110_v7 }
  0x23   : > { %1997 = vmatprep.subr.bf16.mxu0 %v2111_v8  ;;  %2071 = vmatprep.subr.bf16.mxu1 %v2111_v8 }
  0x26   : > { %1998 = vmatpush3.bf16.msra.mxu0 %v2111_v8  ;;  %2079 = vmatpush3.bf16.msra.mxu1 %v2111_v8 }
  0x27   : > { %1999 = vmatprep.subr.bf16.mxu0 %v2112_v9  ;;  %2072 = vmatprep.subr.bf16.mxu1 %v2112_v9 }
  0x2a   : > { %2000 = vmatpush3.bf16.msra.mxu0 %v2112_v9  ;;  %2080 = vmatpush3.bf16.msra.mxu1 %v2112_v9 }
  0x2d   : > { %2002 = vmatmul.mubr.bf16.vlgmr.msra.gmra.mxu0 %v2115_v10  ;;  %2034 = vmatmul.mubr.bf16.vlgmr.msra.gmra.mxu1 %v2116_v11 }
  0x2e   : > { %2005 = vmatprep.mubr.bf16.mxu0 %v2117_v12  ;;  %2037 = vmatprep.mubr.bf16.mxu1 %v2118_v13 }
  0x35   : > { %2006 = vmatmul.mubr.bf16.gmra.mxu0 %v2119_v14  ;;  %2038 = vmatmul.mubr.bf16.gmra.mxu1 %v2120_v15 }
  0x36   : > { %2009 = vmatprep.mubr.bf16.mxu0 %v2121_v16  ;;  %2041 = vmatprep.mubr.bf16.mxu1 %v2122_v17 }
  0x3d   : > { %2010 = vmatmul.mubr.bf16.gmra.mxu0 %v2123_v18  ;;  %2042 = vmatmul.mubr.bf16.gmra.mxu1 %v2124_v19 }
  0x3e   : > { %2013 = vmatprep.mubr.bf16.mxu0 %v2125_v20  ;;  %2045 = vmatprep.mubr.bf16.mxu1 %v2126_v21 }
  0x45   : > { %2014 = vmatmul.mubr.bf16.gmra.mxu0 %v2127_v22  ;;  %2046 = vmatmul.mubr.bf16.gmra.mxu1 %v2128_v23 }
  0x46   : > { %2017 = vmatprep.mubr.bf16.mxu0 %v2129_v24  ;;  %2049 = vmatprep.mubr.bf16.mxu1 %v2130_v25 }
  0x4d   : > { %2018 = vmatmul.mubr.bf16.gmra.mxu0 %v2131_v26  ;;  %2050 = vmatmul.mubr.bf16.gmra.mxu1 %v2132_v27 }
  0x4e   : > { %2021 = vmatprep.mubr.bf16.mxu0 %v2133_v28  ;;  %2053 = vmatprep.mubr.bf16.mxu1 %v2134_v29 }
  0x55   : > { %2022 = vmatmul.mubr.bf16.gmra.mxu0 %v2135_v30  ;;  %2054 = vmatmul.mubr.bf16.gmra.mxu1 %v2136_v31 }
  0x56   : > { %2025 = vmatprep.mubr.bf16.mxu0 %v2137_v32  ;;  %2057 = vmatprep.mubr.bf16.mxu1 %v2138_v33 }
  0x5d   : > { %2026 = vmatmul.mubr.bf16.gmra.mxu0 %v2139_v34  ;;  %2058 = vmatmul.mubr.bf16.gmra.mxu1 %v2140_v35 }
  0x5e   : > { %2029 = vmatprep.mubr.bf16.mxu0 %v2141_v36  ;;  %2061 = vmatprep.mubr.bf16.mxu1 %v2142_v37 }
  0x65   : > { %2030 = vmatmul.mubr.bf16.gmra.mxu0 %v2143_v38  ;;  %2062 = vmatmul.mubr.bf16.gmra.mxu1 %v2144_v39 }
  0xed   : > { %v2003_v40 = vpop.f32.mrf.mxu0  ;;  %v2035_v41 = vpop.f32.mrf.mxu1 }
  0xef   : > { %v705_v42 = vpop.f32.mrf.mxu0  ;;  %v833_v43 = vpop.f32.mrf.mxu1 }
  0xf1   : > { %v2004_v44 = vpop.f32.mrf.mxu0  ;;  %v2036_v45 = vpop.f32.mrf.mxu1 }
  0xf2   : > { %v1762_v46 = vpack.c.bf16 %v2004_v44, %v2003_v40  ;;  %v1842_v47 = vpack.c.bf16 %v2036_v45, %v2035_v41 }
  0xf3   : > { %v708_v48 = vpop.f32.mrf.mxu0  ;;  %v836_v49 = vpop.f32.mrf.mxu1 }
  0xf4   : > { %1914 = vst [vmem:[%s2273_s8 + $0x8] sm:$0xff] %v1762_v46   ;;  %1930 = vst [vmem:[%s2273_s8 + $0x88] sm:$0xff] %v1842_v47   ;;  %v1757_v50 = vpack.c.bf16 %v708_v48, %v705_v42  ;;  %v1837_v51 = vpack.c.bf16 %v836_v49, %v833_v43 }
  0xf5   : > { %v2007_v52 = vpop.f32.mrf.mxu0  ;;  %v2039_v53 = vpop.f32.mrf.mxu1 }
  0xf6   : > { %1758 = vst [vmem:[%s2273_s8] sm:$0xff] %v1757_v50   ;;  %1929 = vst [vmem:[%s2273_s8 + $0x80] sm:$0xff] %v1837_v51  }
  0xf7   : > { %v721_v54 = vpop.f32.mrf.mxu0  ;;  %v849_v55 = vpop.f32.mrf.mxu1 }
  0xf9   : > { %v2008_v56 = vpop.f32.mrf.mxu0  ;;  %v2040_v57 = vpop.f32.mrf.mxu1 }
  0xfa   : > { %v1772_v58 = vpack.c.bf16 %v2008_v56, %v2007_v52  ;;  %v1852_v59 = vpack.c.bf16 %v2040_v57, %v2039_v53 }
  0xfb   : > { %v724_v60 = vpop.f32.mrf.mxu0  ;;  %v852_v61 = vpop.f32.mrf.mxu1 }
  0xfc   : > { %1916 = vst [vmem:[%s2273_s8 + $0x18] sm:$0xff] %v1772_v58   ;;  %1932 = vst [vmem:[%s2273_s8 + $0x98] sm:$0xff] %v1852_v59   ;;  %v1767_v62 = vpack.c.bf16 %v724_v60, %v721_v54  ;;  %v1847_v63 = vpack.c.bf16 %v852_v61, %v849_v55 }
  0xfd   : > { %v2011_v0 = vpop.f32.mrf.mxu0  ;;  %v2043_v1 = vpop.f32.mrf.mxu1 }
  0xfe   : > { %1915 = vst [vmem:[%s2273_s8 + $0x10] sm:$0xff] %v1767_v62   ;;  %1931 = vst [vmem:[%s2273_s8 + $0x90] sm:$0xff] %v1847_v63  }
  0xff   : > { %v737_v2 = vpop.f32.mrf.mxu0  ;;  %v865_v3 = vpop.f32.mrf.mxu1 }
 0x101   : > { %v2012_v4 = vpop.f32.mrf.mxu0  ;;  %v2044_v5 = vpop.f32.mrf.mxu1 }
 0x102   : > { %v1782_v6 = vpack.c.bf16 %v2012_v4, %v2011_v0  ;;  %v1862_v7 = vpack.c.bf16 %v2044_v5, %v2043_v1 }
 0x103   : > { %v740_v8 = vpop.f32.mrf.mxu0  ;;  %v868_v9 = vpop.f32.mrf.mxu1 }
 0x104   : > { %1918 = vst [vmem:[%s2273_s8 + $0x28] sm:$0xff] %v1782_v6   ;;  %1934 = vst [vmem:[%s2273_s8 + $0xa8] sm:$0xff] %v1862_v7   ;;  %v1777_v10 = vpack.c.bf16 %v740_v8, %v737_v2  ;;  %v1857_v11 = vpack.c.bf16 %v868_v9, %v865_v3 }
 0x105   : > { %v2015_v12 = vpop.f32.mrf.mxu0  ;;  %v2047_v13 = vpop.f32.mrf.mxu1 }
 0x106   : > { %1917 = vst [vmem:[%s2273_s8 + $0x20] sm:$0xff] %v1777_v10   ;;  %1933 = vst [vmem:[%s2273_s8 + $0xa0] sm:$0xff] %v1857_v11  }
 0x107   : > { %v753_v14 = vpop.f32.mrf.mxu0  ;;  %v881_v15 = vpop.f32.mrf.mxu1 }
 0x109   : > { %v2016_v16 = vpop.f32.mrf.mxu0  ;;  %v2048_v17 = vpop.f32.mrf.mxu1 }
 0x10a   : > { %v1792_v18 = vpack.c.bf16 %v2016_v16, %v2015_v12  ;;  %v1872_v19 = vpack.c.bf16 %v2048_v17, %v2047_v13 }
 0x10b   : > { %v756_v20 = vpop.f32.mrf.mxu0  ;;  %v884_v21 = vpop.f32.mrf.mxu1 }
 0x10c   : > { %1920 = vst [vmem:[%s2273_s8 + $0x38] sm:$0xff] %v1792_v18   ;;  %1936 = vst [vmem:[%s2273_s8 + $0xb8] sm:$0xff] %v1872_v19   ;;  %v1787_v22 = vpack.c.bf16 %v756_v20, %v753_v14  ;;  %v1867_v23 = vpack.c.bf16 %v884_v21, %v881_v15 }
 0x10d   : > { %v2019_v24 = vpop.f32.mrf.mxu0  ;;  %v2051_v25 = vpop.f32.mrf.mxu1 }
 0x10e   : > { %1919 = vst [vmem:[%s2273_s8 + $0x30] sm:$0xff] %v1787_v22   ;;  %1935 = vst [vmem:[%s2273_s8 + $0xb0] sm:$0xff] %v1867_v23  }
 0x10f   : > { %v769_v26 = vpop.f32.mrf.mxu0  ;;  %v897_v27 = vpop.f32.mrf.mxu1 }
 0x111   : > { %v2020_v28 = vpop.f32.mrf.mxu0  ;;  %v2052_v29 = vpop.f32.mrf.mxu1 }
 0x112   : > { %v1802_v30 = vpack.c.bf16 %v2020_v28, %v2019_v24  ;;  %v1882_v31 = vpack.c.bf16 %v2052_v29, %v2051_v25 }
 0x113   : > { %v772_v32 = vpop.f32.mrf.mxu0  ;;  %v900_v33 = vpop.f32.mrf.mxu1 }
 0x114   : > { %1922 = vst [vmem:[%s2273_s8 + $0x48] sm:$0xff] %v1802_v30   ;;  %1938 = vst [vmem:[%s2273_s8 + $0xc8] sm:$0xff] %v1882_v31   ;;  %v1797_v34 = vpack.c.bf16 %v772_v32, %v769_v26  ;;  %v1877_v35 = vpack.c.bf16 %v900_v33, %v897_v27 }
 0x115   : > { %v2023_v36 = vpop.f32.mrf.mxu0  ;;  %v2055_v37 = vpop.f32.mrf.mxu1 }
 0x116   : > { %1921 = vst [vmem:[%s2273_s8 + $0x40] sm:$0xff] %v1797_v34   ;;  %1937 = vst [vmem:[%s2273_s8 + $0xc0] sm:$0xff] %v1877_v35  }
 0x117   : > { %v785_v38 = vpop.f32.mrf.mxu0  ;;  %v913_v39 = vpop.f32.mrf.mxu1 }
 0x119   : > { %v2024_v40 = vpop.f32.mrf.mxu0  ;;  %v2056_v41 = vpop.f32.mrf.mxu1 }
 0x11a   : > { %v1812_v42 = vpack.c.bf16 %v2024_v40, %v2023_v36  ;;  %v1892_v43 = vpack.c.bf16 %v2056_v41, %v2055_v37 }
 0x11b   : > { %v788_v44 = vpop.f32.mrf.mxu0  ;;  %v916_v45 = vpop.f32.mrf.mxu1 }
 0x11c   : > { %1924 = vst [vmem:[%s2273_s8 + $0x58] sm:$0xff] %v1812_v42   ;;  %1940 = vst [vmem:[%s2273_s8 + $0xd8] sm:$0xff] %v1892_v43   ;;  %v1807_v46 = vpack.c.bf16 %v788_v44, %v785_v38  ;;  %v1887_v47 = vpack.c.bf16 %v916_v45, %v913_v39 }
 0x11d   : > { %v2027_v48 = vpop.f32.mrf.mxu0  ;;  %v2059_v49 = vpop.f32.mrf.mxu1 }
 0x11e   : > { %1923 = vst [vmem:[%s2273_s8 + $0x50] sm:$0xff] %v1807_v46   ;;  %1939 = vst [vmem:[%s2273_s8 + $0xd0] sm:$0xff] %v1887_v47  }
 0x11f   : > { %v801_v50 = vpop.f32.mrf.mxu0  ;;  %v929_v51 = vpop.f32.mrf.mxu1 }
 0x121   : > { %v2028_v52 = vpop.f32.mrf.mxu0  ;;  %v2060_v53 = vpop.f32.mrf.mxu1 }
 0x122   : > { %v1822_v54 = vpack.c.bf16 %v2028_v52, %v2027_v48  ;;  %v1902_v55 = vpack.c.bf16 %v2060_v53, %v2059_v49 }
 0x123   : > { %v804_v56 = vpop.f32.mrf.mxu0  ;;  %v932_v57 = vpop.f32.mrf.mxu1 }
 0x124   : > { %1926 = vst [vmem:[%s2273_s8 + $0x68] sm:$0xff] %v1822_v54   ;;  %1942 = vst [vmem:[%s2273_s8 + $0xe8] sm:$0xff] %v1902_v55   ;;  %v1817_v58 = vpack.c.bf16 %v804_v56, %v801_v50  ;;  %v1897_v59 = vpack.c.bf16 %v932_v57, %v929_v51 }
 0x125   : > { %v2031_v60 = vpop.f32.mrf.mxu0  ;;  %v2063_v61 = vpop.f32.mrf.mxu1 }
 0x126   : > { %1925 = vst [vmem:[%s2273_s8 + $0x60] sm:$0xff] %v1817_v58   ;;  %1941 = vst [vmem:[%s2273_s8 + $0xe0] sm:$0xff] %v1897_v59  }
 0x127   : > { %v817_v62 = vpop.f32.mrf.mxu0  ;;  %v945_v63 = vpop.f32.mrf.mxu1 }
 0x129   : > { %v2032_v0 = vpop.f32.mrf.mxu0  ;;  %v2064_v1 = vpop.f32.mrf.mxu1 }
 0x12a   : > { %v1832_v2 = vpack.c.bf16 %v2032_v0, %v2031_v60  ;;  %v1912_v3 = vpack.c.bf16 %v2064_v1, %v2063_v61 }
 0x12b   : > { %v820_v4 = vpop.f32.mrf.mxu0  ;;  %v948_v5 = vpop.f32.mrf.mxu1 }
 0x12c   : > { %1928 = vst [vmem:[%s2273_s8 + $0x78] sm:$0xff] %v1832_v2   ;;  %1944 = vst [vmem:[%s2273_s8 + $0xf8] sm:$0xff] %v1912_v3   ;;  %v1827_v6 = vpack.c.bf16 %v820_v4, %v817_v62  ;;  %v1907_v7 = vpack.c.bf16 %v948_v5, %v945_v63 }
 0x12e   : > { %1927 = vst [vmem:[%s2273_s8 + $0x70] sm:$0xff] %v1827_v6   ;;  %1943 = vst [vmem:[%s2273_s8 + $0xf0] sm:$0xff] %v1907_v7  }
 0x12f PF: > { %s12_s11 = sadd.s32 1, %s2167_s11   ;;  %s2319_s9 = smov %s2163_s10 }
 0x130   : > { %p9_p5 = scmp.ge.s32.totalorder %s12_s11, 4   ;;  %s2320_s10 = smov %s2322_s12 }
 0x132   :  { %11 = sbr.rel (!%p9_p5) target bundleno = 2 (0x2), region = 69 }

// kernel: sgc_forward.7
= control target key start
LH: loop header
LB: loop body
LE: loop exit
PB: predicated region body
PF: predicated region fallthrough
CT: control target
= control target key end

     0   :  { %s4635_s12 = smov 0   ;;  %s4637_s13 = smov 0   ;;  %s5543_s0 = inlined_call_operand.vmem [shape: bf16[1024,1024], index: 0, kind: input, shape index: {}]   ;;  %s5544_s1 = inlined_call_operand.vmem [shape: bf16[1024,128], index: 1, kind: input, shape index: {}]   ;;  %s5545_s2 = inlined_call_operand.vmem [shape: f32[1,128], index: 2, kind: input, shape index: {}]   ;;  %s5546_s3 = inlined_call_operand.vmem [shape: bf16[1024,128], index: 3, kind: output, shape index: {}]  }
   0x1   :  { %s4639_s14 = smov 0   ;;  %s4641_s15 = smov 0  }
   0x2   :  { %s4643_s16 = smov 0   ;;  %s4645_s17 = smov 0  }
   0x3   :  { %s4647_s18 = smov 0  }
   0x4 LB: > { %s25_s19 = sadd.s32 1, %s4603_s16  ;;  %s28_s20 = sadd.s32 1, %s4607_s17  ;;  %s4611_s18 = sphi %s4647_s18, %s13_s18   ;;  %s4607_s17 = sphi %s4645_s17, %s5552_s17   ;;  %s4603_s16 = sphi %s4643_s16, %s5551_s16   ;;  %s4599_s15 = sphi %s4641_s15, %s5550_s15   ;;  %s4595_s14 = sphi %s4639_s14, %s5549_s14   ;;  %s4591_s13 = sphi %s4637_s13, %s5548_s13   ;;  %s4587_s12 = sphi %s4635_s12, %s5547_s12  }
   0x5   : > { %p26_p0 = scmp.ge.s32.totalorder %s25_s19, 2  ;;  %p48_p1 = scmp.ne.s32.totalorder %s4591_s13, %s4587_s12 }
   0x6   : > { %p49_p2 = scmp.eq.s32.totalorder %s4611_s18, 0  ;;  %s41_s24 = sadd.s32 1, %s4591_s13 }
   0x7   : > { %s5554_s19 = smov (%p26_p0, %s25_s19), 0  ;;  %s5556_s20 = smov (!%p26_p0, %s28_s20), %s4607_s17 }
   0x8   : > { %p50_p3 = por %p49_p2, %p48_p1  ;;  %p30_p4 = scmp.ge.s32.totalorder %s5556_s20, 2 }
   0x9   : > { %s37_s21 = ssub.s32 %s4603_s16, %s5554_s19  ;;  %p3643_p6 = scmp.ge.s32.totalorder %s4611_s18, 4 }
   0xa   : > { %s5558_s20 = smov (%p30_p4, %s5556_s20), 0 }
   0xb   : > { %s36_s22 = ssub.s32 %s4607_s17, %s5558_s20  ;;  %148 = sbr.rel (%p3643_p6) target bundleno = 87 (0x57), region = 24 }
   0xc   : > { %s38_s23 = sor.u32 %s37_s21, %s36_s22 }
   0xd   : > { %p39_p5 = scmp.eq.s32.totalorder %s38_s23, 0 }
   0xf   : > { %s4686_s25 = scalar_select %p39_p5, %s4591_s13, %s41_s24  }
  0x10   : > { %151 = sbr.rel (!%p50_p3) target bundleno = 87 (0x57), region = 28  ;;  %s153_s26 = sand.u32 (%p50_p3), 1, %s4591_s13  }
  0x11   : > { %s3646_s27 = sshll.u32 (%p50_p3), %s4603_s16, 2  ;;  %s3644_s28 = sshll.u32 (%p50_p3), %s153_s26, 10 }
  0x12   : > { %s3951_s29 = sshll.u32 (%p50_p3), %s4607_s17, 9  ;;  %s4700_s8 = scalar_lea.vmem (%p50_p3), [#allocation4], %s3644_s28 }
  0x13   : > { %s159_s30 = sadd.s32 (%p50_p3), %s3951_s29, %s3646_s27 }
  0x14   : > { %s3648_s4 = sshll.u32 (%p50_p3), %s159_s30, 2 }
  0x15   : > { %s4695_s7 = scalar_lea.vmem %s5543_s0, %s3648_s4 }
  0x16   : > { %v174_v0 = vld [vmem:[%s4695_s7] sm:$0xff]  ;;  %v176_v1 = vld [vmem:[%s4695_s7 + $0x8] sm:$0xff] }
  0x17   : > { %v178_v2 = vld [vmem:[%s4695_s7 + $0x20] sm:$0xff]  ;;  %175 = vst [vmem:[%s4700_s8] sm:$0xff] %v174_v0  ;;  %177 = vst [vmem:[%s4700_s8 + $0x8] sm:$0xff] %v176_v1  ;;  %v180_v3 = vld [vmem:[%s4695_s7 + $0x28] sm:$0xff] }
  0x18   : > { %179 = vst [vmem:[%s4700_s8 + $0x10] sm:$0xff] %v178_v2  ;;  %v182_v4 = vld [vmem:[%s4695_s7 + $0x40] sm:$0xff]  ;;  %v184_v5 = vld [vmem:[%s4695_s7 + $0x48] sm:$0xff]  ;;  %181 = vst [vmem:[%s4700_s8 + $0x18] sm:$0xff] %v180_v3 }
  0x19   : > { %183 = vst [vmem:[%s4700_s8 + $0x20] sm:$0xff] %v182_v4  ;;  %185 = vst [vmem:[%s4700_s8 + $0x28] sm:$0xff] %v184_v5  ;;  %v186_v6 = vld [vmem:[%s4695_s7 + $0x60] sm:$0xff]  ;;  %v188_v7 = vld [vmem:[%s4695_s7 + $0x68] sm:$0xff] }
  0x1a   : > { %v190_v8 = vld [vmem:[%s4695_s7 + $0x80] sm:$0xff]  ;;  %187 = vst [vmem:[%s4700_s8 + $0x30] sm:$0xff] %v186_v6  ;;  %189 = vst [vmem:[%s4700_s8 + $0x38] sm:$0xff] %v188_v7  ;;  %v192_v9 = vld [vmem:[%s4695_s7 + $0x88] sm:$0xff] }
  0x1b   : > { %191 = vst [vmem:[%s4700_s8 + $0x40] sm:$0xff] %v190_v8  ;;  %v194_v10 = vld [vmem:[%s4695_s7 + $0xa0] sm:$0xff]  ;;  %v196_v11 = vld [vmem:[%s4695_s7 + $0xa8] sm:$0xff]  ;;  %193 = vst [vmem:[%s4700_s8 + $0x48] sm:$0xff] %v192_v9 }
  0x1c   : > { %195 = vst [vmem:[%s4700_s8 + $0x50] sm:$0xff] %v194_v10  ;;  %197 = vst [vmem:[%s4700_s8 + $0x58] sm:$0xff] %v196_v11  ;;  %v198_v12 = vld [vmem:[%s4695_s7 + $0xc0] sm:$0xff]  ;;  %v200_v13 = vld [vmem:[%s4695_s7 + $0xc8] sm:$0xff] }
  0x1d   : > { %v202_v14 = vld [vmem:[%s4695_s7 + $0xe0] sm:$0xff]  ;;  %199 = vst [vmem:[%s4700_s8 + $0x60] sm:$0xff] %v198_v12  ;;  %201 = vst [vmem:[%s4700_s8 + $0x68] sm:$0xff] %v200_v13  ;;  %v204_v15 = vld [vmem:[%s4695_s7 + $0xe8] sm:$0xff] }
  0x1e   : > { %203 = vst [vmem:[%s4700_s8 + $0x70] sm:$0xff] %v202_v14  ;;  %v206_v16 = vld [vmem:[%s4695_s7 + $0x100] sm:$0xff]  ;;  %v208_v17 = vld [vmem:[%s4695_s7 + $0x108] sm:$0xff]  ;;  %205 = vst [vmem:[%s4700_s8 + $0x78] sm:$0xff] %v204_v15 }
  0x1f   : > { %207 = vst [vmem:[%s4700_s8 + $0x80] sm:$0xff] %v206_v16  ;;  %209 = vst [vmem:[%s4700_s8 + $0x88] sm:$0xff] %v208_v17  ;;  %v210_v18 = vld [vmem:[%s4695_s7 + $0x120] sm:$0xff]  ;;  %v212_v19 = vld [vmem:[%s4695_s7 + $0x128] sm:$0xff] }
  0x20   : > { %v214_v20 = vld [vmem:[%s4695_s7 + $0x140] sm:$0xff]  ;;  %211 = vst [vmem:[%s4700_s8 + $0x90] sm:$0xff] %v210_v18  ;;  %213 = vst [vmem:[%s4700_s8 + $0x98] sm:$0xff] %v212_v19  ;;  %v216_v21 = vld [vmem:[%s4695_s7 + $0x148] sm:$0xff] }
  0x21   : > { %215 = vst [vmem:[%s4700_s8 + $0xa0] sm:$0xff] %v214_v20  ;;  %v218_v22 = vld [vmem:[%s4695_s7 + $0x160] sm:$0xff]  ;;  %v220_v23 = vld [vmem:[%s4695_s7 + $0x168] sm:$0xff]  ;;  %217 = vst [vmem:[%s4700_s8 + $0xa8] sm:$0xff] %v216_v21 }
  0x22   : > { %219 = vst [vmem:[%s4700_s8 + $0xb0] sm:$0xff] %v218_v22  ;;  %221 = vst [vmem:[%s4700_s8 + $0xb8] sm:$0xff] %v220_v23  ;;  %v222_v24 = vld [vmem:[%s4695_s7 + $0x180] sm:$0xff]  ;;  %v224_v25 = vld [vmem:[%s4695_s7 + $0x188] sm:$0xff] }
  0x23   : > { %v226_v26 = vld [vmem:[%s4695_s7 + $0x1a0] sm:$0xff]  ;;  %223 = vst [vmem:[%s4700_s8 + $0xc0] sm:$0xff] %v222_v24  ;;  %225 = vst [vmem:[%s4700_s8 + $0xc8] sm:$0xff] %v224_v25  ;;  %v228_v27 = vld [vmem:[%s4695_s7 + $0x1a8] sm:$0xff] }
  0x24   : > { %227 = vst [vmem:[%s4700_s8 + $0xd0] sm:$0xff] %v226_v26  ;;  %v230_v28 = vld [vmem:[%s4695_s7 + $0x1c0] sm:$0xff]  ;;  %v232_v29 = vld [vmem:[%s4695_s7 + $0x1c8] sm:$0xff]  ;;  %229 = vst [vmem:[%s4700_s8 + $0xd8] sm:$0xff] %v228_v27 }
  0x25   : > { %231 = vst [vmem:[%s4700_s8 + $0xe0] sm:$0xff] %v230_v28  ;;  %233 = vst [vmem:[%s4700_s8 + $0xe8] sm:$0xff] %v232_v29  ;;  %v234_v30 = vld [vmem:[%s4695_s7 + $0x1e0] sm:$0xff]  ;;  %v236_v31 = vld [vmem:[%s4695_s7 + $0x1e8] sm:$0xff] }
  0x26   : > { %v238_v32 = vld [vmem:[%s4695_s7 + $0x200] sm:$0xff]  ;;  %235 = vst [vmem:[%s4700_s8 + $0xf0] sm:$0xff] %v234_v30  ;;  %237 = vst [vmem:[%s4700_s8 + $0xf8] sm:$0xff] %v236_v31  ;;  %v240_v33 = vld [vmem:[%s4695_s7 + $0x208] sm:$0xff] }
  0x27   : > { %239 = vst [vmem:[%s4700_s8 + $0x100] sm:$0xff] %v238_v32  ;;  %v242_v34 = vld [vmem:[%s4695_s7 + $0x220] sm:$0xff]  ;;  %v244_v35 = vld [vmem:[%s4695_s7 + $0x228] sm:$0xff]  ;;  %241 = vst [vmem:[%s4700_s8 + $0x108] sm:$0xff] %v240_v33 }
  0x28   : > { %243 = vst [vmem:[%s4700_s8 + $0x110] sm:$0xff] %v242_v34  ;;  %245 = vst [vmem:[%s4700_s8 + $0x118] sm:$0xff] %v244_v35  ;;  %v246_v36 = vld [vmem:[%s4695_s7 + $0x240] sm:$0xff]  ;;  %v248_v37 = vld [vmem:[%s4695_s7 + $0x248] sm:$0xff] }
  0x29   : > { %v250_v38 = vld [vmem:[%s4695_s7 + $0x260] sm:$0xff]  ;;  %247 = vst [vmem:[%s4700_s8 + $0x120] sm:$0xff] %v246_v36  ;;  %249 = vst [vmem:[%s4700_s8 + $0x128] sm:$0xff] %v248_v37  ;;  %v252_v39 = vld [vmem:[%s4695_s7 + $0x268] sm:$0xff] }
  0x2a   : > { %251 = vst [vmem:[%s4700_s8 + $0x130] sm:$0xff] %v250_v38  ;;  %v254_v40 = vld [vmem:[%s4695_s7 + $0x280] sm:$0xff]  ;;  %v256_v41 = vld [vmem:[%s4695_s7 + $0x288] sm:$0xff]  ;;  %253 = vst [vmem:[%s4700_s8 + $0x138] sm:$0xff] %v252_v39 }
  0x2b   : > { %255 = vst [vmem:[%s4700_s8 + $0x140] sm:$0xff] %v254_v40  ;;  %257 = vst [vmem:[%s4700_s8 + $0x148] sm:$0xff] %v256_v41  ;;  %v258_v42 = vld [vmem:[%s4695_s7 + $0x2a0] sm:$0xff]  ;;  %v260_v43 = vld [vmem:[%s4695_s7 + $0x2a8] sm:$0xff] }
  0x2c   : > { %v262_v44 = vld [vmem:[%s4695_s7 + $0x2c0] sm:$0xff]  ;;  %259 = vst [vmem:[%s4700_s8 + $0x150] sm:$0xff] %v258_v42  ;;  %261 = vst [vmem:[%s4700_s8 + $0x158] sm:$0xff] %v260_v43  ;;  %v264_v45 = vld [vmem:[%s4695_s7 + $0x2c8] sm:$0xff] }
  0x2d   : > { %263 = vst [vmem:[%s4700_s8 + $0x160] sm:$0xff] %v262_v44  ;;  %v266_v46 = vld [vmem:[%s4695_s7 + $0x2e0] sm:$0xff]  ;;  %v268_v47 = vld [vmem:[%s4695_s7 + $0x2e8] sm:$0xff]  ;;  %265 = vst [vmem:[%s4700_s8 + $0x168] sm:$0xff] %v264_v45 }
  0x2e   : > { %267 = vst [vmem:[%s4700_s8 + $0x170] sm:$0xff] %v266_v46  ;;  %269 = vst [vmem:[%s4700_s8 + $0x178] sm:$0xff] %v268_v47  ;;  %v270_v48 = vld [vmem:[%s4695_s7 + $0x300] sm:$0xff]  ;;  %v272_v49 = vld [vmem:[%s4695_s7 + $0x308] sm:$0xff] }
  0x2f   : > { %v274_v50 = vld [vmem:[%s4695_s7 + $0x320] sm:$0xff]  ;;  %271 = vst [vmem:[%s4700_s8 + $0x180] sm:$0xff] %v270_v48  ;;  %273 = vst [vmem:[%s4700_s8 + $0x188] sm:$0xff] %v272_v49  ;;  %v276_v51 = vld [vmem:[%s4695_s7 + $0x328] sm:$0xff] }
  0x30   : > { %275 = vst [vmem:[%s4700_s8 + $0x190] sm:$0xff] %v274_v50  ;;  %v278_v52 = vld [vmem:[%s4695_s7 + $0x340] sm:$0xff]  ;;  %v280_v53 = vld [vmem:[%s4695_s7 + $0x348] sm:$0xff]  ;;  %277 = vst [vmem:[%s4700_s8 + $0x198] sm:$0xff] %v276_v51 }
  0x31   : > { %279 = vst [vmem:[%s4700_s8 + $0x1a0] sm:$0xff] %v278_v52  ;;  %281 = vst [vmem:[%s4700_s8 + $0x1a8] sm:$0xff] %v280_v53  ;;  %v282_v54 = vld [vmem:[%s4695_s7 + $0x360] sm:$0xff]  ;;  %v284_v55 = vld [vmem:[%s4695_s7 + $0x368] sm:$0xff] }
  0x32   : > { %v286_v56 = vld [vmem:[%s4695_s7 + $0x380] sm:$0xff]  ;;  %283 = vst [vmem:[%s4700_s8 + $0x1b0] sm:$0xff] %v282_v54  ;;  %285 = vst [vmem:[%s4700_s8 + $0x1b8] sm:$0xff] %v284_v55  ;;  %v288_v57 = vld [vmem:[%s4695_s7 + $0x388] sm:$0xff] }
  0x33   : > { %287 = vst [vmem:[%s4700_s8 + $0x1c0] sm:$0xff] %v286_v56  ;;  %v290_v58 = vld [vmem:[%s4695_s7 + $0x3a0] sm:$0xff]  ;;  %v292_v59 = vld [vmem:[%s4695_s7 + $0x3a8] sm:$0xff]  ;;  %289 = vst [vmem:[%s4700_s8 + $0x1c8] sm:$0xff] %v288_v57 }
  0x34   : > { %291 = vst [vmem:[%s4700_s8 + $0x1d0] sm:$0xff] %v290_v58  ;;  %293 = vst [vmem:[%s4700_s8 + $0x1d8] sm:$0xff] %v292_v59  ;;  %v294_v60 = vld [vmem:[%s4695_s7 + $0x3c0] sm:$0xff]  ;;  %v296_v61 = vld [vmem:[%s4695_s7 + $0x3c8] sm:$0xff] }
  0x35   : > { %v298_v62 = vld [vmem:[%s4695_s7 + $0x3e0] sm:$0xff]  ;;  %295 = vst [vmem:[%s4700_s8 + $0x1e0] sm:$0xff] %v294_v60  ;;  %297 = vst [vmem:[%s4700_s8 + $0x1e8] sm:$0xff] %v296_v61  ;;  %v300_v63 = vld [vmem:[%s4695_s7 + $0x3e8] sm:$0xff] }
  0x36   : > { %299 = vst [vmem:[%s4700_s8 + $0x1f0] sm:$0xff] %v298_v62  ;;  %v302_v0 = vld [vmem:[%s4695_s7 + $0x400] sm:$0xff]  ;;  %v304_v1 = vld [vmem:[%s4695_s7 + $0x408] sm:$0xff]  ;;  %301 = vst [vmem:[%s4700_s8 + $0x1f8] sm:$0xff] %v300_v63 }
  0x37   : > { %303 = vst [vmem:[%s4700_s8 + $0x200] sm:$0xff] %v302_v0  ;;  %305 = vst [vmem:[%s4700_s8 + $0x208] sm:$0xff] %v304_v1  ;;  %v306_v2 = vld [vmem:[%s4695_s7 + $0x420] sm:$0xff]  ;;  %v308_v3 = vld [vmem:[%s4695_s7 + $0x428] sm:$0xff] }
  0x38   : > { %v310_v4 = vld [vmem:[%s4695_s7 + $0x440] sm:$0xff]  ;;  %307 = vst [vmem:[%s4700_s8 + $0x210] sm:$0xff] %v306_v2  ;;  %309 = vst [vmem:[%s4700_s8 + $0x218] sm:$0xff] %v308_v3  ;;  %v312_v5 = vld [vmem:[%s4695_s7 + $0x448] sm:$0xff] }
  0x39   : > { %311 = vst [vmem:[%s4700_s8 + $0x220] sm:$0xff] %v310_v4  ;;  %v314_v6 = vld [vmem:[%s4695_s7 + $0x460] sm:$0xff]  ;;  %v316_v7 = vld [vmem:[%s4695_s7 + $0x468] sm:$0xff]  ;;  %313 = vst [vmem:[%s4700_s8 + $0x228] sm:$0xff] %v312_v5 }
  0x3a   : > { %315 = vst [vmem:[%s4700_s8 + $0x230] sm:$0xff] %v314_v6  ;;  %317 = vst [vmem:[%s4700_s8 + $0x238] sm:$0xff] %v316_v7  ;;  %v318_v8 = vld [vmem:[%s4695_s7 + $0x480] sm:$0xff]  ;;  %v320_v9 = vld [vmem:[%s4695_s7 + $0x488] sm:$0xff] }
  0x3b   : > { %v322_v10 = vld [vmem:[%s4695_s7 + $0x4a0] sm:$0xff]  ;;  %319 = vst [vmem:[%s4700_s8 + $0x240] sm:$0xff] %v318_v8  ;;  %321 = vst [vmem:[%s4700_s8 + $0x248] sm:$0xff] %v320_v9  ;;  %v324_v11 = vld [vmem:[%s4695_s7 + $0x4a8] sm:$0xff] }
  0x3c   : > { %323 = vst [vmem:[%s4700_s8 + $0x250] sm:$0xff] %v322_v10  ;;  %v326_v12 = vld [vmem:[%s4695_s7 + $0x4c0] sm:$0xff]  ;;  %v328_v13 = vld [vmem:[%s4695_s7 + $0x4c8] sm:$0xff]  ;;  %325 = vst [vmem:[%s4700_s8 + $0x258] sm:$0xff] %v324_v11 }
  0x3d   : > { %327 = vst [vmem:[%s4700_s8 + $0x260] sm:$0xff] %v326_v12  ;;  %329 = vst [vmem:[%s4700_s8 + $0x268] sm:$0xff] %v328_v13  ;;  %v330_v14 = vld [vmem:[%s4695_s7 + $0x4e0] sm:$0xff]  ;;  %v332_v15 = vld [vmem:[%s4695_s7 + $0x4e8] sm:$0xff] }
  0x3e   : > { %v334_v16 = vld [vmem:[%s4695_s7 + $0x500] sm:$0xff]  ;;  %331 = vst [vmem:[%s4700_s8 + $0x270] sm:$0xff] %v330_v14  ;;  %333 = vst [vmem:[%s4700_s8 + $0x278] sm:$0xff] %v332_v15  ;;  %v336_v17 = vld [vmem:[%s4695_s7 + $0x508] sm:$0xff] }
  0x3f   : > { %335 = vst [vmem:[%s4700_s8 + $0x280] sm:$0xff] %v334_v16  ;;  %v338_v18 = vld [vmem:[%s4695_s7 + $0x520] sm:$0xff]  ;;  %v340_v19 = vld [vmem:[%s4695_s7 + $0x528] sm:$0xff]  ;;  %337 = vst [vmem:[%s4700_s8 + $0x288] sm:$0xff] %v336_v17 }
  0x40   : > { %339 = vst [vmem:[%s4700_s8 + $0x290] sm:$0xff] %v338_v18  ;;  %341 = vst [vmem:[%s4700_s8 + $0x298] sm:$0xff] %v340_v19  ;;  %v342_v20 = vld [vmem:[%s4695_s7 + $0x540] sm:$0xff]  ;;  %v344_v21 = vld [vmem:[%s4695_s7 + $0x548] sm:$0xff] }
  0x41   : > { %v346_v22 = vld [vmem:[%s4695_s7 + $0x560] sm:$0xff]  ;;  %343 = vst [vmem:[%s4700_s8 + $0x2a0] sm:$0xff] %v342_v20  ;;  %345 = vst [vmem:[%s4700_s8 + $0x2a8] sm:$0xff] %v344_v21  ;;  %v348_v23 = vld [vmem:[%s4695_s7 + $0x568] sm:$0xff] }
  0x42   : > { %347 = vst [vmem:[%s4700_s8 + $0x2b0] sm:$0xff] %v346_v22  ;;  %v350_v24 = vld [vmem:[%s4695_s7 + $0x580] sm:$0xff]  ;;  %v352_v25 = vld [vmem:[%s4695_s7 + $0x588] sm:$0xff]  ;;  %349 = vst [vmem:[%s4700_s8 + $0x2b8] sm:$0xff] %v348_v23 }
  0x43   : > { %351 = vst [vmem:[%s4700_s8 + $0x2c0] sm:$0xff] %v350_v24  ;;  %353 = vst [vmem:[%s4700_s8 + $0x2c8] sm:$0xff] %v352_v25  ;;  %v354_v26 = vld [vmem:[%s4695_s7 + $0x5a0] sm:$0xff]  ;;  %v356_v27 = vld [vmem:[%s4695_s7 + $0x5a8] sm:$0xff] }
  0x44   : > { %v358_v28 = vld [vmem:[%s4695_s7 + $0x5c0] sm:$0xff]  ;;  %355 = vst [vmem:[%s4700_s8 + $0x2d0] sm:$0xff] %v354_v26  ;;  %357 = vst [vmem:[%s4700_s8 + $0x2d8] sm:$0xff] %v356_v27  ;;  %v360_v29 = vld [vmem:[%s4695_s7 + $0x5c8] sm:$0xff] }
  0x45   : > { %359 = vst [vmem:[%s4700_s8 + $0x2e0] sm:$0xff] %v358_v28  ;;  %v362_v30 = vld [vmem:[%s4695_s7 + $0x5e0] sm:$0xff]  ;;  %v364_v31 = vld [vmem:[%s4695_s7 + $0x5e8] sm:$0xff]  ;;  %361 = vst [vmem:[%s4700_s8 + $0x2e8] sm:$0xff] %v360_v29 }
  0x46   : > { %363 = vst [vmem:[%s4700_s8 + $0x2f0] sm:$0xff] %v362_v30  ;;  %365 = vst [vmem:[%s4700_s8 + $0x2f8] sm:$0xff] %v364_v31  ;;  %v366_v32 = vld [vmem:[%s4695_s7 + $0x600] sm:$0xff]  ;;  %v368_v33 = vld [vmem:[%s4695_s7 + $0x608] sm:$0xff] }
  0x47   : > { %v370_v34 = vld [vmem:[%s4695_s7 + $0x620] sm:$0xff]  ;;  %367 = vst [vmem:[%s4700_s8 + $0x300] sm:$0xff] %v366_v32  ;;  %369 = vst [vmem:[%s4700_s8 + $0x308] sm:$0xff] %v368_v33  ;;  %v372_v35 = vld [vmem:[%s4695_s7 + $0x628] sm:$0xff] }
  0x48   : > { %371 = vst [vmem:[%s4700_s8 + $0x310] sm:$0xff] %v370_v34  ;;  %v374_v36 = vld [vmem:[%s4695_s7 + $0x640] sm:$0xff]  ;;  %v376_v37 = vld [vmem:[%s4695_s7 + $0x648] sm:$0xff]  ;;  %373 = vst [vmem:[%s4700_s8 + $0x318] sm:$0xff] %v372_v35 }
  0x49   : > { %375 = vst [vmem:[%s4700_s8 + $0x320] sm:$0xff] %v374_v36  ;;  %377 = vst [vmem:[%s4700_s8 + $0x328] sm:$0xff] %v376_v37  ;;  %v378_v38 = vld [vmem:[%s4695_s7 + $0x660] sm:$0xff]  ;;  %v380_v39 = vld [vmem:[%s4695_s7 + $0x668] sm:$0xff] }
  0x4a   : > { %v382_v40 = vld [vmem:[%s4695_s7 + $0x680] sm:$0xff]  ;;  %379 = vst [vmem:[%s4700_s8 + $0x330] sm:$0xff] %v378_v38  ;;  %381 = vst [vmem:[%s4700_s8 + $0x338] sm:$0xff] %v380_v39  ;;  %v384_v41 = vld [vmem:[%s4695_s7 + $0x688] sm:$0xff] }
  0x4b   : > { %383 = vst [vmem:[%s4700_s8 + $0x340] sm:$0xff] %v382_v40  ;;  %v386_v42 = vld [vmem:[%s4695_s7 + $0x6a0] sm:$0xff]  ;;  %v388_v43 = vld [vmem:[%s4695_s7 + $0x6a8] sm:$0xff]  ;;  %385 = vst [vmem:[%s4700_s8 + $0x348] sm:$0xff] %v384_v41 }
  0x4c   : > { %387 = vst [vmem:[%s4700_s8 + $0x350] sm:$0xff] %v386_v42  ;;  %389 = vst [vmem:[%s4700_s8 + $0x358] sm:$0xff] %v388_v43  ;;  %v390_v44 = vld [vmem:[%s4695_s7 + $0x6c0] sm:$0xff]  ;;  %v392_v45 = vld [vmem:[%s4695_s7 + $0x6c8] sm:$0xff] }
  0x4d   : > { %v394_v46 = vld [vmem:[%s4695_s7 + $0x6e0] sm:$0xff]  ;;  %391 = vst [vmem:[%s4700_s8 + $0x360] sm:$0xff] %v390_v44  ;;  %393 = vst [vmem:[%s4700_s8 + $0x368] sm:$0xff] %v392_v45  ;;  %v396_v47 = vld [vmem:[%s4695_s7 + $0x6e8] sm:$0xff] }
  0x4e   : > { %395 = vst [vmem:[%s4700_s8 + $0x370] sm:$0xff] %v394_v46  ;;  %v398_v48 = vld [vmem:[%s4695_s7 + $0x700] sm:$0xff]  ;;  %v400_v49 = vld [vmem:[%s4695_s7 + $0x708] sm:$0xff]  ;;  %397 = vst [vmem:[%s4700_s8 + $0x378] sm:$0xff] %v396_v47 }
  0x4f   : > { %399 = vst [vmem:[%s4700_s8 + $0x380] sm:$0xff] %v398_v48  ;;  %401 = vst [vmem:[%s4700_s8 + $0x388] sm:$0xff] %v400_v49  ;;  %v402_v50 = vld [vmem:[%s4695_s7 + $0x720] sm:$0xff]  ;;  %v404_v51 = vld [vmem:[%s4695_s7 + $0x728] sm:$0xff] }
  0x50   : > { %v406_v52 = vld [vmem:[%s4695_s7 + $0x740] sm:$0xff]  ;;  %403 = vst [vmem:[%s4700_s8 + $0x390] sm:$0xff] %v402_v50  ;;  %405 = vst [vmem:[%s4700_s8 + $0x398] sm:$0xff] %v404_v51  ;;  %v408_v53 = vld [vmem:[%s4695_s7 + $0x748] sm:$0xff] }
  0x51   : > { %407 = vst [vmem:[%s4700_s8 + $0x3a0] sm:$0xff] %v406_v52  ;;  %v410_v54 = vld [vmem:[%s4695_s7 + $0x760] sm:$0xff]  ;;  %v412_v55 = vld [vmem:[%s4695_s7 + $0x768] sm:$0xff]  ;;  %409 = vst [vmem:[%s4700_s8 + $0x3a8] sm:$0xff] %v408_v53 }
  0x52   : > { %411 = vst [vmem:[%s4700_s8 + $0x3b0] sm:$0xff] %v410_v54  ;;  %413 = vst [vmem:[%s4700_s8 + $0x3b8] sm:$0xff] %v412_v55  ;;  %v414_v56 = vld [vmem:[%s4695_s7 + $0x780] sm:$0xff]  ;;  %v416_v57 = vld [vmem:[%s4695_s7 + $0x788] sm:$0xff] }
  0x53   : > { %v418_v58 = vld [vmem:[%s4695_s7 + $0x7a0] sm:$0xff]  ;;  %415 = vst [vmem:[%s4700_s8 + $0x3c0] sm:$0xff] %v414_v56  ;;  %417 = vst [vmem:[%s4700_s8 + $0x3c8] sm:$0xff] %v416_v57  ;;  %v420_v59 = vld [vmem:[%s4695_s7 + $0x7a8] sm:$0xff] }
  0x54   : > { %419 = vst [vmem:[%s4700_s8 + $0x3d0] sm:$0xff] %v418_v58  ;;  %v422_v60 = vld [vmem:[%s4695_s7 + $0x7c0] sm:$0xff]  ;;  %v424_v61 = vld [vmem:[%s4695_s7 + $0x7c8] sm:$0xff]  ;;  %421 = vst [vmem:[%s4700_s8 + $0x3d8] sm:$0xff] %v420_v59 }
  0x55   : > { %423 = vst [vmem:[%s4700_s8 + $0x3e0] sm:$0xff] %v422_v60  ;;  %425 = vst [vmem:[%s4700_s8 + $0x3e8] sm:$0xff] %v424_v61  ;;  %v426_v62 = vld [vmem:[%s4695_s7 + $0x7e0] sm:$0xff]  ;;  %v428_v63 = vld [vmem:[%s4695_s7 + $0x7e8] sm:$0xff] }
  0x56   : > { %427 = vst [vmem:[%s4700_s8 + $0x3f0] sm:$0xff] %v426_v62  ;;  %429 = vst [vmem:[%s4700_s8 + $0x3f8] sm:$0xff] %v428_v63 }
  0x57 PF: > { %p3649_p7 = scmp.ge.s32.totalorder %s4611_s18, 1  ;;  %p434_p8 = scmp.lt.s32.totalorder %s4611_s18, 5 }
  0x59   : > { %p435_p9 = pnand %p3649_p7, %p434_p8 }
  0x5a   : > { %s441_s9 = sand.u32 (!%p435_p9), 1, %s4587_s12   ;;  %s3651_s10 = sshll.u32 (!%p435_p9), %s4599_s15, 6 }
  0x5b   : > { %438 = sbr.rel (%p435_p9) target bundleno = 740 (0x2e4), region = 51  ;;  %s3650_s11 = sshll.u32 (!%p435_p9), %s441_s9, 10 }
  0x5c   : > { %p467_p10 = scmp.lt.s32.totalorder (!%p435_p9), %s3651_s10, 127  ;;  %p474_p11 = scmp.eq.s32.totalorder (!%p435_p9), %s4599_s15, 0 }
  0x5d   : > { %p477_p12 = scmp.eq.s32.totalorder (!%p435_p9), %s4595_s14, 0  ;;  %s4966_s26 = scalar_lea.vmem (!%p435_p9), [#allocation4], %s3650_s11 }
  0x5f   : > { %p478_p13 = pnand (!%p435_p9), %p477_p12, %p474_p11 }
  0x60   : > { %s5560_s10 = smov (!%p467_p10, %s3651_s10), 127 }
  0x61   : > { %s3652_s21 = sshll.u32 %s5560_s10, 2  ;;  %481 = sbr.rel (%p478_p13) target bundleno = 135 (0x87), region = 59 }
  0x62   : > { %s4964_s24 = scalar_lea.vmem %s5546_s3, %s3652_s21 }
  0x66   : > { %v482_v0 = vld [vmem:[%s5544_s1] sm:$0xff]   ;;  %v484_v1 = vld [vmem:[%s5544_s1 + $0x8] sm:$0xff]   ;;  %v486_v2 = vld [vmem:[%s5544_s1 + $0x10] sm:$0xff]  }
  0x67   : > { %610 = vst [vmem:[#allocation2] sm:$0xff] %v482_v0   ;;  %612 = vst [vmem:[#allocation2 + $0x8] sm:$0xff] %v484_v1   ;;  %v488_v3 = vld [vmem:[%s5544_s1 + $0x18] sm:$0xff]   ;;  %v490_v4 = vld [vmem:[%s5544_s1 + $0x20] sm:$0xff]  }
  0x68   : > { %614 = vst [vmem:[#allocation2 + $0x10] sm:$0xff] %v486_v2   ;;  %v492_v5 = vld [vmem:[%s5544_s1 + $0x28] sm:$0xff]   ;;  %616 = vst [vmem:[#allocation2 + $0x18] sm:$0xff] %v488_v3   ;;  %v494_v6 = vld [vmem:[%s5544_s1 + $0x30] sm:$0xff]  }
  0x69   : > { %618 = vst [vmem:[#allocation2 + $0x20] sm:$0xff] %v490_v4   ;;  %620 = vst [vmem:[#allocation2 + $0x28] sm:$0xff] %v492_v5   ;;  %v496_v7 = vld [vmem:[%s5544_s1 + $0x38] sm:$0xff]   ;;  %v498_v8 = vld [vmem:[%s5544_s1 + $0x40] sm:$0xff]  }
  0x6a   : > { %622 = vst [vmem:[#allocation2 + $0x30] sm:$0xff] %v494_v6   ;;  %624 = vst [vmem:[#allocation2 + $0x38] sm:$0xff] %v496_v7   ;;  %v500_v9 = vld [vmem:[%s5544_s1 + $0x48] sm:$0xff]   ;;  %v502_v10 = vld [vmem:[%s5544_s1 + $0x50] sm:$0xff]  }
  0x6b   : > { %626 = vst [vmem:[#allocation2 + $0x40] sm:$0xff] %v498_v8   ;;  %v504_v11 = vld [vmem:[%s5544_s1 + $0x58] sm:$0xff]   ;;  %628 = vst [vmem:[#allocation2 + $0x48] sm:$0xff] %v500_v9   ;;  %v506_v12 = vld [vmem:[%s5544_s1 + $0x60] sm:$0xff]  }
  0x6c   : > { %630 = vst [vmem:[#allocation2 + $0x50] sm:$0xff] %v502_v10   ;;  %632 = vst [vmem:[#allocation2 + $0x58] sm:$0xff] %v504_v11   ;;  %v508_v13 = vld [vmem:[%s5544_s1 + $0x68] sm:$0xff]   ;;  %v510_v14 = vld [vmem:[%s5544_s1 + $0x70] sm:$0xff]  }
  0x6d   : > { %634 = vst [vmem:[#allocation2 + $0x60] sm:$0xff] %v506_v12   ;;  %636 = vst [vmem:[#allocation2 + $0x68] sm:$0xff] %v508_v13   ;;  %v512_v15 = vld [vmem:[%s5544_s1 + $0x78] sm:$0xff]   ;;  %v514_v16 = vld [vmem:[%s5544_s1 + $0x80] sm:$0xff]  }
  0x6e   : > { %638 = vst [vmem:[#allocation2 + $0x70] sm:$0xff] %v510_v14   ;;  %v516_v17 = vld [vmem:[%s5544_s1 + $0x88] sm:$0xff]   ;;  %640 = vst [vmem:[#allocation2 + $0x78] sm:$0xff] %v512_v15   ;;  %v518_v18 = vld [vmem:[%s5544_s1 + $0x90] sm:$0xff]  }
  0x6f   : > { %642 = vst [vmem:[#allocation2 + $0x80] sm:$0xff] %v514_v16   ;;  %644 = vst [vmem:[#allocation2 + $0x88] sm:$0xff] %v516_v17   ;;  %v520_v19 = vld [vmem:[%s5544_s1 + $0x98] sm:$0xff]   ;;  %v522_v20 = vld [vmem:[%s5544_s1 + $0xa0] sm:$0xff]  }
  0x70   : > { %646 = vst [vmem:[#allocation2 + $0x90] sm:$0xff] %v518_v18   ;;  %648 = vst [vmem:[#allocation2 + $0x98] sm:$0xff] %v520_v19   ;;  %v524_v21 = vld [vmem:[%s5544_s1 + $0xa8] sm:$0xff]   ;;  %v526_v22 = vld [vmem:[%s5544_s1 + $0xb0] sm:$0xff]  }
  0x71   : > { %650 = vst [vmem:[#allocation2 + $0xa0] sm:$0xff] %v522_v20   ;;  %v528_v23 = vld [vmem:[%s5544_s1 + $0xb8] sm:$0xff]   ;;  %652 = vst [vmem:[#allocation2 + $0xa8] sm:$0xff] %v524_v21   ;;  %v530_v24 = vld [vmem:[%s5544_s1 + $0xc0] sm:$0xff]  }
  0x72   : > { %654 = vst [vmem:[#allocation2 + $0xb0] sm:$0xff] %v526_v22   ;;  %656 = vst [vmem:[#allocation2 + $0xb8] sm:$0xff] %v528_v23   ;;  %v532_v25 = vld [vmem:[%s5544_s1 + $0xc8] sm:$0xff]   ;;  %v534_v26 = vld [vmem:[%s5544_s1 + $0xd0] sm:$0xff]  }
  0x73   : > { %658 = vst [vmem:[#allocation2 + $0xc0] sm:$0xff] %v530_v24   ;;  %660 = vst [vmem:[#allocation2 + $0xc8] sm:$0xff] %v532_v25   ;;  %v536_v27 = vld [vmem:[%s5544_s1 + $0xd8] sm:$0xff]   ;;  %v538_v28 = vld [vmem:[%s5544_s1 + $0xe0] sm:$0xff]  }
  0x74   : > { %662 = vst [vmem:[#allocation2 + $0xd0] sm:$0xff] %v534_v26   ;;  %v540_v29 = vld [vmem:[%s5544_s1 + $0xe8] sm:$0xff]   ;;  %664 = vst [vmem:[#allocation2 + $0xd8] sm:$0xff] %v536_v27   ;;  %v542_v30 = vld [vmem:[%s5544_s1 + $0xf0] sm:$0xff]  }
  0x75   : > { %666 = vst [vmem:[#allocation2 + $0xe0] sm:$0xff] %v538_v28   ;;  %668 = vst [vmem:[#allocation2 + $0xe8] sm:$0xff] %v540_v29   ;;  %v544_v31 = vld [vmem:[%s5544_s1 + $0xf8] sm:$0xff]   ;;  %v546_v32 = vld [vmem:[%s5544_s1 + $0x100] sm:$0xff]  }
  0x76   : > { %670 = vst [vmem:[#allocation2 + $0xf0] sm:$0xff] %v542_v30   ;;  %672 = vst [vmem:[#allocation2 + $0xf8] sm:$0xff] %v544_v31   ;;  %v548_v33 = vld [vmem:[%s5544_s1 + $0x108] sm:$0xff]   ;;  %v550_v34 = vld [vmem:[%s5544_s1 + $0x110] sm:$0xff]  }
  0x77   : > { %674 = vst [vmem:[#allocation2 + $0x100] sm:$0xff] %v546_v32   ;;  %v552_v35 = vld [vmem:[%s5544_s1 + $0x118] sm:$0xff]   ;;  %676 = vst [vmem:[#allocation2 + $0x108] sm:$0xff] %v548_v33   ;;  %v554_v36 = vld [vmem:[%s5544_s1 + $0x120] sm:$0xff]  }
  0x78   : > { %678 = vst [vmem:[#allocation2 + $0x110] sm:$0xff] %v550_v34   ;;  %680 = vst [vmem:[#allocation2 + $0x118] sm:$0xff] %v552_v35   ;;  %v556_v37 = vld [vmem:[%s5544_s1 + $0x128] sm:$0xff]   ;;  %v558_v38 = vld [vmem:[%s5544_s1 + $0x130] sm:$0xff]  }
  0x79   : > { %682 = vst [vmem:[#allocation2 + $0x120] sm:$0xff] %v554_v36   ;;  %684 = vst [vmem:[#allocation2 + $0x128] sm:$0xff] %v556_v37   ;;  %v560_v39 = vld [vmem:[%s5544_s1 + $0x138] sm:$0xff]   ;;  %v562_v40 = vld [vmem:[%s5544_s1 + $0x140] sm:$0xff]  }
  0x7a   : > { %686 = vst [vmem:[#allocation2 + $0x130] sm:$0xff] %v558_v38   ;;  %v564_v41 = vld [vmem:[%s5544_s1 + $0x148] sm:$0xff]   ;;  %688 = vst [vmem:[#allocation2 + $0x138] sm:$0xff] %v560_v39   ;;  %v566_v42 = vld [vmem:[%s5544_s1 + $0x150] sm:$0xff]  }
  0x7b   : > { %690 = vst [vmem:[#allocation2 + $0x140] sm:$0xff] %v562_v40   ;;  %692 = vst [vmem:[#allocation2 + $0x148] sm:$0xff] %v564_v41   ;;  %v568_v43 = vld [vmem:[%s5544_s1 + $0x158] sm:$0xff]   ;;  %v570_v44 = vld [vmem:[%s5544_s1 + $0x160] sm:$0xff]  }
  0x7c   : > { %694 = vst [vmem:[#allocation2 + $0x150] sm:$0xff] %v566_v42   ;;  %696 = vst [vmem:[#allocation2 + $0x158] sm:$0xff] %v568_v43   ;;  %v572_v45 = vld [vmem:[%s5544_s1 + $0x168] sm:$0xff]   ;;  %v574_v46 = vld [vmem:[%s5544_s1 + $0x170] sm:$0xff]  }
  0x7d   : > { %698 = vst [vmem:[#allocation2 + $0x160] sm:$0xff] %v570_v44   ;;  %v576_v47 = vld [vmem:[%s5544_s1 + $0x178] sm:$0xff]   ;;  %700 = vst [vmem:[#allocation2 + $0x168] sm:$0xff] %v572_v45   ;;  %v578_v48 = vld [vmem:[%s5544_s1 + $0x180] sm:$0xff]  }
  0x7e   : > { %702 = vst [vmem:[#allocation2 + $0x170] sm:$0xff] %v574_v46   ;;  %704 = vst [vmem:[#allocation2 + $0x178] sm:$0xff] %v576_v47   ;;  %v580_v49 = vld [vmem:[%s5544_s1 + $0x188] sm:$0xff]   ;;  %v582_v50 = vld [vmem:[%s5544_s1 + $0x190] sm:$0xff]  }
  0x7f   : > { %706 = vst [vmem:[#allocation2 + $0x180] sm:$0xff] %v578_v48   ;;  %708 = vst [vmem:[#allocation2 + $0x188] sm:$0xff] %v580_v49   ;;  %v584_v51 = vld [vmem:[%s5544_s1 + $0x198] sm:$0xff]   ;;  %v586_v52 = vld [vmem:[%s5544_s1 + $0x1a0] sm:$0xff]  }
  0x80   : > { %710 = vst [vmem:[#allocation2 + $0x190] sm:$0xff] %v582_v50   ;;  %v588_v53 = vld [vmem:[%s5544_s1 + $0x1a8] sm:$0xff]   ;;  %712 = vst [vmem:[#allocation2 + $0x198] sm:$0xff] %v584_v51   ;;  %v590_v54 = vld [vmem:[%s5544_s1 + $0x1b0] sm:$0xff]  }
  0x81   : > { %714 = vst [vmem:[#allocation2 + $0x1a0] sm:$0xff] %v586_v52   ;;  %716 = vst [vmem:[#allocation2 + $0x1a8] sm:$0xff] %v588_v53   ;;  %v592_v55 = vld [vmem:[%s5544_s1 + $0x1b8] sm:$0xff]   ;;  %v594_v56 = vld [vmem:[%s5544_s1 + $0x1c0] sm:$0xff]  }
  0x82   : > { %718 = vst [vmem:[#allocation2 + $0x1b0] sm:$0xff] %v590_v54   ;;  %720 = vst [vmem:[#allocation2 + $0x1b8] sm:$0xff] %v592_v55   ;;  %v596_v57 = vld [vmem:[%s5544_s1 + $0x1c8] sm:$0xff]   ;;  %v598_v58 = vld [vmem:[%s5544_s1 + $0x1d0] sm:$0xff]  }
  0x83   : > { %722 = vst [vmem:[#allocation2 + $0x1c0] sm:$0xff] %v594_v56   ;;  %v600_v59 = vld [vmem:[%s5544_s1 + $0x1d8] sm:$0xff]   ;;  %724 = vst [vmem:[#allocation2 + $0x1c8] sm:$0xff] %v596_v57   ;;  %v602_v60 = vld [vmem:[%s5544_s1 + $0x1e0] sm:$0xff]  }
  0x84   : > { %726 = vst [vmem:[#allocation2 + $0x1d0] sm:$0xff] %v598_v58   ;;  %728 = vst [vmem:[#allocation2 + $0x1d8] sm:$0xff] %v600_v59   ;;  %v604_v61 = vld [vmem:[%s5544_s1 + $0x1e8] sm:$0xff]   ;;  %v606_v62 = vld [vmem:[%s5544_s1 + $0x1f0] sm:$0xff]  }
  0x85   : > { %730 = vst [vmem:[#allocation2 + $0x1e0] sm:$0xff] %v602_v60   ;;  %732 = vst [vmem:[#allocation2 + $0x1e8] sm:$0xff] %v604_v61   ;;  %v608_v63 = vld [vmem:[%s5544_s1 + $0x1f8] sm:$0xff]  }
  0x86   : > { %734 = vst [vmem:[#allocation2 + $0x1f0] sm:$0xff] %v606_v62   ;;  %736 = vst [vmem:[#allocation2 + $0x1f8] sm:$0xff] %v608_v63  }
  0x87 PF: > { %p3654_p0 = scmp.ne.s32.totalorder %s4595_s14, 0 }
  0x89   : > { %740 = sbr.rel (%p3654_p0) target bundleno = 175 (0xaf), region = 63 }
  0x8e   : > { %v4613_v0 = vmov 0.0  }
  0x8f   : > { %741 = vst [vmem:[#allocation3 + $0xb0] sm:$0xff] %v4613_v0  ;;  %742 = vst [vmem:[#allocation3 + $0x1b0] sm:$0xff] %v4613_v0 }
  0x90   : > { %743 = vst [vmem:[#allocation3 + $0xd8] sm:$0xff] %v4613_v0  ;;  %744 = vst [vmem:[#allocation3 + $0x18] sm:$0xff] %v4613_v0 }
  0x91   : > { %745 = vst [vmem:[#allocation3 + $0x50] sm:$0xff] %v4613_v0  ;;  %746 = vst [vmem:[#allocation3 + $0x168] sm:$0xff] %v4613_v0 }
  0x92   : > { %747 = vst [vmem:[#allocation3 + $0x130] sm:$0xff] %v4613_v0  ;;  %748 = vst [vmem:[#allocation3 + $0x48] sm:$0xff] %v4613_v0 }
  0x93   : > { %749 = vst [vmem:[#allocation3 + $0x180] sm:$0xff] %v4613_v0  ;;  %750 = vst [vmem:[#allocation3 + $0x110] sm:$0xff] %v4613_v0 }
  0x94   : > { %751 = vst [vmem:[#allocation3 + $0x118] sm:$0xff] %v4613_v0  ;;  %752 = vst [vmem:[#allocation3 + $0x98] sm:$0xff] %v4613_v0 }
  0x95   : > { %753 = vst [vmem:[#allocation3 + $0x120] sm:$0xff] %v4613_v0  ;;  %754 = vst [vmem:[#allocation3 + $0x150] sm:$0xff] %v4613_v0 }
  0x96   : > { %755 = vst [vmem:[#allocation3 + $0x108] sm:$0xff] %v4613_v0  ;;  %756 = vst [vmem:[#allocation3 + $0x60] sm:$0xff] %v4613_v0 }
  0x97   : > { %757 = vst [vmem:[#allocation3 + $0xe0] sm:$0xff] %v4613_v0  ;;  %758 = vst [vmem:[#allocation3 + $0x188] sm:$0xff] %v4613_v0 }
  0x98   : > { %759 = vst [vmem:[#allocation3 + $0x138] sm:$0xff] %v4613_v0  ;;  %760 = vst [vmem:[#allocation3 + $0x140] sm:$0xff] %v4613_v0 }
  0x99   : > { %761 = vst [vmem:[#allocation3 + $0x80] sm:$0xff] %v4613_v0  ;;  %762 = vst [vmem:[#allocation3 + $0x1a8] sm:$0xff] %v4613_v0 }
  0x9a   : > { %763 = vst [vmem:[#allocation3 + $0x1b8] sm:$0xff] %v4613_v0  ;;  %764 = vst [vmem:[#allocation3 + $0x28] sm:$0xff] %v4613_v0 }
  0x9b   : > { %765 = vst [vmem:[#allocation3 + $0x1e8] sm:$0xff] %v4613_v0  ;;  %766 = vst [vmem:[#allocation3 + $0xf8] sm:$0xff] %v4613_v0 }
  0x9c   : > { %767 = vst [vmem:[#allocation3 + $0x160] sm:$0xff] %v4613_v0  ;;  %768 = vst [vmem:[#allocation3 + $0x30] sm:$0xff] %v4613_v0 }
  0x9d   : > { %769 = vst [vmem:[#allocation3 + $0x1e0] sm:$0xff] %v4613_v0  ;;  %770 = vst [vmem:[#allocation3] sm:$0xff] %v4613_v0 }
  0x9e   : > { %771 = vst [vmem:[#allocation3 + $0xf0] sm:$0xff] %v4613_v0  ;;  %772 = vst [vmem:[#allocation3 + $0x8] sm:$0xff] %v4613_v0 }
  0x9f   : > { %773 = vst [vmem:[#allocation3 + $0x148] sm:$0xff] %v4613_v0  ;;  %774 = vst [vmem:[#allocation3 + $0x1d0] sm:$0xff] %v4613_v0 }
  0xa0   : > { %775 = vst [vmem:[#allocation3 + $0x100] sm:$0xff] %v4613_v0  ;;  %776 = vst [vmem:[#allocation3 + $0xc8] sm:$0xff] %v4613_v0 }
  0xa1   : > { %777 = vst [vmem:[#allocation3 + $0x40] sm:$0xff] %v4613_v0  ;;  %778 = vst [vmem:[#allocation3 + $0x1f8] sm:$0xff] %v4613_v0 }
  0xa2   : > { %779 = vst [vmem:[#allocation3 + $0x20] sm:$0xff] %v4613_v0  ;;  %780 = vst [vmem:[#allocation3 + $0x128] sm:$0xff] %v4613_v0 }
  0xa3   : > { %781 = vst [vmem:[#allocation3 + $0x1a0] sm:$0xff] %v4613_v0  ;;  %782 = vst [vmem:[#allocation3 + $0x1f0] sm:$0xff] %v4613_v0 }
  0xa4   : > { %783 = vst [vmem:[#allocation3 + $0xe8] sm:$0xff] %v4613_v0  ;;  %784 = vst [vmem:[#allocation3 + $0x78] sm:$0xff] %v4613_v0 }
  0xa5   : > { %785 = vst [vmem:[#allocation3 + $0x70] sm:$0xff] %v4613_v0  ;;  %786 = vst [vmem:[#allocation3 + $0x90] sm:$0xff] %v4613_v0 }
  0xa6   : > { %787 = vst [vmem:[#allocation3 + $0x1d8] sm:$0xff] %v4613_v0  ;;  %788 = vst [vmem:[#allocation3 + $0xd0] sm:$0xff] %v4613_v0 }
  0xa7   : > { %789 = vst [vmem:[#allocation3 + $0xb8] sm:$0xff] %v4613_v0  ;;  %790 = vst [vmem:[#allocation3 + $0x88] sm:$0xff] %v4613_v0 }
  0xa8   : > { %791 = vst [vmem:[#allocation3 + $0xa8] sm:$0xff] %v4613_v0  ;;  %792 = vst [vmem:[#allocation3 + $0x1c8] sm:$0xff] %v4613_v0 }
  0xa9   : > { %793 = vst [vmem:[#allocation3 + $0x170] sm:$0xff] %v4613_v0  ;;  %794 = vst [vmem:[#allocation3 + $0x178] sm:$0xff] %v4613_v0 }
  0xaa   : > { %795 = vst [vmem:[#allocation3 + $0x68] sm:$0xff] %v4613_v0  ;;  %796 = vst [vmem:[#allocation3 + $0x190] sm:$0xff] %v4613_v0 }
  0xab   : > { %797 = vst [vmem:[#allocation3 + $0x198] sm:$0xff] %v4613_v0  ;;  %798 = vst [vmem:[#allocation3 + $0x38] sm:$0xff] %v4613_v0 }
  0xac   : > { %799 = vst [vmem:[#allocation3 + $0xc0] sm:$0xff] %v4613_v0  ;;  %800 = vst [vmem:[#allocation3 + $0x1c0] sm:$0xff] %v4613_v0 }
  0xad   : > { %801 = vst [vmem:[#allocation3 + $0x158] sm:$0xff] %v4613_v0  ;;  %802 = vst [vmem:[#allocation3 + $0x10] sm:$0xff] %v4613_v0 }
  0xae   : > { %803 = vst [vmem:[#allocation3 + $0x58] sm:$0xff] %v4613_v0  ;;  %804 = vst [vmem:[#allocation3 + $0xa0] sm:$0xff] %v4613_v0 }
  0xaf PF: > { %s3655_s7 = sshll.u32 %s4595_s14, 9  ;;  %v4614_v1 = vmov 0   ;;  %v4367_v2 = vld [vmem:[%s4966_s26 + $0x4] ss:$16 sps:$4 sm:$0xff]   ;;  %v4370_v3 = vld [vmem:[%s4966_s26 + $0xc] ss:$16 sps:$4 sm:$0xff]  }
  0xb0   : > { %1912 = vmatprep.subr.bf16.mxu0 %v4614_v1  ;;  %2201 = vmatprep.subr.bf16.mxu1 %v4614_v1  ;;  %s1010_s8 = sshra.s32 %s3655_s7, 3  ;;  %v4365_v36 = vld [vmem:[%s4966_s26] ss:$16 sps:$4 sm:$0xff]   ;;  %v4368_v37 = vld [vmem:[%s4966_s26 + $0x8] ss:$16 sps:$4 sm:$0xff]   ;;  %p3817_p1 = scmp.ne.s32.totalorder %s4595_s14, 1 }
  0xb1   : > { %s3656_s9 = sshll.u32 %s1010_s8, 2  ;;  %1944 = vmatprep.mubr.bf16.mxu0 %v4367_v2  ;;  %2233 = vmatprep.mubr.bf16.mxu1 %v4370_v3  ;;  %v4371_v38 = vld [vmem:[%s4966_s26 + $0x24] ss:$16 sps:$4 sm:$0xff]   ;;  %v4373_v39 = vld [vmem:[%s4966_s26 + $0x2c] ss:$16 sps:$4 sm:$0xff]  }
  0xb2   : > { %s5230_s10 = scalar_lea.vmem [#allocation2], %s3656_s9  ;;  %v4375_v40 = vld [vmem:[%s4966_s26 + $0x20] ss:$16 sps:$4 sm:$0xff]   ;;  %v4376_v41 = vld [vmem:[%s4966_s26 + $0x28] ss:$16 sps:$4 sm:$0xff]  }
  0xb3   : > { %v4333_v4 = vld [vmem:[%s5230_s10 + $0x38] sm:$0xff]   ;;  %v4335_v6 = vld [vmem:[%s5230_s10 + $0x30] sm:$0xff]   ;;  %v4337_v8 = vld [vmem:[%s5230_s10 + $0x28] sm:$0xff]  }
  0xb4   : > { %v4334_v5 = vld [vmem:[%s5230_s10 + $0xb8] sm:$0xff]   ;;  %1913 = vmatpush1.bf16.msra.mxu0 %v4333_v4  ;;  %v4336_v7 = vld [vmem:[%s5230_s10 + $0xb0] sm:$0xff]   ;;  %v4338_v9 = vld [vmem:[%s5230_s10 + $0xa8] sm:$0xff]  }
  0xb5   : > { %2202 = vmatpush1.bf16.msra.mxu1 %v4334_v5  ;;  %1914 = vmatprep.subr.bf16.mxu0 %v4614_v1  ;;  %v4339_v10 = vld [vmem:[%s5230_s10 + $0x20] sm:$0xff]   ;;  %v4341_v12 = vld [vmem:[%s5230_s10 + $0x18] sm:$0xff]   ;;  %v4343_v14 = vld [vmem:[%s5230_s10 + $0x10] sm:$0xff]  }
  0xb6   : > { %2203 = vmatprep.subr.bf16.mxu1 %v4614_v1  ;;  %v4340_v11 = vld [vmem:[%s5230_s10 + $0xa0] sm:$0xff]   ;;  %v4342_v13 = vld [vmem:[%s5230_s10 + $0x98] sm:$0xff]   ;;  %v4344_v15 = vld [vmem:[%s5230_s10 + $0x90] sm:$0xff]  }
  0xb7   : > { %v4345_v16 = vld [vmem:[%s5230_s10 + $0x8] sm:$0xff]   ;;  %v4347_v18 = vld [vmem:[%s5230_s10] sm:$0xff]   ;;  %v4349_v20 = vld [vmem:[%s5230_s10 + $0x78] sm:$0xff]  }
  0xb8   : > { %1915 = vmatpush1.bf16.msra.mxu0 %v4335_v6  ;;  %v4346_v17 = vld [vmem:[%s5230_s10 + $0x88] sm:$0xff]   ;;  %v4348_v19 = vld [vmem:[%s5230_s10 + $0x80] sm:$0xff]   ;;  %v4350_v21 = vld [vmem:[%s5230_s10 + $0xf8] sm:$0xff]  }
  0xb9   : > { %2204 = vmatpush1.bf16.msra.mxu1 %v4336_v7  ;;  %1916 = vmatprep.subr.bf16.mxu0 %v4614_v1  ;;  %v4351_v22 = vld [vmem:[%s5230_s10 + $0x70] sm:$0xff]   ;;  %v4353_v24 = vld [vmem:[%s5230_s10 + $0x68] sm:$0xff]   ;;  %v4355_v26 = vld [vmem:[%s5230_s10 + $0x60] sm:$0xff]  }
  0xba   : > { %2205 = vmatprep.subr.bf16.mxu1 %v4614_v1  ;;  %v4352_v23 = vld [vmem:[%s5230_s10 + $0xf0] sm:$0xff]   ;;  %v4354_v25 = vld [vmem:[%s5230_s10 + $0xe8] sm:$0xff]   ;;  %v4356_v27 = vld [vmem:[%s5230_s10 + $0xe0] sm:$0xff]  }
  0xbb   : > { %v4357_v28 = vld [vmem:[%s5230_s10 + $0x58] sm:$0xff]   ;;  %v4359_v30 = vld [vmem:[%s5230_s10 + $0x50] sm:$0xff]   ;;  %v4361_v32 = vld [vmem:[%s5230_s10 + $0x48] sm:$0xff]  }
  0xbc   : > { %1917 = vmatpush1.bf16.msra.mxu0 %v4337_v8  ;;  %v4358_v29 = vld [vmem:[%s5230_s10 + $0xd8] sm:$0xff]   ;;  %v4360_v31 = vld [vmem:[%s5230_s10 + $0xd0] sm:$0xff]   ;;  %v4362_v33 = vld [vmem:[%s5230_s10 + $0xc8] sm:$0xff]  }
  0xbd   : > { %2206 = vmatpush1.bf16.msra.mxu1 %v4338_v9  ;;  %1918 = vmatprep.subr.bf16.mxu0 %v4614_v1  ;;  %v4363_v34 = vld [vmem:[%s5230_s10 + $0x40] sm:$0xff]   ;;  %v4379_v43 = vld [vmem:[%s4966_s26 + $0x4c] ss:$16 sps:$4 sm:$0xff]   ;;  %v4382_v45 = vld [vmem:[%s4966_s26 + $0x48] ss:$16 sps:$4 sm:$0xff]  }
  0xbe   : > { %2207 = vmatprep.subr.bf16.mxu1 %v4614_v1  ;;  %v4364_v35 = vld [vmem:[%s5230_s10 + $0xc0] sm:$0xff]   ;;  %v4385_v47 = vld [vmem:[%s4966_s26 + $0x6c] ss:$16 sps:$4 sm:$0xff]   ;;  %v4388_v49 = vld [vmem:[%s4966_s26 + $0x68] ss:$16 sps:$4 sm:$0xff]  }
  0xbf   : > { %v4377_v42 = vld [vmem:[%s4966_s26 + $0x44] ss:$16 sps:$4 sm:$0xff]   ;;  %v4381_v44 = vld [vmem:[%s4966_s26 + $0x40] ss:$16 sps:$4 sm:$0xff]   ;;  %v4391_v51 = vld [vmem:[%s4966_s26 + $0x8c] ss:$16 sps:$4 sm:$0xff]  }
  0xc0   : > { %1919 = vmatpush1.bf16.msra.mxu0 %v4339_v10  ;;  %v4383_v46 = vld [vmem:[%s4966_s26 + $0x64] ss:$16 sps:$4 sm:$0xff]   ;;  %v4387_v48 = vld [vmem:[%s4966_s26 + $0x60] ss:$16 sps:$4 sm:$0xff]   ;;  %v4394_v53 = vld [vmem:[%s4966_s26 + $0x88] ss:$16 sps:$4 sm:$0xff]  }
  0xc1   : > { %2208 = vmatpush1.bf16.msra.mxu1 %v4340_v11  ;;  %1920 = vmatprep.subr.bf16.mxu0 %v4614_v1  ;;  %v4389_v50 = vld [vmem:[%s4966_s26 + $0x84] ss:$16 sps:$4 sm:$0xff]   ;;  %v4393_v52 = vld [vmem:[%s4966_s26 + $0x80] ss:$16 sps:$4 sm:$0xff]   ;;  %v4397_v55 = vld [vmem:[%s4966_s26 + $0xac] ss:$16 sps:$4 sm:$0xff]  }
  0xc2   : > { %2209 = vmatprep.subr.bf16.mxu1 %v4614_v1  ;;  %v4395_v54 = vld [vmem:[%s4966_s26 + $0xa4] ss:$16 sps:$4 sm:$0xff]   ;;  %v4399_v56 = vld [vmem:[%s4966_s26 + $0xa0] ss:$16 sps:$4 sm:$0xff]   ;;  %v4400_v57 = vld [vmem:[%s4966_s26 + $0xa8] ss:$16 sps:$4 sm:$0xff]  }
  0xc3   : > { %v4401_v58 = vld [vmem:[%s4966_s26 + $0xc4] ss:$16 sps:$4 sm:$0xff]   ;;  %v4403_v59 = vld [vmem:[%s4966_s26 + $0xcc] ss:$16 sps:$4 sm:$0xff]   ;;  %v4405_v60 = vld [vmem:[%s4966_s26 + $0xc0] ss:$16 sps:$4 sm:$0xff]  }
  0xc4   : > { %1921 = vmatpush1.bf16.msra.mxu0 %v4341_v12  ;;  %v4406_v61 = vld [vmem:[%s4966_s26 + $0xc8] ss:$16 sps:$4 sm:$0xff]   ;;  %v4407_v62 = vld [vmem:[%s4966_s26 + $0xe4] ss:$16 sps:$4 sm:$0xff]   ;;  %v4409_v63 = vld [vmem:[%s4966_s26 + $0xec] ss:$16 sps:$4 sm:$0xff]  }
  0xc5   : > { %2210 = vmatpush1.bf16.msra.mxu1 %v4342_v13  ;;  %1922 = vmatprep.subr.bf16.mxu0 %v4614_v1  ;;  %v4411_v0 = vld [vmem:[%s4966_s26 + $0xe0] ss:$16 sps:$4 sm:$0xff]   ;;  %v4413_v2 = vld [vmem:[%s4966_s26 + $0x104] ss:$16 sps:$4 sm:$0xff]   ;;  %v4415_v3 = vld [vmem:[%s4966_s26 + $0x10c] ss:$16 sps:$4 sm:$0xff]  }
  0xc6   : > { %2211 = vmatprep.subr.bf16.mxu1 %v4614_v1  ;;  %v4417_v4 = vld [vmem:[%s4966_s26 + $0x100] ss:$16 sps:$4 sm:$0xff]   ;;  %v4418_v5 = vld [vmem:[%s4966_s26 + $0x108] ss:$16 sps:$4 sm:$0xff]   ;;  %v4419_v6 = vld [vmem:[%s4966_s26 + $0x124] ss:$16 sps:$4 sm:$0xff]  }
  0xc7   : > { %v4421_v7 = vld [vmem:[%s4966_s26 + $0x12c] ss:$16 sps:$4 sm:$0xff]   ;;  %v4423_v8 = vld [vmem:[%s4966_s26 + $0x120] ss:$16 sps:$4 sm:$0xff]   ;;  %v4424_v9 = vld [vmem:[%s4966_s26 + $0x128] ss:$16 sps:$4 sm:$0xff]  }
  0xc8   : > { %1923 = vmatpush1.bf16.msra.mxu0 %v4343_v14  ;;  %v4425_v10 = vld [vmem:[%s4966_s26 + $0x144] ss:$16 sps:$4 sm:$0xff]   ;;  %v4427_v11 = vld [vmem:[%s4966_s26 + $0x14c] ss:$16 sps:$4 sm:$0xff]   ;;  %v4429_v12 = vld [vmem:[%s4966_s26 + $0x140] ss:$16 sps:$4 sm:$0xff]  }
  0xc9   : > { %2212 = vmatpush1.bf16.msra.mxu1 %v4344_v15  ;;  %1924 = vmatprep.subr.bf16.mxu0 %v4614_v1  ;;  %v4430_v13 = vld [vmem:[%s4966_s26 + $0x148] ss:$16 sps:$4 sm:$0xff]   ;;  %v4431_v14 = vld [vmem:[%s4966_s26 + $0x164] ss:$16 sps:$4 sm:$0xff]   ;;  %v4433_v15 = vld [vmem:[%s4966_s26 + $0x16c] ss:$16 sps:$4 sm:$0xff]  }
  0xca   : > { %2213 = vmatprep.subr.bf16.mxu1 %v4614_v1 }
  0xcc   : > { %1925 = vmatpush1.bf16.msra.mxu0 %v4345_v16  ;;  %v4435_v16 = vld [vmem:[%s4966_s26 + $0x160] ss:$16 sps:$4 sm:$0xff]  }
  0xcd   : > { %2214 = vmatpush1.bf16.msra.mxu1 %v4346_v17  ;;  %1926 = vmatprep.subr.bf16.mxu0 %v4614_v1  ;;  %v4436_v17 = vld [vmem:[%s4966_s26 + $0x168] ss:$16 sps:$4 sm:$0xff]  }
  0xce   : > { %2215 = vmatprep.subr.bf16.mxu1 %v4614_v1 }
  0xd0   : > { %1927 = vmatpush1.bf16.msra.mxu0 %v4347_v18  ;;  %v4437_v18 = vld [vmem:[%s4966_s26 + $0x184] ss:$16 sps:$4 sm:$0xff]  }
  0xd1   : > { %2216 = vmatpush1.bf16.msra.mxu1 %v4348_v19  ;;  %1928 = vmatprep.subr.bf16.mxu0 %v4614_v1  ;;  %v4439_v19 = vld [vmem:[%s4966_s26 + $0x18c] ss:$16 sps:$4 sm:$0xff]  }
  0xd2   : > { %2217 = vmatprep.subr.bf16.mxu1 %v4614_v1 }
  0xd4   : > { %1929 = vmatpush2.bf16.msra.mxu0 %v4349_v20  ;;  %v4441_v20 = vld [vmem:[%s4966_s26 + $0x180] ss:$16 sps:$4 sm:$0xff]  }
  0xd5   : > { %2218 = vmatpush2.bf16.msra.mxu1 %v4350_v21  ;;  %1930 = vmatprep.subr.bf16.mxu0 %v4614_v1  ;;  %v4442_v21 = vld [vmem:[%s4966_s26 + $0x188] ss:$16 sps:$4 sm:$0xff]  }
  0xd6   : > { %2219 = vmatprep.subr.bf16.mxu1 %v4614_v1 }
  0xd8   : > { %1931 = vmatpush2.bf16.msra.mxu0 %v4351_v22  ;;  %v4443_v22 = vld [vmem:[%s4966_s26 + $0x1a4] ss:$16 sps:$4 sm:$0xff]  }
  0xd9   : > { %2220 = vmatpush2.bf16.msra.mxu1 %v4352_v23  ;;  %1932 = vmatprep.subr.bf16.mxu0 %v4614_v1  ;;  %v4445_v23 = vld [vmem:[%s4966_s26 + $0x1ac] ss:$16 sps:$4 sm:$0xff]  }
  0xda   : > { %2221 = vmatprep.subr.bf16.mxu1 %v4614_v1 }
  0xdc   : > { %1933 = vmatpush2.bf16.msra.mxu0 %v4353_v24  ;;  %v4447_v24 = vld [vmem:[%s4966_s26 + $0x1a0] ss:$16 sps:$4 sm:$0xff]  }
  0xdd   : > { %2222 = vmatpush2.bf16.msra.mxu1 %v4354_v25  ;;  %1934 = vmatprep.subr.bf16.mxu0 %v4614_v1  ;;  %v4448_v25 = vld [vmem:[%s4966_s26 + $0x1a8] ss:$16 sps:$4 sm:$0xff]  }
  0xde   : > { %2223 = vmatprep.subr.bf16.mxu1 %v4614_v1 }
  0xe0   : > { %1935 = vmatpush2.bf16.msra.mxu0 %v4355_v26  ;;  %v4449_v26 = vld [vmem:[%s4966_s26 + $0x1c4] ss:$16 sps:$4 sm:$0xff]  }
  0xe1   : > { %2224 = vmatpush2.bf16.msra.mxu1 %v4356_v27  ;;  %1936 = vmatprep.subr.bf16.mxu0 %v4614_v1  ;;  %v4451_v27 = vld [vmem:[%s4966_s26 + $0x1cc] ss:$16 sps:$4 sm:$0xff]  }
  0xe2   : > { %2225 = vmatprep.subr.bf16.mxu1 %v4614_v1 }
  0xe4   : > { %1937 = vmatpush2.bf16.msra.mxu0 %v4357_v28  ;;  %v4453_v28 = vld [vmem:[%s4966_s26 + $0x1c0] ss:$16 sps:$4 sm:$0xff]  }
  0xe5   : > { %2226 = vmatpush2.bf16.msra.mxu1 %v4358_v29  ;;  %1938 = vmatprep.subr.bf16.mxu0 %v4614_v1  ;;  %v4454_v29 = vld [vmem:[%s4966_s26 + $0x1c8] ss:$16 sps:$4 sm:$0xff]  }
  0xe6   : > { %2227 = vmatprep.subr.bf16.mxu1 %v4614_v1 }
  0xe8   : > { %1939 = vmatpush2.bf16.msra.mxu0 %v4359_v30  ;;  %v4455_v30 = vld [vmem:[%s4966_s26 + $0x1e4] ss:$16 sps:$4 sm:$0xff]  }
  0xe9   : > { %2228 = vmatpush2.bf16.msra.mxu1 %v4360_v31  ;;  %1940 = vmatprep.subr.bf16.mxu0 %v4614_v1  ;;  %v4457_v31 = vld [vmem:[%s4966_s26 + $0x1ec] ss:$16 sps:$4 sm:$0xff]  }
  0xea   : > { %2229 = vmatprep.subr.bf16.mxu1 %v4614_v1 }
  0xec   : > { %1941 = vmatpush2.bf16.msra.mxu0 %v4361_v32  ;;  %v4459_v32 = vld [vmem:[%s4966_s26 + $0x1e0] ss:$16 sps:$4 sm:$0xff]  }
  0xed   : > { %2230 = vmatpush2.bf16.msra.mxu1 %v4362_v33  ;;  %1942 = vmatprep.subr.bf16.mxu0 %v4614_v1  ;;  %v4460_v33 = vld [vmem:[%s4966_s26 + $0x1e8] ss:$16 sps:$4 sm:$0xff]  }
  0xee   : > { %2231 = vmatprep.subr.bf16.mxu1 %v4614_v1  ;;  %v4412_v1 = vld [vmem:[%s4966_s26 + $0xe8] ss:$16 sps:$4 sm:$0xff]  }
  0xf0   : > { %1943 = vmatpush2.bf16.msra.mxu0 %v4363_v34  ;;  %v4461_v34 = vld [vmem:[%s4966_s26 + $0x204] ss:$16 sps:$4 sm:$0xff]  }
  0xf1   : > { %2232 = vmatpush2.bf16.msra.mxu1 %v4364_v35  ;;  %v4463_v35 = vld [vmem:[%s4966_s26 + $0x20c] ss:$16 sps:$4 sm:$0xff]  }
  0xf3   : > { %1945 = vmatmul.mubr.bf16.vlgmr.msra.gmra.mxu0 %v4365_v36  ;;  %v4465_v36 = vld [vmem:[%s4966_s26 + $0x200] ss:$16 sps:$4 sm:$0xff]  }
  0xf4   : > { %2234 = vmatmul.mubr.bf16.vlgmr.msra.gmra.mxu1 %v4368_v37  ;;  %1952 = vmatprep.mubr.bf16.mxu0 %v4371_v38  ;;  %v4466_v37 = vld [vmem:[%s4966_s26 + $0x208] ss:$16 sps:$4 sm:$0xff]   ;;  %v4467_v38 = vld [vmem:[%s4966_s26 + $0x224] ss:$16 sps:$4 sm:$0xff]  }
  0xf5   : > { %2241 = vmatprep.mubr.bf16.mxu1 %v4373_v39  ;;  %v4469_v39 = vld [vmem:[%s4966_s26 + $0x22c] ss:$16 sps:$4 sm:$0xff]  }
  0xfb   : > { %1953 = vmatmul.mubr.bf16.gmra.mxu0 %v4375_v40  ;;  %v4471_v40 = vld [vmem:[%s4966_s26 + $0x220] ss:$16 sps:$4 sm:$0xff]  }
  0xfc   : > { %2242 = vmatmul.mubr.bf16.gmra.mxu1 %v4376_v41  ;;  %1960 = vmatprep.mubr.bf16.mxu0 %v4377_v42  ;;  %v4472_v41 = vld [vmem:[%s4966_s26 + $0x228] ss:$16 sps:$4 sm:$0xff]   ;;  %v4473_v42 = vld [vmem:[%s4966_s26 + $0x244] ss:$16 sps:$4 sm:$0xff]  }
  0xfd   : > { %2249 = vmatprep.mubr.bf16.mxu1 %v4379_v43  ;;  %v4475_v43 = vld [vmem:[%s4966_s26 + $0x24c] ss:$16 sps:$4 sm:$0xff]  }
 0x103   : > { %1961 = vmatmul.mubr.bf16.gmra.mxu0 %v4381_v44  ;;  %v4477_v44 = vld [vmem:[%s4966_s26 + $0x240] ss:$16 sps:$4 sm:$0xff]  }
 0x104   : > { %2250 = vmatmul.mubr.bf16.gmra.mxu1 %v4382_v45  ;;  %1968 = vmatprep.mubr.bf16.mxu0 %v4383_v46  ;;  %v4478_v45 = vld [vmem:[%s4966_s26 + $0x248] ss:$16 sps:$4 sm:$0xff]   ;;  %v4479_v46 = vld [vmem:[%s4966_s26 + $0x264] ss:$16 sps:$4 sm:$0xff]  }
 0x105   : > { %2257 = vmatprep.mubr.bf16.mxu1 %v4385_v47  ;;  %v4481_v47 = vld [vmem:[%s4966_s26 + $0x26c] ss:$16 sps:$4 sm:$0xff]  }
 0x10b   : > { %1969 = vmatmul.mubr.bf16.gmra.mxu0 %v4387_v48  ;;  %v4483_v48 = vld [vmem:[%s4966_s26 + $0x260] ss:$16 sps:$4 sm:$0xff]  }
 0x10c   : > { %2258 = vmatmul.mubr.bf16.gmra.mxu1 %v4388_v49  ;;  %1976 = vmatprep.mubr.bf16.mxu0 %v4389_v50  ;;  %v4484_v49 = vld [vmem:[%s4966_s26 + $0x268] ss:$16 sps:$4 sm:$0xff]   ;;  %v4485_v50 = vld [vmem:[%s4966_s26 + $0x284] ss:$16 sps:$4 sm:$0xff]  }
 0x10d   : > { %2265 = vmatprep.mubr.bf16.mxu1 %v4391_v51  ;;  %v4487_v51 = vld [vmem:[%s4966_s26 + $0x28c] ss:$16 sps:$4 sm:$0xff]  }
 0x113   : > { %1977 = vmatmul.mubr.bf16.gmra.mxu0 %v4393_v52  ;;  %v4489_v52 = vld [vmem:[%s4966_s26 + $0x280] ss:$16 sps:$4 sm:$0xff]  }
 0x114   : > { %2266 = vmatmul.mubr.bf16.gmra.mxu1 %v4394_v53  ;;  %1984 = vmatprep.mubr.bf16.mxu0 %v4395_v54  ;;  %v4490_v53 = vld [vmem:[%s4966_s26 + $0x288] ss:$16 sps:$4 sm:$0xff]   ;;  %v4491_v54 = vld [vmem:[%s4966_s26 + $0x2a4] ss:$16 sps:$4 sm:$0xff]  }
 0x115   : > { %2273 = vmatprep.mubr.bf16.mxu1 %v4397_v55  ;;  %v4493_v55 = vld [vmem:[%s4966_s26 + $0x2ac] ss:$16 sps:$4 sm:$0xff]  }
 0x11b   : > { %1985 = vmatmul.mubr.bf16.gmra.mxu0 %v4399_v56  ;;  %v4495_v56 = vld [vmem:[%s4966_s26 + $0x2a0] ss:$16 sps:$4 sm:$0xff]  }
 0x11c   : > { %2274 = vmatmul.mubr.bf16.gmra.mxu1 %v4400_v57  ;;  %1992 = vmatprep.mubr.bf16.mxu0 %v4401_v58  ;;  %v4496_v57 = vld [vmem:[%s4966_s26 + $0x2a8] ss:$16 sps:$4 sm:$0xff]   ;;  %v4497_v58 = vld [vmem:[%s4966_s26 + $0x2c4] ss:$16 sps:$4 sm:$0xff]  }
 0x11d   : > { %2281 = vmatprep.mubr.bf16.mxu1 %v4403_v59  ;;  %v4499_v59 = vld [vmem:[%s4966_s26 + $0x2cc] ss:$16 sps:$4 sm:$0xff]  }
 0x123   : > { %1993 = vmatmul.mubr.bf16.gmra.mxu0 %v4405_v60  ;;  %v4501_v60 = vld [vmem:[%s4966_s26 + $0x2c0] ss:$16 sps:$4 sm:$0xff]  }
 0x124   : > { %2282 = vmatmul.mubr.bf16.gmra.mxu1 %v4406_v61  ;;  %2000 = vmatprep.mubr.bf16.mxu0 %v4407_v62  ;;  %v4502_v61 = vld [vmem:[%s4966_s26 + $0x2c8] ss:$16 sps:$4 sm:$0xff]   ;;  %v4503_v62 = vld [vmem:[%s4966_s26 + $0x2e4] ss:$16 sps:$4 sm:$0xff]  }
 0x125   : > { %2289 = vmatprep.mubr.bf16.mxu1 %v4409_v63  ;;  %v4505_v63 = vld [vmem:[%s4966_s26 + $0x2ec] ss:$16 sps:$4 sm:$0xff]  }
 0x12b   : > { %2001 = vmatmul.mubr.bf16.gmra.mxu0 %v4411_v0  ;;  %v4507_v0 = vld [vmem:[%s4966_s26 + $0x2e0] ss:$16 sps:$4 sm:$0xff]  }
 0x12c   : > { %2290 = vmatmul.mubr.bf16.gmra.mxu1 %v4412_v1  ;;  %2008 = vmatprep.mubr.bf16.mxu0 %v4413_v2  ;;  %v4508_v1 = vld [vmem:[%s4966_s26 + $0x2e8] ss:$16 sps:$4 sm:$0xff]   ;;  %v4509_v2 = vld [vmem:[%s4966_s26 + $0x304] ss:$16 sps:$4 sm:$0xff]  }
 0x12d   : > { %2297 = vmatprep.mubr.bf16.mxu1 %v4415_v3  ;;  %v4511_v3 = vld [vmem:[%s4966_s26 + $0x30c] ss:$16 sps:$4 sm:$0xff]  }
 0x133   : > { %2009 = vmatmul.mubr.bf16.gmra.mxu0 %v4417_v4  ;;  %v4513_v4 = vld [vmem:[%s4966_s26 + $0x300] ss:$16 sps:$4 sm:$0xff]  }
 0x134   : > { %2298 = vmatmul.mubr.bf16.gmra.mxu1 %v4418_v5  ;;  %2016 = vmatprep.mubr.bf16.mxu0 %v4419_v6  ;;  %v4514_v5 = vld [vmem:[%s4966_s26 + $0x308] ss:$16 sps:$4 sm:$0xff]   ;;  %v4515_v6 = vld [vmem:[%s4966_s26 + $0x324] ss:$16 sps:$4 sm:$0xff]  }
 0x135   : > { %2305 = vmatprep.mubr.bf16.mxu1 %v4421_v7  ;;  %v4517_v7 = vld [vmem:[%s4966_s26 + $0x32c] ss:$16 sps:$4 sm:$0xff]  }
 0x13b   : > { %2017 = vmatmul.mubr.bf16.gmra.mxu0 %v4423_v8 }
 0x13c   : > { %2306 = vmatmul.mubr.bf16.gmra.mxu1 %v4424_v9  ;;  %2024 = vmatprep.mubr.bf16.mxu0 %v4425_v10  ;;  %v818_v9 = vld [vmem:[#allocation3 + $0xb0] sm:$0xff] }
 0x13d   : > { %2313 = vmatprep.mubr.bf16.mxu1 %v4427_v11 }
 0x143   : > { %2025 = vmatmul.mubr.bf16.gmra.mxu0 %v4429_v12 }
 0x144   : > { %2314 = vmatmul.mubr.bf16.gmra.mxu1 %v4430_v13  ;;  %2032 = vmatprep.mubr.bf16.mxu0 %v4431_v14 }
 0x145   : > { %2321 = vmatprep.mubr.bf16.mxu1 %v4433_v15 }
 0x14b   : > { %2033 = vmatmul.mubr.bf16.gmra.mxu0 %v4435_v16  ;;  %v4519_v16 = vld [vmem:[%s4966_s26 + $0x320] ss:$16 sps:$4 sm:$0xff]  }
 0x14c   : > { %2322 = vmatmul.mubr.bf16.gmra.mxu1 %v4436_v17  ;;  %2040 = vmatprep.mubr.bf16.mxu0 %v4437_v18  ;;  %v819_v17 = vld [vmem:[#allocation3 + $0x1b0] sm:$0xff] }
 0x14d   : > { %2329 = vmatprep.mubr.bf16.mxu1 %v4439_v19  ;;  %v4520_v19 = vld [vmem:[%s4966_s26 + $0x328] ss:$16 sps:$4 sm:$0xff]  }
 0x153   : > { %2041 = vmatmul.mubr.bf16.gmra.mxu0 %v4441_v20  ;;  %v4521_v20 = vld [vmem:[%s4966_s26 + $0x344] ss:$16 sps:$4 sm:$0xff]  }
 0x154   : > { %2330 = vmatmul.mubr.bf16.gmra.mxu1 %v4442_v21  ;;  %2048 = vmatprep.mubr.bf16.mxu0 %v4443_v22 }
 0x155   : > { %2337 = vmatprep.mubr.bf16.mxu1 %v4445_v23  ;;  %v4523_v23 = vld [vmem:[%s4966_s26 + $0x34c] ss:$16 sps:$4 sm:$0xff]  }
 0x15b   : > { %2049 = vmatmul.mubr.bf16.gmra.mxu0 %v4447_v24 }
 0x15c   : > { %2338 = vmatmul.mubr.bf16.gmra.mxu1 %v4448_v25  ;;  %2056 = vmatprep.mubr.bf16.mxu0 %v4449_v26 }
 0x15d   : > { %2345 = vmatprep.mubr.bf16.mxu1 %v4451_v27  ;;  %v820_v27 = vld [vmem:[#allocation3 + $0xd8] sm:$0xff] }
 0x163   : > { %2057 = vmatmul.mubr.bf16.gmra.mxu0 %v4453_v28 }
 0x164   : > { %2346 = vmatmul.mubr.bf16.gmra.mxu1 %v4454_v29  ;;  %2064 = vmatprep.mubr.bf16.mxu0 %v4455_v30 }
 0x165   : > { %2353 = vmatprep.mubr.bf16.mxu1 %v4457_v31 }
 0x16b   : > { %2065 = vmatmul.mubr.bf16.gmra.mxu0 %v4459_v32 }
 0x16c   : > { %2354 = vmatmul.mubr.bf16.gmra.mxu1 %v4460_v33  ;;  %2072 = vmatprep.mubr.bf16.mxu0 %v4461_v34  ;;  %v4525_v34 = vld [vmem:[%s4966_s26 + $0x340] ss:$16 sps:$4 sm:$0xff]  }
 0x16d   : > { %2361 = vmatprep.mubr.bf16.mxu1 %v4463_v35  ;;  %v821_v35 = vld [vmem:[#allocation3 + $0x18] sm:$0xff] }
 0x173   : > { %2073 = vmatmul.mubr.bf16.gmra.mxu0 %v4465_v36 }
 0x174   : > { %2362 = vmatmul.mubr.bf16.gmra.mxu1 %v4466_v37  ;;  %2080 = vmatprep.mubr.bf16.mxu0 %v4467_v38  ;;  %v4526_v37 = vld [vmem:[%s4966_s26 + $0x348] ss:$16 sps:$4 sm:$0xff]   ;;  %v4527_v38 = vld [vmem:[%s4966_s26 + $0x364] ss:$16 sps:$4 sm:$0xff]  }
 0x175   : > { %2369 = vmatprep.mubr.bf16.mxu1 %v4469_v39 }
 0x17b   : > { %2081 = vmatmul.mubr.bf16.gmra.mxu0 %v4471_v40 }
 0x17c   : > { %2370 = vmatmul.mubr.bf16.gmra.mxu1 %v4472_v41  ;;  %2088 = vmatprep.mubr.bf16.mxu0 %v4473_v42  ;;  %v4529_v41 = vld [vmem:[%s4966_s26 + $0x36c] ss:$16 sps:$4 sm:$0xff]  }
 0x17d   : > { %2377 = vmatprep.mubr.bf16.mxu1 %v4475_v43 }
 0x183   : > { %2089 = vmatmul.mubr.bf16.gmra.mxu0 %v4477_v44 }
 0x184   : > { %2378 = vmatmul.mubr.bf16.gmra.mxu1 %v4478_v45  ;;  %2096 = vmatprep.mubr.bf16.mxu0 %v4479_v46  ;;  %v822_v45 = vld [vmem:[#allocation3 + $0x50] sm:$0xff] }
 0x185   : > { %2385 = vmatprep.mubr.bf16.mxu1 %v4481_v47 }
 0x18b   : > { %2097 = vmatmul.mubr.bf16.gmra.mxu0 %v4483_v48 }
 0x18c   : > { %2386 = vmatmul.mubr.bf16.gmra.mxu1 %v4484_v49  ;;  %2104 = vmatprep.mubr.bf16.mxu0 %v4485_v50 }
 0x18d   : > { %2393 = vmatprep.mubr.bf16.mxu1 %v4487_v51 }
 0x193   : > { %2105 = vmatmul.mubr.bf16.gmra.mxu0 %v4489_v52  ;;  %v4531_v52 = vld [vmem:[%s4966_s26 + $0x360] ss:$16 sps:$4 sm:$0xff]  }
 0x194   : > { %2394 = vmatmul.mubr.bf16.gmra.mxu1 %v4490_v53  ;;  %2112 = vmatprep.mubr.bf16.mxu0 %v4491_v54  ;;  %v823_v53 = vld [vmem:[#allocation3 + $0x168] sm:$0xff] }
 0x195   : > { %2401 = vmatprep.mubr.bf16.mxu1 %v4493_v55  ;;  %v4532_v55 = vld [vmem:[%s4966_s26 + $0x368] ss:$16 sps:$4 sm:$0xff]  }
 0x19b   : > { %2113 = vmatmul.mubr.bf16.gmra.mxu0 %v4495_v56  ;;  %v4535_v56 = vld [vmem:[%s4966_s26 + $0x384] ss:$16 sps:$4 sm:$0xff]  }
 0x19c   : > { %2402 = vmatmul.mubr.bf16.gmra.mxu1 %v4496_v57  ;;  %2120 = vmatprep.mubr.bf16.mxu0 %v4497_v58 }
 0x19d   : > { %2409 = vmatprep.mubr.bf16.mxu1 %v4499_v59  ;;  %v4538_v59 = vld [vmem:[%s4966_s26 + $0x38c] ss:$16 sps:$4 sm:$0xff]  }
 0x1a3   : > { %2121 = vmatmul.mubr.bf16.gmra.mxu0 %v4501_v60 }
 0x1a4   : > { %2410 = vmatmul.mubr.bf16.gmra.mxu1 %v4502_v61  ;;  %2128 = vmatprep.mubr.bf16.mxu0 %v4503_v62 }
 0x1a5   : > { %2417 = vmatprep.mubr.bf16.mxu1 %v4505_v63  ;;  %v824_v63 = vld [vmem:[#allocation3 + $0x130] sm:$0xff] }
 0x1ab   : > { %2129 = vmatmul.mubr.bf16.gmra.mxu0 %v4507_v0 }
 0x1ac   : > { %2418 = vmatmul.mubr.bf16.gmra.mxu1 %v4508_v1  ;;  %2136 = vmatprep.mubr.bf16.mxu0 %v4509_v2 }
 0x1ad   : > { %2425 = vmatprep.mubr.bf16.mxu1 %v4511_v3 }
 0x1b3   : > { %v1946_v8 = vpop.f32.mrf.mxu0  ;;  %2137 = vmatmul.mubr.bf16.gmra.mxu0 %v4513_v4 }
 0x1b4   : > { %v2235_v10 = vpop.f32.mrf.mxu1  ;;  %2426 = vmatmul.mubr.bf16.gmra.mxu1 %v4514_v5  ;;  %2144 = vmatprep.mubr.bf16.mxu0 %v4515_v6  ;;  %v4533_v6 = vld [vmem:[%s4966_s26 + $0x380] ss:$16 sps:$4 sm:$0xff]  }
 0x1b5   : > { %v2236_v11 = vadd.f32 %v2235_v10, %v1946_v8  ;;  %v1948_v12 = vpop.f32.mrf.mxu0  ;;  %2433 = vmatprep.mubr.bf16.mxu1 %v4517_v7  ;;  %v825_v7 = vld [vmem:[#allocation3 + $0x48] sm:$0xff]  ;;  %v4541_v10 = vld [vmem:[%s4966_s26 + $0x3a4] ss:$16 sps:$4 sm:$0xff]  }
 0x1b6   : > { %v2237_v13 = vpop.f32.mrf.mxu1 }
 0x1b7   : > { %v2490_v14 = vadd.f32 %v2236_v11, %v818_v9  ;;  %v1949_v15 = vpop.f32.mrf.mxu0  ;;  %v4536_v9 = vld [vmem:[%s4966_s26 + $0x388] ss:$16 sps:$4 sm:$0xff]   ;;  %v4544_v13 = vld [vmem:[%s4966_s26 + $0x3ac] ss:$16 sps:$4 sm:$0xff]  }
 0x1b8   : > { %v2238_v18 = vpop.f32.mrf.mxu1 }
 0x1b9   : > { %2554 = vst [vmem:[#allocation3 + $0xb0] sm:$0xff] %v2490_v14  ;;  %v2239_v21 = vadd.f32 %v2238_v18, %v1949_v15  ;;  %v1951_v22 = vpop.f32.mrf.mxu0 }
 0x1ba   : > { %v2240_v24 = vpop.f32.mrf.mxu1 }
 0x1bb   : > { %v2491_v25 = vadd.f32 %v2239_v21, %v819_v17  ;;  %v1954_v26 = vpop.f32.mrf.mxu0  ;;  %2145 = vmatmul.mubr.bf16.gmra.mxu0 %v4519_v16  ;;  %v826_v17 = vld [vmem:[#allocation3 + $0x180] sm:$0xff] }
 0x1bc   : > { %v2243_v28 = vpop.f32.mrf.mxu1  ;;  %2434 = vmatmul.mubr.bf16.gmra.mxu1 %v4520_v19  ;;  %2152 = vmatprep.mubr.bf16.mxu0 %v4521_v20  ;;  %v4539_v24 = vld [vmem:[%s4966_s26 + $0x3a0] ss:$16 sps:$4 sm:$0xff]  }
 0x1bd   : > { %2555 = vst [vmem:[#allocation3 + $0x1b0] sm:$0xff] %v2491_v25  ;;  %v2244_v29 = vadd.f32 %v2243_v28, %v1954_v26  ;;  %v1956_v30 = vpop.f32.mrf.mxu0  ;;  %2441 = vmatprep.mubr.bf16.mxu1 %v4523_v23  ;;  %v827_v25 = vld [vmem:[#allocation3 + $0x110] sm:$0xff] }
 0x1be   : > { %v2245_v31 = vpop.f32.mrf.mxu1  ;;  %v4547_v28 = vld [vmem:[%s4966_s26 + $0x3c4] ss:$16 sps:$4 sm:$0xff]  }
 0x1bf   : > { %v2492_v32 = vadd.f32 %v2244_v29, %v820_v27  ;;  %v1957_v33 = vpop.f32.mrf.mxu0  ;;  %v4542_v27 = vld [vmem:[%s4966_s26 + $0x3a8] ss:$16 sps:$4 sm:$0xff]   ;;  %v4550_v31 = vld [vmem:[%s4966_s26 + $0x3cc] ss:$16 sps:$4 sm:$0xff]  }
 0x1c0   : > { %v2246_v36 = vpop.f32.mrf.mxu1 }
 0x1c1   : > { %2556 = vst [vmem:[#allocation3 + $0xd8] sm:$0xff] %v2492_v32  ;;  %v2247_v39 = vadd.f32 %v2246_v36, %v1957_v33  ;;  %v1959_v40 = vpop.f32.mrf.mxu0 }
 0x1c2   : > { %v2248_v42 = vpop.f32.mrf.mxu1 }
 0x1c3   : > { %v2493_v43 = vadd.f32 %v2247_v39, %v821_v35  ;;  %v1962_v44 = vpop.f32.mrf.mxu0  ;;  %2153 = vmatmul.mubr.bf16.gmra.mxu0 %v4525_v34  ;;  %v828_v35 = vld [vmem:[#allocation3 + $0x118] sm:$0xff]  ;;  %v4545_v42 = vld [vmem:[%s4966_s26 + $0x3c0] ss:$16 sps:$4 sm:$0xff]  }
 0x1c4   : > { %v2251_v46 = vpop.f32.mrf.mxu1  ;;  %2442 = vmatmul.mubr.bf16.gmra.mxu1 %v4526_v37  ;;  %2160 = vmatprep.mubr.bf16.mxu0 %v4527_v38 }
 0x1c5   : > { %2557 = vst [vmem:[#allocation3 + $0x18] sm:$0xff] %v2493_v43  ;;  %v2252_v47 = vadd.f32 %v2251_v46, %v1962_v44  ;;  %v1964_v48 = vpop.f32.mrf.mxu0  ;;  %2449 = vmatprep.mubr.bf16.mxu1 %v4529_v41  ;;  %v829_v43 = vld [vmem:[#allocation3 + $0x98] sm:$0xff]  ;;  %v4553_v46 = vld [vmem:[%s4966_s26 + $0x3e4] ss:$16 sps:$4 sm:$0xff]  }
 0x1c6   : > { %v2253_v49 = vpop.f32.mrf.mxu1 }
 0x1c7   : > { %v2494_v50 = vadd.f32 %v2252_v47, %v822_v45  ;;  %v1965_v51 = vpop.f32.mrf.mxu0  ;;  %v4548_v45 = vld [vmem:[%s4966_s26 + $0x3c8] ss:$16 sps:$4 sm:$0xff]   ;;  %v4556_v49 = vld [vmem:[%s4966_s26 + $0x3ec] ss:$16 sps:$4 sm:$0xff]  }
 0x1c8   : > { %v2254_v54 = vpop.f32.mrf.mxu1 }
 0x1c9   : > { %2558 = vst [vmem:[#allocation3 + $0x50] sm:$0xff] %v2494_v50  ;;  %v2255_v57 = vadd.f32 %v2254_v54, %v1965_v51  ;;  %v1967_v58 = vpop.f32.mrf.mxu0 }
 0x1ca   : > { %v2256_v60 = vpop.f32.mrf.mxu1 }
 0x1cb   : > { %v2495_v61 = vadd.f32 %v2255_v57, %v823_v53  ;;  %v1970_v62 = vpop.f32.mrf.mxu0  ;;  %2161 = vmatmul.mubr.bf16.gmra.mxu0 %v4531_v52  ;;  %v830_v53 = vld [vmem:[#allocation3 + $0x120] sm:$0xff] }
 0x1cc   : > { %v2259_v0 = vpop.f32.mrf.mxu1  ;;  %2450 = vmatmul.mubr.bf16.gmra.mxu1 %v4532_v55  ;;  %2168 = vmatprep.mubr.bf16.mxu0 %v4535_v56  ;;  %v4551_v60 = vld [vmem:[%s4966_s26 + $0x3e0] ss:$16 sps:$4 sm:$0xff]  }
 0x1cd   : > { %2559 = vst [vmem:[#allocation3 + $0x168] sm:$0xff] %v2495_v61  ;;  %v2260_v1 = vadd.f32 %v2259_v0, %v1970_v62  ;;  %v1972_v2 = vpop.f32.mrf.mxu0  ;;  %2457 = vmatprep.mubr.bf16.mxu1 %v4538_v59  ;;  %v831_v61 = vld [vmem:[#allocation3 + $0x150] sm:$0xff] }
 0x1ce   : > { %v2261_v3 = vpop.f32.mrf.mxu1 }
 0x1cf   : > { %v2496_v4 = vadd.f32 %v2260_v1, %v824_v63  ;;  %v1973_v5 = vpop.f32.mrf.mxu0  ;;  %v4554_v63 = vld [vmem:[%s4966_s26 + $0x3e8] ss:$16 sps:$4 sm:$0xff]  }
 0x1d0   : > { %v2262_v8 = vpop.f32.mrf.mxu1 }
 0x1d1   : > { %2560 = vst [vmem:[#allocation3 + $0x130] sm:$0xff] %v2496_v4  ;;  %v2263_v11 = vadd.f32 %v2262_v8, %v1973_v5  ;;  %v1975_v12 = vpop.f32.mrf.mxu0  ;;  %v832_v5 = vld [vmem:[#allocation3 + $0x108] sm:$0xff] }
 0x1d2   : > { %v2264_v14 = vpop.f32.mrf.mxu1  ;;  %v833_v12 = vld [vmem:[#allocation3 + $0x60] sm:$0xff] }
 0x1d3   : > { %v2497_v15 = vadd.f32 %v2263_v11, %v825_v7  ;;  %v1978_v16 = vpop.f32.mrf.mxu0  ;;  %2169 = vmatmul.mubr.bf16.gmra.mxu0 %v4533_v6 }
 0x1d4   : > { %v2267_v18 = vpop.f32.mrf.mxu1  ;;  %2458 = vmatmul.mubr.bf16.gmra.mxu1 %v4536_v9  ;;  %2176 = vmatprep.mubr.bf16.mxu0 %v4541_v10 }
 0x1d5   : > { %2561 = vst [vmem:[#allocation3 + $0x48] sm:$0xff] %v2497_v15  ;;  %v2268_v19 = vadd.f32 %v2267_v18, %v1978_v16  ;;  %v1980_v20 = vpop.f32.mrf.mxu0  ;;  %2465 = vmatprep.mubr.bf16.mxu1 %v4544_v13 }
 0x1d6   : > { %v2269_v21 = vpop.f32.mrf.mxu1 }
 0x1d7   : > { %v2498_v22 = vadd.f32 %v2268_v19, %v826_v17  ;;  %v1981_v23 = vpop.f32.mrf.mxu0  ;;  %v834_v19 = vld [vmem:[#allocation3 + $0xe0] sm:$0xff] }
 0x1d8   : > { %v2270_v26 = vpop.f32.mrf.mxu1 }
 0x1d9   : > { %2562 = vst [vmem:[#allocation3 + $0x180] sm:$0xff] %v2498_v22  ;;  %v2271_v29 = vadd.f32 %v2270_v26, %v1981_v23  ;;  %v1983_v30 = vpop.f32.mrf.mxu0  ;;  %v835_v26 = vld [vmem:[#allocation3 + $0x188] sm:$0xff] }
 0x1da   : > { %v2272_v32 = vpop.f32.mrf.mxu1 }
 0x1db   : > { %v2499_v33 = vadd.f32 %v2271_v29, %v827_v25  ;;  %v1986_v34 = vpop.f32.mrf.mxu0  ;;  %2177 = vmatmul.mubr.bf16.gmra.mxu0 %v4539_v24 }
 0x1dc   : > { %v2275_v36 = vpop.f32.mrf.mxu1  ;;  %2466 = vmatmul.mubr.bf16.gmra.mxu1 %v4542_v27  ;;  %2184 = vmatprep.mubr.bf16.mxu0 %v4547_v28 }
 0x1dd   : > { %2563 = vst [vmem:[#allocation3 + $0x110] sm:$0xff] %v2499_v33  ;;  %v2276_v37 = vadd.f32 %v2275_v36, %v1986_v34  ;;  %v1988_v38 = vpop.f32.mrf.mxu0  ;;  %2473 = vmatprep.mubr.bf16.mxu1 %v4550_v31  ;;  %v836_v33 = vld [vmem:[#allocation3 + $0x138] sm:$0xff] }
 0x1de   : > { %v2277_v39 = vpop.f32.mrf.mxu1 }
 0x1df   : > { %v2500_v40 = vadd.f32 %v2276_v37, %v828_v35  ;;  %v1989_v41 = vpop.f32.mrf.mxu0 }
 0x1e0   : > { %v2278_v44 = vpop.f32.mrf.mxu1 }
 0x1e1   : > { %2564 = vst [vmem:[#allocation3 + $0x118] sm:$0xff] %v2500_v40  ;;  %v2279_v47 = vadd.f32 %v2278_v44, %v1989_v41  ;;  %v1991_v48 = vpop.f32.mrf.mxu0  ;;  %v837_v40 = vld [vmem:[#allocation3 + $0x140] sm:$0xff] }
 0x1e2   : > { %v2280_v50 = vpop.f32.mrf.mxu1 }
 0x1e3   : > { %v2501_v51 = vadd.f32 %v2279_v47, %v829_v43  ;;  %v1994_v52 = vpop.f32.mrf.mxu0  ;;  %2185 = vmatmul.mubr.bf16.gmra.mxu0 %v4545_v42  ;;  %v838_v47 = vld [vmem:[#allocation3 + $0x80] sm:$0xff] }
 0x1e4   : > { %v2283_v54 = vpop.f32.mrf.mxu1  ;;  %2474 = vmatmul.mubr.bf16.gmra.mxu1 %v4548_v45  ;;  %2192 = vmatprep.mubr.bf16.mxu0 %v4553_v46 }
 0x1e5   : > { %2565 = vst [vmem:[#allocation3 + $0x98] sm:$0xff] %v2501_v51  ;;  %v2284_v55 = vadd.f32 %v2283_v54, %v1994_v52  ;;  %v1996_v56 = vpop.f32.mrf.mxu0  ;;  %2481 = vmatprep.mubr.bf16.mxu1 %v4556_v49  ;;  %v839_v54 = vld [vmem:[#allocation3 + $0x1a8] sm:$0xff] }
 0x1e6   : > { %v2285_v57 = vpop.f32.mrf.mxu1 }
 0x1e7   : > { %v2502_v58 = vadd.f32 %v2284_v55, %v830_v53  ;;  %v1997_v59 = vpop.f32.mrf.mxu0 }
 0x1e8   : > { %v2286_v62 = vpop.f32.mrf.mxu1 }
 0x1e9   : > { %2566 = vst [vmem:[#allocation3 + $0x120] sm:$0xff] %v2502_v58  ;;  %v2287_v0 = vadd.f32 %v2286_v62, %v1997_v59  ;;  %v1999_v1 = vpop.f32.mrf.mxu0 }
 0x1ea   : > { %v2288_v2 = vpop.f32.mrf.mxu1 }
 0x1eb   : > { %v2503_v3 = vadd.f32 %v2287_v0, %v831_v61  ;;  %v2002_v4 = vpop.f32.mrf.mxu0  ;;  %2193 = vmatmul.mubr.bf16.gmra.mxu0 %v4551_v60  ;;  %v840_v61 = vld [vmem:[#allocation3 + $0x1b8] sm:$0xff] }
 0x1ec   : > { %v2291_v6 = vpop.f32.mrf.mxu1  ;;  %2482 = vmatmul.mubr.bf16.gmra.mxu1 %v4554_v63 }
 0x1ed   : > { %2567 = vst [vmem:[#allocation3 + $0x150] sm:$0xff] %v2503_v3  ;;  %v2292_v7 = vadd.f32 %v2291_v6, %v2002_v4  ;;  %v2004_v8 = vpop.f32.mrf.mxu0  ;;  %v841_v4 = vld [vmem:[#allocation3 + $0x28] sm:$0xff] }
 0x1ee   : > { %v2293_v9 = vpop.f32.mrf.mxu1 }
 0x1ef   : > { %v2504_v10 = vadd.f32 %v2292_v7, %v832_v5  ;;  %v2005_v11 = vpop.f32.mrf.mxu0 }
 0x1f0   : > { %v2294_v13 = vpop.f32.mrf.mxu1 }
 0x1f1   : > { %2568 = vst [vmem:[#allocation3 + $0x108] sm:$0xff] %v2504_v10  ;;  %v2295_v14 = vadd.f32 %v2294_v13, %v2005_v11  ;;  %v2007_v15 = vpop.f32.mrf.mxu0  ;;  %v842_v11 = vld [vmem:[#allocation3 + $0x1e8] sm:$0xff] }
 0x1f2   : > { %v2296_v16 = vpop.f32.mrf.mxu1 }
 0x1f3   : > { %v2505_v17 = vadd.f32 %v2295_v14, %v833_v12  ;;  %v2010_v18 = vpop.f32.mrf.mxu0 }
 0x1f4   : > { %v2299_v20 = vpop.f32.mrf.mxu1 }
 0x1f5   : > { %2569 = vst [vmem:[#allocation3 + $0x60] sm:$0xff] %v2505_v17  ;;  %v2300_v21 = vadd.f32 %v2299_v20, %v2010_v18  ;;  %v2012_v22 = vpop.f32.mrf.mxu0  ;;  %v843_v18 = vld [vmem:[#allocation3 + $0xf8] sm:$0xff] }
 0x1f6   : > { %v2301_v23 = vpop.f32.mrf.mxu1 }
 0x1f7   : > { %v2506_v24 = vadd.f32 %v2300_v21, %v834_v19  ;;  %v2013_v25 = vpop.f32.mrf.mxu0 }
 0x1f8   : > { %v2302_v27 = vpop.f32.mrf.mxu1 }
 0x1f9   : > { %2570 = vst [vmem:[#allocation3 + $0xe0] sm:$0xff] %v2506_v24  ;;  %v2303_v28 = vadd.f32 %v2302_v27, %v2013_v25  ;;  %v2015_v29 = vpop.f32.mrf.mxu0  ;;  %v844_v25 = vld [vmem:[#allocation3 + $0x160] sm:$0xff] }
 0x1fa   : > { %v2304_v30 = vpop.f32.mrf.mxu1 }
 0x1fb   : > { %v2507_v31 = vadd.f32 %v2303_v28, %v835_v26  ;;  %v2018_v32 = vpop.f32.mrf.mxu0 }
 0x1fc   : > { %v2307_v34 = vpop.f32.mrf.mxu1 }
 0x1fd   : > { %2571 = vst [vmem:[#allocation3 + $0x188] sm:$0xff] %v2507_v31  ;;  %v2308_v35 = vadd.f32 %v2307_v34, %v2018_v32  ;;  %v2020_v36 = vpop.f32.mrf.mxu0  ;;  %v845_v32 = vld [vmem:[#allocation3 + $0x30] sm:$0xff] }
 0x1fe   : > { %v2309_v37 = vpop.f32.mrf.mxu1 }
 0x1ff   : > { %v2508_v38 = vadd.f32 %v2308_v35, %v836_v33  ;;  %v2021_v39 = vpop.f32.mrf.mxu0 }
 0x200   : > { %v2310_v41 = vpop.f32.mrf.mxu1 }
 0x201   : > { %2572 = vst [vmem:[#allocation3 + $0x138] sm:$0xff] %v2508_v38  ;;  %v2311_v42 = vadd.f32 %v2310_v41, %v2021_v39  ;;  %v2023_v43 = vpop.f32.mrf.mxu0  ;;  %v846_v39 = vld [vmem:[#allocation3 + $0x1e0] sm:$0xff] }
 0x202   : > { %v2312_v44 = vpop.f32.mrf.mxu1 }
 0x203   : > { %v2509_v45 = vadd.f32 %v2311_v42, %v837_v40  ;;  %v2026_v46 = vpop.f32.mrf.mxu0 }
 0x204   : > { %v2315_v48 = vpop.f32.mrf.mxu1 }
 0x205   : > { %2573 = vst [vmem:[#allocation3 + $0x140] sm:$0xff] %v2509_v45  ;;  %v2316_v49 = vadd.f32 %v2315_v48, %v2026_v46  ;;  %v2028_v50 = vpop.f32.mrf.mxu0  ;;  %v847_v46 = vld [vmem:[#allocation3] sm:$0xff] }
 0x206   : > { %v2317_v51 = vpop.f32.mrf.mxu1 }
 0x207   : > { %v2510_v52 = vadd.f32 %v2316_v49, %v838_v47  ;;  %v2029_v53 = vpop.f32.mrf.mxu0 }
 0x208   : > { %v2318_v55 = vpop.f32.mrf.mxu1 }
 0x209   : > { %2574 = vst [vmem:[#allocation3 + $0x80] sm:$0xff] %v2510_v52  ;;  %v2319_v56 = vadd.f32 %v2318_v55, %v2029_v53  ;;  %v2031_v57 = vpop.f32.mrf.mxu0  ;;  %v848_v53 = vld [vmem:[#allocation3 + $0xf0] sm:$0xff] }
 0x20a   : > { %v2320_v58 = vpop.f32.mrf.mxu1 }
 0x20b   : > { %v2511_v59 = vadd.f32 %v2319_v56, %v839_v54  ;;  %v2034_v60 = vpop.f32.mrf.mxu0 }
 0x20c   : > { %v2323_v62 = vpop.f32.mrf.mxu1 }
 0x20d   : > { %2575 = vst [vmem:[#allocation3 + $0x1a8] sm:$0xff] %v2511_v59  ;;  %v2324_v63 = vadd.f32 %v2323_v62, %v2034_v60  ;;  %v2036_v0 = vpop.f32.mrf.mxu0  ;;  %v849_v60 = vld [vmem:[#allocation3 + $0x8] sm:$0xff] }
 0x20e   : > { %v2325_v1 = vpop.f32.mrf.mxu1 }
 0x20f   : > { %v2512_v2 = vadd.f32 %v2324_v63, %v840_v61  ;;  %v2037_v3 = vpop.f32.mrf.mxu0 }
 0x210   : > { %v2326_v5 = vpop.f32.mrf.mxu1 }
 0x211   : > { %2576 = vst [vmem:[#allocation3 + $0x1b8] sm:$0xff] %v2512_v2  ;;  %v2327_v6 = vadd.f32 %v2326_v5, %v2037_v3  ;;  %v2039_v7 = vpop.f32.mrf.mxu0  ;;  %v850_v3 = vld [vmem:[#allocation3 + $0x148] sm:$0xff] }
 0x212   : > { %v2328_v8 = vpop.f32.mrf.mxu1 }
 0x213   : > { %v2513_v9 = vadd.f32 %v2327_v6, %v841_v4  ;;  %v2042_v10 = vpop.f32.mrf.mxu0 }
 0x214   : > { %v2331_v12 = vpop.f32.mrf.mxu1 }
 0x215   : > { %2577 = vst [vmem:[#allocation3 + $0x28] sm:$0xff] %v2513_v9  ;;  %v2332_v13 = vadd.f32 %v2331_v12, %v2042_v10  ;;  %v2044_v14 = vpop.f32.mrf.mxu0  ;;  %v851_v10 = vld [vmem:[#allocation3 + $0x1d0] sm:$0xff] }
 0x216   : > { %v2333_v15 = vpop.f32.mrf.mxu1 }
 0x217   : > { %v2514_v16 = vadd.f32 %v2332_v13, %v842_v11  ;;  %v2045_v17 = vpop.f32.mrf.mxu0 }
 0x218   : > { %v2334_v19 = vpop.f32.mrf.mxu1 }
 0x219   : > { %2578 = vst [vmem:[#allocation3 + $0x1e8] sm:$0xff] %v2514_v16  ;;  %v2335_v20 = vadd.f32 %v2334_v19, %v2045_v17  ;;  %v2047_v21 = vpop.f32.mrf.mxu0  ;;  %v852_v17 = vld [vmem:[#allocation3 + $0x100] sm:$0xff] }
 0x21a   : > { %v2336_v22 = vpop.f32.mrf.mxu1 }
 0x21b   : > { %v2515_v23 = vadd.f32 %v2335_v20, %v843_v18  ;;  %v2050_v24 = vpop.f32.mrf.mxu0 }
 0x21c   : > { %v2339_v26 = vpop.f32.mrf.mxu1 }
 0x21d   : > { %2579 = vst [vmem:[#allocation3 + $0xf8] sm:$0xff] %v2515_v23  ;;  %v2340_v27 = vadd.f32 %v2339_v26, %v2050_v24  ;;  %v2052_v28 = vpop.f32.mrf.mxu0  ;;  %v853_v24 = vld [vmem:[#allocation3 + $0xc8] sm:$0xff] }
 0x21e   : > { %v2341_v29 = vpop.f32.mrf.mxu1 }
 0x21f   : > { %v2516_v30 = vadd.f32 %v2340_v27, %v844_v25  ;;  %v2053_v31 = vpop.f32.mrf.mxu0 }
 0x220   : > { %v2342_v33 = vpop.f32.mrf.mxu1 }
 0x221   : > { %2580 = vst [vmem:[#allocation3 + $0x160] sm:$0xff] %v2516_v30  ;;  %v2343_v34 = vadd.f32 %v2342_v33, %v2053_v31  ;;  %v2055_v35 = vpop.f32.mrf.mxu0  ;;  %v854_v31 = vld [vmem:[#allocation3 + $0x40] sm:$0xff] }
 0x222   : > { %v2344_v36 = vpop.f32.mrf.mxu1 }
 0x223   : > { %v2517_v37 = vadd.f32 %v2343_v34, %v845_v32  ;;  %v2058_v38 = vpop.f32.mrf.mxu0 }
 0x224   : > { %v2347_v40 = vpop.f32.mrf.mxu1 }
 0x225   : > { %2581 = vst [vmem:[#allocation3 + $0x30] sm:$0xff] %v2517_v37  ;;  %v2348_v41 = vadd.f32 %v2347_v40, %v2058_v38  ;;  %v2060_v42 = vpop.f32.mrf.mxu0  ;;  %v855_v38 = vld [vmem:[#allocation3 + $0x1f8] sm:$0xff] }
 0x226   : > { %v2349_v43 = vpop.f32.mrf.mxu1 }
 0x227   : > { %v2518_v44 = vadd.f32 %v2348_v41, %v846_v39  ;;  %v2061_v45 = vpop.f32.mrf.mxu0 }
 0x228   : > { %v2350_v47 = vpop.f32.mrf.mxu1 }
 0x229   : > { %2582 = vst [vmem:[#allocation3 + $0x1e0] sm:$0xff] %v2518_v44  ;;  %v2351_v48 = vadd.f32 %v2350_v47, %v2061_v45  ;;  %v2063_v49 = vpop.f32.mrf.mxu0  ;;  %v856_v45 = vld [vmem:[#allocation3 + $0x20] sm:$0xff] }
 0x22a   : > { %v2352_v50 = vpop.f32.mrf.mxu1 }
 0x22b   : > { %v2519_v51 = vadd.f32 %v2351_v48, %v847_v46  ;;  %v2066_v52 = vpop.f32.mrf.mxu0 }
 0x22c   : > { %v2355_v54 = vpop.f32.mrf.mxu1 }
 0x22d   : > { %2583 = vst [vmem:[#allocation3] sm:$0xff] %v2519_v51  ;;  %v2356_v55 = vadd.f32 %v2355_v54, %v2066_v52  ;;  %v2068_v56 = vpop.f32.mrf.mxu0  ;;  %v857_v52 = vld [vmem:[#allocation3 + $0x128] sm:$0xff] }
 0x22e   : > { %v2357_v57 = vpop.f32.mrf.mxu1 }
 0x22f   : > { %v2520_v58 = vadd.f32 %v2356_v55, %v848_v53  ;;  %v2069_v59 = vpop.f32.mrf.mxu0 }
 0x230   : > { %v2358_v61 = vpop.f32.mrf.mxu1 }
 0x231   : > { %2584 = vst [vmem:[#allocation3 + $0xf0] sm:$0xff] %v2520_v58  ;;  %v2359_v62 = vadd.f32 %v2358_v61, %v2069_v59  ;;  %v2071_v63 = vpop.f32.mrf.mxu0  ;;  %v858_v59 = vld [vmem:[#allocation3 + $0x1a0] sm:$0xff] }
 0x232   : > { %v2360_v0 = vpop.f32.mrf.mxu1 }
 0x233   : > { %v2521_v1 = vadd.f32 %v2359_v62, %v849_v60  ;;  %v2074_v2 = vpop.f32.mrf.mxu0 }
 0x234   : > { %v2363_v4 = vpop.f32.mrf.mxu1 }
 0x235   : > { %2585 = vst [vmem:[#allocation3 + $0x8] sm:$0xff] %v2521_v1  ;;  %v2364_v5 = vadd.f32 %v2363_v4, %v2074_v2  ;;  %v2076_v6 = vpop.f32.mrf.mxu0  ;;  %v859_v2 = vld [vmem:[#allocation3 + $0x1f0] sm:$0xff] }
 0x236   : > { %v2365_v7 = vpop.f32.mrf.mxu1 }
 0x237   : > { %v2522_v8 = vadd.f32 %v2364_v5, %v850_v3  ;;  %v2077_v9 = vpop.f32.mrf.mxu0 }
 0x238   : > { %v2366_v11 = vpop.f32.mrf.mxu1 }
 0x239   : > { %2586 = vst [vmem:[#allocation3 + $0x148] sm:$0xff] %v2522_v8  ;;  %v2367_v12 = vadd.f32 %v2366_v11, %v2077_v9  ;;  %v2079_v13 = vpop.f32.mrf.mxu0  ;;  %v860_v9 = vld [vmem:[#allocation3 + $0xe8] sm:$0xff] }
 0x23a   : > { %v2368_v14 = vpop.f32.mrf.mxu1 }
 0x23b   : > { %v2523_v15 = vadd.f32 %v2367_v12, %v851_v10  ;;  %v2082_v16 = vpop.f32.mrf.mxu0 }
 0x23c   : > { %v2371_v18 = vpop.f32.mrf.mxu1 }
 0x23d   : > { %2587 = vst [vmem:[#allocation3 + $0x1d0] sm:$0xff] %v2523_v15  ;;  %v2372_v19 = vadd.f32 %v2371_v18, %v2082_v16  ;;  %v2084_v20 = vpop.f32.mrf.mxu0  ;;  %v861_v16 = vld [vmem:[#allocation3 + $0x78] sm:$0xff] }
 0x23e   : > { %v2373_v21 = vpop.f32.mrf.mxu1 }
 0x23f   : > { %v2524_v22 = vadd.f32 %v2372_v19, %v852_v17  ;;  %v2085_v23 = vpop.f32.mrf.mxu0 }
 0x240   : > { %v2374_v25 = vpop.f32.mrf.mxu1 }
 0x241   : > { %2588 = vst [vmem:[#allocation3 + $0x100] sm:$0xff] %v2524_v22  ;;  %v2375_v26 = vadd.f32 %v2374_v25, %v2085_v23  ;;  %v2087_v27 = vpop.f32.mrf.mxu0  ;;  %v862_v23 = vld [vmem:[#allocation3 + $0x70] sm:$0xff] }
 0x242   : > { %v2376_v28 = vpop.f32.mrf.mxu1 }
 0x243   : > { %v2525_v29 = vadd.f32 %v2375_v26, %v853_v24  ;;  %v2090_v30 = vpop.f32.mrf.mxu0 }
 0x244   : > { %v2379_v32 = vpop.f32.mrf.mxu1 }
 0x245   : > { %2589 = vst [vmem:[#allocation3 + $0xc8] sm:$0xff] %v2525_v29  ;;  %v2380_v33 = vadd.f32 %v2379_v32, %v2090_v30  ;;  %v2092_v34 = vpop.f32.mrf.mxu0  ;;  %v863_v30 = vld [vmem:[#allocation3 + $0x90] sm:$0xff] }
 0x246   : > { %v2381_v35 = vpop.f32.mrf.mxu1 }
 0x247   : > { %v2526_v36 = vadd.f32 %v2380_v33, %v854_v31  ;;  %v2093_v37 = vpop.f32.mrf.mxu0 }
 0x248   : > { %v2382_v39 = vpop.f32.mrf.mxu1 }
 0x249   : > { %2590 = vst [vmem:[#allocation3 + $0x40] sm:$0xff] %v2526_v36  ;;  %v2383_v40 = vadd.f32 %v2382_v39, %v2093_v37  ;;  %v2095_v41 = vpop.f32.mrf.mxu0  ;;  %v864_v37 = vld [vmem:[#allocation3 + $0x1d8] sm:$0xff] }
 0x24a   : > { %v2384_v42 = vpop.f32.mrf.mxu1 }
 0x24b   : > { %v2527_v43 = vadd.f32 %v2383_v40, %v855_v38  ;;  %v2098_v44 = vpop.f32.mrf.mxu0 }
 0x24c   : > { %v2387_v46 = vpop.f32.mrf.mxu1 }
 0x24d   : > { %2591 = vst [vmem:[#allocation3 + $0x1f8] sm:$0xff] %v2527_v43  ;;  %v2388_v47 = vadd.f32 %v2387_v46, %v2098_v44  ;;  %v2100_v48 = vpop.f32.mrf.mxu0  ;;  %v865_v44 = vld [vmem:[#allocation3 + $0xd0] sm:$0xff] }
 0x24e   : > { %v2389_v49 = vpop.f32.mrf.mxu1 }
 0x24f   : > { %v2528_v50 = vadd.f32 %v2388_v47, %v856_v45  ;;  %v2101_v51 = vpop.f32.mrf.mxu0 }
 0x250   : > { %v2390_v53 = vpop.f32.mrf.mxu1 }
 0x251   : > { %2592 = vst [vmem:[#allocation3 + $0x20] sm:$0xff] %v2528_v50  ;;  %v2391_v54 = vadd.f32 %v2390_v53, %v2101_v51  ;;  %v2103_v55 = vpop.f32.mrf.mxu0  ;;  %v866_v51 = vld [vmem:[#allocation3 + $0xb8] sm:$0xff] }
 0x252   : > { %v2392_v56 = vpop.f32.mrf.mxu1 }
 0x253   : > { %v2529_v57 = vadd.f32 %v2391_v54, %v857_v52  ;;  %v2106_v58 = vpop.f32.mrf.mxu0 }
 0x254   : > { %v2395_v60 = vpop.f32.mrf.mxu1 }
 0x255   : > { %2593 = vst [vmem:[#allocation3 + $0x128] sm:$0xff] %v2529_v57  ;;  %v2396_v61 = vadd.f32 %v2395_v60, %v2106_v58  ;;  %v2108_v62 = vpop.f32.mrf.mxu0  ;;  %v867_v58 = vld [vmem:[#allocation3 + $0x88] sm:$0xff] }
 0x256   : > { %v2397_v63 = vpop.f32.mrf.mxu1 }
 0x257   : > { %v2530_v0 = vadd.f32 %v2396_v61, %v858_v59  ;;  %v2109_v1 = vpop.f32.mrf.mxu0 }
 0x258   : > { %v2398_v3 = vpop.f32.mrf.mxu1 }
 0x259   : > { %2594 = vst [vmem:[#allocation3 + $0x1a0] sm:$0xff] %v2530_v0  ;;  %v2399_v4 = vadd.f32 %v2398_v3, %v2109_v1  ;;  %v2111_v5 = vpop.f32.mrf.mxu0  ;;  %v868_v1 = vld [vmem:[#allocation3 + $0xa8] sm:$0xff] }
 0x25a   : > { %v2400_v6 = vpop.f32.mrf.mxu1 }
 0x25b   : > { %v2531_v7 = vadd.f32 %v2399_v4, %v859_v2  ;;  %v2114_v8 = vpop.f32.mrf.mxu0 }
 0x25c   : > { %v2403_v10 = vpop.f32.mrf.mxu1 }
 0x25d   : > { %2595 = vst [vmem:[#allocation3 + $0x1f0] sm:$0xff] %v2531_v7  ;;  %v2404_v11 = vadd.f32 %v2403_v10, %v2114_v8  ;;  %v2116_v12 = vpop.f32.mrf.mxu0  ;;  %v869_v8 = vld [vmem:[#allocation3 + $0x1c8] sm:$0xff] }
 0x25e   : > { %v2405_v13 = vpop.f32.mrf.mxu1 }
 0x25f   : > { %v2532_v14 = vadd.f32 %v2404_v11, %v860_v9  ;;  %v2117_v15 = vpop.f32.mrf.mxu0 }
 0x260   : > { %v2406_v17 = vpop.f32.mrf.mxu1 }
 0x261   : > { %2596 = vst [vmem:[#allocation3 + $0xe8] sm:$0xff] %v2532_v14  ;;  %v2407_v18 = vadd.f32 %v2406_v17, %v2117_v15  ;;  %v2119_v19 = vpop.f32.mrf.mxu0  ;;  %v870_v15 = vld [vmem:[#allocation3 + $0x170] sm:$0xff] }
 0x262   : > { %v2408_v20 = vpop.f32.mrf.mxu1 }
 0x263   : > { %v2533_v21 = vadd.f32 %v2407_v18, %v861_v16  ;;  %v2122_v22 = vpop.f32.mrf.mxu0 }
 0x264   : > { %v2411_v24 = vpop.f32.mrf.mxu1 }
 0x265   : > { %2597 = vst [vmem:[#allocation3 + $0x78] sm:$0xff] %v2533_v21  ;;  %v2412_v25 = vadd.f32 %v2411_v24, %v2122_v22  ;;  %v2124_v26 = vpop.f32.mrf.mxu0  ;;  %v871_v22 = vld [vmem:[#allocation3 + $0x178] sm:$0xff] }
 0x266   : > { %v2413_v27 = vpop.f32.mrf.mxu1 }
 0x267   : > { %v2534_v28 = vadd.f32 %v2412_v25, %v862_v23  ;;  %v2125_v29 = vpop.f32.mrf.mxu0 }
 0x268   : > { %v2414_v31 = vpop.f32.mrf.mxu1 }
 0x269   : > { %2598 = vst [vmem:[#allocation3 + $0x70] sm:$0xff] %v2534_v28  ;;  %v2415_v32 = vadd.f32 %v2414_v31, %v2125_v29  ;;  %v2127_v33 = vpop.f32.mrf.mxu0  ;;  %v872_v29 = vld [vmem:[#allocation3 + $0x68] sm:$0xff] }
 0x26a   : > { %v2416_v34 = vpop.f32.mrf.mxu1 }
 0x26b   : > { %v2535_v35 = vadd.f32 %v2415_v32, %v863_v30  ;;  %v2130_v36 = vpop.f32.mrf.mxu0 }
 0x26c   : > { %v2419_v38 = vpop.f32.mrf.mxu1 }
 0x26d   : > { %2599 = vst [vmem:[#allocation3 + $0x90] sm:$0xff] %v2535_v35  ;;  %v2420_v39 = vadd.f32 %v2419_v38, %v2130_v36  ;;  %v2132_v40 = vpop.f32.mrf.mxu0  ;;  %v873_v36 = vld [vmem:[#allocation3 + $0x190] sm:$0xff] }
 0x26e   : > { %v2421_v41 = vpop.f32.mrf.mxu1 }
 0x26f   : > { %v2536_v42 = vadd.f32 %v2420_v39, %v864_v37  ;;  %v2133_v43 = vpop.f32.mrf.mxu0 }
 0x270   : > { %v2422_v45 = vpop.f32.mrf.mxu1 }
 0x271   : > { %2600 = vst [vmem:[#allocation3 + $0x1d8] sm:$0xff] %v2536_v42  ;;  %v2423_v46 = vadd.f32 %v2422_v45, %v2133_v43  ;;  %v2135_v47 = vpop.f32.mrf.mxu0  ;;  %v874_v43 = vld [vmem:[#allocation3 + $0x198] sm:$0xff] }
 0x272   : > { %v2424_v48 = vpop.f32.mrf.mxu1 }
 0x273   : > { %v2537_v49 = vadd.f32 %v2423_v46, %v865_v44  ;;  %v2138_v50 = vpop.f32.mrf.mxu0 }
 0x274   : > { %v2427_v52 = vpop.f32.mrf.mxu1 }
 0x275   : > { %2601 = vst [vmem:[#allocation3 + $0xd0] sm:$0xff] %v2537_v49  ;;  %v2428_v53 = vadd.f32 %v2427_v52, %v2138_v50  ;;  %v2140_v54 = vpop.f32.mrf.mxu0  ;;  %v875_v50 = vld [vmem:[#allocation3 + $0x38] sm:$0xff] }
 0x276   : > { %v2429_v55 = vpop.f32.mrf.mxu1 }
 0x277   : > { %v2538_v56 = vadd.f32 %v2428_v53, %v866_v51  ;;  %v2141_v57 = vpop.f32.mrf.mxu0 }
 0x278   : > { %v2430_v59 = vpop.f32.mrf.mxu1 }
 0x279   : > { %2602 = vst [vmem:[#allocation3 + $0xb8] sm:$0xff] %v2538_v56  ;;  %v2431_v60 = vadd.f32 %v2430_v59, %v2141_v57  ;;  %v2143_v61 = vpop.f32.mrf.mxu0  ;;  %v876_v57 = vld [vmem:[#allocation3 + $0xc0] sm:$0xff] }
 0x27a   : > { %v2432_v62 = vpop.f32.mrf.mxu1 }
 0x27b   : > { %v2539_v63 = vadd.f32 %v2431_v60, %v867_v58  ;;  %v2146_v0 = vpop.f32.mrf.mxu0 }
 0x27c   : > { %v2435_v2 = vpop.f32.mrf.mxu1 }
 0x27d   : > { %2603 = vst [vmem:[#allocation3 + $0x88] sm:$0xff] %v2539_v63  ;;  %v2436_v3 = vadd.f32 %v2435_v2, %v2146_v0  ;;  %v2148_v4 = vpop.f32.mrf.mxu0  ;;  %v877_v0 = vld [vmem:[#allocation3 + $0x1c0] sm:$0xff] }
 0x27e   : > { %v2437_v5 = vpop.f32.mrf.mxu1 }
 0x27f   : > { %v2540_v6 = vadd.f32 %v2436_v3, %v868_v1  ;;  %v2149_v7 = vpop.f32.mrf.mxu0 }
 0x280   : > { %v2438_v9 = vpop.f32.mrf.mxu1 }
 0x281   : > { %2604 = vst [vmem:[#allocation3 + $0xa8] sm:$0xff] %v2540_v6  ;;  %v2439_v10 = vadd.f32 %v2438_v9, %v2149_v7  ;;  %v2151_v11 = vpop.f32.mrf.mxu0  ;;  %v878_v7 = vld [vmem:[#allocation3 + $0x158] sm:$0xff] }
 0x282   : > { %v2440_v12 = vpop.f32.mrf.mxu1 }
 0x283   : > { %v2541_v13 = vadd.f32 %v2439_v10, %v869_v8  ;;  %v2154_v14 = vpop.f32.mrf.mxu0 }
 0x284   : > { %v2443_v16 = vpop.f32.mrf.mxu1 }
 0x285   : > { %2605 = vst [vmem:[#allocation3 + $0x1c8] sm:$0xff] %v2541_v13  ;;  %v2444_v17 = vadd.f32 %v2443_v16, %v2154_v14  ;;  %v2156_v18 = vpop.f32.mrf.mxu0  ;;  %v879_v14 = vld [vmem:[#allocation3 + $0x10] sm:$0xff] }
 0x286   : > { %v2445_v19 = vpop.f32.mrf.mxu1 }
 0x287   : > { %v2542_v20 = vadd.f32 %v2444_v17, %v870_v15  ;;  %v2157_v21 = vpop.f32.mrf.mxu0 }
 0x288   : > { %v2446_v23 = vpop.f32.mrf.mxu1 }
 0x289   : > { %2606 = vst [vmem:[#allocation3 + $0x170] sm:$0xff] %v2542_v20  ;;  %v2447_v24 = vadd.f32 %v2446_v23, %v2157_v21  ;;  %v2159_v25 = vpop.f32.mrf.mxu0  ;;  %v880_v21 = vld [vmem:[#allocation3 + $0x58] sm:$0xff] }
 0x28a   : > { %v2448_v26 = vpop.f32.mrf.mxu1 }
 0x28b   : > { %v2543_v27 = vadd.f32 %v2447_v24, %v871_v22  ;;  %v2162_v28 = vpop.f32.mrf.mxu0 }
 0x28c   : > { %v2451_v30 = vpop.f32.mrf.mxu1 }
 0x28d   : > { %2607 = vst [vmem:[#allocation3 + $0x178] sm:$0xff] %v2543_v27  ;;  %v2452_v31 = vadd.f32 %v2451_v30, %v2162_v28  ;;  %v2164_v32 = vpop.f32.mrf.mxu0  ;;  %v881_v28 = vld [vmem:[#allocation3 + $0xa0] sm:$0xff] }
 0x28e   : > { %v2453_v33 = vpop.f32.mrf.mxu1 }
 0x28f   : > { %v2544_v34 = vadd.f32 %v2452_v31, %v872_v29  ;;  %v2165_v35 = vpop.f32.mrf.mxu0 }
 0x290   : > { %v2454_v37 = vpop.f32.mrf.mxu1 }
 0x291   : > { %2608 = vst [vmem:[#allocation3 + $0x68] sm:$0xff] %v2544_v34  ;;  %v2455_v38 = vadd.f32 %v2454_v37, %v2165_v35  ;;  %v2167_v39 = vpop.f32.mrf.mxu0 }
 0x292   : > { %v2456_v40 = vpop.f32.mrf.mxu1 }
 0x293   : > { %v2545_v41 = vadd.f32 %v2455_v38, %v873_v36  ;;  %v2170_v42 = vpop.f32.mrf.mxu0 }
 0x294   : > { %v2459_v44 = vpop.f32.mrf.mxu1 }
 0x295   : > { %2609 = vst [vmem:[#allocation3 + $0x190] sm:$0xff] %v2545_v41  ;;  %v2460_v45 = vadd.f32 %v2459_v44, %v2170_v42  ;;  %v2172_v46 = vpop.f32.mrf.mxu0 }
 0x296   : > { %v2461_v47 = vpop.f32.mrf.mxu1 }
 0x297   : > { %v2546_v48 = vadd.f32 %v2460_v45, %v874_v43  ;;  %v2173_v49 = vpop.f32.mrf.mxu0 }
 0x298   : > { %v2462_v51 = vpop.f32.mrf.mxu1 }
 0x299   : > { %2610 = vst [vmem:[#allocation3 + $0x198] sm:$0xff] %v2546_v48  ;;  %v2463_v52 = vadd.f32 %v2462_v51, %v2173_v49  ;;  %v2175_v53 = vpop.f32.mrf.mxu0 }
 0x29a   : > { %v2464_v54 = vpop.f32.mrf.mxu1 }
 0x29b   : > { %v2547_v55 = vadd.f32 %v2463_v52, %v875_v50  ;;  %v2178_v56 = vpop.f32.mrf.mxu0 }
 0x29c   : > { %v2467_v58 = vpop.f32.mrf.mxu1 }
 0x29d   : > { %2611 = vst [vmem:[#allocation3 + $0x38] sm:$0xff] %v2547_v55  ;;  %v2468_v59 = vadd.f32 %v2467_v58, %v2178_v56  ;;  %v2180_v60 = vpop.f32.mrf.mxu0 }
 0x29e   : > { %v2469_v61 = vpop.f32.mrf.mxu1 }
 0x29f   : > { %v2548_v62 = vadd.f32 %v2468_v59, %v876_v57  ;;  %v2181_v63 = vpop.f32.mrf.mxu0 }
 0x2a0   : > { %v2470_v1 = vpop.f32.mrf.mxu1 }
 0x2a1   : > { %2612 = vst [vmem:[#allocation3 + $0xc0] sm:$0xff] %v2548_v62  ;;  %v2471_v2 = vadd.f32 %v2470_v1, %v2181_v63  ;;  %v2183_v3 = vpop.f32.mrf.mxu0 }
 0x2a2   : > { %v2472_v4 = vpop.f32.mrf.mxu1 }
 0x2a3   : > { %v2549_v5 = vadd.f32 %v2471_v2, %v877_v0  ;;  %v2186_v6 = vpop.f32.mrf.mxu0 }
 0x2a4   : > { %v2475_v8 = vpop.f32.mrf.mxu1 }
 0x2a5   : > { %2613 = vst [vmem:[#allocation3 + $0x1c0] sm:$0xff] %v2549_v5  ;;  %v2476_v9 = vadd.f32 %v2475_v8, %v2186_v6  ;;  %v2188_v10 = vpop.f32.mrf.mxu0 }
 0x2a6   : > { %v2477_v11 = vpop.f32.mrf.mxu1 }
 0x2a7   : > { %v2550_v12 = vadd.f32 %v2476_v9, %v878_v7  ;;  %v2189_v13 = vpop.f32.mrf.mxu0 }
 0x2a8   : > { %v2478_v15 = vpop.f32.mrf.mxu1 }
 0x2a9   : > { %2614 = vst [vmem:[#allocation3 + $0x158] sm:$0xff] %v2550_v12  ;;  %v2479_v16 = vadd.f32 %v2478_v15, %v2189_v13  ;;  %v2191_v17 = vpop.f32.mrf.mxu0 }
 0x2aa   : > { %v2480_v18 = vpop.f32.mrf.mxu1 }
 0x2ab   : > { %v2551_v19 = vadd.f32 %v2479_v16, %v879_v14  ;;  %v2194_v20 = vpop.f32.mrf.mxu0 }
 0x2ac   : > { %v2483_v22 = vpop.f32.mrf.mxu1 }
 0x2ad   : > { %2615 = vst [vmem:[#allocation3 + $0x10] sm:$0xff] %v2551_v19  ;;  %v2484_v23 = vadd.f32 %v2483_v22, %v2194_v20  ;;  %v2196_v24 = vpop.f32.mrf.mxu0 }
 0x2ae   : > { %v2485_v25 = vpop.f32.mrf.mxu1 }
 0x2af   : > { %v2552_v26 = vadd.f32 %v2484_v23, %v880_v21  ;;  %v2197_v27 = vpop.f32.mrf.mxu0 }
 0x2b0   : > { %v2486_v29 = vpop.f32.mrf.mxu1 }
 0x2b1   : > { %2616 = vst [vmem:[#allocation3 + $0x58] sm:$0xff] %v2552_v26  ;;  %v2487_v30 = vadd.f32 %v2486_v29, %v2197_v27  ;;  %v2199_v31 = vpop.f32.mrf.mxu0  ;;  %2621 = sbr.rel (%p3817_p1) target bundleno = 740 (0x2e4), region = 67 }
 0x2b2   : > { %v2488_v32 = vpop.f32.mrf.mxu1 }
 0x2b3   : > { %v2553_v33 = vadd.f32 %v2487_v30, %v881_v28 }
 0x2b5   : > { %2617 = vst [vmem:[#allocation3 + $0xa0] sm:$0xff] %v2553_v33 }
 0x2b6   : > { %v3033_v34 = vld [vmem:[#allocation3 + $0xb0] sm:$0xff]  ;;  %v5424_v36 = vld [vmem:[%s5545_s2] ss:$0 sm:$0xff]  ;;  %v3035_v39 = vld [vmem:[#allocation3 + $0xd8] sm:$0xff] }
 0x2b7   : > { %v3034_v35 = vld [vmem:[#allocation3 + $0x1b0] sm:$0xff]  ;;  %v3104_v37 = vadd.f32 %v5424_v36, %v3033_v34  ;;  %v3036_v40 = vld [vmem:[#allocation3 + $0x18] sm:$0xff]  ;;  %v3106_v42 = vadd.f32 %v5424_v36, %v3035_v39  ;;  %v3038_v44 = vld [vmem:[#allocation3 + $0x168] sm:$0xff] }
 0x2b8   : > { %v3105_v38 = vadd.f32 %v5424_v36, %v3034_v35  ;;  %v3037_v41 = vld [vmem:[#allocation3 + $0x50] sm:$0xff]  ;;  %v3107_v43 = vadd.f32 %v5424_v36, %v3036_v40  ;;  %v3040_v47 = vld [vmem:[#allocation3 + $0x48] sm:$0xff]  ;;  %v3109_v50 = vadd.f32 %v5424_v36, %v3038_v44  ;;  %v3041_v52 = vld [vmem:[#allocation3 + $0x180] sm:$0xff] }
 0x2b9   : > { %v3108_v45 = vadd.f32 %v5424_v36, %v3037_v41  ;;  %v3039_v46 = vld [vmem:[#allocation3 + $0x130] sm:$0xff]  ;;  %v3168_v48 = vmax.f32 %v3104_v37, 0.0  ;;  %v3043_v54 = vld [vmem:[#allocation3 + $0x118] sm:$0xff]  ;;  %v3170_v55 = vmax.f32 %v3106_v42, 0.0  ;;  %v3111_v58 = vadd.f32 %v5424_v36, %v3040_v47  ;;  %v3045_v60 = vld [vmem:[#allocation3 + $0x120] sm:$0xff] }
 0x2ba   : > { %v3169_v49 = vmax.f32 %v3105_v38, 0.0  ;;  %v3110_v51 = vadd.f32 %v5424_v36, %v3039_v46  ;;  %v3042_v53 = vld [vmem:[#allocation3 + $0x110] sm:$0xff]  ;;  %v3171_v56 = vmax.f32 %v3107_v43, 0.0  ;;  %v3044_v59 = vld [vmem:[#allocation3 + $0x98] sm:$0xff]  ;;  %v3173_v62 = vmax.f32 %v3109_v50, 0.0  ;;  %v3047_v6 = vld [vmem:[#allocation3 + $0x108] sm:$0xff] }
 0x2bb   : > { %v3172_v57 = vmax.f32 %v3108_v45, 0.0  ;;  %v3112_v0 = vadd.f32 %v5424_v36, %v3041_v52  ;;  %v3046_v1 = vld [vmem:[#allocation3 + $0x150] sm:$0xff]  ;;  %v3175_v3 = vmax.f32 %v3111_v58, 0.0  ;;  %v3113_v4 = vadd.f32 %v5424_v36, %v3042_v53  ;;  %v3048_v7 = vld [vmem:[#allocation3 + $0x60] sm:$0xff]  ;;  %v3050_v13 = vld [vmem:[#allocation3 + $0x188] sm:$0xff] }
 0x2bc   : > { %v4087_v61 = vpack.c.bf16 %v3169_v49, %v3168_v48  ;;  %v3174_v63 = vmax.f32 %v3110_v51, 0.0  ;;  %v4092_v2 = vpack.c.bf16 %v3171_v56, %v3170_v55  ;;  %v3114_v5 = vadd.f32 %v5424_v36, %v3043_v54  ;;  %v3049_v12 = vld [vmem:[#allocation3 + $0xe0] sm:$0xff]  ;;  %v3051_v18 = vld [vmem:[#allocation3 + $0x138] sm:$0xff]  ;;  %v3054_v29 = vld [vmem:[#allocation3 + $0x1a8] sm:$0xff] }
 0x2bd   : > { %v4097_v8 = vpack.c.bf16 %v3173_v62, %v3172_v57  ;;  %v3176_v9 = vmax.f32 %v3112_v0, 0.0  ;;  %v3115_v10 = vadd.f32 %v5424_v36, %v3044_v59  ;;  %v3116_v11 = vadd.f32 %v5424_v36, %v3045_v60  ;;  %v3052_v23 = vld [vmem:[#allocation3 + $0x140] sm:$0xff]  ;;  %v3055_v34 = vld [vmem:[#allocation3 + $0x1b8] sm:$0xff]  ;;  %v3056_v35 = vld [vmem:[#allocation3 + $0x28] sm:$0xff] }
 0x2be   : > { %4088 = vst [vmem:[%s4964_s24] sm:$0xff] %v4087_v61   ;;  %4244 = vst [vmem:[%s4964_s24 + $0x8] sm:$0xff] %v4092_v2   ;;  %v4102_v14 = vpack.c.bf16 %v3175_v3, %v3174_v63  ;;  %v3177_v15 = vmax.f32 %v3113_v4, 0.0  ;;  %v3178_v16 = vmax.f32 %v3114_v5, 0.0  ;;  %v3117_v17 = vadd.f32 %v5424_v36, %v3046_v1  ;;  %v3053_v28 = vld [vmem:[#allocation3 + $0x80] sm:$0xff]  ;;  %v3057_v41 = vld [vmem:[#allocation3 + $0x1e8] sm:$0xff] }
 0x2bf   : > { %4245 = vst [vmem:[%s4964_s24 + $0x10] sm:$0xff] %v4097_v8   ;;  %v3179_v19 = vmax.f32 %v3115_v10, 0.0  ;;  %v3180_v20 = vmax.f32 %v3116_v11, 0.0  ;;  %v3118_v21 = vadd.f32 %v5424_v36, %v3047_v6  ;;  %v3119_v22 = vadd.f32 %v5424_v36, %v3048_v7  ;;  %v3058_v42 = vld [vmem:[#allocation3 + $0xf8] sm:$0xff]  ;;  %v3059_v47 = vld [vmem:[#allocation3 + $0x160] sm:$0xff]  ;;  %v3060_v52 = vld [vmem:[#allocation3 + $0x30] sm:$0xff] }
 0x2c0   : > { %4246 = vst [vmem:[%s4964_s24 + $0x18] sm:$0xff] %v4102_v14   ;;  %v4107_v24 = vpack.c.bf16 %v3177_v15, %v3176_v9  ;;  %v3181_v25 = vmax.f32 %v3117_v17, 0.0  ;;  %v3120_v26 = vadd.f32 %v5424_v36, %v3049_v12  ;;  %v3121_v27 = vadd.f32 %v5424_v36, %v3050_v13  ;;  %v3061_v57 = vld [vmem:[#allocation3 + $0x1e0] sm:$0xff]  ;;  %v3063_v63 = vld [vmem:[#allocation3 + $0xf0] sm:$0xff]  ;;  %v3064_v0 = vld [vmem:[#allocation3 + $0x8] sm:$0xff] }
 0x2c1   : > { %v4112_v30 = vpack.c.bf16 %v3179_v19, %v3178_v16  ;;  %v3182_v31 = vmax.f32 %v3118_v21, 0.0  ;;  %v3183_v32 = vmax.f32 %v3119_v22, 0.0  ;;  %v3122_v33 = vadd.f32 %v5424_v36, %v3051_v18  ;;  %v3062_v58 = vld [vmem:[#allocation3] sm:$0xff]  ;;  %v3065_v5 = vld [vmem:[#allocation3 + $0x148] sm:$0xff]  ;;  %v3066_v6 = vld [vmem:[#allocation3 + $0x1d0] sm:$0xff] }
 0x2c2   : > { %4247 = vst [vmem:[%s4964_s24 + $0x20] sm:$0xff] %v4107_v24   ;;  %v4117_v37 = vpack.c.bf16 %v3181_v25, %v3180_v20  ;;  %v3184_v38 = vmax.f32 %v3120_v26, 0.0  ;;  %v3185_v39 = vmax.f32 %v3121_v27, 0.0  ;;  %v3123_v40 = vadd.f32 %v5424_v36, %v3052_v23  ;;  %v3067_v11 = vld [vmem:[#allocation3 + $0x100] sm:$0xff]  ;;  %v3068_v16 = vld [vmem:[#allocation3 + $0xc8] sm:$0xff]  ;;  %v3070_v22 = vld [vmem:[#allocation3 + $0x1f8] sm:$0xff] }
 0x2c3   : > { %4248 = vst [vmem:[%s4964_s24 + $0x28] sm:$0xff] %v4112_v30   ;;  %v4122_v43 = vpack.c.bf16 %v3183_v32, %v3182_v31  ;;  %v3186_v44 = vmax.f32 %v3122_v33, 0.0  ;;  %v3124_v45 = vadd.f32 %v5424_v36, %v3053_v28  ;;  %v3125_v46 = vadd.f32 %v5424_v36, %v3054_v29  ;;  %v3069_v21 = vld [vmem:[#allocation3 + $0x40] sm:$0xff]  ;;  %v3072_v28 = vld [vmem:[#allocation3 + $0x128] sm:$0xff] }
 0x2c4   : > { %4249 = vst [vmem:[%s4964_s24 + $0x30] sm:$0xff] %v4117_v37   ;;  %v4127_v48 = vpack.c.bf16 %v3185_v39, %v3184_v38  ;;  %v3187_v49 = vmax.f32 %v3123_v40, 0.0  ;;  %v3126_v50 = vadd.f32 %v5424_v36, %v3055_v34  ;;  %v3127_v51 = vadd.f32 %v5424_v36, %v3056_v35  ;;  %v3071_v27 = vld [vmem:[#allocation3 + $0x20] sm:$0xff]  ;;  %v3074_v34 = vld [vmem:[#allocation3 + $0x1f0] sm:$0xff]  ;;  %v3075_v40 = vld [vmem:[#allocation3 + $0xe8] sm:$0xff] }
 0x2c5   : > { %4250 = vst [vmem:[%s4964_s24 + $0x38] sm:$0xff] %v4122_v43   ;;  %v3188_v53 = vmax.f32 %v3124_v45, 0.0  ;;  %v3189_v54 = vmax.f32 %v3125_v46, 0.0  ;;  %v3128_v55 = vadd.f32 %v5424_v36, %v3057_v41  ;;  %v3129_v56 = vadd.f32 %v5424_v36, %v3058_v42  ;;  %v3073_v33 = vld [vmem:[#allocation3 + $0x1a0] sm:$0xff]  ;;  %v3076_v45 = vld [vmem:[#allocation3 + $0x78] sm:$0xff] }
 0x2c6   : > { %4251 = vst [vmem:[%s4964_s24 + $0x40] sm:$0xff] %v4127_v48   ;;  %v4132_v59 = vpack.c.bf16 %v3187_v49, %v3186_v44  ;;  %v3190_v60 = vmax.f32 %v3126_v50, 0.0  ;;  %v3191_v61 = vmax.f32 %v3127_v51, 0.0  ;;  %v3130_v62 = vadd.f32 %v5424_v36, %v3059_v47  ;;  %v3077_v50 = vld [vmem:[#allocation3 + $0x70] sm:$0xff] }
 0x2c7   : > { %v4137_v1 = vpack.c.bf16 %v3189_v54, %v3188_v53  ;;  %v3192_v2 = vmax.f32 %v3128_v55, 0.0  ;;  %v3193_v3 = vmax.f32 %v3129_v56, 0.0  ;;  %v3131_v4 = vadd.f32 %v5424_v36, %v3060_v52  ;;  %v3078_v51 = vld [vmem:[#allocation3 + $0x90] sm:$0xff]  ;;  %v3079_v56 = vld [vmem:[#allocation3 + $0x1d8] sm:$0xff] }
 0x2c8   : > { %4252 = vst [vmem:[%s4964_s24 + $0x48] sm:$0xff] %v4132_v59   ;;  %v4142_v7 = vpack.c.bf16 %v3191_v61, %v3190_v60  ;;  %v3194_v8 = vmax.f32 %v3130_v62, 0.0  ;;  %v3132_v9 = vadd.f32 %v5424_v36, %v3061_v57  ;;  %v3133_v10 = vadd.f32 %v5424_v36, %v3062_v58  ;;  %v3080_v57 = vld [vmem:[#allocation3 + $0xd0] sm:$0xff]  ;;  %v3081_v62 = vld [vmem:[#allocation3 + $0xb8] sm:$0xff] }
 0x2c9   : > { %4253 = vst [vmem:[%s4964_s24 + $0x50] sm:$0xff] %v4137_v1   ;;  %v4147_v12 = vpack.c.bf16 %v3193_v3, %v3192_v2  ;;  %v3195_v13 = vmax.f32 %v3131_v4, 0.0  ;;  %v3134_v14 = vadd.f32 %v5424_v36, %v3063_v63  ;;  %v3135_v15 = vadd.f32 %v5424_v36, %v3064_v0  ;;  %v3082_v63 = vld [vmem:[#allocation3 + $0x88] sm:$0xff] }
 0x2ca   : > { %4254 = vst [vmem:[%s4964_s24 + $0x58] sm:$0xff] %v4142_v7   ;;  %v3196_v17 = vmax.f32 %v3132_v9, 0.0  ;;  %v3197_v18 = vmax.f32 %v3133_v10, 0.0  ;;  %v3136_v19 = vadd.f32 %v5424_v36, %v3065_v5  ;;  %v3137_v20 = vadd.f32 %v5424_v36, %v3066_v6  ;;  %v3083_v4 = vld [vmem:[#allocation3 + $0xa8] sm:$0xff] }
 0x2cb   : > { %4255 = vst [vmem:[%s4964_s24 + $0x60] sm:$0xff] %v4147_v12   ;;  %v4152_v23 = vpack.c.bf16 %v3195_v13, %v3194_v8  ;;  %v3198_v24 = vmax.f32 %v3134_v14, 0.0  ;;  %v3199_v25 = vmax.f32 %v3135_v15, 0.0  ;;  %v3138_v26 = vadd.f32 %v5424_v36, %v3067_v11  ;;  %v3084_v9 = vld [vmem:[#allocation3 + $0x1c8] sm:$0xff]  ;;  %v3085_v14 = vld [vmem:[#allocation3 + $0x170] sm:$0xff]  ;;  %v3086_v15 = vld [vmem:[#allocation3 + $0x178] sm:$0xff] }
 0x2cc   : > { %v4157_v29 = vpack.c.bf16 %v3197_v18, %v3196_v17  ;;  %v3200_v30 = vmax.f32 %v3136_v19, 0.0  ;;  %v3201_v31 = vmax.f32 %v3137_v20, 0.0  ;;  %v3139_v32 = vadd.f32 %v5424_v36, %v3068_v16  ;;  %v3087_v20 = vld [vmem:[#allocation3 + $0x68] sm:$0xff] }
 0x2cd   : > { %4256 = vst [vmem:[%s4964_s24 + $0x68] sm:$0xff] %v4152_v23   ;;  %v4162_v35 = vpack.c.bf16 %v3199_v25, %v3198_v24  ;;  %v3202_v37 = vmax.f32 %v3138_v26, 0.0  ;;  %v3140_v38 = vadd.f32 %v5424_v36, %v3069_v21  ;;  %v3141_v39 = vadd.f32 %v5424_v36, %v3070_v22  ;;  %v3088_v21 = vld [vmem:[#allocation3 + $0x190] sm:$0xff]  ;;  %v3089_v26 = vld [vmem:[#allocation3 + $0x198] sm:$0xff] }
 0x2ce   : > { %4257 = vst [vmem:[%s4964_s24 + $0x70] sm:$0xff] %v4157_v29   ;;  %v4167_v41 = vpack.c.bf16 %v3201_v31, %v3200_v30  ;;  %v3203_v42 = vmax.f32 %v3139_v32, 0.0  ;;  %v3142_v43 = vadd.f32 %v5424_v36, %v3071_v27  ;;  %v3143_v44 = vadd.f32 %v5424_v36, %v3072_v28  ;;  %v3090_v27 = vld [vmem:[#allocation3 + $0x38] sm:$0xff]  ;;  %v3091_v32 = vld [vmem:[#allocation3 + $0xc0] sm:$0xff] }
 0x2cf   : > { %4258 = vst [vmem:[%s4964_s24 + $0x78] sm:$0xff] %v4162_v35   ;;  %v3204_v46 = vmax.f32 %v3140_v38, 0.0  ;;  %v3205_v47 = vmax.f32 %v3141_v39, 0.0  ;;  %v3144_v48 = vadd.f32 %v5424_v36, %v3073_v33  ;;  %v3145_v49 = vadd.f32 %v5424_v36, %v3074_v34  ;;  %v3092_v38 = vld [vmem:[#allocation3 + $0x1c0] sm:$0xff] }
 0x2d0   : > { %4259 = vst [vmem:[%s4964_s24 + $0x80] sm:$0xff] %v4167_v41   ;;  %v4172_v52 = vpack.c.bf16 %v3203_v42, %v3202_v37  ;;  %v3206_v53 = vmax.f32 %v3142_v43, 0.0  ;;  %v3207_v54 = vmax.f32 %v3143_v44, 0.0  ;;  %v3146_v55 = vadd.f32 %v5424_v36, %v3075_v40  ;;  %v3093_v43 = vld [vmem:[#allocation3 + $0x158] sm:$0xff]  ;;  %v3094_v44 = vld [vmem:[#allocation3 + $0x10] sm:$0xff] }
 0x2d1   : > { %v4177_v58 = vpack.c.bf16 %v3205_v47, %v3204_v46  ;;  %v3208_v59 = vmax.f32 %v3144_v48, 0.0  ;;  %v3209_v60 = vmax.f32 %v3145_v49, 0.0  ;;  %v3147_v61 = vadd.f32 %v5424_v36, %v3076_v45  ;;  %v3095_v49 = vld [vmem:[#allocation3 + $0x58] sm:$0xff] }
 0x2d2   : > { %4260 = vst [vmem:[%s4964_s24 + $0x88] sm:$0xff] %v4172_v52   ;;  %v4182_v0 = vpack.c.bf16 %v3207_v54, %v3206_v53  ;;  %v3210_v1 = vmax.f32 %v3146_v55, 0.0  ;;  %v3148_v2 = vadd.f32 %v5424_v36, %v3077_v50  ;;  %v3149_v3 = vadd.f32 %v5424_v36, %v3078_v51  ;;  %v3096_v50 = vld [vmem:[#allocation3 + $0xa0] sm:$0xff] }
 0x2d3   : > { %4261 = vst [vmem:[%s4964_s24 + $0x90] sm:$0xff] %v4177_v58   ;;  %v4187_v5 = vpack.c.bf16 %v3209_v60, %v3208_v59  ;;  %v3211_v6 = vmax.f32 %v3147_v61, 0.0  ;;  %v3150_v7 = vadd.f32 %v5424_v36, %v3079_v56  ;;  %v3151_v8 = vadd.f32 %v5424_v36, %v3080_v57 }
 0x2d4   : > { %4262 = vst [vmem:[%s4964_s24 + $0x98] sm:$0xff] %v4182_v0   ;;  %v3212_v10 = vmax.f32 %v3148_v2, 0.0  ;;  %v3213_v11 = vmax.f32 %v3149_v3, 0.0  ;;  %v3152_v12 = vadd.f32 %v5424_v36, %v3081_v62  ;;  %v3153_v13 = vadd.f32 %v5424_v36, %v3082_v63 }
 0x2d5   : > { %4263 = vst [vmem:[%s4964_s24 + $0xa0] sm:$0xff] %v4187_v5   ;;  %v4192_v16 = vpack.c.bf16 %v3211_v6, %v3210_v1  ;;  %v3214_v17 = vmax.f32 %v3150_v7, 0.0  ;;  %v3215_v18 = vmax.f32 %v3151_v8, 0.0  ;;  %v3154_v19 = vadd.f32 %v5424_v36, %v3083_v4 }
 0x2d6   : > { %v4197_v22 = vpack.c.bf16 %v3213_v11, %v3212_v10  ;;  %v3216_v23 = vmax.f32 %v3152_v12, 0.0  ;;  %v3217_v24 = vmax.f32 %v3153_v13, 0.0  ;;  %v3155_v25 = vadd.f32 %v5424_v36, %v3084_v9 }
 0x2d7   : > { %4264 = vst [vmem:[%s4964_s24 + $0xa8] sm:$0xff] %v4192_v16   ;;  %v4202_v28 = vpack.c.bf16 %v3215_v18, %v3214_v17  ;;  %v3218_v29 = vmax.f32 %v3154_v19, 0.0  ;;  %v3156_v30 = vadd.f32 %v5424_v36, %v3085_v14  ;;  %v3157_v31 = vadd.f32 %v5424_v36, %v3086_v15 }
 0x2d8   : > { %4265 = vst [vmem:[%s4964_s24 + $0xb0] sm:$0xff] %v4197_v22   ;;  %v4207_v33 = vpack.c.bf16 %v3217_v24, %v3216_v23  ;;  %v3219_v34 = vmax.f32 %v3155_v25, 0.0  ;;  %v3158_v35 = vadd.f32 %v5424_v36, %v3087_v20  ;;  %v3159_v37 = vadd.f32 %v5424_v36, %v3088_v21 }
 0x2d9   : > { %4266 = vst [vmem:[%s4964_s24 + $0xb8] sm:$0xff] %v4202_v28   ;;  %v3220_v39 = vmax.f32 %v3156_v30, 0.0  ;;  %v3221_v40 = vmax.f32 %v3157_v31, 0.0  ;;  %v3160_v41 = vadd.f32 %v5424_v36, %v3089_v26  ;;  %v3161_v42 = vadd.f32 %v5424_v36, %v3090_v27 }
 0x2da   : > { %4267 = vst [vmem:[%s4964_s24 + $0xc0] sm:$0xff] %v4207_v33   ;;  %v4212_v45 = vpack.c.bf16 %v3219_v34, %v3218_v29  ;;  %v3222_v46 = vmax.f32 %v3158_v35, 0.0  ;;  %v3223_v47 = vmax.f32 %v3159_v37, 0.0  ;;  %v3162_v48 = vadd.f32 %v5424_v36, %v3091_v32 }
 0x2db   : > { %v4217_v51 = vpack.c.bf16 %v3221_v40, %v3220_v39  ;;  %v3224_v52 = vmax.f32 %v3160_v41, 0.0  ;;  %v3225_v53 = vmax.f32 %v3161_v42, 0.0  ;;  %v3163_v54 = vadd.f32 %v5424_v36, %v3092_v38 }
 0x2dc   : > { %4268 = vst [vmem:[%s4964_s24 + $0xc8] sm:$0xff] %v4212_v45   ;;  %v4222_v55 = vpack.c.bf16 %v3223_v47, %v3222_v46  ;;  %v3226_v56 = vmax.f32 %v3162_v48, 0.0  ;;  %v3164_v57 = vadd.f32 %v5424_v36, %v3093_v43  ;;  %v3165_v58 = vadd.f32 %v5424_v36, %v3094_v44 }
 0x2dd   : > { %4269 = vst [vmem:[%s4964_s24 + $0xd0] sm:$0xff] %v4217_v51   ;;  %v4227_v59 = vpack.c.bf16 %v3225_v53, %v3224_v52  ;;  %v3227_v60 = vmax.f32 %v3163_v54, 0.0  ;;  %v3166_v61 = vadd.f32 %v5424_v36, %v3095_v49  ;;  %v3167_v62 = vadd.f32 %v5424_v36, %v3096_v50 }
 0x2de   : > { %4270 = vst [vmem:[%s4964_s24 + $0xd8] sm:$0xff] %v4222_v55   ;;  %v3228_v63 = vmax.f32 %v3164_v57, 0.0  ;;  %v3229_v0 = vmax.f32 %v3165_v58, 0.0 }
 0x2df   : > { %4271 = vst [vmem:[%s4964_s24 + $0xe0] sm:$0xff] %v4227_v59   ;;  %v4232_v1 = vpack.c.bf16 %v3227_v60, %v3226_v56  ;;  %v3230_v2 = vmax.f32 %v3166_v61, 0.0  ;;  %v3231_v3 = vmax.f32 %v3167_v62, 0.0 }
 0x2e0   : > { %v4237_v4 = vpack.c.bf16 %v3229_v0, %v3228_v63 }
 0x2e1   : > { %4272 = vst [vmem:[%s4964_s24 + $0xe8] sm:$0xff] %v4232_v1   ;;  %v4242_v5 = vpack.c.bf16 %v3231_v3, %v3230_v2 }
 0x2e2   : > { %4273 = vst [vmem:[%s4964_s24 + $0xf0] sm:$0xff] %v4237_v4  }
 0x2e3   : > { %4274 = vst [vmem:[%s4964_s24 + $0xf8] sm:$0xff] %v4242_v5  }
 0x2e4 PF: > { %s13_s18 = sadd.s32 1, %s4611_s18   ;;  %s5547_s12 = smov %s4591_s13 }
 0x2e5   : > { %p10_p2 = scmp.ge.s32.totalorder %s13_s18, 6   ;;  %s5548_s13 = smov %s4686_s25 }
 0x2e6   : > { %s5549_s14 = smov %s4603_s16  ;;  %s5550_s15 = smov %s4607_s17 }
 0x2e7   : > { %s5551_s16 = smov %s5554_s19  ;;  %s5552_s17 = smov %s5558_s20 }
 0x2e8   :  { %12 = sbr.rel (!%p10_p2) target bundleno = 4 (0x4), region = 112 }

// kernel: sgc_forward.9
= control target key start
LH: loop header
LB: loop body
LE: loop exit
PB: predicated region body
PF: predicated region fallthrough
CT: control target
= control target key end

     0   :  { %s4867_s12 = smov 0   ;;  %s4869_s13 = smov 0   ;;  %s5904_s0 = inlined_call_operand.vmem [shape: bf16[1024,1024], index: 0, kind: input, shape index: {}]   ;;  %s5905_s1 = inlined_call_operand.vmem [shape: bf16[1024,128], index: 1, kind: input, shape index: {}]   ;;  %s5906_s2 = inlined_call_operand.vmem [shape: f32[1,128], index: 2, kind: input, shape index: {}]   ;;  %s5907_s3 = inlined_call_operand.vmem [shape: bf16[1024,128], index: 3, kind: output, shape index: {}]  }
   0x1   :  { %s4871_s14 = smov 0   ;;  %s4873_s15 = smov 0  }
   0x2   :  { %s4875_s16 = smov 0   ;;  %s4877_s17 = smov 0  }
   0x3   :  { %s4879_s18 = smov 0   ;;  %s4881_s19 = smov 0  }
   0x4   :  { %s4883_s20 = smov 0  }
   0x5 LB: > { %s25_s21 = sadd.s32 1, %s4831_s17  ;;  %s28_s22 = sadd.s32 1, %s4835_s18  ;;  %s4843_s20 = sphi %s4883_s20, %s13_s20   ;;  %s4839_s19 = sphi %s4881_s19, %s5915_s19   ;;  %s4835_s18 = sphi %s4879_s18, %s5914_s18   ;;  %s4831_s17 = sphi %s4877_s17, %s5913_s17   ;;  %s4827_s16 = sphi %s4875_s16, %s5912_s16   ;;  %s4823_s15 = sphi %s4873_s15, %s5911_s15   ;;  %s4819_s14 = sphi %s4871_s14, %s5910_s14   ;;  %s4815_s13 = sphi %s4869_s13, %s5909_s13   ;;  %s4811_s12 = sphi %s4867_s12, %s5908_s12  }
   0x6   : > { %p26_p0 = scmp.ge.s32.totalorder %s25_s21, 2  ;;  %p48_p1 = scmp.ne.s32.totalorder %s4815_s13, %s4811_s12 }
   0x7   : > { %p49_p2 = scmp.eq.s32.totalorder %s4843_s20, 0  ;;  %s32_s23 = sadd.s32 1, %s4839_s19 }
   0x8   : > { %s5917_s21 = smov (%p26_p0, %s25_s21), 0  ;;  %s5919_s22 = smov (!%p26_p0, %s28_s22), %s4835_s18 }
   0x9   : > { %p30_p3 = scmp.ge.s32.totalorder %s5919_s22, 2  ;;  %s37_s24 = ssub.s32 %s4831_s17, %s5917_s21 }
   0xa   : > { %p50_p4 = por %p49_p2, %p48_p1  ;;  %s41_s26 = sadd.s32 1, %s4815_s13 }
   0xb   : > { %s5921_s22 = smov (%p30_p3, %s5919_s22), 0  ;;  %s5923_s23 = smov (!%p30_p3, %s32_s23), %s4839_s19 }
   0xc   : > { %s36_s25 = ssub.s32 %s4835_s18, %s5921_s22  ;;  %p34_p5 = scmp.ge.s32.totalorder %s5923_s23, 2 }
   0xd   : > { %s38_s27 = sor.u32 %s37_s24, %s36_s25  ;;  %p3647_p7 = scmp.ge.s32.totalorder %s4843_s20, 8 }
   0xe   : > { %p39_p6 = scmp.eq.s32.totalorder %s38_s27, 0  ;;  %s5925_s23 = smov (%p34_p5, %s5923_s23), 0 }
   0xf   : > { %148 = sbr.rel (%p3647_p7) target bundleno = 91 (0x5b), region = 24 }
  0x10   : > { %s4932_s28 = scalar_select %p39_p6, %s4815_s13, %s41_s26  }
  0x14   : > { %151 = sbr.rel (!%p50_p4) target bundleno = 91 (0x5b), region = 28  ;;  %s153_s29 = sand.u32 (%p50_p4), 1, %s4815_s13  }
  0x15   : > { %s3650_s30 = sshll.u32 (%p50_p4), %s4831_s17, 2  ;;  %s3648_s4 = sshll.u32 (%p50_p4), %s153_s29, 10 }
  0x16   : > { %s3964_s5 = sshll.u32 (%p50_p4), %s4835_s18, 9  ;;  %s4946_s11 = scalar_lea.vmem (%p50_p4), [#allocation4], %s3648_s4 }
  0x17   : > { %s159_s6 = sadd.s32 (%p50_p4), %s3964_s5, %s3650_s30 }
  0x18   : > { %s3652_s7 = sshll.u32 (%p50_p4), %s159_s6, 2 }
  0x19   : > { %s4941_s10 = scalar_lea.vmem %s5904_s0, %s3652_s7 }
  0x1a   : > { %v174_v0 = vld [vmem:[%s4941_s10] sm:$0xff]  ;;  %v176_v1 = vld [vmem:[%s4941_s10 + $0x8] sm:$0xff] }
  0x1b   : > { %v178_v2 = vld [vmem:[%s4941_s10 + $0x20] sm:$0xff]  ;;  %175 = vst [vmem:[%s4946_s11] sm:$0xff] %v174_v0  ;;  %177 = vst [vmem:[%s4946_s11 + $0x8] sm:$0xff] %v176_v1  ;;  %v180_v3 = vld [vmem:[%s4941_s10 + $0x28] sm:$0xff] }
  0x1c   : > { %179 = vst [vmem:[%s4946_s11 + $0x10] sm:$0xff] %v178_v2  ;;  %v182_v4 = vld [vmem:[%s4941_s10 + $0x40] sm:$0xff]  ;;  %v184_v5 = vld [vmem:[%s4941_s10 + $0x48] sm:$0xff]  ;;  %181 = vst [vmem:[%s4946_s11 + $0x18] sm:$0xff] %v180_v3 }
  0x1d   : > { %183 = vst [vmem:[%s4946_s11 + $0x20] sm:$0xff] %v182_v4  ;;  %185 = vst [vmem:[%s4946_s11 + $0x28] sm:$0xff] %v184_v5  ;;  %v186_v6 = vld [vmem:[%s4941_s10 + $0x60] sm:$0xff]  ;;  %v188_v7 = vld [vmem:[%s4941_s10 + $0x68] sm:$0xff] }
  0x1e   : > { %v190_v8 = vld [vmem:[%s4941_s10 + $0x80] sm:$0xff]  ;;  %187 = vst [vmem:[%s4946_s11 + $0x30] sm:$0xff] %v186_v6  ;;  %189 = vst [vmem:[%s4946_s11 + $0x38] sm:$0xff] %v188_v7  ;;  %v192_v9 = vld [vmem:[%s4941_s10 + $0x88] sm:$0xff] }
  0x1f   : > { %191 = vst [vmem:[%s4946_s11 + $0x40] sm:$0xff] %v190_v8  ;;  %v194_v10 = vld [vmem:[%s4941_s10 + $0xa0] sm:$0xff]  ;;  %v196_v11 = vld [vmem:[%s4941_s10 + $0xa8] sm:$0xff]  ;;  %193 = vst [vmem:[%s4946_s11 + $0x48] sm:$0xff] %v192_v9 }
  0x20   : > { %195 = vst [vmem:[%s4946_s11 + $0x50] sm:$0xff] %v194_v10  ;;  %197 = vst [vmem:[%s4946_s11 + $0x58] sm:$0xff] %v196_v11  ;;  %v198_v12 = vld [vmem:[%s4941_s10 + $0xc0] sm:$0xff]  ;;  %v200_v13 = vld [vmem:[%s4941_s10 + $0xc8] sm:$0xff] }
  0x21   : > { %v202_v14 = vld [vmem:[%s4941_s10 + $0xe0] sm:$0xff]  ;;  %199 = vst [vmem:[%s4946_s11 + $0x60] sm:$0xff] %v198_v12  ;;  %201 = vst [vmem:[%s4946_s11 + $0x68] sm:$0xff] %v200_v13  ;;  %v204_v15 = vld [vmem:[%s4941_s10 + $0xe8] sm:$0xff] }
  0x22   : > { %203 = vst [vmem:[%s4946_s11 + $0x70] sm:$0xff] %v202_v14  ;;  %v206_v16 = vld [vmem:[%s4941_s10 + $0x100] sm:$0xff]  ;;  %v208_v17 = vld [vmem:[%s4941_s10 + $0x108] sm:$0xff]  ;;  %205 = vst [vmem:[%s4946_s11 + $0x78] sm:$0xff] %v204_v15 }
  0x23   : > { %207 = vst [vmem:[%s4946_s11 + $0x80] sm:$0xff] %v206_v16  ;;  %209 = vst [vmem:[%s4946_s11 + $0x88] sm:$0xff] %v208_v17  ;;  %v210_v18 = vld [vmem:[%s4941_s10 + $0x120] sm:$0xff]  ;;  %v212_v19 = vld [vmem:[%s4941_s10 + $0x128] sm:$0xff] }
  0x24   : > { %v214_v20 = vld [vmem:[%s4941_s10 + $0x140] sm:$0xff]  ;;  %211 = vst [vmem:[%s4946_s11 + $0x90] sm:$0xff] %v210_v18  ;;  %213 = vst [vmem:[%s4946_s11 + $0x98] sm:$0xff] %v212_v19  ;;  %v216_v21 = vld [vmem:[%s4941_s10 + $0x148] sm:$0xff] }
  0x25   : > { %215 = vst [vmem:[%s4946_s11 + $0xa0] sm:$0xff] %v214_v20  ;;  %v218_v22 = vld [vmem:[%s4941_s10 + $0x160] sm:$0xff]  ;;  %v220_v23 = vld [vmem:[%s4941_s10 + $0x168] sm:$0xff]  ;;  %217 = vst [vmem:[%s4946_s11 + $0xa8] sm:$0xff] %v216_v21 }
  0x26   : > { %219 = vst [vmem:[%s4946_s11 + $0xb0] sm:$0xff] %v218_v22  ;;  %221 = vst [vmem:[%s4946_s11 + $0xb8] sm:$0xff] %v220_v23  ;;  %v222_v24 = vld [vmem:[%s4941_s10 + $0x180] sm:$0xff]  ;;  %v224_v25 = vld [vmem:[%s4941_s10 + $0x188] sm:$0xff] }
  0x27   : > { %v226_v26 = vld [vmem:[%s4941_s10 + $0x1a0] sm:$0xff]  ;;  %223 = vst [vmem:[%s4946_s11 + $0xc0] sm:$0xff] %v222_v24  ;;  %225 = vst [vmem:[%s4946_s11 + $0xc8] sm:$0xff] %v224_v25  ;;  %v228_v27 = vld [vmem:[%s4941_s10 + $0x1a8] sm:$0xff] }
  0x28   : > { %227 = vst [vmem:[%s4946_s11 + $0xd0] sm:$0xff] %v226_v26  ;;  %v230_v28 = vld [vmem:[%s4941_s10 + $0x1c0] sm:$0xff]  ;;  %v232_v29 = vld [vmem:[%s4941_s10 + $0x1c8] sm:$0xff]  ;;  %229 = vst [vmem:[%s4946_s11 + $0xd8] sm:$0xff] %v228_v27 }
  0x29   : > { %231 = vst [vmem:[%s4946_s11 + $0xe0] sm:$0xff] %v230_v28  ;;  %233 = vst [vmem:[%s4946_s11 + $0xe8] sm:$0xff] %v232_v29  ;;  %v234_v30 = vld [vmem:[%s4941_s10 + $0x1e0] sm:$0xff]  ;;  %v236_v31 = vld [vmem:[%s4941_s10 + $0x1e8] sm:$0xff] }
  0x2a   : > { %v238_v32 = vld [vmem:[%s4941_s10 + $0x200] sm:$0xff]  ;;  %235 = vst [vmem:[%s4946_s11 + $0xf0] sm:$0xff] %v234_v30  ;;  %237 = vst [vmem:[%s4946_s11 + $0xf8] sm:$0xff] %v236_v31  ;;  %v240_v33 = vld [vmem:[%s4941_s10 + $0x208] sm:$0xff] }
  0x2b   : > { %239 = vst [vmem:[%s4946_s11 + $0x100] sm:$0xff] %v238_v32  ;;  %v242_v34 = vld [vmem:[%s4941_s10 + $0x220] sm:$0xff]  ;;  %v244_v35 = vld [vmem:[%s4941_s10 + $0x228] sm:$0xff]  ;;  %241 = vst [vmem:[%s4946_s11 + $0x108] sm:$0xff] %v240_v33 }
  0x2c   : > { %243 = vst [vmem:[%s4946_s11 + $0x110] sm:$0xff] %v242_v34  ;;  %245 = vst [vmem:[%s4946_s11 + $0x118] sm:$0xff] %v244_v35  ;;  %v246_v36 = vld [vmem:[%s4941_s10 + $0x240] sm:$0xff]  ;;  %v248_v37 = vld [vmem:[%s4941_s10 + $0x248] sm:$0xff] }
  0x2d   : > { %v250_v38 = vld [vmem:[%s4941_s10 + $0x260] sm:$0xff]  ;;  %247 = vst [vmem:[%s4946_s11 + $0x120] sm:$0xff] %v246_v36  ;;  %249 = vst [vmem:[%s4946_s11 + $0x128] sm:$0xff] %v248_v37  ;;  %v252_v39 = vld [vmem:[%s4941_s10 + $0x268] sm:$0xff] }
  0x2e   : > { %251 = vst [vmem:[%s4946_s11 + $0x130] sm:$0xff] %v250_v38  ;;  %v254_v40 = vld [vmem:[%s4941_s10 + $0x280] sm:$0xff]  ;;  %v256_v41 = vld [vmem:[%s4941_s10 + $0x288] sm:$0xff]  ;;  %253 = vst [vmem:[%s4946_s11 + $0x138] sm:$0xff] %v252_v39 }
  0x2f   : > { %255 = vst [vmem:[%s4946_s11 + $0x140] sm:$0xff] %v254_v40  ;;  %257 = vst [vmem:[%s4946_s11 + $0x148] sm:$0xff] %v256_v41  ;;  %v258_v42 = vld [vmem:[%s4941_s10 + $0x2a0] sm:$0xff]  ;;  %v260_v43 = vld [vmem:[%s4941_s10 + $0x2a8] sm:$0xff] }
  0x30   : > { %v262_v44 = vld [vmem:[%s4941_s10 + $0x2c0] sm:$0xff]  ;;  %259 = vst [vmem:[%s4946_s11 + $0x150] sm:$0xff] %v258_v42  ;;  %261 = vst [vmem:[%s4946_s11 + $0x158] sm:$0xff] %v260_v43  ;;  %v264_v45 = vld [vmem:[%s4941_s10 + $0x2c8] sm:$0xff] }
  0x31   : > { %263 = vst [vmem:[%s4946_s11 + $0x160] sm:$0xff] %v262_v44  ;;  %v266_v46 = vld [vmem:[%s4941_s10 + $0x2e0] sm:$0xff]  ;;  %v268_v47 = vld [vmem:[%s4941_s10 + $0x2e8] sm:$0xff]  ;;  %265 = vst [vmem:[%s4946_s11 + $0x168] sm:$0xff] %v264_v45 }
  0x32   : > { %267 = vst [vmem:[%s4946_s11 + $0x170] sm:$0xff] %v266_v46  ;;  %269 = vst [vmem:[%s4946_s11 + $0x178] sm:$0xff] %v268_v47  ;;  %v270_v48 = vld [vmem:[%s4941_s10 + $0x300] sm:$0xff]  ;;  %v272_v49 = vld [vmem:[%s4941_s10 + $0x308] sm:$0xff] }
  0x33   : > { %v274_v50 = vld [vmem:[%s4941_s10 + $0x320] sm:$0xff]  ;;  %271 = vst [vmem:[%s4946_s11 + $0x180] sm:$0xff] %v270_v48  ;;  %273 = vst [vmem:[%s4946_s11 + $0x188] sm:$0xff] %v272_v49  ;;  %v276_v51 = vld [vmem:[%s4941_s10 + $0x328] sm:$0xff] }
  0x34   : > { %275 = vst [vmem:[%s4946_s11 + $0x190] sm:$0xff] %v274_v50  ;;  %v278_v52 = vld [vmem:[%s4941_s10 + $0x340] sm:$0xff]  ;;  %v280_v53 = vld [vmem:[%s4941_s10 + $0x348] sm:$0xff]  ;;  %277 = vst [vmem:[%s4946_s11 + $0x198] sm:$0xff] %v276_v51 }
  0x35   : > { %279 = vst [vmem:[%s4946_s11 + $0x1a0] sm:$0xff] %v278_v52  ;;  %281 = vst [vmem:[%s4946_s11 + $0x1a8] sm:$0xff] %v280_v53  ;;  %v282_v54 = vld [vmem:[%s4941_s10 + $0x360] sm:$0xff]  ;;  %v284_v55 = vld [vmem:[%s4941_s10 + $0x368] sm:$0xff] }
  0x36   : > { %v286_v56 = vld [vmem:[%s4941_s10 + $0x380] sm:$0xff]  ;;  %283 = vst [vmem:[%s4946_s11 + $0x1b0] sm:$0xff] %v282_v54  ;;  %285 = vst [vmem:[%s4946_s11 + $0x1b8] sm:$0xff] %v284_v55  ;;  %v288_v57 = vld [vmem:[%s4941_s10 + $0x388] sm:$0xff] }
  0x37   : > { %287 = vst [vmem:[%s4946_s11 + $0x1c0] sm:$0xff] %v286_v56  ;;  %v290_v58 = vld [vmem:[%s4941_s10 + $0x3a0] sm:$0xff]  ;;  %v292_v59 = vld [vmem:[%s4941_s10 + $0x3a8] sm:$0xff]  ;;  %289 = vst [vmem:[%s4946_s11 + $0x1c8] sm:$0xff] %v288_v57 }
  0x38   : > { %291 = vst [vmem:[%s4946_s11 + $0x1d0] sm:$0xff] %v290_v58  ;;  %293 = vst [vmem:[%s4946_s11 + $0x1d8] sm:$0xff] %v292_v59  ;;  %v294_v60 = vld [vmem:[%s4941_s10 + $0x3c0] sm:$0xff]  ;;  %v296_v61 = vld [vmem:[%s4941_s10 + $0x3c8] sm:$0xff] }
  0x39   : > { %v298_v62 = vld [vmem:[%s4941_s10 + $0x3e0] sm:$0xff]  ;;  %295 = vst [vmem:[%s4946_s11 + $0x1e0] sm:$0xff] %v294_v60  ;;  %297 = vst [vmem:[%s4946_s11 + $0x1e8] sm:$0xff] %v296_v61  ;;  %v300_v63 = vld [vmem:[%s4941_s10 + $0x3e8] sm:$0xff] }
  0x3a   : > { %299 = vst [vmem:[%s4946_s11 + $0x1f0] sm:$0xff] %v298_v62  ;;  %v302_v0 = vld [vmem:[%s4941_s10 + $0x400] sm:$0xff]  ;;  %v304_v1 = vld [vmem:[%s4941_s10 + $0x408] sm:$0xff]  ;;  %301 = vst [vmem:[%s4946_s11 + $0x1f8] sm:$0xff] %v300_v63 }
  0x3b   : > { %303 = vst [vmem:[%s4946_s11 + $0x200] sm:$0xff] %v302_v0  ;;  %305 = vst [vmem:[%s4946_s11 + $0x208] sm:$0xff] %v304_v1  ;;  %v306_v2 = vld [vmem:[%s4941_s10 + $0x420] sm:$0xff]  ;;  %v308_v3 = vld [vmem:[%s4941_s10 + $0x428] sm:$0xff] }
  0x3c   : > { %v310_v4 = vld [vmem:[%s4941_s10 + $0x440] sm:$0xff]  ;;  %307 = vst [vmem:[%s4946_s11 + $0x210] sm:$0xff] %v306_v2  ;;  %309 = vst [vmem:[%s4946_s11 + $0x218] sm:$0xff] %v308_v3  ;;  %v312_v5 = vld [vmem:[%s4941_s10 + $0x448] sm:$0xff] }
  0x3d   : > { %311 = vst [vmem:[%s4946_s11 + $0x220] sm:$0xff] %v310_v4  ;;  %v314_v6 = vld [vmem:[%s4941_s10 + $0x460] sm:$0xff]  ;;  %v316_v7 = vld [vmem:[%s4941_s10 + $0x468] sm:$0xff]  ;;  %313 = vst [vmem:[%s4946_s11 + $0x228] sm:$0xff] %v312_v5 }
  0x3e   : > { %315 = vst [vmem:[%s4946_s11 + $0x230] sm:$0xff] %v314_v6  ;;  %317 = vst [vmem:[%s4946_s11 + $0x238] sm:$0xff] %v316_v7  ;;  %v318_v8 = vld [vmem:[%s4941_s10 + $0x480] sm:$0xff]  ;;  %v320_v9 = vld [vmem:[%s4941_s10 + $0x488] sm:$0xff] }
  0x3f   : > { %v322_v10 = vld [vmem:[%s4941_s10 + $0x4a0] sm:$0xff]  ;;  %319 = vst [vmem:[%s4946_s11 + $0x240] sm:$0xff] %v318_v8  ;;  %321 = vst [vmem:[%s4946_s11 + $0x248] sm:$0xff] %v320_v9  ;;  %v324_v11 = vld [vmem:[%s4941_s10 + $0x4a8] sm:$0xff] }
  0x40   : > { %323 = vst [vmem:[%s4946_s11 + $0x250] sm:$0xff] %v322_v10  ;;  %v326_v12 = vld [vmem:[%s4941_s10 + $0x4c0] sm:$0xff]  ;;  %v328_v13 = vld [vmem:[%s4941_s10 + $0x4c8] sm:$0xff]  ;;  %325 = vst [vmem:[%s4946_s11 + $0x258] sm:$0xff] %v324_v11 }
  0x41   : > { %327 = vst [vmem:[%s4946_s11 + $0x260] sm:$0xff] %v326_v12  ;;  %329 = vst [vmem:[%s4946_s11 + $0x268] sm:$0xff] %v328_v13  ;;  %v330_v14 = vld [vmem:[%s4941_s10 + $0x4e0] sm:$0xff]  ;;  %v332_v15 = vld [vmem:[%s4941_s10 + $0x4e8] sm:$0xff] }
  0x42   : > { %v334_v16 = vld [vmem:[%s4941_s10 + $0x500] sm:$0xff]  ;;  %331 = vst [vmem:[%s4946_s11 + $0x270] sm:$0xff] %v330_v14  ;;  %333 = vst [vmem:[%s4946_s11 + $0x278] sm:$0xff] %v332_v15  ;;  %v336_v17 = vld [vmem:[%s4941_s10 + $0x508] sm:$0xff] }
  0x43   : > { %335 = vst [vmem:[%s4946_s11 + $0x280] sm:$0xff] %v334_v16  ;;  %v338_v18 = vld [vmem:[%s4941_s10 + $0x520] sm:$0xff]  ;;  %v340_v19 = vld [vmem:[%s4941_s10 + $0x528] sm:$0xff]  ;;  %337 = vst [vmem:[%s4946_s11 + $0x288] sm:$0xff] %v336_v17 }
  0x44   : > { %339 = vst [vmem:[%s4946_s11 + $0x290] sm:$0xff] %v338_v18  ;;  %341 = vst [vmem:[%s4946_s11 + $0x298] sm:$0xff] %v340_v19  ;;  %v342_v20 = vld [vmem:[%s4941_s10 + $0x540] sm:$0xff]  ;;  %v344_v21 = vld [vmem:[%s4941_s10 + $0x548] sm:$0xff] }
  0x45   : > { %v346_v22 = vld [vmem:[%s4941_s10 + $0x560] sm:$0xff]  ;;  %343 = vst [vmem:[%s4946_s11 + $0x2a0] sm:$0xff] %v342_v20  ;;  %345 = vst [vmem:[%s4946_s11 + $0x2a8] sm:$0xff] %v344_v21  ;;  %v348_v23 = vld [vmem:[%s4941_s10 + $0x568] sm:$0xff] }
  0x46   : > { %347 = vst [vmem:[%s4946_s11 + $0x2b0] sm:$0xff] %v346_v22  ;;  %v350_v24 = vld [vmem:[%s4941_s10 + $0x580] sm:$0xff]  ;;  %v352_v25 = vld [vmem:[%s4941_s10 + $0x588] sm:$0xff]  ;;  %349 = vst [vmem:[%s4946_s11 + $0x2b8] sm:$0xff] %v348_v23 }
  0x47   : > { %351 = vst [vmem:[%s4946_s11 + $0x2c0] sm:$0xff] %v350_v24  ;;  %353 = vst [vmem:[%s4946_s11 + $0x2c8] sm:$0xff] %v352_v25  ;;  %v354_v26 = vld [vmem:[%s4941_s10 + $0x5a0] sm:$0xff]  ;;  %v356_v27 = vld [vmem:[%s4941_s10 + $0x5a8] sm:$0xff] }
  0x48   : > { %v358_v28 = vld [vmem:[%s4941_s10 + $0x5c0] sm:$0xff]  ;;  %355 = vst [vmem:[%s4946_s11 + $0x2d0] sm:$0xff] %v354_v26  ;;  %357 = vst [vmem:[%s4946_s11 + $0x2d8] sm:$0xff] %v356_v27  ;;  %v360_v29 = vld [vmem:[%s4941_s10 + $0x5c8] sm:$0xff] }
  0x49   : > { %359 = vst [vmem:[%s4946_s11 + $0x2e0] sm:$0xff] %v358_v28  ;;  %v362_v30 = vld [vmem:[%s4941_s10 + $0x5e0] sm:$0xff]  ;;  %v364_v31 = vld [vmem:[%s4941_s10 + $0x5e8] sm:$0xff]  ;;  %361 = vst [vmem:[%s4946_s11 + $0x2e8] sm:$0xff] %v360_v29 }
  0x4a   : > { %363 = vst [vmem:[%s4946_s11 + $0x2f0] sm:$0xff] %v362_v30  ;;  %365 = vst [vmem:[%s4946_s11 + $0x2f8] sm:$0xff] %v364_v31  ;;  %v366_v32 = vld [vmem:[%s4941_s10 + $0x600] sm:$0xff]  ;;  %v368_v33 = vld [vmem:[%s4941_s10 + $0x608] sm:$0xff] }
  0x4b   : > { %v370_v34 = vld [vmem:[%s4941_s10 + $0x620] sm:$0xff]  ;;  %367 = vst [vmem:[%s4946_s11 + $0x300] sm:$0xff] %v366_v32  ;;  %369 = vst [vmem:[%s4946_s11 + $0x308] sm:$0xff] %v368_v33  ;;  %v372_v35 = vld [vmem:[%s4941_s10 + $0x628] sm:$0xff] }
  0x4c   : > { %371 = vst [vmem:[%s4946_s11 + $0x310] sm:$0xff] %v370_v34  ;;  %v374_v36 = vld [vmem:[%s4941_s10 + $0x640] sm:$0xff]  ;;  %v376_v37 = vld [vmem:[%s4941_s10 + $0x648] sm:$0xff]  ;;  %373 = vst [vmem:[%s4946_s11 + $0x318] sm:$0xff] %v372_v35 }
  0x4d   : > { %375 = vst [vmem:[%s4946_s11 + $0x320] sm:$0xff] %v374_v36  ;;  %377 = vst [vmem:[%s4946_s11 + $0x328] sm:$0xff] %v376_v37  ;;  %v378_v38 = vld [vmem:[%s4941_s10 + $0x660] sm:$0xff]  ;;  %v380_v39 = vld [vmem:[%s4941_s10 + $0x668] sm:$0xff] }
  0x4e   : > { %v382_v40 = vld [vmem:[%s4941_s10 + $0x680] sm:$0xff]  ;;  %379 = vst [vmem:[%s4946_s11 + $0x330] sm:$0xff] %v378_v38  ;;  %381 = vst [vmem:[%s4946_s11 + $0x338] sm:$0xff] %v380_v39  ;;  %v384_v41 = vld [vmem:[%s4941_s10 + $0x688] sm:$0xff] }
  0x4f   : > { %383 = vst [vmem:[%s4946_s11 + $0x340] sm:$0xff] %v382_v40  ;;  %v386_v42 = vld [vmem:[%s4941_s10 + $0x6a0] sm:$0xff]  ;;  %v388_v43 = vld [vmem:[%s4941_s10 + $0x6a8] sm:$0xff]  ;;  %385 = vst [vmem:[%s4946_s11 + $0x348] sm:$0xff] %v384_v41 }
  0x50   : > { %387 = vst [vmem:[%s4946_s11 + $0x350] sm:$0xff] %v386_v42  ;;  %389 = vst [vmem:[%s4946_s11 + $0x358] sm:$0xff] %v388_v43  ;;  %v390_v44 = vld [vmem:[%s4941_s10 + $0x6c0] sm:$0xff]  ;;  %v392_v45 = vld [vmem:[%s4941_s10 + $0x6c8] sm:$0xff] }
  0x51   : > { %v394_v46 = vld [vmem:[%s4941_s10 + $0x6e0] sm:$0xff]  ;;  %391 = vst [vmem:[%s4946_s11 + $0x360] sm:$0xff] %v390_v44  ;;  %393 = vst [vmem:[%s4946_s11 + $0x368] sm:$0xff] %v392_v45  ;;  %v396_v47 = vld [vmem:[%s4941_s10 + $0x6e8] sm:$0xff] }
  0x52   : > { %395 = vst [vmem:[%s4946_s11 + $0x370] sm:$0xff] %v394_v46  ;;  %v398_v48 = vld [vmem:[%s4941_s10 + $0x700] sm:$0xff]  ;;  %v400_v49 = vld [vmem:[%s4941_s10 + $0x708] sm:$0xff]  ;;  %397 = vst [vmem:[%s4946_s11 + $0x378] sm:$0xff] %v396_v47 }
  0x53   : > { %399 = vst [vmem:[%s4946_s11 + $0x380] sm:$0xff] %v398_v48  ;;  %401 = vst [vmem:[%s4946_s11 + $0x388] sm:$0xff] %v400_v49  ;;  %v402_v50 = vld [vmem:[%s4941_s10 + $0x720] sm:$0xff]  ;;  %v404_v51 = vld [vmem:[%s4941_s10 + $0x728] sm:$0xff] }
  0x54   : > { %v406_v52 = vld [vmem:[%s4941_s10 + $0x740] sm:$0xff]  ;;  %403 = vst [vmem:[%s4946_s11 + $0x390] sm:$0xff] %v402_v50  ;;  %405 = vst [vmem:[%s4946_s11 + $0x398] sm:$0xff] %v404_v51  ;;  %v408_v53 = vld [vmem:[%s4941_s10 + $0x748] sm:$0xff] }
  0x55   : > { %407 = vst [vmem:[%s4946_s11 + $0x3a0] sm:$0xff] %v406_v52  ;;  %v410_v54 = vld [vmem:[%s4941_s10 + $0x760] sm:$0xff]  ;;  %v412_v55 = vld [vmem:[%s4941_s10 + $0x768] sm:$0xff]  ;;  %409 = vst [vmem:[%s4946_s11 + $0x3a8] sm:$0xff] %v408_v53 }
  0x56   : > { %411 = vst [vmem:[%s4946_s11 + $0x3b0] sm:$0xff] %v410_v54  ;;  %413 = vst [vmem:[%s4946_s11 + $0x3b8] sm:$0xff] %v412_v55  ;;  %v414_v56 = vld [vmem:[%s4941_s10 + $0x780] sm:$0xff]  ;;  %v416_v57 = vld [vmem:[%s4941_s10 + $0x788] sm:$0xff] }
  0x57   : > { %v418_v58 = vld [vmem:[%s4941_s10 + $0x7a0] sm:$0xff]  ;;  %415 = vst [vmem:[%s4946_s11 + $0x3c0] sm:$0xff] %v414_v56  ;;  %417 = vst [vmem:[%s4946_s11 + $0x3c8] sm:$0xff] %v416_v57  ;;  %v420_v59 = vld [vmem:[%s4941_s10 + $0x7a8] sm:$0xff] }
  0x58   : > { %419 = vst [vmem:[%s4946_s11 + $0x3d0] sm:$0xff] %v418_v58  ;;  %v422_v60 = vld [vmem:[%s4941_s10 + $0x7c0] sm:$0xff]  ;;  %v424_v61 = vld [vmem:[%s4941_s10 + $0x7c8] sm:$0xff]  ;;  %421 = vst [vmem:[%s4946_s11 + $0x3d8] sm:$0xff] %v420_v59 }
  0x59   : > { %423 = vst [vmem:[%s4946_s11 + $0x3e0] sm:$0xff] %v422_v60  ;;  %425 = vst [vmem:[%s4946_s11 + $0x3e8] sm:$0xff] %v424_v61  ;;  %v426_v62 = vld [vmem:[%s4941_s10 + $0x7e0] sm:$0xff]  ;;  %v428_v63 = vld [vmem:[%s4941_s10 + $0x7e8] sm:$0xff] }
  0x5a   : > { %427 = vst [vmem:[%s4946_s11 + $0x3f0] sm:$0xff] %v426_v62  ;;  %429 = vst [vmem:[%s4946_s11 + $0x3f8] sm:$0xff] %v428_v63 }
  0x5b PF: > { %p3653_p8 = scmp.ge.s32.totalorder %s4843_s20, 1  ;;  %p434_p9 = scmp.lt.s32.totalorder %s4843_s20, 9 }
  0x5d   : > { %p435_p10 = pnand %p3653_p8, %p434_p9 }
  0x5e   : > { %s441_s24 = sand.u32 (!%p435_p10), 1, %s4811_s12   ;;  %s3655_s25 = sshll.u32 (!%p435_p10), %s4823_s15, 6 }
  0x5f   : > { %438 = sbr.rel (%p435_p10) target bundleno = 796 (0x31c), region = 51  ;;  %s3654_s26 = sshll.u32 (!%p435_p10), %s441_s24, 10 }
  0x60   : > { %p467_p11 = scmp.lt.s32.totalorder (!%p435_p10), %s3655_s25, 127  ;;  %p473_p12 = scmp.eq.s32.totalorder (!%p435_p10), %s4827_s16, 0 }
  0x61   : > { %p474_p13 = scmp.eq.s32.totalorder (!%p435_p10), %s4823_s15, 0  ;;  %p477_p0 = scmp.eq.s32.totalorder (!%p435_p10), %s4819_s14, 0 }
  0x62   : > { %s5213_s5 = scalar_lea.vmem (!%p435_p10), [#allocation4], %s3654_s26 }
  0x63   : > { %p475_p1 = pnand (!%p435_p10), %p474_p13, %p473_p12 }
  0x64   : > { %s5927_s25 = smov (!%p467_p11, %s3655_s25), 127 }
  0x65   : > { %s3656_s27 = sshll.u32 %s5927_s25, 2  ;;  %p476_p2 = pneg %p475_p1 }
  0x66   : > { %s5211_s4 = scalar_lea.vmem %s5907_s3, %s3656_s27 }
  0x67   : > { %p478_p3 = pnand %p477_p0, %p476_p2 }
  0x69   : > { %481 = sbr.rel (%p478_p3) target bundleno = 143 (0x8f), region = 59 }
  0x6e   : > { %v482_v0 = vld [vmem:[%s5905_s1] sm:$0xff]   ;;  %v484_v1 = vld [vmem:[%s5905_s1 + $0x8] sm:$0xff]   ;;  %v486_v2 = vld [vmem:[%s5905_s1 + $0x10] sm:$0xff]  }
  0x6f   : > { %610 = vst [vmem:[#allocation2] sm:$0xff] %v482_v0   ;;  %612 = vst [vmem:[#allocation2 + $0x8] sm:$0xff] %v484_v1   ;;  %v488_v3 = vld [vmem:[%s5905_s1 + $0x18] sm:$0xff]   ;;  %v490_v4 = vld [vmem:[%s5905_s1 + $0x20] sm:$0xff]  }
  0x70   : > { %614 = vst [vmem:[#allocation2 + $0x10] sm:$0xff] %v486_v2   ;;  %v492_v5 = vld [vmem:[%s5905_s1 + $0x28] sm:$0xff]   ;;  %616 = vst [vmem:[#allocation2 + $0x18] sm:$0xff] %v488_v3   ;;  %v494_v6 = vld [vmem:[%s5905_s1 + $0x30] sm:$0xff]  }
  0x71   : > { %618 = vst [vmem:[#allocation2 + $0x20] sm:$0xff] %v490_v4   ;;  %620 = vst [vmem:[#allocation2 + $0x28] sm:$0xff] %v492_v5   ;;  %v496_v7 = vld [vmem:[%s5905_s1 + $0x38] sm:$0xff]   ;;  %v498_v8 = vld [vmem:[%s5905_s1 + $0x40] sm:$0xff]  }
  0x72   : > { %622 = vst [vmem:[#allocation2 + $0x30] sm:$0xff] %v494_v6   ;;  %624 = vst [vmem:[#allocation2 + $0x38] sm:$0xff] %v496_v7   ;;  %v500_v9 = vld [vmem:[%s5905_s1 + $0x48] sm:$0xff]   ;;  %v502_v10 = vld [vmem:[%s5905_s1 + $0x50] sm:$0xff]  }
  0x73   : > { %626 = vst [vmem:[#allocation2 + $0x40] sm:$0xff] %v498_v8   ;;  %v504_v11 = vld [vmem:[%s5905_s1 + $0x58] sm:$0xff]   ;;  %628 = vst [vmem:[#allocation2 + $0x48] sm:$0xff] %v500_v9   ;;  %v506_v12 = vld [vmem:[%s5905_s1 + $0x60] sm:$0xff]  }
  0x74   : > { %630 = vst [vmem:[#allocation2 + $0x50] sm:$0xff] %v502_v10   ;;  %632 = vst [vmem:[#allocation2 + $0x58] sm:$0xff] %v504_v11   ;;  %v508_v13 = vld [vmem:[%s5905_s1 + $0x68] sm:$0xff]   ;;  %v510_v14 = vld [vmem:[%s5905_s1 + $0x70] sm:$0xff]  }
  0x75   : > { %634 = vst [vmem:[#allocation2 + $0x60] sm:$0xff] %v506_v12   ;;  %636 = vst [vmem:[#allocation2 + $0x68] sm:$0xff] %v508_v13   ;;  %v512_v15 = vld [vmem:[%s5905_s1 + $0x78] sm:$0xff]   ;;  %v514_v16 = vld [vmem:[%s5905_s1 + $0x80] sm:$0xff]  }
  0x76   : > { %638 = vst [vmem:[#allocation2 + $0x70] sm:$0xff] %v510_v14   ;;  %v516_v17 = vld [vmem:[%s5905_s1 + $0x88] sm:$0xff]   ;;  %640 = vst [vmem:[#allocation2 + $0x78] sm:$0xff] %v512_v15   ;;  %v518_v18 = vld [vmem:[%s5905_s1 + $0x90] sm:$0xff]  }
  0x77   : > { %642 = vst [vmem:[#allocation2 + $0x80] sm:$0xff] %v514_v16   ;;  %644 = vst [vmem:[#allocation2 + $0x88] sm:$0xff] %v516_v17   ;;  %v520_v19 = vld [vmem:[%s5905_s1 + $0x98] sm:$0xff]   ;;  %v522_v20 = vld [vmem:[%s5905_s1 + $0xa0] sm:$0xff]  }
  0x78   : > { %646 = vst [vmem:[#allocation2 + $0x90] sm:$0xff] %v518_v18   ;;  %648 = vst [vmem:[#allocation2 + $0x98] sm:$0xff] %v520_v19   ;;  %v524_v21 = vld [vmem:[%s5905_s1 + $0xa8] sm:$0xff]   ;;  %v526_v22 = vld [vmem:[%s5905_s1 + $0xb0] sm:$0xff]  }
  0x79   : > { %650 = vst [vmem:[#allocation2 + $0xa0] sm:$0xff] %v522_v20   ;;  %v528_v23 = vld [vmem:[%s5905_s1 + $0xb8] sm:$0xff]   ;;  %652 = vst [vmem:[#allocation2 + $0xa8] sm:$0xff] %v524_v21   ;;  %v530_v24 = vld [vmem:[%s5905_s1 + $0xc0] sm:$0xff]  }
  0x7a   : > { %654 = vst [vmem:[#allocation2 + $0xb0] sm:$0xff] %v526_v22   ;;  %656 = vst [vmem:[#allocation2 + $0xb8] sm:$0xff] %v528_v23   ;;  %v532_v25 = vld [vmem:[%s5905_s1 + $0xc8] sm:$0xff]   ;;  %v534_v26 = vld [vmem:[%s5905_s1 + $0xd0] sm:$0xff]  }
  0x7b   : > { %658 = vst [vmem:[#allocation2 + $0xc0] sm:$0xff] %v530_v24   ;;  %660 = vst [vmem:[#allocation2 + $0xc8] sm:$0xff] %v532_v25   ;;  %v536_v27 = vld [vmem:[%s5905_s1 + $0xd8] sm:$0xff]   ;;  %v538_v28 = vld [vmem:[%s5905_s1 + $0xe0] sm:$0xff]  }
  0x7c   : > { %662 = vst [vmem:[#allocation2 + $0xd0] sm:$0xff] %v534_v26   ;;  %v540_v29 = vld [vmem:[%s5905_s1 + $0xe8] sm:$0xff]   ;;  %664 = vst [vmem:[#allocation2 + $0xd8] sm:$0xff] %v536_v27   ;;  %v542_v30 = vld [vmem:[%s5905_s1 + $0xf0] sm:$0xff]  }
  0x7d   : > { %666 = vst [vmem:[#allocation2 + $0xe0] sm:$0xff] %v538_v28   ;;  %668 = vst [vmem:[#allocation2 + $0xe8] sm:$0xff] %v540_v29   ;;  %v544_v31 = vld [vmem:[%s5905_s1 + $0xf8] sm:$0xff]   ;;  %v546_v32 = vld [vmem:[%s5905_s1 + $0x100] sm:$0xff]  }
  0x7e   : > { %670 = vst [vmem:[#allocation2 + $0xf0] sm:$0xff] %v542_v30   ;;  %672 = vst [vmem:[#allocation2 + $0xf8] sm:$0xff] %v544_v31   ;;  %v548_v33 = vld [vmem:[%s5905_s1 + $0x108] sm:$0xff]   ;;  %v550_v34 = vld [vmem:[%s5905_s1 + $0x110] sm:$0xff]  }
  0x7f   : > { %674 = vst [vmem:[#allocation2 + $0x100] sm:$0xff] %v546_v32   ;;  %v552_v35 = vld [vmem:[%s5905_s1 + $0x118] sm:$0xff]   ;;  %676 = vst [vmem:[#allocation2 + $0x108] sm:$0xff] %v548_v33   ;;  %v554_v36 = vld [vmem:[%s5905_s1 + $0x120] sm:$0xff]  }
  0x80   : > { %678 = vst [vmem:[#allocation2 + $0x110] sm:$0xff] %v550_v34   ;;  %680 = vst [vmem:[#allocation2 + $0x118] sm:$0xff] %v552_v35   ;;  %v556_v37 = vld [vmem:[%s5905_s1 + $0x128] sm:$0xff]   ;;  %v558_v38 = vld [vmem:[%s5905_s1 + $0x130] sm:$0xff]  }
  0x81   : > { %682 = vst [vmem:[#allocation2 + $0x120] sm:$0xff] %v554_v36   ;;  %684 = vst [vmem:[#allocation2 + $0x128] sm:$0xff] %v556_v37   ;;  %v560_v39 = vld [vmem:[%s5905_s1 + $0x138] sm:$0xff]   ;;  %v562_v40 = vld [vmem:[%s5905_s1 + $0x140] sm:$0xff]  }
  0x82   : > { %686 = vst [vmem:[#allocation2 + $0x130] sm:$0xff] %v558_v38   ;;  %v564_v41 = vld [vmem:[%s5905_s1 + $0x148] sm:$0xff]   ;;  %688 = vst [vmem:[#allocation2 + $0x138] sm:$0xff] %v560_v39   ;;  %v566_v42 = vld [vmem:[%s5905_s1 + $0x150] sm:$0xff]  }
  0x83   : > { %690 = vst [vmem:[#allocation2 + $0x140] sm:$0xff] %v562_v40   ;;  %692 = vst [vmem:[#allocation2 + $0x148] sm:$0xff] %v564_v41   ;;  %v568_v43 = vld [vmem:[%s5905_s1 + $0x158] sm:$0xff]   ;;  %v570_v44 = vld [vmem:[%s5905_s1 + $0x160] sm:$0xff]  }
  0x84   : > { %694 = vst [vmem:[#allocation2 + $0x150] sm:$0xff] %v566_v42   ;;  %696 = vst [vmem:[#allocation2 + $0x158] sm:$0xff] %v568_v43   ;;  %v572_v45 = vld [vmem:[%s5905_s1 + $0x168] sm:$0xff]   ;;  %v574_v46 = vld [vmem:[%s5905_s1 + $0x170] sm:$0xff]  }
  0x85   : > { %698 = vst [vmem:[#allocation2 + $0x160] sm:$0xff] %v570_v44   ;;  %v576_v47 = vld [vmem:[%s5905_s1 + $0x178] sm:$0xff]   ;;  %700 = vst [vmem:[#allocation2 + $0x168] sm:$0xff] %v572_v45   ;;  %v578_v48 = vld [vmem:[%s5905_s1 + $0x180] sm:$0xff]  }
  0x86   : > { %702 = vst [vmem:[#allocation2 + $0x170] sm:$0xff] %v574_v46   ;;  %704 = vst [vmem:[#allocation2 + $0x178] sm:$0xff] %v576_v47   ;;  %v580_v49 = vld [vmem:[%s5905_s1 + $0x188] sm:$0xff]   ;;  %v582_v50 = vld [vmem:[%s5905_s1 + $0x190] sm:$0xff]  }
  0x87   : > { %706 = vst [vmem:[#allocation2 + $0x180] sm:$0xff] %v578_v48   ;;  %708 = vst [vmem:[#allocation2 + $0x188] sm:$0xff] %v580_v49   ;;  %v584_v51 = vld [vmem:[%s5905_s1 + $0x198] sm:$0xff]   ;;  %v586_v52 = vld [vmem:[%s5905_s1 + $0x1a0] sm:$0xff]  }
  0x88   : > { %710 = vst [vmem:[#allocation2 + $0x190] sm:$0xff] %v582_v50   ;;  %v588_v53 = vld [vmem:[%s5905_s1 + $0x1a8] sm:$0xff]   ;;  %712 = vst [vmem:[#allocation2 + $0x198] sm:$0xff] %v584_v51   ;;  %v590_v54 = vld [vmem:[%s5905_s1 + $0x1b0] sm:$0xff]  }
  0x89   : > { %714 = vst [vmem:[#allocation2 + $0x1a0] sm:$0xff] %v586_v52   ;;  %716 = vst [vmem:[#allocation2 + $0x1a8] sm:$0xff] %v588_v53   ;;  %v592_v55 = vld [vmem:[%s5905_s1 + $0x1b8] sm:$0xff]   ;;  %v594_v56 = vld [vmem:[%s5905_s1 + $0x1c0] sm:$0xff]  }
  0x8a   : > { %718 = vst [vmem:[#allocation2 + $0x1b0] sm:$0xff] %v590_v54   ;;  %720 = vst [vmem:[#allocation2 + $0x1b8] sm:$0xff] %v592_v55   ;;  %v596_v57 = vld [vmem:[%s5905_s1 + $0x1c8] sm:$0xff]   ;;  %v598_v58 = vld [vmem:[%s5905_s1 + $0x1d0] sm:$0xff]  }
  0x8b   : > { %722 = vst [vmem:[#allocation2 + $0x1c0] sm:$0xff] %v594_v56   ;;  %v600_v59 = vld [vmem:[%s5905_s1 + $0x1d8] sm:$0xff]   ;;  %724 = vst [vmem:[#allocation2 + $0x1c8] sm:$0xff] %v596_v57   ;;  %v602_v60 = vld [vmem:[%s5905_s1 + $0x1e0] sm:$0xff]  }
  0x8c   : > { %726 = vst [vmem:[#allocation2 + $0x1d0] sm:$0xff] %v598_v58   ;;  %728 = vst [vmem:[#allocation2 + $0x1d8] sm:$0xff] %v600_v59   ;;  %v604_v61 = vld [vmem:[%s5905_s1 + $0x1e8] sm:$0xff]   ;;  %v606_v62 = vld [vmem:[%s5905_s1 + $0x1f0] sm:$0xff]  }
  0x8d   : > { %730 = vst [vmem:[#allocation2 + $0x1e0] sm:$0xff] %v602_v60   ;;  %732 = vst [vmem:[#allocation2 + $0x1e8] sm:$0xff] %v604_v61   ;;  %v608_v63 = vld [vmem:[%s5905_s1 + $0x1f8] sm:$0xff]  }
  0x8e   : > { %734 = vst [vmem:[#allocation2 + $0x1f0] sm:$0xff] %v606_v62   ;;  %736 = vst [vmem:[#allocation2 + $0x1f8] sm:$0xff] %v608_v63  }
  0x8f PF: > { %p3657_p4 = scmp.ne.s32.totalorder %s4819_s14, 0 }
  0x91   : > { %740 = sbr.rel (%p3657_p4) target bundleno = 183 (0xb7), region = 63 }
  0x96   : > { %v4845_v0 = vmov 0.0  }
  0x97   : > { %741 = vst [vmem:[#allocation3 + $0xb0] sm:$0xff] %v4845_v0  ;;  %742 = vst [vmem:[#allocation3 + $0x1b0] sm:$0xff] %v4845_v0 }
  0x98   : > { %743 = vst [vmem:[#allocation3 + $0xd8] sm:$0xff] %v4845_v0  ;;  %744 = vst [vmem:[#allocation3 + $0x18] sm:$0xff] %v4845_v0 }
  0x99   : > { %745 = vst [vmem:[#allocation3 + $0x50] sm:$0xff] %v4845_v0  ;;  %746 = vst [vmem:[#allocation3 + $0x168] sm:$0xff] %v4845_v0 }
  0x9a   : > { %747 = vst [vmem:[#allocation3 + $0x130] sm:$0xff] %v4845_v0  ;;  %748 = vst [vmem:[#allocation3 + $0x48] sm:$0xff] %v4845_v0 }
  0x9b   : > { %749 = vst [vmem:[#allocation3 + $0x180] sm:$0xff] %v4845_v0  ;;  %750 = vst [vmem:[#allocation3 + $0x110] sm:$0xff] %v4845_v0 }
  0x9c   : > { %751 = vst [vmem:[#allocation3 + $0x118] sm:$0xff] %v4845_v0  ;;  %752 = vst [vmem:[#allocation3 + $0x98] sm:$0xff] %v4845_v0 }
  0x9d   : > { %753 = vst [vmem:[#allocation3 + $0x120] sm:$0xff] %v4845_v0  ;;  %754 = vst [vmem:[#allocation3 + $0x150] sm:$0xff] %v4845_v0 }
  0x9e   : > { %755 = vst [vmem:[#allocation3 + $0x108] sm:$0xff] %v4845_v0  ;;  %756 = vst [vmem:[#allocation3 + $0x60] sm:$0xff] %v4845_v0 }
  0x9f   : > { %757 = vst [vmem:[#allocation3 + $0xe0] sm:$0xff] %v4845_v0  ;;  %758 = vst [vmem:[#allocation3 + $0x188] sm:$0xff] %v4845_v0 }
  0xa0   : > { %759 = vst [vmem:[#allocation3 + $0x138] sm:$0xff] %v4845_v0  ;;  %760 = vst [vmem:[#allocation3 + $0x140] sm:$0xff] %v4845_v0 }
  0xa1   : > { %761 = vst [vmem:[#allocation3 + $0x80] sm:$0xff] %v4845_v0  ;;  %762 = vst [vmem:[#allocation3 + $0x1a8] sm:$0xff] %v4845_v0 }
  0xa2   : > { %763 = vst [vmem:[#allocation3 + $0x1b8] sm:$0xff] %v4845_v0  ;;  %764 = vst [vmem:[#allocation3 + $0x28] sm:$0xff] %v4845_v0 }
  0xa3   : > { %765 = vst [vmem:[#allocation3 + $0x1e8] sm:$0xff] %v4845_v0  ;;  %766 = vst [vmem:[#allocation3 + $0xf8] sm:$0xff] %v4845_v0 }
  0xa4   : > { %767 = vst [vmem:[#allocation3 + $0x160] sm:$0xff] %v4845_v0  ;;  %768 = vst [vmem:[#allocation3 + $0x30] sm:$0xff] %v4845_v0 }
  0xa5   : > { %769 = vst [vmem:[#allocation3 + $0x1e0] sm:$0xff] %v4845_v0  ;;  %770 = vst [vmem:[#allocation3] sm:$0xff] %v4845_v0 }
  0xa6   : > { %771 = vst [vmem:[#allocation3 + $0xf0] sm:$0xff] %v4845_v0  ;;  %772 = vst [vmem:[#allocation3 + $0x8] sm:$0xff] %v4845_v0 }
  0xa7   : > { %773 = vst [vmem:[#allocation3 + $0x148] sm:$0xff] %v4845_v0  ;;  %774 = vst [vmem:[#allocation3 + $0x1d0] sm:$0xff] %v4845_v0 }
  0xa8   : > { %775 = vst [vmem:[#allocation3 + $0x100] sm:$0xff] %v4845_v0  ;;  %776 = vst [vmem:[#allocation3 + $0xc8] sm:$0xff] %v4845_v0 }
  0xa9   : > { %777 = vst [vmem:[#allocation3 + $0x40] sm:$0xff] %v4845_v0  ;;  %778 = vst [vmem:[#allocation3 + $0x1f8] sm:$0xff] %v4845_v0 }
  0xaa   : > { %779 = vst [vmem:[#allocation3 + $0x20] sm:$0xff] %v4845_v0  ;;  %780 = vst [vmem:[#allocation3 + $0x128] sm:$0xff] %v4845_v0 }
  0xab   : > { %781 = vst [vmem:[#allocation3 + $0x1a0] sm:$0xff] %v4845_v0  ;;  %782 = vst [vmem:[#allocation3 + $0x1f0] sm:$0xff] %v4845_v0 }
  0xac   : > { %783 = vst [vmem:[#allocation3 + $0xe8] sm:$0xff] %v4845_v0  ;;  %784 = vst [vmem:[#allocation3 + $0x78] sm:$0xff] %v4845_v0 }
  0xad   : > { %785 = vst [vmem:[#allocation3 + $0x70] sm:$0xff] %v4845_v0  ;;  %786 = vst [vmem:[#allocation3 + $0x90] sm:$0xff] %v4845_v0 }
  0xae   : > { %787 = vst [vmem:[#allocation3 + $0x1d8] sm:$0xff] %v4845_v0  ;;  %788 = vst [vmem:[#allocation3 + $0xd0] sm:$0xff] %v4845_v0 }
  0xaf   : > { %789 = vst [vmem:[#allocation3 + $0xb8] sm:$0xff] %v4845_v0  ;;  %790 = vst [vmem:[#allocation3 + $0x88] sm:$0xff] %v4845_v0 }
  0xb0   : > { %791 = vst [vmem:[#allocation3 + $0xa8] sm:$0xff] %v4845_v0  ;;  %792 = vst [vmem:[#allocation3 + $0x1c8] sm:$0xff] %v4845_v0 }
  0xb1   : > { %793 = vst [vmem:[#allocation3 + $0x170] sm:$0xff] %v4845_v0  ;;  %794 = vst [vmem:[#allocation3 + $0x178] sm:$0xff] %v4845_v0 }
  0xb2   : > { %795 = vst [vmem:[#allocation3 + $0x68] sm:$0xff] %v4845_v0  ;;  %796 = vst [vmem:[#allocation3 + $0x190] sm:$0xff] %v4845_v0 }
  0xb3   : > { %797 = vst [vmem:[#allocation3 + $0x198] sm:$0xff] %v4845_v0  ;;  %798 = vst [vmem:[#allocation3 + $0x38] sm:$0xff] %v4845_v0 }
  0xb4   : > { %799 = vst [vmem:[#allocation3 + $0xc0] sm:$0xff] %v4845_v0  ;;  %800 = vst [vmem:[#allocation3 + $0x1c0] sm:$0xff] %v4845_v0 }
  0xb5   : > { %801 = vst [vmem:[#allocation3 + $0x158] sm:$0xff] %v4845_v0  ;;  %802 = vst [vmem:[#allocation3 + $0x10] sm:$0xff] %v4845_v0 }
  0xb6   : > { %803 = vst [vmem:[#allocation3 + $0x58] sm:$0xff] %v4845_v0  ;;  %804 = vst [vmem:[#allocation3 + $0xa0] sm:$0xff] %v4845_v0 }
  0xb7 PF: > { %p805_p5 = scmp.lt.s32.totalorder %s4827_s16, 0  ;;  %s806_s29 = ssub.s32 0, %s4827_s16  ;;  %v4846_v1 = vmov 0   ;;  %v4583_v2 = vld [vmem:[%s5213_s5 + $0x4] ss:$16 sps:$4 sm:$0xff]  }
  0xb8   : > { %1912 = vmatprep.subr.bf16.mxu0 %v4846_v1  ;;  %2201 = vmatprep.subr.bf16.mxu1 %v4846_v1  ;;  %s3658_s30 = smin.u32 %s4827_s16, %s806_s29  ;;  %v4586_v3 = vld [vmem:[%s5213_s5 + $0xc] ss:$16 sps:$4 sm:$0xff]   ;;  %s3661_s7 = sshll.u32 %s4819_s14, 9  ;;  %v4581_v36 = vld [vmem:[%s5213_s5] ss:$16 sps:$4 sm:$0xff]  }
  0xb9   : > { %s808_s12 = sand.u32 1, %s3658_s30   ;;  %1944 = vmatprep.mubr.bf16.mxu0 %v4583_v2  ;;  %2233 = vmatprep.mubr.bf16.mxu1 %v4586_v3  ;;  %s1010_s9 = sshra.s32 %s3661_s7, 3  ;;  %v4584_v37 = vld [vmem:[%s5213_s5 + $0x8] ss:$16 sps:$4 sm:$0xff]   ;;  %v4587_v38 = vld [vmem:[%s5213_s5 + $0x24] ss:$16 sps:$4 sm:$0xff]  }
  0xba   : > { %s809_s6 = ssub.s32 0, %s808_s12  ;;  %v4589_v39 = vld [vmem:[%s5213_s5 + $0x2c] ss:$16 sps:$4 sm:$0xff]   ;;  %v4591_v40 = vld [vmem:[%s5213_s5 + $0x20] ss:$16 sps:$4 sm:$0xff]   ;;  %p3824_p7 = scmp.ne.s32.totalorder %s4819_s14, 1 }
  0xbb   : > { %s5929_s6 = smov (!%p805_p5, %s809_s6), %s808_s12  ;;  %v4592_v41 = vld [vmem:[%s5213_s5 + $0x28] ss:$16 sps:$4 sm:$0xff]   ;;  %v4593_v42 = vld [vmem:[%s5213_s5 + $0x44] ss:$16 sps:$4 sm:$0xff]   ;;  %v4595_v43 = vld [vmem:[%s5213_s5 + $0x4c] ss:$16 sps:$4 sm:$0xff]  }
  0xbc   : > { %p3660_p6 = scmp.lt.s32.totalorder %s5929_s6, 0  ;;  %s815_s8 = sadd.s32 2, %s5929_s6  ;;  %v4597_v44 = vld [vmem:[%s5213_s5 + $0x40] ss:$16 sps:$4 sm:$0xff]   ;;  %v4598_v45 = vld [vmem:[%s5213_s5 + $0x48] ss:$16 sps:$4 sm:$0xff]  }
  0xbd   : > { %v4599_v46 = vld [vmem:[%s5213_s5 + $0x64] ss:$16 sps:$4 sm:$0xff]   ;;  %v4601_v47 = vld [vmem:[%s5213_s5 + $0x6c] ss:$16 sps:$4 sm:$0xff]   ;;  %v4603_v48 = vld [vmem:[%s5213_s5 + $0x60] ss:$16 sps:$4 sm:$0xff]  }
  0xbe   : > { %s5931_s8 = smov (!%p3660_p6, %s815_s8), %s5929_s6  ;;  %v4604_v49 = vld [vmem:[%s5213_s5 + $0x68] ss:$16 sps:$4 sm:$0xff]   ;;  %v4605_v50 = vld [vmem:[%s5213_s5 + $0x84] ss:$16 sps:$4 sm:$0xff]   ;;  %v4607_v51 = vld [vmem:[%s5213_s5 + $0x8c] ss:$16 sps:$4 sm:$0xff]  }
  0xbf   : > { %s3662_s10 = sshll.u32 %s5931_s8, 7  ;;  %v4609_v52 = vld [vmem:[%s5213_s5 + $0x80] ss:$16 sps:$4 sm:$0xff]   ;;  %v4610_v53 = vld [vmem:[%s5213_s5 + $0x88] ss:$16 sps:$4 sm:$0xff]   ;;  %p3825_p8 = scmp.ge.s32.totalorder (!%p3824_p7), %s4827_s16, 1 }
  0xc0   : > { %s1013_s11 = sadd.s32 %s3662_s10, %s1010_s9  ;;  %v4611_v54 = vld [vmem:[%s5213_s5 + $0xa4] ss:$16 sps:$4 sm:$0xff]   ;;  %v4613_v55 = vld [vmem:[%s5213_s5 + $0xac] ss:$16 sps:$4 sm:$0xff]   ;;  %v4615_v56 = vld [vmem:[%s5213_s5 + $0xa0] ss:$16 sps:$4 sm:$0xff]  }
  0xc1   : > { %s3663_s24 = sshll.u32 %s1013_s11, 2  ;;  %v4616_v57 = vld [vmem:[%s5213_s5 + $0xa8] ss:$16 sps:$4 sm:$0xff]   ;;  %v4617_v58 = vld [vmem:[%s5213_s5 + $0xc4] ss:$16 sps:$4 sm:$0xff]  }
  0xc2   : > { %s5480_s25 = scalar_lea.vmem [#allocation2], %s3663_s24  ;;  %v4619_v59 = vld [vmem:[%s5213_s5 + $0xcc] ss:$16 sps:$4 sm:$0xff]   ;;  %v4621_v60 = vld [vmem:[%s5213_s5 + $0xc0] ss:$16 sps:$4 sm:$0xff]  }
  0xc3   : > { %v4549_v4 = vld [vmem:[%s5480_s25 + $0x38] sm:$0xff]   ;;  %v4551_v6 = vld [vmem:[%s5480_s25 + $0x30] sm:$0xff]   ;;  %v4553_v8 = vld [vmem:[%s5480_s25 + $0x28] sm:$0xff]  }
  0xc4   : > { %v4550_v5 = vld [vmem:[%s5480_s25 + $0xb8] sm:$0xff]   ;;  %1913 = vmatpush1.bf16.msra.mxu0 %v4549_v4  ;;  %v4552_v7 = vld [vmem:[%s5480_s25 + $0xb0] sm:$0xff]   ;;  %v4554_v9 = vld [vmem:[%s5480_s25 + $0xa8] sm:$0xff]  }
  0xc5   : > { %2202 = vmatpush1.bf16.msra.mxu1 %v4550_v5  ;;  %1914 = vmatprep.subr.bf16.mxu0 %v4846_v1  ;;  %v4555_v10 = vld [vmem:[%s5480_s25 + $0x20] sm:$0xff]   ;;  %v4557_v12 = vld [vmem:[%s5480_s25 + $0x18] sm:$0xff]   ;;  %v4559_v14 = vld [vmem:[%s5480_s25 + $0x10] sm:$0xff]  }
  0xc6   : > { %2203 = vmatprep.subr.bf16.mxu1 %v4846_v1  ;;  %v4556_v11 = vld [vmem:[%s5480_s25 + $0xa0] sm:$0xff]   ;;  %v4558_v13 = vld [vmem:[%s5480_s25 + $0x98] sm:$0xff]   ;;  %v4560_v15 = vld [vmem:[%s5480_s25 + $0x90] sm:$0xff]  }
  0xc7   : > { %v4561_v16 = vld [vmem:[%s5480_s25 + $0x8] sm:$0xff]   ;;  %v4563_v18 = vld [vmem:[%s5480_s25] sm:$0xff]   ;;  %v4565_v20 = vld [vmem:[%s5480_s25 + $0x78] sm:$0xff]  }
  0xc8   : > { %1915 = vmatpush1.bf16.msra.mxu0 %v4551_v6  ;;  %v4562_v17 = vld [vmem:[%s5480_s25 + $0x88] sm:$0xff]   ;;  %v4564_v19 = vld [vmem:[%s5480_s25 + $0x80] sm:$0xff]   ;;  %v4566_v21 = vld [vmem:[%s5480_s25 + $0xf8] sm:$0xff]  }
  0xc9   : > { %2204 = vmatpush1.bf16.msra.mxu1 %v4552_v7  ;;  %1916 = vmatprep.subr.bf16.mxu0 %v4846_v1  ;;  %v4567_v22 = vld [vmem:[%s5480_s25 + $0x70] sm:$0xff]   ;;  %v4569_v24 = vld [vmem:[%s5480_s25 + $0x68] sm:$0xff]   ;;  %v4571_v26 = vld [vmem:[%s5480_s25 + $0x60] sm:$0xff]  }
  0xca   : > { %2205 = vmatprep.subr.bf16.mxu1 %v4846_v1  ;;  %v4568_v23 = vld [vmem:[%s5480_s25 + $0xf0] sm:$0xff]   ;;  %v4570_v25 = vld [vmem:[%s5480_s25 + $0xe8] sm:$0xff]   ;;  %v4572_v27 = vld [vmem:[%s5480_s25 + $0xe0] sm:$0xff]  }
  0xcb   : > { %v4573_v28 = vld [vmem:[%s5480_s25 + $0x58] sm:$0xff]   ;;  %v4575_v30 = vld [vmem:[%s5480_s25 + $0x50] sm:$0xff]   ;;  %v4577_v32 = vld [vmem:[%s5480_s25 + $0x48] sm:$0xff]  }
  0xcc   : > { %1917 = vmatpush1.bf16.msra.mxu0 %v4553_v8  ;;  %v4574_v29 = vld [vmem:[%s5480_s25 + $0xd8] sm:$0xff]   ;;  %v4576_v31 = vld [vmem:[%s5480_s25 + $0xd0] sm:$0xff]   ;;  %v4578_v33 = vld [vmem:[%s5480_s25 + $0xc8] sm:$0xff]  }
  0xcd   : > { %2206 = vmatpush1.bf16.msra.mxu1 %v4554_v9  ;;  %1918 = vmatprep.subr.bf16.mxu0 %v4846_v1  ;;  %v4579_v34 = vld [vmem:[%s5480_s25 + $0x40] sm:$0xff]   ;;  %v4622_v61 = vld [vmem:[%s5213_s5 + $0xc8] ss:$16 sps:$4 sm:$0xff]   ;;  %v4625_v63 = vld [vmem:[%s5213_s5 + $0xec] ss:$16 sps:$4 sm:$0xff]  }
  0xce   : > { %2207 = vmatprep.subr.bf16.mxu1 %v4846_v1  ;;  %v4580_v35 = vld [vmem:[%s5480_s25 + $0xc0] sm:$0xff]   ;;  %v4631_v3 = vld [vmem:[%s5213_s5 + $0x10c] ss:$16 sps:$4 sm:$0xff]   ;;  %v4634_v5 = vld [vmem:[%s5213_s5 + $0x108] ss:$16 sps:$4 sm:$0xff]  }
  0xcf   : > { %v4623_v62 = vld [vmem:[%s5213_s5 + $0xe4] ss:$16 sps:$4 sm:$0xff]   ;;  %v4627_v0 = vld [vmem:[%s5213_s5 + $0xe0] ss:$16 sps:$4 sm:$0xff]   ;;  %v4637_v7 = vld [vmem:[%s5213_s5 + $0x12c] ss:$16 sps:$4 sm:$0xff]  }
  0xd0   : > { %1919 = vmatpush1.bf16.msra.mxu0 %v4555_v10  ;;  %v4629_v2 = vld [vmem:[%s5213_s5 + $0x104] ss:$16 sps:$4 sm:$0xff]   ;;  %v4633_v4 = vld [vmem:[%s5213_s5 + $0x100] ss:$16 sps:$4 sm:$0xff]   ;;  %v4640_v9 = vld [vmem:[%s5213_s5 + $0x128] ss:$16 sps:$4 sm:$0xff]  }
  0xd1   : > { %2208 = vmatpush1.bf16.msra.mxu1 %v4556_v11  ;;  %1920 = vmatprep.subr.bf16.mxu0 %v4846_v1  ;;  %v4635_v6 = vld [vmem:[%s5213_s5 + $0x124] ss:$16 sps:$4 sm:$0xff]   ;;  %v4639_v8 = vld [vmem:[%s5213_s5 + $0x120] ss:$16 sps:$4 sm:$0xff]   ;;  %v4643_v11 = vld [vmem:[%s5213_s5 + $0x14c] ss:$16 sps:$4 sm:$0xff]  }
  0xd2   : > { %2209 = vmatprep.subr.bf16.mxu1 %v4846_v1  ;;  %v4641_v10 = vld [vmem:[%s5213_s5 + $0x144] ss:$16 sps:$4 sm:$0xff]  }
  0xd4   : > { %1921 = vmatpush1.bf16.msra.mxu0 %v4557_v12  ;;  %v4645_v12 = vld [vmem:[%s5213_s5 + $0x140] ss:$16 sps:$4 sm:$0xff]  }
  0xd5   : > { %2210 = vmatpush1.bf16.msra.mxu1 %v4558_v13  ;;  %1922 = vmatprep.subr.bf16.mxu0 %v4846_v1  ;;  %v4646_v13 = vld [vmem:[%s5213_s5 + $0x148] ss:$16 sps:$4 sm:$0xff]  }
  0xd6   : > { %2211 = vmatprep.subr.bf16.mxu1 %v4846_v1 }
  0xd8   : > { %1923 = vmatpush1.bf16.msra.mxu0 %v4559_v14  ;;  %v4647_v14 = vld [vmem:[%s5213_s5 + $0x164] ss:$16 sps:$4 sm:$0xff]  }
  0xd9   : > { %2212 = vmatpush1.bf16.msra.mxu1 %v4560_v15  ;;  %1924 = vmatprep.subr.bf16.mxu0 %v4846_v1  ;;  %v4649_v15 = vld [vmem:[%s5213_s5 + $0x16c] ss:$16 sps:$4 sm:$0xff]  }
  0xda   : > { %2213 = vmatprep.subr.bf16.mxu1 %v4846_v1 }
  0xdc   : > { %1925 = vmatpush1.bf16.msra.mxu0 %v4561_v16  ;;  %v4651_v16 = vld [vmem:[%s5213_s5 + $0x160] ss:$16 sps:$4 sm:$0xff]  }
  0xdd   : > { %2214 = vmatpush1.bf16.msra.mxu1 %v4562_v17  ;;  %1926 = vmatprep.subr.bf16.mxu0 %v4846_v1  ;;  %v4652_v17 = vld [vmem:[%s5213_s5 + $0x168] ss:$16 sps:$4 sm:$0xff]  }
  0xde   : > { %2215 = vmatprep.subr.bf16.mxu1 %v4846_v1 }
  0xe0   : > { %1927 = vmatpush1.bf16.msra.mxu0 %v4563_v18  ;;  %v4653_v18 = vld [vmem:[%s5213_s5 + $0x184] ss:$16 sps:$4 sm:$0xff]  }
  0xe1   : > { %2216 = vmatpush1.bf16.msra.mxu1 %v4564_v19  ;;  %1928 = vmatprep.subr.bf16.mxu0 %v4846_v1  ;;  %v4655_v19 = vld [vmem:[%s5213_s5 + $0x18c] ss:$16 sps:$4 sm:$0xff]  }
  0xe2   : > { %2217 = vmatprep.subr.bf16.mxu1 %v4846_v1 }
  0xe4   : > { %1929 = vmatpush2.bf16.msra.mxu0 %v4565_v20  ;;  %v4657_v20 = vld [vmem:[%s5213_s5 + $0x180] ss:$16 sps:$4 sm:$0xff]  }
  0xe5   : > { %2218 = vmatpush2.bf16.msra.mxu1 %v4566_v21  ;;  %1930 = vmatprep.subr.bf16.mxu0 %v4846_v1  ;;  %v4658_v21 = vld [vmem:[%s5213_s5 + $0x188] ss:$16 sps:$4 sm:$0xff]  }
  0xe6   : > { %2219 = vmatprep.subr.bf16.mxu1 %v4846_v1 }
  0xe8   : > { %1931 = vmatpush2.bf16.msra.mxu0 %v4567_v22  ;;  %v4659_v22 = vld [vmem:[%s5213_s5 + $0x1a4] ss:$16 sps:$4 sm:$0xff]  }
  0xe9   : > { %2220 = vmatpush2.bf16.msra.mxu1 %v4568_v23  ;;  %1932 = vmatprep.subr.bf16.mxu0 %v4846_v1  ;;  %v4661_v23 = vld [vmem:[%s5213_s5 + $0x1ac] ss:$16 sps:$4 sm:$0xff]  }
  0xea   : > { %2221 = vmatprep.subr.bf16.mxu1 %v4846_v1 }
  0xec   : > { %1933 = vmatpush2.bf16.msra.mxu0 %v4569_v24  ;;  %v4663_v24 = vld [vmem:[%s5213_s5 + $0x1a0] ss:$16 sps:$4 sm:$0xff]  }
  0xed   : > { %2222 = vmatpush2.bf16.msra.mxu1 %v4570_v25  ;;  %1934 = vmatprep.subr.bf16.mxu0 %v4846_v1  ;;  %v4664_v25 = vld [vmem:[%s5213_s5 + $0x1a8] ss:$16 sps:$4 sm:$0xff]  }
  0xee   : > { %2223 = vmatprep.subr.bf16.mxu1 %v4846_v1 }
  0xf0   : > { %1935 = vmatpush2.bf16.msra.mxu0 %v4571_v26  ;;  %v4665_v26 = vld [vmem:[%s5213_s5 + $0x1c4] ss:$16 sps:$4 sm:$0xff]  }
  0xf1   : > { %2224 = vmatpush2.bf16.msra.mxu1 %v4572_v27  ;;  %1936 = vmatprep.subr.bf16.mxu0 %v4846_v1  ;;  %v4667_v27 = vld [vmem:[%s5213_s5 + $0x1cc] ss:$16 sps:$4 sm:$0xff]  }
  0xf2   : > { %2225 = vmatprep.subr.bf16.mxu1 %v4846_v1 }
  0xf4   : > { %1937 = vmatpush2.bf16.msra.mxu0 %v4573_v28  ;;  %v4669_v28 = vld [vmem:[%s5213_s5 + $0x1c0] ss:$16 sps:$4 sm:$0xff]  }
  0xf5   : > { %2226 = vmatpush2.bf16.msra.mxu1 %v4574_v29  ;;  %1938 = vmatprep.subr.bf16.mxu0 %v4846_v1  ;;  %v4670_v29 = vld [vmem:[%s5213_s5 + $0x1c8] ss:$16 sps:$4 sm:$0xff]  }
  0xf6   : > { %2227 = vmatprep.subr.bf16.mxu1 %v4846_v1 }
  0xf8   : > { %1939 = vmatpush2.bf16.msra.mxu0 %v4575_v30  ;;  %v4671_v30 = vld [vmem:[%s5213_s5 + $0x1e4] ss:$16 sps:$4 sm:$0xff]  }
  0xf9   : > { %2228 = vmatpush2.bf16.msra.mxu1 %v4576_v31  ;;  %1940 = vmatprep.subr.bf16.mxu0 %v4846_v1  ;;  %v4673_v31 = vld [vmem:[%s5213_s5 + $0x1ec] ss:$16 sps:$4 sm:$0xff]  }
  0xfa   : > { %2229 = vmatprep.subr.bf16.mxu1 %v4846_v1 }
  0xfc   : > { %1941 = vmatpush2.bf16.msra.mxu0 %v4577_v32  ;;  %v4675_v32 = vld [vmem:[%s5213_s5 + $0x1e0] ss:$16 sps:$4 sm:$0xff]  }
  0xfd   : > { %2230 = vmatpush2.bf16.msra.mxu1 %v4578_v33  ;;  %1942 = vmatprep.subr.bf16.mxu0 %v4846_v1  ;;  %v4676_v33 = vld [vmem:[%s5213_s5 + $0x1e8] ss:$16 sps:$4 sm:$0xff]  }
  0xfe   : > { %2231 = vmatprep.subr.bf16.mxu1 %v4846_v1  ;;  %v4628_v1 = vld [vmem:[%s5213_s5 + $0xe8] ss:$16 sps:$4 sm:$0xff]  }
 0x100   : > { %1943 = vmatpush2.bf16.msra.mxu0 %v4579_v34  ;;  %v4677_v34 = vld [vmem:[%s5213_s5 + $0x204] ss:$16 sps:$4 sm:$0xff]  }
 0x101   : > { %2232 = vmatpush2.bf16.msra.mxu1 %v4580_v35  ;;  %v4679_v35 = vld [vmem:[%s5213_s5 + $0x20c] ss:$16 sps:$4 sm:$0xff]  }
 0x103   : > { %1945 = vmatmul.mubr.bf16.vlgmr.msra.gmra.mxu0 %v4581_v36  ;;  %v4681_v36 = vld [vmem:[%s5213_s5 + $0x200] ss:$16 sps:$4 sm:$0xff]  }
 0x104   : > { %2234 = vmatmul.mubr.bf16.vlgmr.msra.gmra.mxu1 %v4584_v37  ;;  %1952 = vmatprep.mubr.bf16.mxu0 %v4587_v38  ;;  %v4682_v37 = vld [vmem:[%s5213_s5 + $0x208] ss:$16 sps:$4 sm:$0xff]   ;;  %v4683_v38 = vld [vmem:[%s5213_s5 + $0x224] ss:$16 sps:$4 sm:$0xff]  }
 0x105   : > { %2241 = vmatprep.mubr.bf16.mxu1 %v4589_v39  ;;  %v4685_v39 = vld [vmem:[%s5213_s5 + $0x22c] ss:$16 sps:$4 sm:$0xff]  }
 0x10b   : > { %1953 = vmatmul.mubr.bf16.gmra.mxu0 %v4591_v40  ;;  %v4687_v40 = vld [vmem:[%s5213_s5 + $0x220] ss:$16 sps:$4 sm:$0xff]  }
 0x10c   : > { %2242 = vmatmul.mubr.bf16.gmra.mxu1 %v4592_v41  ;;  %1960 = vmatprep.mubr.bf16.mxu0 %v4593_v42  ;;  %v4688_v41 = vld [vmem:[%s5213_s5 + $0x228] ss:$16 sps:$4 sm:$0xff]   ;;  %v4689_v42 = vld [vmem:[%s5213_s5 + $0x244] ss:$16 sps:$4 sm:$0xff]  }
 0x10d   : > { %2249 = vmatprep.mubr.bf16.mxu1 %v4595_v43  ;;  %v4691_v43 = vld [vmem:[%s5213_s5 + $0x24c] ss:$16 sps:$4 sm:$0xff]  }
 0x113   : > { %1961 = vmatmul.mubr.bf16.gmra.mxu0 %v4597_v44  ;;  %v4693_v44 = vld [vmem:[%s5213_s5 + $0x240] ss:$16 sps:$4 sm:$0xff]  }
 0x114   : > { %2250 = vmatmul.mubr.bf16.gmra.mxu1 %v4598_v45  ;;  %1968 = vmatprep.mubr.bf16.mxu0 %v4599_v46  ;;  %v4694_v45 = vld [vmem:[%s5213_s5 + $0x248] ss:$16 sps:$4 sm:$0xff]   ;;  %v4695_v46 = vld [vmem:[%s5213_s5 + $0x264] ss:$16 sps:$4 sm:$0xff]  }
 0x115   : > { %2257 = vmatprep.mubr.bf16.mxu1 %v4601_v47  ;;  %v4697_v47 = vld [vmem:[%s5213_s5 + $0x26c] ss:$16 sps:$4 sm:$0xff]  }
 0x11b   : > { %1969 = vmatmul.mubr.bf16.gmra.mxu0 %v4603_v48  ;;  %v4699_v48 = vld [vmem:[%s5213_s5 + $0x260] ss:$16 sps:$4 sm:$0xff]  }
 0x11c   : > { %2258 = vmatmul.mubr.bf16.gmra.mxu1 %v4604_v49  ;;  %1976 = vmatprep.mubr.bf16.mxu0 %v4605_v50  ;;  %v4700_v49 = vld [vmem:[%s5213_s5 + $0x268] ss:$16 sps:$4 sm:$0xff]   ;;  %v4701_v50 = vld [vmem:[%s5213_s5 + $0x284] ss:$16 sps:$4 sm:$0xff]  }
 0x11d   : > { %2265 = vmatprep.mubr.bf16.mxu1 %v4607_v51  ;;  %v4703_v51 = vld [vmem:[%s5213_s5 + $0x28c] ss:$16 sps:$4 sm:$0xff]  }
 0x123   : > { %1977 = vmatmul.mubr.bf16.gmra.mxu0 %v4609_v52  ;;  %v4705_v52 = vld [vmem:[%s5213_s5 + $0x280] ss:$16 sps:$4 sm:$0xff]  }
 0x124   : > { %2266 = vmatmul.mubr.bf16.gmra.mxu1 %v4610_v53  ;;  %1984 = vmatprep.mubr.bf16.mxu0 %v4611_v54  ;;  %v4706_v53 = vld [vmem:[%s5213_s5 + $0x288] ss:$16 sps:$4 sm:$0xff]   ;;  %v4707_v54 = vld [vmem:[%s5213_s5 + $0x2a4] ss:$16 sps:$4 sm:$0xff]  }
 0x125   : > { %2273 = vmatprep.mubr.bf16.mxu1 %v4613_v55  ;;  %v4709_v55 = vld [vmem:[%s5213_s5 + $0x2ac] ss:$16 sps:$4 sm:$0xff]  }
 0x12b   : > { %1985 = vmatmul.mubr.bf16.gmra.mxu0 %v4615_v56  ;;  %v4711_v56 = vld [vmem:[%s5213_s5 + $0x2a0] ss:$16 sps:$4 sm:$0xff]  }
 0x12c   : > { %2274 = vmatmul.mubr.bf16.gmra.mxu1 %v4616_v57  ;;  %1992 = vmatprep.mubr.bf16.mxu0 %v4617_v58  ;;  %v4712_v57 = vld [vmem:[%s5213_s5 + $0x2a8] ss:$16 sps:$4 sm:$0xff]   ;;  %v4713_v58 = vld [vmem:[%s5213_s5 + $0x2c4] ss:$16 sps:$4 sm:$0xff]  }
 0x12d   : > { %2281 = vmatprep.mubr.bf16.mxu1 %v4619_v59  ;;  %v4715_v59 = vld [vmem:[%s5213_s5 + $0x2cc] ss:$16 sps:$4 sm:$0xff]  }
 0x133   : > { %1993 = vmatmul.mubr.bf16.gmra.mxu0 %v4621_v60  ;;  %v4717_v60 = vld [vmem:[%s5213_s5 + $0x2c0] ss:$16 sps:$4 sm:$0xff]  }
 0x134   : > { %2282 = vmatmul.mubr.bf16.gmra.mxu1 %v4622_v61  ;;  %2000 = vmatprep.mubr.bf16.mxu0 %v4623_v62  ;;  %v4718_v61 = vld [vmem:[%s5213_s5 + $0x2c8] ss:$16 sps:$4 sm:$0xff]   ;;  %v4719_v62 = vld [vmem:[%s5213_s5 + $0x2e4] ss:$16 sps:$4 sm:$0xff]  }
 0x135   : > { %2289 = vmatprep.mubr.bf16.mxu1 %v4625_v63  ;;  %v4721_v63 = vld [vmem:[%s5213_s5 + $0x2ec] ss:$16 sps:$4 sm:$0xff]  }
 0x13b   : > { %2001 = vmatmul.mubr.bf16.gmra.mxu0 %v4627_v0  ;;  %v4723_v0 = vld [vmem:[%s5213_s5 + $0x2e0] ss:$16 sps:$4 sm:$0xff]  }
 0x13c   : > { %2290 = vmatmul.mubr.bf16.gmra.mxu1 %v4628_v1  ;;  %2008 = vmatprep.mubr.bf16.mxu0 %v4629_v2  ;;  %v4724_v1 = vld [vmem:[%s5213_s5 + $0x2e8] ss:$16 sps:$4 sm:$0xff]   ;;  %v4725_v2 = vld [vmem:[%s5213_s5 + $0x304] ss:$16 sps:$4 sm:$0xff]  }
 0x13d   : > { %2297 = vmatprep.mubr.bf16.mxu1 %v4631_v3  ;;  %v4727_v3 = vld [vmem:[%s5213_s5 + $0x30c] ss:$16 sps:$4 sm:$0xff]  }
 0x143   : > { %2009 = vmatmul.mubr.bf16.gmra.mxu0 %v4633_v4  ;;  %v4729_v4 = vld [vmem:[%s5213_s5 + $0x300] ss:$16 sps:$4 sm:$0xff]  }
 0x144   : > { %2298 = vmatmul.mubr.bf16.gmra.mxu1 %v4634_v5  ;;  %2016 = vmatprep.mubr.bf16.mxu0 %v4635_v6  ;;  %v4730_v5 = vld [vmem:[%s5213_s5 + $0x308] ss:$16 sps:$4 sm:$0xff]   ;;  %v4731_v6 = vld [vmem:[%s5213_s5 + $0x324] ss:$16 sps:$4 sm:$0xff]  }
 0x145   : > { %2305 = vmatprep.mubr.bf16.mxu1 %v4637_v7  ;;  %v4733_v7 = vld [vmem:[%s5213_s5 + $0x32c] ss:$16 sps:$4 sm:$0xff]  }
 0x14b   : > { %2017 = vmatmul.mubr.bf16.gmra.mxu0 %v4639_v8 }
 0x14c   : > { %2306 = vmatmul.mubr.bf16.gmra.mxu1 %v4640_v9  ;;  %2024 = vmatprep.mubr.bf16.mxu0 %v4641_v10  ;;  %v818_v9 = vld [vmem:[#allocation3 + $0xb0] sm:$0xff] }
 0x14d   : > { %2313 = vmatprep.mubr.bf16.mxu1 %v4643_v11 }
 0x153   : > { %2025 = vmatmul.mubr.bf16.gmra.mxu0 %v4645_v12 }
 0x154   : > { %2314 = vmatmul.mubr.bf16.gmra.mxu1 %v4646_v13  ;;  %2032 = vmatprep.mubr.bf16.mxu0 %v4647_v14 }
 0x155   : > { %2321 = vmatprep.mubr.bf16.mxu1 %v4649_v15 }
 0x15b   : > { %2033 = vmatmul.mubr.bf16.gmra.mxu0 %v4651_v16  ;;  %v4735_v16 = vld [vmem:[%s5213_s5 + $0x320] ss:$16 sps:$4 sm:$0xff]  }
 0x15c   : > { %2322 = vmatmul.mubr.bf16.gmra.mxu1 %v4652_v17  ;;  %2040 = vmatprep.mubr.bf16.mxu0 %v4653_v18  ;;  %v819_v17 = vld [vmem:[#allocation3 + $0x1b0] sm:$0xff] }
 0x15d   : > { %2329 = vmatprep.mubr.bf16.mxu1 %v4655_v19  ;;  %v4736_v19 = vld [vmem:[%s5213_s5 + $0x328] ss:$16 sps:$4 sm:$0xff]  }
 0x163   : > { %2041 = vmatmul.mubr.bf16.gmra.mxu0 %v4657_v20  ;;  %v4737_v20 = vld [vmem:[%s5213_s5 + $0x344] ss:$16 sps:$4 sm:$0xff]  }
 0x164   : > { %2330 = vmatmul.mubr.bf16.gmra.mxu1 %v4658_v21  ;;  %2048 = vmatprep.mubr.bf16.mxu0 %v4659_v22 }
 0x165   : > { %2337 = vmatprep.mubr.bf16.mxu1 %v4661_v23  ;;  %v4739_v23 = vld [vmem:[%s5213_s5 + $0x34c] ss:$16 sps:$4 sm:$0xff]  }
 0x16b   : > { %2049 = vmatmul.mubr.bf16.gmra.mxu0 %v4663_v24 }
 0x16c   : > { %2338 = vmatmul.mubr.bf16.gmra.mxu1 %v4664_v25  ;;  %2056 = vmatprep.mubr.bf16.mxu0 %v4665_v26 }
 0x16d   : > { %2345 = vmatprep.mubr.bf16.mxu1 %v4667_v27  ;;  %v820_v27 = vld [vmem:[#allocation3 + $0xd8] sm:$0xff] }
 0x173   : > { %2057 = vmatmul.mubr.bf16.gmra.mxu0 %v4669_v28 }
 0x174   : > { %2346 = vmatmul.mubr.bf16.gmra.mxu1 %v4670_v29  ;;  %2064 = vmatprep.mubr.bf16.mxu0 %v4671_v30 }
 0x175   : > { %2353 = vmatprep.mubr.bf16.mxu1 %v4673_v31 }
 0x17b   : > { %2065 = vmatmul.mubr.bf16.gmra.mxu0 %v4675_v32 }
 0x17c   : > { %2354 = vmatmul.mubr.bf16.gmra.mxu1 %v4676_v33  ;;  %2072 = vmatprep.mubr.bf16.mxu0 %v4677_v34  ;;  %v4741_v34 = vld [vmem:[%s5213_s5 + $0x340] ss:$16 sps:$4 sm:$0xff]  }
 0x17d   : > { %2361 = vmatprep.mubr.bf16.mxu1 %v4679_v35  ;;  %v821_v35 = vld [vmem:[#allocation3 + $0x18] sm:$0xff] }
 0x183   : > { %2073 = vmatmul.mubr.bf16.gmra.mxu0 %v4681_v36 }
 0x184   : > { %2362 = vmatmul.mubr.bf16.gmra.mxu1 %v4682_v37  ;;  %2080 = vmatprep.mubr.bf16.mxu0 %v4683_v38  ;;  %v4742_v37 = vld [vmem:[%s5213_s5 + $0x348] ss:$16 sps:$4 sm:$0xff]   ;;  %v4743_v38 = vld [vmem:[%s5213_s5 + $0x364] ss:$16 sps:$4 sm:$0xff]  }
 0x185   : > { %2369 = vmatprep.mubr.bf16.mxu1 %v4685_v39 }
 0x18b   : > { %2081 = vmatmul.mubr.bf16.gmra.mxu0 %v4687_v40 }
 0x18c   : > { %2370 = vmatmul.mubr.bf16.gmra.mxu1 %v4688_v41  ;;  %2088 = vmatprep.mubr.bf16.mxu0 %v4689_v42  ;;  %v4745_v41 = vld [vmem:[%s5213_s5 + $0x36c] ss:$16 sps:$4 sm:$0xff]  }
 0x18d   : > { %2377 = vmatprep.mubr.bf16.mxu1 %v4691_v43 }
 0x193   : > { %2089 = vmatmul.mubr.bf16.gmra.mxu0 %v4693_v44 }
 0x194   : > { %2378 = vmatmul.mubr.bf16.gmra.mxu1 %v4694_v45  ;;  %2096 = vmatprep.mubr.bf16.mxu0 %v4695_v46  ;;  %v822_v45 = vld [vmem:[#allocation3 + $0x50] sm:$0xff] }
 0x195   : > { %2385 = vmatprep.mubr.bf16.mxu1 %v4697_v47 }
 0x19b   : > { %2097 = vmatmul.mubr.bf16.gmra.mxu0 %v4699_v48 }
 0x19c   : > { %2386 = vmatmul.mubr.bf16.gmra.mxu1 %v4700_v49  ;;  %2104 = vmatprep.mubr.bf16.mxu0 %v4701_v50 }
 0x19d   : > { %2393 = vmatprep.mubr.bf16.mxu1 %v4703_v51 }
 0x1a3   : > { %2105 = vmatmul.mubr.bf16.gmra.mxu0 %v4705_v52  ;;  %v4747_v52 = vld [vmem:[%s5213_s5 + $0x360] ss:$16 sps:$4 sm:$0xff]  }
 0x1a4   : > { %2394 = vmatmul.mubr.bf16.gmra.mxu1 %v4706_v53  ;;  %2112 = vmatprep.mubr.bf16.mxu0 %v4707_v54  ;;  %v823_v53 = vld [vmem:[#allocation3 + $0x168] sm:$0xff] }
 0x1a5   : > { %2401 = vmatprep.mubr.bf16.mxu1 %v4709_v55  ;;  %v4748_v55 = vld [vmem:[%s5213_s5 + $0x368] ss:$16 sps:$4 sm:$0xff]  }
 0x1ab   : > { %2113 = vmatmul.mubr.bf16.gmra.mxu0 %v4711_v56  ;;  %v4751_v56 = vld [vmem:[%s5213_s5 + $0x384] ss:$16 sps:$4 sm:$0xff]  }
 0x1ac   : > { %2402 = vmatmul.mubr.bf16.gmra.mxu1 %v4712_v57  ;;  %2120 = vmatprep.mubr.bf16.mxu0 %v4713_v58 }
 0x1ad   : > { %2409 = vmatprep.mubr.bf16.mxu1 %v4715_v59  ;;  %v4754_v59 = vld [vmem:[%s5213_s5 + $0x38c] ss:$16 sps:$4 sm:$0xff]  }
 0x1b3   : > { %2121 = vmatmul.mubr.bf16.gmra.mxu0 %v4717_v60 }
 0x1b4   : > { %2410 = vmatmul.mubr.bf16.gmra.mxu1 %v4718_v61  ;;  %2128 = vmatprep.mubr.bf16.mxu0 %v4719_v62 }
 0x1b5   : > { %2417 = vmatprep.mubr.bf16.mxu1 %v4721_v63  ;;  %v824_v63 = vld [vmem:[#allocation3 + $0x130] sm:$0xff] }
 0x1bb   : > { %2129 = vmatmul.mubr.bf16.gmra.mxu0 %v4723_v0 }
 0x1bc   : > { %2418 = vmatmul.mubr.bf16.gmra.mxu1 %v4724_v1  ;;  %2136 = vmatprep.mubr.bf16.mxu0 %v4725_v2 }
 0x1bd   : > { %2425 = vmatprep.mubr.bf16.mxu1 %v4727_v3 }
 0x1c3   : > { %v1946_v8 = vpop.f32.mrf.mxu0  ;;  %2137 = vmatmul.mubr.bf16.gmra.mxu0 %v4729_v4 }
 0x1c4   : > { %v2235_v10 = vpop.f32.mrf.mxu1  ;;  %2426 = vmatmul.mubr.bf16.gmra.mxu1 %v4730_v5  ;;  %2144 = vmatprep.mubr.bf16.mxu0 %v4731_v6  ;;  %v4749_v6 = vld [vmem:[%s5213_s5 + $0x380] ss:$16 sps:$4 sm:$0xff]  }
 0x1c5   : > { %v2236_v11 = vadd.f32 %v2235_v10, %v1946_v8  ;;  %v1948_v12 = vpop.f32.mrf.mxu0  ;;  %2433 = vmatprep.mubr.bf16.mxu1 %v4733_v7  ;;  %v825_v7 = vld [vmem:[#allocation3 + $0x48] sm:$0xff]  ;;  %v4757_v10 = vld [vmem:[%s5213_s5 + $0x3a4] ss:$16 sps:$4 sm:$0xff]  }
 0x1c6   : > { %v2237_v13 = vpop.f32.mrf.mxu1 }
 0x1c7   : > { %v2490_v14 = vadd.f32 %v2236_v11, %v818_v9  ;;  %v1949_v15 = vpop.f32.mrf.mxu0  ;;  %v4752_v9 = vld [vmem:[%s5213_s5 + $0x388] ss:$16 sps:$4 sm:$0xff]   ;;  %v4760_v13 = vld [vmem:[%s5213_s5 + $0x3ac] ss:$16 sps:$4 sm:$0xff]  }
 0x1c8   : > { %v2238_v18 = vpop.f32.mrf.mxu1 }
 0x1c9   : > { %2554 = vst [vmem:[#allocation3 + $0xb0] sm:$0xff] %v2490_v14  ;;  %v2239_v21 = vadd.f32 %v2238_v18, %v1949_v15  ;;  %v1951_v22 = vpop.f32.mrf.mxu0 }
 0x1ca   : > { %v2240_v24 = vpop.f32.mrf.mxu1 }
 0x1cb   : > { %v2491_v25 = vadd.f32 %v2239_v21, %v819_v17  ;;  %v1954_v26 = vpop.f32.mrf.mxu0  ;;  %2145 = vmatmul.mubr.bf16.gmra.mxu0 %v4735_v16  ;;  %v826_v17 = vld [vmem:[#allocation3 + $0x180] sm:$0xff] }
 0x1cc   : > { %v2243_v28 = vpop.f32.mrf.mxu1  ;;  %2434 = vmatmul.mubr.bf16.gmra.mxu1 %v4736_v19  ;;  %2152 = vmatprep.mubr.bf16.mxu0 %v4737_v20  ;;  %v4755_v24 = vld [vmem:[%s5213_s5 + $0x3a0] ss:$16 sps:$4 sm:$0xff]  }
 0x1cd   : > { %2555 = vst [vmem:[#allocation3 + $0x1b0] sm:$0xff] %v2491_v25  ;;  %v2244_v29 = vadd.f32 %v2243_v28, %v1954_v26  ;;  %v1956_v30 = vpop.f32.mrf.mxu0  ;;  %2441 = vmatprep.mubr.bf16.mxu1 %v4739_v23  ;;  %v827_v25 = vld [vmem:[#allocation3 + $0x110] sm:$0xff] }
 0x1ce   : > { %v2245_v31 = vpop.f32.mrf.mxu1  ;;  %v4763_v28 = vld [vmem:[%s5213_s5 + $0x3c4] ss:$16 sps:$4 sm:$0xff]  }
 0x1cf   : > { %v2492_v32 = vadd.f32 %v2244_v29, %v820_v27  ;;  %v1957_v33 = vpop.f32.mrf.mxu0  ;;  %v4758_v27 = vld [vmem:[%s5213_s5 + $0x3a8] ss:$16 sps:$4 sm:$0xff]   ;;  %v4766_v31 = vld [vmem:[%s5213_s5 + $0x3cc] ss:$16 sps:$4 sm:$0xff]  }
 0x1d0   : > { %v2246_v36 = vpop.f32.mrf.mxu1 }
 0x1d1   : > { %2556 = vst [vmem:[#allocation3 + $0xd8] sm:$0xff] %v2492_v32  ;;  %v2247_v39 = vadd.f32 %v2246_v36, %v1957_v33  ;;  %v1959_v40 = vpop.f32.mrf.mxu0 }
 0x1d2   : > { %v2248_v42 = vpop.f32.mrf.mxu1 }
 0x1d3   : > { %v2493_v43 = vadd.f32 %v2247_v39, %v821_v35  ;;  %v1962_v44 = vpop.f32.mrf.mxu0  ;;  %2153 = vmatmul.mubr.bf16.gmra.mxu0 %v4741_v34  ;;  %v828_v35 = vld [vmem:[#allocation3 + $0x118] sm:$0xff]  ;;  %v4761_v42 = vld [vmem:[%s5213_s5 + $0x3c0] ss:$16 sps:$4 sm:$0xff]  }
 0x1d4   : > { %v2251_v46 = vpop.f32.mrf.mxu1  ;;  %2442 = vmatmul.mubr.bf16.gmra.mxu1 %v4742_v37  ;;  %2160 = vmatprep.mubr.bf16.mxu0 %v4743_v38 }
 0x1d5   : > { %2557 = vst [vmem:[#allocation3 + $0x18] sm:$0xff] %v2493_v43  ;;  %v2252_v47 = vadd.f32 %v2251_v46, %v1962_v44  ;;  %v1964_v48 = vpop.f32.mrf.mxu0  ;;  %2449 = vmatprep.mubr.bf16.mxu1 %v4745_v41  ;;  %v829_v43 = vld [vmem:[#allocation3 + $0x98] sm:$0xff]  ;;  %v4769_v46 = vld [vmem:[%s5213_s5 + $0x3e4] ss:$16 sps:$4 sm:$0xff]  }
 0x1d6   : > { %v2253_v49 = vpop.f32.mrf.mxu1 }
 0x1d7   : > { %v2494_v50 = vadd.f32 %v2252_v47, %v822_v45  ;;  %v1965_v51 = vpop.f32.mrf.mxu0  ;;  %v4764_v45 = vld [vmem:[%s5213_s5 + $0x3c8] ss:$16 sps:$4 sm:$0xff]   ;;  %v4772_v49 = vld [vmem:[%s5213_s5 + $0x3ec] ss:$16 sps:$4 sm:$0xff]  }
 0x1d8   : > { %v2254_v54 = vpop.f32.mrf.mxu1 }
 0x1d9   : > { %2558 = vst [vmem:[#allocation3 + $0x50] sm:$0xff] %v2494_v50  ;;  %v2255_v57 = vadd.f32 %v2254_v54, %v1965_v51  ;;  %v1967_v58 = vpop.f32.mrf.mxu0 }
 0x1da   : > { %v2256_v60 = vpop.f32.mrf.mxu1 }
 0x1db   : > { %v2495_v61 = vadd.f32 %v2255_v57, %v823_v53  ;;  %v1970_v62 = vpop.f32.mrf.mxu0  ;;  %2161 = vmatmul.mubr.bf16.gmra.mxu0 %v4747_v52  ;;  %v830_v53 = vld [vmem:[#allocation3 + $0x120] sm:$0xff] }
 0x1dc   : > { %v2259_v0 = vpop.f32.mrf.mxu1  ;;  %2450 = vmatmul.mubr.bf16.gmra.mxu1 %v4748_v55  ;;  %2168 = vmatprep.mubr.bf16.mxu0 %v4751_v56  ;;  %v4767_v60 = vld [vmem:[%s5213_s5 + $0x3e0] ss:$16 sps:$4 sm:$0xff]  }
 0x1dd   : > { %2559 = vst [vmem:[#allocation3 + $0x168] sm:$0xff] %v2495_v61  ;;  %v2260_v1 = vadd.f32 %v2259_v0, %v1970_v62  ;;  %v1972_v2 = vpop.f32.mrf.mxu0  ;;  %2457 = vmatprep.mubr.bf16.mxu1 %v4754_v59  ;;  %v831_v61 = vld [vmem:[#allocation3 + $0x150] sm:$0xff] }
 0x1de   : > { %v2261_v3 = vpop.f32.mrf.mxu1 }
 0x1df   : > { %v2496_v4 = vadd.f32 %v2260_v1, %v824_v63  ;;  %v1973_v5 = vpop.f32.mrf.mxu0  ;;  %v4770_v63 = vld [vmem:[%s5213_s5 + $0x3e8] ss:$16 sps:$4 sm:$0xff]  }
 0x1e0   : > { %v2262_v8 = vpop.f32.mrf.mxu1 }
 0x1e1   : > { %2560 = vst [vmem:[#allocation3 + $0x130] sm:$0xff] %v2496_v4  ;;  %v2263_v11 = vadd.f32 %v2262_v8, %v1973_v5  ;;  %v1975_v12 = vpop.f32.mrf.mxu0  ;;  %v832_v5 = vld [vmem:[#allocation3 + $0x108] sm:$0xff] }
 0x1e2   : > { %v2264_v14 = vpop.f32.mrf.mxu1  ;;  %v833_v12 = vld [vmem:[#allocation3 + $0x60] sm:$0xff] }
 0x1e3   : > { %v2497_v15 = vadd.f32 %v2263_v11, %v825_v7  ;;  %v1978_v16 = vpop.f32.mrf.mxu0  ;;  %2169 = vmatmul.mubr.bf16.gmra.mxu0 %v4749_v6 }
 0x1e4   : > { %v2267_v18 = vpop.f32.mrf.mxu1  ;;  %2458 = vmatmul.mubr.bf16.gmra.mxu1 %v4752_v9  ;;  %2176 = vmatprep.mubr.bf16.mxu0 %v4757_v10 }
 0x1e5   : > { %2561 = vst [vmem:[#allocation3 + $0x48] sm:$0xff] %v2497_v15  ;;  %v2268_v19 = vadd.f32 %v2267_v18, %v1978_v16  ;;  %v1980_v20 = vpop.f32.mrf.mxu0  ;;  %2465 = vmatprep.mubr.bf16.mxu1 %v4760_v13 }
 0x1e6   : > { %v2269_v21 = vpop.f32.mrf.mxu1 }
 0x1e7   : > { %v2498_v22 = vadd.f32 %v2268_v19, %v826_v17  ;;  %v1981_v23 = vpop.f32.mrf.mxu0  ;;  %v834_v19 = vld [vmem:[#allocation3 + $0xe0] sm:$0xff] }
 0x1e8   : > { %v2270_v26 = vpop.f32.mrf.mxu1 }
 0x1e9   : > { %2562 = vst [vmem:[#allocation3 + $0x180] sm:$0xff] %v2498_v22  ;;  %v2271_v29 = vadd.f32 %v2270_v26, %v1981_v23  ;;  %v1983_v30 = vpop.f32.mrf.mxu0  ;;  %v835_v26 = vld [vmem:[#allocation3 + $0x188] sm:$0xff] }
 0x1ea   : > { %v2272_v32 = vpop.f32.mrf.mxu1 }
 0x1eb   : > { %v2499_v33 = vadd.f32 %v2271_v29, %v827_v25  ;;  %v1986_v34 = vpop.f32.mrf.mxu0  ;;  %2177 = vmatmul.mubr.bf16.gmra.mxu0 %v4755_v24 }
 0x1ec   : > { %v2275_v36 = vpop.f32.mrf.mxu1  ;;  %2466 = vmatmul.mubr.bf16.gmra.mxu1 %v4758_v27  ;;  %2184 = vmatprep.mubr.bf16.mxu0 %v4763_v28 }
 0x1ed   : > { %2563 = vst [vmem:[#allocation3 + $0x110] sm:$0xff] %v2499_v33  ;;  %v2276_v37 = vadd.f32 %v2275_v36, %v1986_v34  ;;  %v1988_v38 = vpop.f32.mrf.mxu0  ;;  %2473 = vmatprep.mubr.bf16.mxu1 %v4766_v31  ;;  %v836_v33 = vld [vmem:[#allocation3 + $0x138] sm:$0xff] }
 0x1ee   : > { %v2277_v39 = vpop.f32.mrf.mxu1 }
 0x1ef   : > { %v2500_v40 = vadd.f32 %v2276_v37, %v828_v35  ;;  %v1989_v41 = vpop.f32.mrf.mxu0 }
 0x1f0   : > { %v2278_v44 = vpop.f32.mrf.mxu1 }
 0x1f1   : > { %2564 = vst [vmem:[#allocation3 + $0x118] sm:$0xff] %v2500_v40  ;;  %v2279_v47 = vadd.f32 %v2278_v44, %v1989_v41  ;;  %v1991_v48 = vpop.f32.mrf.mxu0  ;;  %v837_v40 = vld [vmem:[#allocation3 + $0x140] sm:$0xff] }
 0x1f2   : > { %v2280_v50 = vpop.f32.mrf.mxu1 }
 0x1f3   : > { %v2501_v51 = vadd.f32 %v2279_v47, %v829_v43  ;;  %v1994_v52 = vpop.f32.mrf.mxu0  ;;  %2185 = vmatmul.mubr.bf16.gmra.mxu0 %v4761_v42  ;;  %v838_v47 = vld [vmem:[#allocation3 + $0x80] sm:$0xff] }
 0x1f4   : > { %v2283_v54 = vpop.f32.mrf.mxu1  ;;  %2474 = vmatmul.mubr.bf16.gmra.mxu1 %v4764_v45  ;;  %2192 = vmatprep.mubr.bf16.mxu0 %v4769_v46 }
 0x1f5   : > { %2565 = vst [vmem:[#allocation3 + $0x98] sm:$0xff] %v2501_v51  ;;  %v2284_v55 = vadd.f32 %v2283_v54, %v1994_v52  ;;  %v1996_v56 = vpop.f32.mrf.mxu0  ;;  %2481 = vmatprep.mubr.bf16.mxu1 %v4772_v49  ;;  %v839_v54 = vld [vmem:[#allocation3 + $0x1a8] sm:$0xff] }
 0x1f6   : > { %v2285_v57 = vpop.f32.mrf.mxu1 }
 0x1f7   : > { %v2502_v58 = vadd.f32 %v2284_v55, %v830_v53  ;;  %v1997_v59 = vpop.f32.mrf.mxu0 }
 0x1f8   : > { %v2286_v62 = vpop.f32.mrf.mxu1 }
 0x1f9   : > { %2566 = vst [vmem:[#allocation3 + $0x120] sm:$0xff] %v2502_v58  ;;  %v2287_v0 = vadd.f32 %v2286_v62, %v1997_v59  ;;  %v1999_v1 = vpop.f32.mrf.mxu0 }
 0x1fa   : > { %v2288_v2 = vpop.f32.mrf.mxu1 }
 0x1fb   : > { %v2503_v3 = vadd.f32 %v2287_v0, %v831_v61  ;;  %v2002_v4 = vpop.f32.mrf.mxu0  ;;  %2193 = vmatmul.mubr.bf16.gmra.mxu0 %v4767_v60  ;;  %v840_v61 = vld [vmem:[#allocation3 + $0x1b8] sm:$0xff] }
 0x1fc   : > { %v2291_v6 = vpop.f32.mrf.mxu1  ;;  %2482 = vmatmul.mubr.bf16.gmra.mxu1 %v4770_v63 }
 0x1fd   : > { %2567 = vst [vmem:[#allocation3 + $0x150] sm:$0xff] %v2503_v3  ;;  %v2292_v7 = vadd.f32 %v2291_v6, %v2002_v4  ;;  %v2004_v8 = vpop.f32.mrf.mxu0  ;;  %v841_v4 = vld [vmem:[#allocation3 + $0x28] sm:$0xff] }
 0x1fe   : > { %v2293_v9 = vpop.f32.mrf.mxu1 }
 0x1ff   : > { %v2504_v10 = vadd.f32 %v2292_v7, %v832_v5  ;;  %v2005_v11 = vpop.f32.mrf.mxu0 }
 0x200   : > { %v2294_v13 = vpop.f32.mrf.mxu1 }
 0x201   : > { %2568 = vst [vmem:[#allocation3 + $0x108] sm:$0xff] %v2504_v10  ;;  %v2295_v14 = vadd.f32 %v2294_v13, %v2005_v11  ;;  %v2007_v15 = vpop.f32.mrf.mxu0  ;;  %v842_v11 = vld [vmem:[#allocation3 + $0x1e8] sm:$0xff] }
 0x202   : > { %v2296_v16 = vpop.f32.mrf.mxu1 }
 0x203   : > { %v2505_v17 = vadd.f32 %v2295_v14, %v833_v12  ;;  %v2010_v18 = vpop.f32.mrf.mxu0 }
 0x204   : > { %v2299_v20 = vpop.f32.mrf.mxu1 }
 0x205   : > { %2569 = vst [vmem:[#allocation3 + $0x60] sm:$0xff] %v2505_v17  ;;  %v2300_v21 = vadd.f32 %v2299_v20, %v2010_v18  ;;  %v2012_v22 = vpop.f32.mrf.mxu0  ;;  %v843_v18 = vld [vmem:[#allocation3 + $0xf8] sm:$0xff] }
 0x206   : > { %v2301_v23 = vpop.f32.mrf.mxu1 }
 0x207   : > { %v2506_v24 = vadd.f32 %v2300_v21, %v834_v19  ;;  %v2013_v25 = vpop.f32.mrf.mxu0 }
 0x208   : > { %v2302_v27 = vpop.f32.mrf.mxu1 }
 0x209   : > { %2570 = vst [vmem:[#allocation3 + $0xe0] sm:$0xff] %v2506_v24  ;;  %v2303_v28 = vadd.f32 %v2302_v27, %v2013_v25  ;;  %v2015_v29 = vpop.f32.mrf.mxu0  ;;  %v844_v25 = vld [vmem:[#allocation3 + $0x160] sm:$0xff] }
 0x20a   : > { %v2304_v30 = vpop.f32.mrf.mxu1 }
 0x20b   : > { %v2507_v31 = vadd.f32 %v2303_v28, %v835_v26  ;;  %v2018_v32 = vpop.f32.mrf.mxu0 }
 0x20c   : > { %v2307_v34 = vpop.f32.mrf.mxu1 }
 0x20d   : > { %2571 = vst [vmem:[#allocation3 + $0x188] sm:$0xff] %v2507_v31  ;;  %v2308_v35 = vadd.f32 %v2307_v34, %v2018_v32  ;;  %v2020_v36 = vpop.f32.mrf.mxu0  ;;  %v845_v32 = vld [vmem:[#allocation3 + $0x30] sm:$0xff] }
 0x20e   : > { %v2309_v37 = vpop.f32.mrf.mxu1 }
 0x20f   : > { %v2508_v38 = vadd.f32 %v2308_v35, %v836_v33  ;;  %v2021_v39 = vpop.f32.mrf.mxu0 }
 0x210   : > { %v2310_v41 = vpop.f32.mrf.mxu1 }
 0x211   : > { %2572 = vst [vmem:[#allocation3 + $0x138] sm:$0xff] %v2508_v38  ;;  %v2311_v42 = vadd.f32 %v2310_v41, %v2021_v39  ;;  %v2023_v43 = vpop.f32.mrf.mxu0  ;;  %v846_v39 = vld [vmem:[#allocation3 + $0x1e0] sm:$0xff] }
 0x212   : > { %v2312_v44 = vpop.f32.mrf.mxu1 }
 0x213   : > { %v2509_v45 = vadd.f32 %v2311_v42, %v837_v40  ;;  %v2026_v46 = vpop.f32.mrf.mxu0 }
 0x214   : > { %v2315_v48 = vpop.f32.mrf.mxu1 }
 0x215   : > { %2573 = vst [vmem:[#allocation3 + $0x140] sm:$0xff] %v2509_v45  ;;  %v2316_v49 = vadd.f32 %v2315_v48, %v2026_v46  ;;  %v2028_v50 = vpop.f32.mrf.mxu0  ;;  %v847_v46 = vld [vmem:[#allocation3] sm:$0xff] }
 0x216   : > { %v2317_v51 = vpop.f32.mrf.mxu1 }
 0x217   : > { %v2510_v52 = vadd.f32 %v2316_v49, %v838_v47  ;;  %v2029_v53 = vpop.f32.mrf.mxu0 }
 0x218   : > { %v2318_v55 = vpop.f32.mrf.mxu1 }
 0x219   : > { %2574 = vst [vmem:[#allocation3 + $0x80] sm:$0xff] %v2510_v52  ;;  %v2319_v56 = vadd.f32 %v2318_v55, %v2029_v53  ;;  %v2031_v57 = vpop.f32.mrf.mxu0  ;;  %v848_v53 = vld [vmem:[#allocation3 + $0xf0] sm:$0xff] }
 0x21a   : > { %v2320_v58 = vpop.f32.mrf.mxu1 }
 0x21b   : > { %v2511_v59 = vadd.f32 %v2319_v56, %v839_v54  ;;  %v2034_v60 = vpop.f32.mrf.mxu0 }
 0x21c   : > { %v2323_v62 = vpop.f32.mrf.mxu1 }
 0x21d   : > { %2575 = vst [vmem:[#allocation3 + $0x1a8] sm:$0xff] %v2511_v59  ;;  %v2324_v63 = vadd.f32 %v2323_v62, %v2034_v60  ;;  %v2036_v0 = vpop.f32.mrf.mxu0  ;;  %v849_v60 = vld [vmem:[#allocation3 + $0x8] sm:$0xff] }
 0x21e   : > { %v2325_v1 = vpop.f32.mrf.mxu1 }
 0x21f   : > { %v2512_v2 = vadd.f32 %v2324_v63, %v840_v61  ;;  %v2037_v3 = vpop.f32.mrf.mxu0 }
 0x220   : > { %v2326_v5 = vpop.f32.mrf.mxu1 }
 0x221   : > { %2576 = vst [vmem:[#allocation3 + $0x1b8] sm:$0xff] %v2512_v2  ;;  %v2327_v6 = vadd.f32 %v2326_v5, %v2037_v3  ;;  %v2039_v7 = vpop.f32.mrf.mxu0  ;;  %v850_v3 = vld [vmem:[#allocation3 + $0x148] sm:$0xff] }
 0x222   : > { %v2328_v8 = vpop.f32.mrf.mxu1 }
 0x223   : > { %v2513_v9 = vadd.f32 %v2327_v6, %v841_v4  ;;  %v2042_v10 = vpop.f32.mrf.mxu0 }
 0x224   : > { %v2331_v12 = vpop.f32.mrf.mxu1 }
 0x225   : > { %2577 = vst [vmem:[#allocation3 + $0x28] sm:$0xff] %v2513_v9  ;;  %v2332_v13 = vadd.f32 %v2331_v12, %v2042_v10  ;;  %v2044_v14 = vpop.f32.mrf.mxu0  ;;  %v851_v10 = vld [vmem:[#allocation3 + $0x1d0] sm:$0xff] }
 0x226   : > { %v2333_v15 = vpop.f32.mrf.mxu1 }
 0x227   : > { %v2514_v16 = vadd.f32 %v2332_v13, %v842_v11  ;;  %v2045_v17 = vpop.f32.mrf.mxu0 }
 0x228   : > { %v2334_v19 = vpop.f32.mrf.mxu1 }
 0x229   : > { %2578 = vst [vmem:[#allocation3 + $0x1e8] sm:$0xff] %v2514_v16  ;;  %v2335_v20 = vadd.f32 %v2334_v19, %v2045_v17  ;;  %v2047_v21 = vpop.f32.mrf.mxu0  ;;  %v852_v17 = vld [vmem:[#allocation3 + $0x100] sm:$0xff] }
 0x22a   : > { %v2336_v22 = vpop.f32.mrf.mxu1 }
 0x22b   : > { %v2515_v23 = vadd.f32 %v2335_v20, %v843_v18  ;;  %v2050_v24 = vpop.f32.mrf.mxu0 }
 0x22c   : > { %v2339_v26 = vpop.f32.mrf.mxu1 }
 0x22d   : > { %2579 = vst [vmem:[#allocation3 + $0xf8] sm:$0xff] %v2515_v23  ;;  %v2340_v27 = vadd.f32 %v2339_v26, %v2050_v24  ;;  %v2052_v28 = vpop.f32.mrf.mxu0  ;;  %v853_v24 = vld [vmem:[#allocation3 + $0xc8] sm:$0xff] }
 0x22e   : > { %v2341_v29 = vpop.f32.mrf.mxu1 }
 0x22f   : > { %v2516_v30 = vadd.f32 %v2340_v27, %v844_v25  ;;  %v2053_v31 = vpop.f32.mrf.mxu0 }
 0x230   : > { %v2342_v33 = vpop.f32.mrf.mxu1 }
 0x231   : > { %2580 = vst [vmem:[#allocation3 + $0x160] sm:$0xff] %v2516_v30  ;;  %v2343_v34 = vadd.f32 %v2342_v33, %v2053_v31  ;;  %v2055_v35 = vpop.f32.mrf.mxu0  ;;  %v854_v31 = vld [vmem:[#allocation3 + $0x40] sm:$0xff] }
 0x232   : > { %v2344_v36 = vpop.f32.mrf.mxu1 }
 0x233   : > { %v2517_v37 = vadd.f32 %v2343_v34, %v845_v32  ;;  %v2058_v38 = vpop.f32.mrf.mxu0 }
 0x234   : > { %v2347_v40 = vpop.f32.mrf.mxu1 }
 0x235   : > { %2581 = vst [vmem:[#allocation3 + $0x30] sm:$0xff] %v2517_v37  ;;  %v2348_v41 = vadd.f32 %v2347_v40, %v2058_v38  ;;  %v2060_v42 = vpop.f32.mrf.mxu0  ;;  %v855_v38 = vld [vmem:[#allocation3 + $0x1f8] sm:$0xff] }
 0x236   : > { %v2349_v43 = vpop.f32.mrf.mxu1 }
 0x237   : > { %v2518_v44 = vadd.f32 %v2348_v41, %v846_v39  ;;  %v2061_v45 = vpop.f32.mrf.mxu0 }
 0x238   : > { %v2350_v47 = vpop.f32.mrf.mxu1 }
 0x239   : > { %2582 = vst [vmem:[#allocation3 + $0x1e0] sm:$0xff] %v2518_v44  ;;  %v2351_v48 = vadd.f32 %v2350_v47, %v2061_v45  ;;  %v2063_v49 = vpop.f32.mrf.mxu0  ;;  %v856_v45 = vld [vmem:[#allocation3 + $0x20] sm:$0xff] }
 0x23a   : > { %v2352_v50 = vpop.f32.mrf.mxu1 }
 0x23b   : > { %v2519_v51 = vadd.f32 %v2351_v48, %v847_v46  ;;  %v2066_v52 = vpop.f32.mrf.mxu0 }
 0x23c   : > { %v2355_v54 = vpop.f32.mrf.mxu1 }
 0x23d   : > { %2583 = vst [vmem:[#allocation3] sm:$0xff] %v2519_v51  ;;  %v2356_v55 = vadd.f32 %v2355_v54, %v2066_v52  ;;  %v2068_v56 = vpop.f32.mrf.mxu0  ;;  %v857_v52 = vld [vmem:[#allocation3 + $0x128] sm:$0xff] }
 0x23e   : > { %v2357_v57 = vpop.f32.mrf.mxu1 }
 0x23f   : > { %v2520_v58 = vadd.f32 %v2356_v55, %v848_v53  ;;  %v2069_v59 = vpop.f32.mrf.mxu0 }
 0x240   : > { %v2358_v61 = vpop.f32.mrf.mxu1 }
 0x241   : > { %2584 = vst [vmem:[#allocation3 + $0xf0] sm:$0xff] %v2520_v58  ;;  %v2359_v62 = vadd.f32 %v2358_v61, %v2069_v59  ;;  %v2071_v63 = vpop.f32.mrf.mxu0  ;;  %v858_v59 = vld [vmem:[#allocation3 + $0x1a0] sm:$0xff] }
 0x242   : > { %v2360_v0 = vpop.f32.mrf.mxu1 }
 0x243   : > { %v2521_v1 = vadd.f32 %v2359_v62, %v849_v60  ;;  %v2074_v2 = vpop.f32.mrf.mxu0 }
 0x244   : > { %v2363_v4 = vpop.f32.mrf.mxu1 }
 0x245   : > { %2585 = vst [vmem:[#allocation3 + $0x8] sm:$0xff] %v2521_v1  ;;  %v2364_v5 = vadd.f32 %v2363_v4, %v2074_v2  ;;  %v2076_v6 = vpop.f32.mrf.mxu0  ;;  %v859_v2 = vld [vmem:[#allocation3 + $0x1f0] sm:$0xff] }
 0x246   : > { %v2365_v7 = vpop.f32.mrf.mxu1 }
 0x247   : > { %v2522_v8 = vadd.f32 %v2364_v5, %v850_v3  ;;  %v2077_v9 = vpop.f32.mrf.mxu0 }
 0x248   : > { %v2366_v11 = vpop.f32.mrf.mxu1 }
 0x249   : > { %2586 = vst [vmem:[#allocation3 + $0x148] sm:$0xff] %v2522_v8  ;;  %v2367_v12 = vadd.f32 %v2366_v11, %v2077_v9  ;;  %v2079_v13 = vpop.f32.mrf.mxu0  ;;  %v860_v9 = vld [vmem:[#allocation3 + $0xe8] sm:$0xff] }
 0x24a   : > { %v2368_v14 = vpop.f32.mrf.mxu1 }
 0x24b   : > { %v2523_v15 = vadd.f32 %v2367_v12, %v851_v10  ;;  %v2082_v16 = vpop.f32.mrf.mxu0 }
 0x24c   : > { %v2371_v18 = vpop.f32.mrf.mxu1 }
 0x24d   : > { %2587 = vst [vmem:[#allocation3 + $0x1d0] sm:$0xff] %v2523_v15  ;;  %v2372_v19 = vadd.f32 %v2371_v18, %v2082_v16  ;;  %v2084_v20 = vpop.f32.mrf.mxu0  ;;  %v861_v16 = vld [vmem:[#allocation3 + $0x78] sm:$0xff] }
 0x24e   : > { %v2373_v21 = vpop.f32.mrf.mxu1 }
 0x24f   : > { %v2524_v22 = vadd.f32 %v2372_v19, %v852_v17  ;;  %v2085_v23 = vpop.f32.mrf.mxu0 }
 0x250   : > { %v2374_v25 = vpop.f32.mrf.mxu1 }
 0x251   : > { %2588 = vst [vmem:[#allocation3 + $0x100] sm:$0xff] %v2524_v22  ;;  %v2375_v26 = vadd.f32 %v2374_v25, %v2085_v23  ;;  %v2087_v27 = vpop.f32.mrf.mxu0  ;;  %v862_v23 = vld [vmem:[#allocation3 + $0x70] sm:$0xff] }
 0x252   : > { %v2376_v28 = vpop.f32.mrf.mxu1 }
 0x253   : > { %v2525_v29 = vadd.f32 %v2375_v26, %v853_v24  ;;  %v2090_v30 = vpop.f32.mrf.mxu0 }
 0x254   : > { %v2379_v32 = vpop.f32.mrf.mxu1 }
 0x255   : > { %2589 = vst [vmem:[#allocation3 + $0xc8] sm:$0xff] %v2525_v29  ;;  %v2380_v33 = vadd.f32 %v2379_v32, %v2090_v30  ;;  %v2092_v34 = vpop.f32.mrf.mxu0  ;;  %v863_v30 = vld [vmem:[#allocation3 + $0x90] sm:$0xff] }
 0x256   : > { %v2381_v35 = vpop.f32.mrf.mxu1 }
 0x257   : > { %v2526_v36 = vadd.f32 %v2380_v33, %v854_v31  ;;  %v2093_v37 = vpop.f32.mrf.mxu0 }
 0x258   : > { %v2382_v39 = vpop.f32.mrf.mxu1 }
 0x259   : > { %2590 = vst [vmem:[#allocation3 + $0x40] sm:$0xff] %v2526_v36  ;;  %v2383_v40 = vadd.f32 %v2382_v39, %v2093_v37  ;;  %v2095_v41 = vpop.f32.mrf.mxu0  ;;  %v864_v37 = vld [vmem:[#allocation3 + $0x1d8] sm:$0xff] }
 0x25a   : > { %v2384_v42 = vpop.f32.mrf.mxu1 }
 0x25b   : > { %v2527_v43 = vadd.f32 %v2383_v40, %v855_v38  ;;  %v2098_v44 = vpop.f32.mrf.mxu0 }
 0x25c   : > { %v2387_v46 = vpop.f32.mrf.mxu1 }
 0x25d   : > { %2591 = vst [vmem:[#allocation3 + $0x1f8] sm:$0xff] %v2527_v43  ;;  %v2388_v47 = vadd.f32 %v2387_v46, %v2098_v44  ;;  %v2100_v48 = vpop.f32.mrf.mxu0  ;;  %v865_v44 = vld [vmem:[#allocation3 + $0xd0] sm:$0xff] }
 0x25e   : > { %v2389_v49 = vpop.f32.mrf.mxu1 }
 0x25f   : > { %v2528_v50 = vadd.f32 %v2388_v47, %v856_v45  ;;  %v2101_v51 = vpop.f32.mrf.mxu0 }
 0x260   : > { %v2390_v53 = vpop.f32.mrf.mxu1 }
 0x261   : > { %2592 = vst [vmem:[#allocation3 + $0x20] sm:$0xff] %v2528_v50  ;;  %v2391_v54 = vadd.f32 %v2390_v53, %v2101_v51  ;;  %v2103_v55 = vpop.f32.mrf.mxu0  ;;  %v866_v51 = vld [vmem:[#allocation3 + $0xb8] sm:$0xff] }
 0x262   : > { %v2392_v56 = vpop.f32.mrf.mxu1 }
 0x263   : > { %v2529_v57 = vadd.f32 %v2391_v54, %v857_v52  ;;  %v2106_v58 = vpop.f32.mrf.mxu0 }
 0x264   : > { %v2395_v60 = vpop.f32.mrf.mxu1 }
 0x265   : > { %2593 = vst [vmem:[#allocation3 + $0x128] sm:$0xff] %v2529_v57  ;;  %v2396_v61 = vadd.f32 %v2395_v60, %v2106_v58  ;;  %v2108_v62 = vpop.f32.mrf.mxu0  ;;  %v867_v58 = vld [vmem:[#allocation3 + $0x88] sm:$0xff] }
 0x266   : > { %v2397_v63 = vpop.f32.mrf.mxu1 }
 0x267   : > { %v2530_v0 = vadd.f32 %v2396_v61, %v858_v59  ;;  %v2109_v1 = vpop.f32.mrf.mxu0 }
 0x268   : > { %v2398_v3 = vpop.f32.mrf.mxu1 }
 0x269   : > { %2594 = vst [vmem:[#allocation3 + $0x1a0] sm:$0xff] %v2530_v0  ;;  %v2399_v4 = vadd.f32 %v2398_v3, %v2109_v1  ;;  %v2111_v5 = vpop.f32.mrf.mxu0  ;;  %v868_v1 = vld [vmem:[#allocation3 + $0xa8] sm:$0xff] }
 0x26a   : > { %v2400_v6 = vpop.f32.mrf.mxu1 }
 0x26b   : > { %v2531_v7 = vadd.f32 %v2399_v4, %v859_v2  ;;  %v2114_v8 = vpop.f32.mrf.mxu0 }
 0x26c   : > { %v2403_v10 = vpop.f32.mrf.mxu1 }
 0x26d   : > { %2595 = vst [vmem:[#allocation3 + $0x1f0] sm:$0xff] %v2531_v7  ;;  %v2404_v11 = vadd.f32 %v2403_v10, %v2114_v8  ;;  %v2116_v12 = vpop.f32.mrf.mxu0  ;;  %v869_v8 = vld [vmem:[#allocation3 + $0x1c8] sm:$0xff] }
 0x26e   : > { %v2405_v13 = vpop.f32.mrf.mxu1 }
 0x26f   : > { %v2532_v14 = vadd.f32 %v2404_v11, %v860_v9  ;;  %v2117_v15 = vpop.f32.mrf.mxu0 }
 0x270   : > { %v2406_v17 = vpop.f32.mrf.mxu1 }
 0x271   : > { %2596 = vst [vmem:[#allocation3 + $0xe8] sm:$0xff] %v2532_v14  ;;  %v2407_v18 = vadd.f32 %v2406_v17, %v2117_v15  ;;  %v2119_v19 = vpop.f32.mrf.mxu0  ;;  %v870_v15 = vld [vmem:[#allocation3 + $0x170] sm:$0xff] }
 0x272   : > { %v2408_v20 = vpop.f32.mrf.mxu1 }
 0x273   : > { %v2533_v21 = vadd.f32 %v2407_v18, %v861_v16  ;;  %v2122_v22 = vpop.f32.mrf.mxu0 }
 0x274   : > { %v2411_v24 = vpop.f32.mrf.mxu1 }
 0x275   : > { %2597 = vst [vmem:[#allocation3 + $0x78] sm:$0xff] %v2533_v21  ;;  %v2412_v25 = vadd.f32 %v2411_v24, %v2122_v22  ;;  %v2124_v26 = vpop.f32.mrf.mxu0  ;;  %v871_v22 = vld [vmem:[#allocation3 + $0x178] sm:$0xff] }
 0x276   : > { %v2413_v27 = vpop.f32.mrf.mxu1 }
 0x277   : > { %v2534_v28 = vadd.f32 %v2412_v25, %v862_v23  ;;  %v2125_v29 = vpop.f32.mrf.mxu0 }
 0x278   : > { %v2414_v31 = vpop.f32.mrf.mxu1 }
 0x279   : > { %2598 = vst [vmem:[#allocation3 + $0x70] sm:$0xff] %v2534_v28  ;;  %v2415_v32 = vadd.f32 %v2414_v31, %v2125_v29  ;;  %v2127_v33 = vpop.f32.mrf.mxu0  ;;  %v872_v29 = vld [vmem:[#allocation3 + $0x68] sm:$0xff] }
 0x27a   : > { %v2416_v34 = vpop.f32.mrf.mxu1 }
 0x27b   : > { %v2535_v35 = vadd.f32 %v2415_v32, %v863_v30  ;;  %v2130_v36 = vpop.f32.mrf.mxu0 }
 0x27c   : > { %v2419_v38 = vpop.f32.mrf.mxu1 }
 0x27d   : > { %2599 = vst [vmem:[#allocation3 + $0x90] sm:$0xff] %v2535_v35  ;;  %v2420_v39 = vadd.f32 %v2419_v38, %v2130_v36  ;;  %v2132_v40 = vpop.f32.mrf.mxu0  ;;  %v873_v36 = vld [vmem:[#allocation3 + $0x190] sm:$0xff] }
 0x27e   : > { %v2421_v41 = vpop.f32.mrf.mxu1 }
 0x27f   : > { %v2536_v42 = vadd.f32 %v2420_v39, %v864_v37  ;;  %v2133_v43 = vpop.f32.mrf.mxu0 }
 0x280   : > { %v2422_v45 = vpop.f32.mrf.mxu1 }
 0x281   : > { %2600 = vst [vmem:[#allocation3 + $0x1d8] sm:$0xff] %v2536_v42  ;;  %v2423_v46 = vadd.f32 %v2422_v45, %v2133_v43  ;;  %v2135_v47 = vpop.f32.mrf.mxu0  ;;  %v874_v43 = vld [vmem:[#allocation3 + $0x198] sm:$0xff] }
 0x282   : > { %v2424_v48 = vpop.f32.mrf.mxu1 }
 0x283   : > { %v2537_v49 = vadd.f32 %v2423_v46, %v865_v44  ;;  %v2138_v50 = vpop.f32.mrf.mxu0 }
 0x284   : > { %v2427_v52 = vpop.f32.mrf.mxu1 }
 0x285   : > { %2601 = vst [vmem:[#allocation3 + $0xd0] sm:$0xff] %v2537_v49  ;;  %v2428_v53 = vadd.f32 %v2427_v52, %v2138_v50  ;;  %v2140_v54 = vpop.f32.mrf.mxu0  ;;  %v875_v50 = vld [vmem:[#allocation3 + $0x38] sm:$0xff] }
 0x286   : > { %v2429_v55 = vpop.f32.mrf.mxu1 }
 0x287   : > { %v2538_v56 = vadd.f32 %v2428_v53, %v866_v51  ;;  %v2141_v57 = vpop.f32.mrf.mxu0 }
 0x288   : > { %v2430_v59 = vpop.f32.mrf.mxu1 }
 0x289   : > { %2602 = vst [vmem:[#allocation3 + $0xb8] sm:$0xff] %v2538_v56  ;;  %v2431_v60 = vadd.f32 %v2430_v59, %v2141_v57  ;;  %v2143_v61 = vpop.f32.mrf.mxu0  ;;  %v876_v57 = vld [vmem:[#allocation3 + $0xc0] sm:$0xff] }
 0x28a   : > { %v2432_v62 = vpop.f32.mrf.mxu1 }
 0x28b   : > { %v2539_v63 = vadd.f32 %v2431_v60, %v867_v58  ;;  %v2146_v0 = vpop.f32.mrf.mxu0 }
 0x28c   : > { %v2435_v2 = vpop.f32.mrf.mxu1 }
 0x28d   : > { %2603 = vst [vmem:[#allocation3 + $0x88] sm:$0xff] %v2539_v63  ;;  %v2436_v3 = vadd.f32 %v2435_v2, %v2146_v0  ;;  %v2148_v4 = vpop.f32.mrf.mxu0  ;;  %v877_v0 = vld [vmem:[#allocation3 + $0x1c0] sm:$0xff] }
 0x28e   : > { %v2437_v5 = vpop.f32.mrf.mxu1 }
 0x28f   : > { %v2540_v6 = vadd.f32 %v2436_v3, %v868_v1  ;;  %v2149_v7 = vpop.f32.mrf.mxu0 }
 0x290   : > { %v2438_v9 = vpop.f32.mrf.mxu1 }
 0x291   : > { %2604 = vst [vmem:[#allocation3 + $0xa8] sm:$0xff] %v2540_v6  ;;  %v2439_v10 = vadd.f32 %v2438_v9, %v2149_v7  ;;  %v2151_v11 = vpop.f32.mrf.mxu0  ;;  %v878_v7 = vld [vmem:[#allocation3 + $0x158] sm:$0xff] }
 0x292   : > { %v2440_v12 = vpop.f32.mrf.mxu1 }
 0x293   : > { %v2541_v13 = vadd.f32 %v2439_v10, %v869_v8  ;;  %v2154_v14 = vpop.f32.mrf.mxu0 }
 0x294   : > { %v2443_v16 = vpop.f32.mrf.mxu1 }
 0x295   : > { %2605 = vst [vmem:[#allocation3 + $0x1c8] sm:$0xff] %v2541_v13  ;;  %v2444_v17 = vadd.f32 %v2443_v16, %v2154_v14  ;;  %v2156_v18 = vpop.f32.mrf.mxu0  ;;  %v879_v14 = vld [vmem:[#allocation3 + $0x10] sm:$0xff] }
 0x296   : > { %v2445_v19 = vpop.f32.mrf.mxu1 }
 0x297   : > { %v2542_v20 = vadd.f32 %v2444_v17, %v870_v15  ;;  %v2157_v21 = vpop.f32.mrf.mxu0 }
 0x298   : > { %v2446_v23 = vpop.f32.mrf.mxu1 }
 0x299   : > { %2606 = vst [vmem:[#allocation3 + $0x170] sm:$0xff] %v2542_v20  ;;  %v2447_v24 = vadd.f32 %v2446_v23, %v2157_v21  ;;  %v2159_v25 = vpop.f32.mrf.mxu0  ;;  %v880_v21 = vld [vmem:[#allocation3 + $0x58] sm:$0xff] }
 0x29a   : > { %v2448_v26 = vpop.f32.mrf.mxu1 }
 0x29b   : > { %v2543_v27 = vadd.f32 %v2447_v24, %v871_v22  ;;  %v2162_v28 = vpop.f32.mrf.mxu0 }
 0x29c   : > { %v2451_v30 = vpop.f32.mrf.mxu1 }
 0x29d   : > { %2607 = vst [vmem:[#allocation3 + $0x178] sm:$0xff] %v2543_v27  ;;  %v2452_v31 = vadd.f32 %v2451_v30, %v2162_v28  ;;  %v2164_v32 = vpop.f32.mrf.mxu0  ;;  %v881_v28 = vld [vmem:[#allocation3 + $0xa0] sm:$0xff] }
 0x29e   : > { %v2453_v33 = vpop.f32.mrf.mxu1 }
 0x29f   : > { %v2544_v34 = vadd.f32 %v2452_v31, %v872_v29  ;;  %v2165_v35 = vpop.f32.mrf.mxu0 }
 0x2a0   : > { %v2454_v37 = vpop.f32.mrf.mxu1 }
 0x2a1   : > { %2608 = vst [vmem:[#allocation3 + $0x68] sm:$0xff] %v2544_v34  ;;  %v2455_v38 = vadd.f32 %v2454_v37, %v2165_v35  ;;  %v2167_v39 = vpop.f32.mrf.mxu0 }
 0x2a2   : > { %v2456_v40 = vpop.f32.mrf.mxu1 }
 0x2a3   : > { %v2545_v41 = vadd.f32 %v2455_v38, %v873_v36  ;;  %v2170_v42 = vpop.f32.mrf.mxu0 }
 0x2a4   : > { %v2459_v44 = vpop.f32.mrf.mxu1 }
 0x2a5   : > { %2609 = vst [vmem:[#allocation3 + $0x190] sm:$0xff] %v2545_v41  ;;  %v2460_v45 = vadd.f32 %v2459_v44, %v2170_v42  ;;  %v2172_v46 = vpop.f32.mrf.mxu0 }
 0x2a6   : > { %v2461_v47 = vpop.f32.mrf.mxu1 }
 0x2a7   : > { %v2546_v48 = vadd.f32 %v2460_v45, %v874_v43  ;;  %v2173_v49 = vpop.f32.mrf.mxu0 }
 0x2a8   : > { %v2462_v51 = vpop.f32.mrf.mxu1 }
 0x2a9   : > { %2610 = vst [vmem:[#allocation3 + $0x198] sm:$0xff] %v2546_v48  ;;  %v2463_v52 = vadd.f32 %v2462_v51, %v2173_v49  ;;  %v2175_v53 = vpop.f32.mrf.mxu0 }
 0x2aa   : > { %v2464_v54 = vpop.f32.mrf.mxu1 }
 0x2ab   : > { %v2547_v55 = vadd.f32 %v2463_v52, %v875_v50  ;;  %v2178_v56 = vpop.f32.mrf.mxu0 }
 0x2ac   : > { %v2467_v58 = vpop.f32.mrf.mxu1 }
 0x2ad   : > { %2611 = vst [vmem:[#allocation3 + $0x38] sm:$0xff] %v2547_v55  ;;  %v2468_v59 = vadd.f32 %v2467_v58, %v2178_v56  ;;  %v2180_v60 = vpop.f32.mrf.mxu0 }
 0x2ae   : > { %v2469_v61 = vpop.f32.mrf.mxu1 }
 0x2af   : > { %v2548_v62 = vadd.f32 %v2468_v59, %v876_v57  ;;  %v2181_v63 = vpop.f32.mrf.mxu0 }
 0x2b0   : > { %v2470_v1 = vpop.f32.mrf.mxu1 }
 0x2b1   : > { %2612 = vst [vmem:[#allocation3 + $0xc0] sm:$0xff] %v2548_v62  ;;  %v2471_v2 = vadd.f32 %v2470_v1, %v2181_v63  ;;  %v2183_v3 = vpop.f32.mrf.mxu0 }
 0x2b2   : > { %v2472_v4 = vpop.f32.mrf.mxu1 }
 0x2b3   : > { %v2549_v5 = vadd.f32 %v2471_v2, %v877_v0  ;;  %v2186_v6 = vpop.f32.mrf.mxu0 }
 0x2b4   : > { %v2475_v8 = vpop.f32.mrf.mxu1 }
 0x2b5   : > { %2613 = vst [vmem:[#allocation3 + $0x1c0] sm:$0xff] %v2549_v5  ;;  %v2476_v9 = vadd.f32 %v2475_v8, %v2186_v6  ;;  %v2188_v10 = vpop.f32.mrf.mxu0 }
 0x2b6   : > { %v2477_v11 = vpop.f32.mrf.mxu1 }
 0x2b7   : > { %v2550_v12 = vadd.f32 %v2476_v9, %v878_v7  ;;  %v2189_v13 = vpop.f32.mrf.mxu0 }
 0x2b8   : > { %v2478_v15 = vpop.f32.mrf.mxu1 }
 0x2b9   : > { %2614 = vst [vmem:[#allocation3 + $0x158] sm:$0xff] %v2550_v12  ;;  %v2479_v16 = vadd.f32 %v2478_v15, %v2189_v13  ;;  %v2191_v17 = vpop.f32.mrf.mxu0 }
 0x2ba   : > { %v2480_v18 = vpop.f32.mrf.mxu1 }
 0x2bb   : > { %v2551_v19 = vadd.f32 %v2479_v16, %v879_v14  ;;  %v2194_v20 = vpop.f32.mrf.mxu0 }
 0x2bc   : > { %v2483_v22 = vpop.f32.mrf.mxu1 }
 0x2bd   : > { %2615 = vst [vmem:[#allocation3 + $0x10] sm:$0xff] %v2551_v19  ;;  %v2484_v23 = vadd.f32 %v2483_v22, %v2194_v20  ;;  %v2196_v24 = vpop.f32.mrf.mxu0 }
 0x2be   : > { %v2485_v25 = vpop.f32.mrf.mxu1 }
 0x2bf   : > { %v2552_v26 = vadd.f32 %v2484_v23, %v880_v21  ;;  %v2197_v27 = vpop.f32.mrf.mxu0 }
 0x2c0   : > { %v2486_v29 = vpop.f32.mrf.mxu1 }
 0x2c1   : > { %2616 = vst [vmem:[#allocation3 + $0x58] sm:$0xff] %v2552_v26  ;;  %v2487_v30 = vadd.f32 %v2486_v29, %v2197_v27  ;;  %v2199_v31 = vpop.f32.mrf.mxu0  ;;  %2621 = sbr.rel (%p3824_p7) target bundleno = 796 (0x31c), region = 67 }
 0x2c2   : > { %v2488_v32 = vpop.f32.mrf.mxu1 }
 0x2c3   : > { %v2553_v33 = vadd.f32 %v2487_v30, %v881_v28 }
 0x2c5   : > { %2617 = vst [vmem:[#allocation3 + $0xa0] sm:$0xff] %v2553_v33 }
 0x2c6   : > { %2625 = sbr.rel (%p3825_p8) target bundleno = 743 (0x2e7), region = 71  ;;  %s2626_s5 = sadd.s32 (!%p3825_p8), 1, %s4827_s16 }
 0x2c7   : > { %p2627_p9 = scmp.lt.s32.totalorder (!%p3825_p8), %s2626_s5, 0  ;;  %s2628_s26 = ssub.s32 (!%p3825_p8), 0, %s2626_s5 }
 0x2c8   : > { %s3826_s27 = smin.u32 (!%p3825_p8), %s2628_s26, %s2626_s5  ;;  %s3829_s30 = sshll.u32 (!%p3825_p8), %s4823_s15, 9 }
 0x2c9   : > { %s2630_s29 = sand.u32 (!%p3825_p8), 1, %s3826_s27   ;;  %s5717_s12 = sshra.s32 (!%p3825_p8), %s3829_s30, 3 }
 0x2ca   : > { %s2631_s14 = ssub.s32 (!%p3825_p8), 0, %s2630_s29 }
 0x2cb   : > { %v5673_v34 = vld [vmem:[#allocation3 + $0xb0] sm:$0xff]  ;;  %v5677_v36 = vld [vmem:[#allocation3 + $0xd8] sm:$0xff]  ;;  %v5683_v39 = vld [vmem:[#allocation3 + $0x168] sm:$0xff]  ;;  %s5933_s14 = smov (!%p2627_p9, %s2631_s14), %s2630_s29 }
 0x2cc   : > { %v5675_v35 = vld [vmem:[#allocation3 + $0x1b0] sm:$0xff]  ;;  %v5679_v37 = vld [vmem:[#allocation3 + $0x18] sm:$0xff]  ;;  %v5687_v41 = vld [vmem:[#allocation3 + $0x48] sm:$0xff]  ;;  %p3828_p10 = scmp.lt.s32.totalorder %s5933_s14, 0  ;;  %s2637_s15 = sadd.s32 2, %s5933_s14 }
 0x2cd   : > { %v5681_v38 = vld [vmem:[#allocation3 + $0x50] sm:$0xff]  ;;  %v5690_v42 = vld [vmem:[#allocation3 + $0x180] sm:$0xff]  ;;  %v5694_v44 = vld [vmem:[#allocation3 + $0x118] sm:$0xff]  ;;  %v4096_v58 = vpack.c.bf16 %v5675_v35, %v5673_v34  ;;  %v4101_v59 = vpack.c.bf16 %v5679_v37, %v5677_v36 }
 0x2ce   : > { %v5685_v40 = vld [vmem:[#allocation3 + $0x130] sm:$0xff]  ;;  %v5696_v45 = vld [vmem:[#allocation3 + $0x98] sm:$0xff]  ;;  %v5698_v46 = vld [vmem:[#allocation3 + $0x120] sm:$0xff]  ;;  %v4106_v60 = vpack.c.bf16 %v5683_v39, %v5681_v38  ;;  %s5935_s15 = smov (!%p3828_p10, %s2637_s15), %s5933_s14 }
 0x2cf   : > { %v5692_v43 = vld [vmem:[#allocation3 + $0x110] sm:$0xff]  ;;  %v5702_v48 = vld [vmem:[#allocation3 + $0x108] sm:$0xff]  ;;  %v5705_v49 = vld [vmem:[#allocation3 + $0x60] sm:$0xff]  ;;  %v4111_v61 = vpack.c.bf16 %v5687_v41, %v5685_v40  ;;  %v4121_v2 = vpack.c.bf16 %v5696_v45, %v5694_v44  ;;  %s3894_s6 = sshll.u32 %s5935_s15, 7 }
 0x2d0   : > { %v5700_v47 = vld [vmem:[#allocation3 + $0x150] sm:$0xff]  ;;  %v5707_v50 = vld [vmem:[#allocation3 + $0xe0] sm:$0xff]  ;;  %v5709_v51 = vld [vmem:[#allocation3 + $0x188] sm:$0xff]  ;;  %v4116_v1 = vpack.c.bf16 %v5692_v43, %v5690_v42  ;;  %v4131_v4 = vpack.c.bf16 %v5705_v49, %v5702_v48  ;;  %s2963_s7 = sadd.s32 %s3894_s6, %s5717_s12 }
 0x2d1   : > { %v5711_v52 = vld [vmem:[#allocation3 + $0x138] sm:$0xff]  ;;  %v5713_v53 = vld [vmem:[#allocation3 + $0x140] sm:$0xff]  ;;  %v2661_v55 = vld [vmem:[#allocation3 + $0x1a8] sm:$0xff]  ;;  %v4126_v3 = vpack.c.bf16 %v5700_v47, %v5698_v46  ;;  %v4136_v8 = vpack.c.bf16 %v5709_v51, %v5707_v50  ;;  %s3895_s8 = sshll.u32 %s2963_s7, 2 }
 0x2d2   : > { %v5715_v54 = vld [vmem:[#allocation3 + $0x80] sm:$0xff]  ;;  %v2662_v56 = vld [vmem:[#allocation3 + $0x1b8] sm:$0xff]  ;;  %v2663_v57 = vld [vmem:[#allocation3 + $0x28] sm:$0xff]  ;;  %v4141_v9 = vpack.c.bf16 %v5713_v53, %v5711_v52  ;;  %s5741_s9 = scalar_lea.vmem [#allocation2], %s3895_s8 }
 0x2d3   : > { %v2664_v62 = vld [vmem:[#allocation3 + $0x1e8] sm:$0xff]  ;;  %v2665_v63 = vld [vmem:[#allocation3 + $0xf8] sm:$0xff]  ;;  %v2666_v0 = vld [vmem:[#allocation3 + $0x160] sm:$0xff]  ;;  %v4146_v10 = vpack.c.bf16 %v2661_v55, %v5715_v54  ;;  %v4151_v11 = vpack.c.bf16 %v2663_v57, %v2662_v56  ;;  %4097 = vst [vmem:[%s5741_s9] sm:$0xff] %v4096_v58  }
 0x2d4   : > { %v2667_v5 = vld [vmem:[#allocation3 + $0x30] sm:$0xff]  ;;  %v2668_v6 = vld [vmem:[#allocation3 + $0x1e0] sm:$0xff]  ;;  %v2671_v13 = vld [vmem:[#allocation3 + $0x8] sm:$0xff]  ;;  %v4156_v15 = vpack.c.bf16 %v2665_v63, %v2664_v62  ;;  %4413 = vst [vmem:[%s5741_s9 + $0x8] sm:$0xff] %v4101_v59  }
 0x2d5   : > { %v2669_v7 = vld [vmem:[#allocation3] sm:$0xff]  ;;  %v2670_v12 = vld [vmem:[#allocation3 + $0xf0] sm:$0xff]  ;;  %v2672_v14 = vld [vmem:[#allocation3 + $0x148] sm:$0xff]  ;;  %v4161_v16 = vpack.c.bf16 %v2667_v5, %v2666_v0  ;;  %4414 = vst [vmem:[%s5741_s9 + $0x10] sm:$0xff] %v4106_v60  }
 0x2d6   : > { %v4166_v17 = vpack.c.bf16 %v2669_v7, %v2668_v6  ;;  %v4171_v18 = vpack.c.bf16 %v2671_v13, %v2670_v12  ;;  %v2673_v19 = vld [vmem:[#allocation3 + $0x1d0] sm:$0xff]  ;;  %v2674_v20 = vld [vmem:[#allocation3 + $0x100] sm:$0xff]  ;;  %v2675_v21 = vld [vmem:[#allocation3 + $0xc8] sm:$0xff]  ;;  %4415 = vst [vmem:[%s5741_s9 + $0x18] sm:$0xff] %v4111_v61  }
 0x2d7   : > { %v4176_v22 = vpack.c.bf16 %v2673_v19, %v2672_v14  ;;  %v4181_v23 = vpack.c.bf16 %v2675_v21, %v2674_v20  ;;  %v2676_v24 = vld [vmem:[#allocation3 + $0x40] sm:$0xff]  ;;  %v2677_v25 = vld [vmem:[#allocation3 + $0x1f8] sm:$0xff]  ;;  %v2679_v28 = vld [vmem:[#allocation3 + $0x128] sm:$0xff]  ;;  %4416 = vst [vmem:[%s5741_s9 + $0x20] sm:$0xff] %v4116_v1  }
 0x2d8   : > { %v2678_v26 = vld [vmem:[#allocation3 + $0x20] sm:$0xff]  ;;  %v4186_v27 = vpack.c.bf16 %v2677_v25, %v2676_v24  ;;  %v2681_v30 = vld [vmem:[#allocation3 + $0x1f0] sm:$0xff]  ;;  %v2682_v33 = vld [vmem:[#allocation3 + $0xe8] sm:$0xff]  ;;  %4417 = vst [vmem:[%s5741_s9 + $0x28] sm:$0xff] %v4121_v2  }
 0x2d9   : > { %v2680_v29 = vld [vmem:[#allocation3 + $0x1a0] sm:$0xff]  ;;  %v4191_v31 = vpack.c.bf16 %v2679_v28, %v2678_v26  ;;  %v2683_v34 = vld [vmem:[#allocation3 + $0x78] sm:$0xff]  ;;  %v2684_v35 = vld [vmem:[#allocation3 + $0x70] sm:$0xff]  ;;  %4418 = vst [vmem:[%s5741_s9 + $0x30] sm:$0xff] %v4126_v3  }
 0x2da   : > { %v4196_v32 = vpack.c.bf16 %v2681_v30, %v2680_v29  ;;  %4419 = vst [vmem:[%s5741_s9 + $0x38] sm:$0xff] %v4131_v4   ;;  %4420 = vst [vmem:[%s5741_s9 + $0x40] sm:$0xff] %v4136_v8   ;;  %v4201_v36 = vpack.c.bf16 %v2683_v34, %v2682_v33  ;;  %v2685_v37 = vld [vmem:[#allocation3 + $0x90] sm:$0xff]  ;;  %v2686_v38 = vld [vmem:[#allocation3 + $0x1d8] sm:$0xff] }
 0x2db   : > { %4421 = vst [vmem:[%s5741_s9 + $0x48] sm:$0xff] %v4141_v9   ;;  %4422 = vst [vmem:[%s5741_s9 + $0x50] sm:$0xff] %v4146_v10   ;;  %v2687_v39 = vld [vmem:[#allocation3 + $0xd0] sm:$0xff]  ;;  %v4206_v40 = vpack.c.bf16 %v2685_v37, %v2684_v35  ;;  %v2688_v42 = vld [vmem:[#allocation3 + $0xb8] sm:$0xff] }
 0x2dc   : > { %4423 = vst [vmem:[%s5741_s9 + $0x58] sm:$0xff] %v4151_v11   ;;  %4424 = vst [vmem:[%s5741_s9 + $0x60] sm:$0xff] %v4156_v15   ;;  %v4211_v41 = vpack.c.bf16 %v2687_v39, %v2686_v38  ;;  %v2689_v43 = vld [vmem:[#allocation3 + $0x88] sm:$0xff]  ;;  %v2692_v47 = vld [vmem:[#allocation3 + $0x170] sm:$0xff] }
 0x2dd   : > { %4425 = vst [vmem:[%s5741_s9 + $0x68] sm:$0xff] %v4161_v16   ;;  %4426 = vst [vmem:[%s5741_s9 + $0x70] sm:$0xff] %v4166_v17   ;;  %v2690_v44 = vld [vmem:[#allocation3 + $0xa8] sm:$0xff]  ;;  %v4216_v45 = vpack.c.bf16 %v2689_v43, %v2688_v42  ;;  %v2693_v48 = vld [vmem:[#allocation3 + $0x178] sm:$0xff] }
 0x2de   : > { %4427 = vst [vmem:[%s5741_s9 + $0x78] sm:$0xff] %v4171_v18   ;;  %4428 = vst [vmem:[%s5741_s9 + $0x80] sm:$0xff] %v4176_v22   ;;  %v2691_v46 = vld [vmem:[#allocation3 + $0x1c8] sm:$0xff]  ;;  %v4226_v50 = vpack.c.bf16 %v2693_v48, %v2692_v47  ;;  %v2695_v52 = vld [vmem:[#allocation3 + $0x190] sm:$0xff] }
 0x2df   : > { %4429 = vst [vmem:[%s5741_s9 + $0x88] sm:$0xff] %v4181_v23   ;;  %4430 = vst [vmem:[%s5741_s9 + $0x90] sm:$0xff] %v4186_v27   ;;  %v4221_v49 = vpack.c.bf16 %v2691_v46, %v2690_v44  ;;  %v2694_v51 = vld [vmem:[#allocation3 + $0x68] sm:$0xff]  ;;  %v2696_v53 = vld [vmem:[#allocation3 + $0x198] sm:$0xff] }
 0x2e0   : > { %4431 = vst [vmem:[%s5741_s9 + $0x98] sm:$0xff] %v4191_v31   ;;  %4432 = vst [vmem:[%s5741_s9 + $0xa0] sm:$0xff] %v4196_v32   ;;  %v4231_v54 = vpack.c.bf16 %v2695_v52, %v2694_v51  ;;  %v2697_v55 = vld [vmem:[#allocation3 + $0x38] sm:$0xff]  ;;  %v2698_v56 = vld [vmem:[#allocation3 + $0xc0] sm:$0xff] }
 0x2e1   : > { %4433 = vst [vmem:[%s5741_s9 + $0xa8] sm:$0xff] %v4201_v36   ;;  %4434 = vst [vmem:[%s5741_s9 + $0xb0] sm:$0xff] %v4206_v40   ;;  %v2699_v57 = vld [vmem:[#allocation3 + $0x1c0] sm:$0xff]  ;;  %v4236_v58 = vpack.c.bf16 %v2697_v55, %v2696_v53  ;;  %v2700_v60 = vld [vmem:[#allocation3 + $0x158] sm:$0xff] }
 0x2e2   : > { %4435 = vst [vmem:[%s5741_s9 + $0xb8] sm:$0xff] %v4211_v41   ;;  %4436 = vst [vmem:[%s5741_s9 + $0xc0] sm:$0xff] %v4216_v45   ;;  %v4241_v59 = vpack.c.bf16 %v2699_v57, %v2698_v56  ;;  %v2701_v61 = vld [vmem:[#allocation3 + $0x10] sm:$0xff]  ;;  %v2702_v62 = vld [vmem:[#allocation3 + $0x58] sm:$0xff] }
 0x2e3   : > { %4437 = vst [vmem:[%s5741_s9 + $0xc8] sm:$0xff] %v4221_v49   ;;  %4438 = vst [vmem:[%s5741_s9 + $0xd0] sm:$0xff] %v4226_v50   ;;  %v4246_v63 = vpack.c.bf16 %v2701_v61, %v2700_v60  ;;  %v2703_v0 = vld [vmem:[#allocation3 + $0xa0] sm:$0xff] }
 0x2e4   : > { %4439 = vst [vmem:[%s5741_s9 + $0xd8] sm:$0xff] %v4231_v54   ;;  %4440 = vst [vmem:[%s5741_s9 + $0xe0] sm:$0xff] %v4236_v58   ;;  %v4251_v1 = vpack.c.bf16 %v2703_v0, %v2702_v62 }
 0x2e5   : > { %4441 = vst [vmem:[%s5741_s9 + $0xe8] sm:$0xff] %v4241_v59   ;;  %4442 = vst [vmem:[%s5741_s9 + $0xf0] sm:$0xff] %v4246_v63  }
 0x2e6   : > { %4443 = vst [vmem:[%s5741_s9 + $0xf8] sm:$0xff] %v4251_v1  }
 0x2e7 PF: > { %p3896_p11 = scmp.ne.s32.totalorder %s4827_s16, 1 }
 0x2e9   : > { %3033 = sbr.rel (%p3896_p11) target bundleno = 796 (0x31c), region = 75 }
 0x2ee   : > { %v3034_v2 = vld [vmem:[#allocation3 + $0xb0] sm:$0xff]  ;;  %v5779_v4 = vld [vmem:[%s5906_s2] ss:$0 sm:$0xff]  ;;  %v3036_v7 = vld [vmem:[#allocation3 + $0xd8] sm:$0xff] }
 0x2ef   : > { %v3035_v3 = vld [vmem:[#allocation3 + $0x1b0] sm:$0xff]  ;;  %v3105_v5 = vadd.f32 %v5779_v4, %v3034_v2  ;;  %v3037_v8 = vld [vmem:[#allocation3 + $0x18] sm:$0xff]  ;;  %v3107_v10 = vadd.f32 %v5779_v4, %v3036_v7  ;;  %v3039_v12 = vld [vmem:[#allocation3 + $0x168] sm:$0xff] }
 0x2f0   : > { %v3106_v6 = vadd.f32 %v5779_v4, %v3035_v3  ;;  %v3038_v9 = vld [vmem:[#allocation3 + $0x50] sm:$0xff]  ;;  %v3108_v11 = vadd.f32 %v5779_v4, %v3037_v8  ;;  %v3041_v15 = vld [vmem:[#allocation3 + $0x48] sm:$0xff]  ;;  %v3110_v18 = vadd.f32 %v5779_v4, %v3039_v12  ;;  %v3042_v20 = vld [vmem:[#allocation3 + $0x180] sm:$0xff] }
 0x2f1   : > { %v3109_v13 = vadd.f32 %v5779_v4, %v3038_v9  ;;  %v3040_v14 = vld [vmem:[#allocation3 + $0x130] sm:$0xff]  ;;  %v3169_v16 = vmax.f32 %v3105_v5, 0.0  ;;  %v3044_v22 = vld [vmem:[#allocation3 + $0x118] sm:$0xff]  ;;  %v3171_v23 = vmax.f32 %v3107_v10, 0.0  ;;  %v3112_v26 = vadd.f32 %v5779_v4, %v3041_v15  ;;  %v3046_v28 = vld [vmem:[#allocation3 + $0x120] sm:$0xff] }
 0x2f2   : > { %v3170_v17 = vmax.f32 %v3106_v6, 0.0  ;;  %v3111_v19 = vadd.f32 %v5779_v4, %v3040_v14  ;;  %v3043_v21 = vld [vmem:[#allocation3 + $0x110] sm:$0xff]  ;;  %v3172_v24 = vmax.f32 %v3108_v11, 0.0  ;;  %v3045_v27 = vld [vmem:[#allocation3 + $0x98] sm:$0xff]  ;;  %v3174_v30 = vmax.f32 %v3110_v18, 0.0  ;;  %v3048_v38 = vld [vmem:[#allocation3 + $0x108] sm:$0xff] }
 0x2f3   : > { %v3173_v25 = vmax.f32 %v3109_v13, 0.0  ;;  %v3113_v32 = vadd.f32 %v5779_v4, %v3042_v20  ;;  %v3047_v33 = vld [vmem:[#allocation3 + $0x150] sm:$0xff]  ;;  %v3176_v35 = vmax.f32 %v3112_v26, 0.0  ;;  %v3114_v36 = vadd.f32 %v5779_v4, %v3043_v21  ;;  %v3049_v39 = vld [vmem:[#allocation3 + $0x60] sm:$0xff]  ;;  %v3051_v45 = vld [vmem:[#allocation3 + $0x188] sm:$0xff] }
 0x2f4   : > { %v4256_v29 = vpack.c.bf16 %v3170_v17, %v3169_v16  ;;  %v3175_v31 = vmax.f32 %v3111_v19, 0.0  ;;  %v4261_v34 = vpack.c.bf16 %v3172_v24, %v3171_v23  ;;  %v3115_v37 = vadd.f32 %v5779_v4, %v3044_v22  ;;  %v3050_v44 = vld [vmem:[#allocation3 + $0xe0] sm:$0xff]  ;;  %v3052_v50 = vld [vmem:[#allocation3 + $0x138] sm:$0xff]  ;;  %v3055_v61 = vld [vmem:[#allocation3 + $0x1a8] sm:$0xff] }
 0x2f5   : > { %v4266_v40 = vpack.c.bf16 %v3174_v30, %v3173_v25  ;;  %v3177_v41 = vmax.f32 %v3113_v32, 0.0  ;;  %v3116_v42 = vadd.f32 %v5779_v4, %v3045_v27  ;;  %v3117_v43 = vadd.f32 %v5779_v4, %v3046_v28  ;;  %v3053_v55 = vld [vmem:[#allocation3 + $0x140] sm:$0xff]  ;;  %v3056_v2 = vld [vmem:[#allocation3 + $0x1b8] sm:$0xff]  ;;  %v3057_v3 = vld [vmem:[#allocation3 + $0x28] sm:$0xff] }
 0x2f6   : > { %4257 = vst [vmem:[%s5211_s4] sm:$0xff] %v4256_v29   ;;  %4444 = vst [vmem:[%s5211_s4 + $0x8] sm:$0xff] %v4261_v34   ;;  %v4271_v46 = vpack.c.bf16 %v3176_v35, %v3175_v31  ;;  %v3178_v47 = vmax.f32 %v3114_v36, 0.0  ;;  %v3179_v48 = vmax.f32 %v3115_v37, 0.0  ;;  %v3118_v49 = vadd.f32 %v5779_v4, %v3047_v33  ;;  %v3054_v60 = vld [vmem:[#allocation3 + $0x80] sm:$0xff]  ;;  %v3058_v9 = vld [vmem:[#allocation3 + $0x1e8] sm:$0xff] }
 0x2f7   : > { %4445 = vst [vmem:[%s5211_s4 + $0x10] sm:$0xff] %v4266_v40   ;;  %v3180_v51 = vmax.f32 %v3116_v42, 0.0  ;;  %v3181_v52 = vmax.f32 %v3117_v43, 0.0  ;;  %v3119_v53 = vadd.f32 %v5779_v4, %v3048_v38  ;;  %v3120_v54 = vadd.f32 %v5779_v4, %v3049_v39  ;;  %v3059_v10 = vld [vmem:[#allocation3 + $0xf8] sm:$0xff]  ;;  %v3060_v15 = vld [vmem:[#allocation3 + $0x160] sm:$0xff]  ;;  %v3061_v20 = vld [vmem:[#allocation3 + $0x30] sm:$0xff] }
 0x2f8   : > { %4446 = vst [vmem:[%s5211_s4 + $0x18] sm:$0xff] %v4271_v46   ;;  %v4276_v56 = vpack.c.bf16 %v3178_v47, %v3177_v41  ;;  %v3182_v57 = vmax.f32 %v3118_v49, 0.0  ;;  %v3121_v58 = vadd.f32 %v5779_v4, %v3050_v44  ;;  %v3122_v59 = vadd.f32 %v5779_v4, %v3051_v45  ;;  %v3062_v25 = vld [vmem:[#allocation3 + $0x1e0] sm:$0xff]  ;;  %v3064_v31 = vld [vmem:[#allocation3 + $0xf0] sm:$0xff]  ;;  %v3065_v32 = vld [vmem:[#allocation3 + $0x8] sm:$0xff] }
 0x2f9   : > { %v4281_v62 = vpack.c.bf16 %v3180_v51, %v3179_v48  ;;  %v3183_v63 = vmax.f32 %v3119_v53, 0.0  ;;  %v3184_v0 = vmax.f32 %v3120_v54, 0.0  ;;  %v3123_v1 = vadd.f32 %v5779_v4, %v3052_v50  ;;  %v3063_v26 = vld [vmem:[#allocation3] sm:$0xff]  ;;  %v3066_v37 = vld [vmem:[#allocation3 + $0x148] sm:$0xff]  ;;  %v3067_v38 = vld [vmem:[#allocation3 + $0x1d0] sm:$0xff] }
 0x2fa   : > { %4447 = vst [vmem:[%s5211_s4 + $0x20] sm:$0xff] %v4276_v56   ;;  %v4286_v5 = vpack.c.bf16 %v3182_v57, %v3181_v52  ;;  %v3185_v6 = vmax.f32 %v3121_v58, 0.0  ;;  %v3186_v7 = vmax.f32 %v3122_v59, 0.0  ;;  %v3124_v8 = vadd.f32 %v5779_v4, %v3053_v55  ;;  %v3068_v43 = vld [vmem:[#allocation3 + $0x100] sm:$0xff]  ;;  %v3069_v48 = vld [vmem:[#allocation3 + $0xc8] sm:$0xff]  ;;  %v3071_v54 = vld [vmem:[#allocation3 + $0x1f8] sm:$0xff] }
 0x2fb   : > { %4448 = vst [vmem:[%s5211_s4 + $0x28] sm:$0xff] %v4281_v62   ;;  %v4291_v11 = vpack.c.bf16 %v3184_v0, %v3183_v63  ;;  %v3187_v12 = vmax.f32 %v3123_v1, 0.0  ;;  %v3125_v13 = vadd.f32 %v5779_v4, %v3054_v60  ;;  %v3126_v14 = vadd.f32 %v5779_v4, %v3055_v61  ;;  %v3070_v53 = vld [vmem:[#allocation3 + $0x40] sm:$0xff]  ;;  %v3073_v60 = vld [vmem:[#allocation3 + $0x128] sm:$0xff] }
 0x2fc   : > { %4449 = vst [vmem:[%s5211_s4 + $0x30] sm:$0xff] %v4286_v5   ;;  %v4296_v16 = vpack.c.bf16 %v3186_v7, %v3185_v6  ;;  %v3188_v17 = vmax.f32 %v3124_v8, 0.0  ;;  %v3127_v18 = vadd.f32 %v5779_v4, %v3056_v2  ;;  %v3128_v19 = vadd.f32 %v5779_v4, %v3057_v3  ;;  %v3072_v59 = vld [vmem:[#allocation3 + $0x20] sm:$0xff]  ;;  %v3075_v2 = vld [vmem:[#allocation3 + $0x1f0] sm:$0xff]  ;;  %v3076_v8 = vld [vmem:[#allocation3 + $0xe8] sm:$0xff] }
 0x2fd   : > { %4450 = vst [vmem:[%s5211_s4 + $0x38] sm:$0xff] %v4291_v11   ;;  %v3189_v21 = vmax.f32 %v3125_v13, 0.0  ;;  %v3190_v22 = vmax.f32 %v3126_v14, 0.0  ;;  %v3129_v23 = vadd.f32 %v5779_v4, %v3058_v9  ;;  %v3130_v24 = vadd.f32 %v5779_v4, %v3059_v10  ;;  %v3074_v1 = vld [vmem:[#allocation3 + $0x1a0] sm:$0xff]  ;;  %v3077_v13 = vld [vmem:[#allocation3 + $0x78] sm:$0xff] }
 0x2fe   : > { %4451 = vst [vmem:[%s5211_s4 + $0x40] sm:$0xff] %v4296_v16   ;;  %v4301_v27 = vpack.c.bf16 %v3188_v17, %v3187_v12  ;;  %v3191_v28 = vmax.f32 %v3127_v18, 0.0  ;;  %v3192_v29 = vmax.f32 %v3128_v19, 0.0  ;;  %v3131_v30 = vadd.f32 %v5779_v4, %v3060_v15  ;;  %v3078_v18 = vld [vmem:[#allocation3 + $0x70] sm:$0xff] }
 0x2ff   : > { %v4306_v33 = vpack.c.bf16 %v3190_v22, %v3189_v21  ;;  %v3193_v34 = vmax.f32 %v3129_v23, 0.0  ;;  %v3194_v35 = vmax.f32 %v3130_v24, 0.0  ;;  %v3132_v36 = vadd.f32 %v5779_v4, %v3061_v20  ;;  %v3079_v19 = vld [vmem:[#allocation3 + $0x90] sm:$0xff]  ;;  %v3080_v24 = vld [vmem:[#allocation3 + $0x1d8] sm:$0xff] }
 0x300   : > { %4452 = vst [vmem:[%s5211_s4 + $0x48] sm:$0xff] %v4301_v27   ;;  %v4311_v39 = vpack.c.bf16 %v3192_v29, %v3191_v28  ;;  %v3195_v40 = vmax.f32 %v3131_v30, 0.0  ;;  %v3133_v41 = vadd.f32 %v5779_v4, %v3062_v25  ;;  %v3134_v42 = vadd.f32 %v5779_v4, %v3063_v26  ;;  %v3081_v25 = vld [vmem:[#allocation3 + $0xd0] sm:$0xff]  ;;  %v3082_v30 = vld [vmem:[#allocation3 + $0xb8] sm:$0xff] }
 0x301   : > { %4453 = vst [vmem:[%s5211_s4 + $0x50] sm:$0xff] %v4306_v33   ;;  %v4316_v44 = vpack.c.bf16 %v3194_v35, %v3193_v34  ;;  %v3196_v45 = vmax.f32 %v3132_v36, 0.0  ;;  %v3135_v46 = vadd.f32 %v5779_v4, %v3064_v31  ;;  %v3136_v47 = vadd.f32 %v5779_v4, %v3065_v32  ;;  %v3083_v31 = vld [vmem:[#allocation3 + $0x88] sm:$0xff] }
 0x302   : > { %4454 = vst [vmem:[%s5211_s4 + $0x58] sm:$0xff] %v4311_v39   ;;  %v3197_v49 = vmax.f32 %v3133_v41, 0.0  ;;  %v3198_v50 = vmax.f32 %v3134_v42, 0.0  ;;  %v3137_v51 = vadd.f32 %v5779_v4, %v3066_v37  ;;  %v3138_v52 = vadd.f32 %v5779_v4, %v3067_v38  ;;  %v3084_v36 = vld [vmem:[#allocation3 + $0xa8] sm:$0xff] }
 0x303   : > { %4455 = vst [vmem:[%s5211_s4 + $0x60] sm:$0xff] %v4316_v44   ;;  %v4321_v55 = vpack.c.bf16 %v3196_v45, %v3195_v40  ;;  %v3199_v56 = vmax.f32 %v3135_v46, 0.0  ;;  %v3200_v57 = vmax.f32 %v3136_v47, 0.0  ;;  %v3139_v58 = vadd.f32 %v5779_v4, %v3068_v43  ;;  %v3085_v41 = vld [vmem:[#allocation3 + $0x1c8] sm:$0xff]  ;;  %v3086_v46 = vld [vmem:[#allocation3 + $0x170] sm:$0xff]  ;;  %v3087_v47 = vld [vmem:[#allocation3 + $0x178] sm:$0xff] }
 0x304   : > { %v4326_v61 = vpack.c.bf16 %v3198_v50, %v3197_v49  ;;  %v3201_v62 = vmax.f32 %v3137_v51, 0.0  ;;  %v3202_v63 = vmax.f32 %v3138_v52, 0.0  ;;  %v3140_v0 = vadd.f32 %v5779_v4, %v3069_v48  ;;  %v3088_v52 = vld [vmem:[#allocation3 + $0x68] sm:$0xff] }
 0x305   : > { %4456 = vst [vmem:[%s5211_s4 + $0x68] sm:$0xff] %v4321_v55   ;;  %v4331_v3 = vpack.c.bf16 %v3200_v57, %v3199_v56  ;;  %v3203_v5 = vmax.f32 %v3139_v58, 0.0  ;;  %v3141_v6 = vadd.f32 %v5779_v4, %v3070_v53  ;;  %v3142_v7 = vadd.f32 %v5779_v4, %v3071_v54  ;;  %v3089_v53 = vld [vmem:[#allocation3 + $0x190] sm:$0xff]  ;;  %v3090_v58 = vld [vmem:[#allocation3 + $0x198] sm:$0xff] }
 0x306   : > { %4457 = vst [vmem:[%s5211_s4 + $0x70] sm:$0xff] %v4326_v61   ;;  %v4336_v9 = vpack.c.bf16 %v3202_v63, %v3201_v62  ;;  %v3204_v10 = vmax.f32 %v3140_v0, 0.0  ;;  %v3143_v11 = vadd.f32 %v5779_v4, %v3072_v59  ;;  %v3144_v12 = vadd.f32 %v5779_v4, %v3073_v60  ;;  %v3091_v59 = vld [vmem:[#allocation3 + $0x38] sm:$0xff]  ;;  %v3092_v0 = vld [vmem:[#allocation3 + $0xc0] sm:$0xff] }
 0x307   : > { %4458 = vst [vmem:[%s5211_s4 + $0x78] sm:$0xff] %v4331_v3   ;;  %v3205_v14 = vmax.f32 %v3141_v6, 0.0  ;;  %v3206_v15 = vmax.f32 %v3142_v7, 0.0  ;;  %v3145_v16 = vadd.f32 %v5779_v4, %v3074_v1  ;;  %v3146_v17 = vadd.f32 %v5779_v4, %v3075_v2  ;;  %v3093_v6 = vld [vmem:[#allocation3 + $0x1c0] sm:$0xff] }
 0x308   : > { %4459 = vst [vmem:[%s5211_s4 + $0x80] sm:$0xff] %v4336_v9   ;;  %v4341_v20 = vpack.c.bf16 %v3204_v10, %v3203_v5  ;;  %v3207_v21 = vmax.f32 %v3143_v11, 0.0  ;;  %v3208_v22 = vmax.f32 %v3144_v12, 0.0  ;;  %v3147_v23 = vadd.f32 %v5779_v4, %v3076_v8  ;;  %v3094_v11 = vld [vmem:[#allocation3 + $0x158] sm:$0xff]  ;;  %v3095_v12 = vld [vmem:[#allocation3 + $0x10] sm:$0xff] }
 0x309   : > { %v4346_v26 = vpack.c.bf16 %v3206_v15, %v3205_v14  ;;  %v3209_v27 = vmax.f32 %v3145_v16, 0.0  ;;  %v3210_v28 = vmax.f32 %v3146_v17, 0.0  ;;  %v3148_v29 = vadd.f32 %v5779_v4, %v3077_v13  ;;  %v3096_v17 = vld [vmem:[#allocation3 + $0x58] sm:$0xff] }
 0x30a   : > { %4460 = vst [vmem:[%s5211_s4 + $0x88] sm:$0xff] %v4341_v20   ;;  %v4351_v32 = vpack.c.bf16 %v3208_v22, %v3207_v21  ;;  %v3211_v33 = vmax.f32 %v3147_v23, 0.0  ;;  %v3149_v34 = vadd.f32 %v5779_v4, %v3078_v18  ;;  %v3150_v35 = vadd.f32 %v5779_v4, %v3079_v19  ;;  %v3097_v18 = vld [vmem:[#allocation3 + $0xa0] sm:$0xff] }
 0x30b   : > { %4461 = vst [vmem:[%s5211_s4 + $0x90] sm:$0xff] %v4346_v26   ;;  %v4356_v37 = vpack.c.bf16 %v3210_v28, %v3209_v27  ;;  %v3212_v38 = vmax.f32 %v3148_v29, 0.0  ;;  %v3151_v39 = vadd.f32 %v5779_v4, %v3080_v24  ;;  %v3152_v40 = vadd.f32 %v5779_v4, %v3081_v25 }
 0x30c   : > { %4462 = vst [vmem:[%s5211_s4 + $0x98] sm:$0xff] %v4351_v32   ;;  %v3213_v42 = vmax.f32 %v3149_v34, 0.0  ;;  %v3214_v43 = vmax.f32 %v3150_v35, 0.0  ;;  %v3153_v44 = vadd.f32 %v5779_v4, %v3082_v30  ;;  %v3154_v45 = vadd.f32 %v5779_v4, %v3083_v31 }
 0x30d   : > { %4463 = vst [vmem:[%s5211_s4 + $0xa0] sm:$0xff] %v4356_v37   ;;  %v4361_v48 = vpack.c.bf16 %v3212_v38, %v3211_v33  ;;  %v3215_v49 = vmax.f32 %v3151_v39, 0.0  ;;  %v3216_v50 = vmax.f32 %v3152_v40, 0.0  ;;  %v3155_v51 = vadd.f32 %v5779_v4, %v3084_v36 }
 0x30e   : > { %v4366_v54 = vpack.c.bf16 %v3214_v43, %v3213_v42  ;;  %v3217_v55 = vmax.f32 %v3153_v44, 0.0  ;;  %v3218_v56 = vmax.f32 %v3154_v45, 0.0  ;;  %v3156_v57 = vadd.f32 %v5779_v4, %v3085_v41 }
 0x30f   : > { %4464 = vst [vmem:[%s5211_s4 + $0xa8] sm:$0xff] %v4361_v48   ;;  %v4371_v60 = vpack.c.bf16 %v3216_v50, %v3215_v49  ;;  %v3219_v61 = vmax.f32 %v3155_v51, 0.0  ;;  %v3157_v62 = vadd.f32 %v5779_v4, %v3086_v46  ;;  %v3158_v63 = vadd.f32 %v5779_v4, %v3087_v47 }
 0x310   : > { %4465 = vst [vmem:[%s5211_s4 + $0xb0] sm:$0xff] %v4366_v54   ;;  %v4376_v1 = vpack.c.bf16 %v3218_v56, %v3217_v55  ;;  %v3220_v2 = vmax.f32 %v3156_v57, 0.0  ;;  %v3159_v3 = vadd.f32 %v5779_v4, %v3088_v52  ;;  %v3160_v5 = vadd.f32 %v5779_v4, %v3089_v53 }
 0x311   : > { %4466 = vst [vmem:[%s5211_s4 + $0xb8] sm:$0xff] %v4371_v60   ;;  %v3221_v7 = vmax.f32 %v3157_v62, 0.0  ;;  %v3222_v8 = vmax.f32 %v3158_v63, 0.0  ;;  %v3161_v9 = vadd.f32 %v5779_v4, %v3090_v58  ;;  %v3162_v10 = vadd.f32 %v5779_v4, %v3091_v59 }
 0x312   : > { %4467 = vst [vmem:[%s5211_s4 + $0xc0] sm:$0xff] %v4376_v1   ;;  %v4381_v13 = vpack.c.bf16 %v3220_v2, %v3219_v61  ;;  %v3223_v14 = vmax.f32 %v3159_v3, 0.0  ;;  %v3224_v15 = vmax.f32 %v3160_v5, 0.0  ;;  %v3163_v16 = vadd.f32 %v5779_v4, %v3092_v0 }
 0x313   : > { %v4386_v19 = vpack.c.bf16 %v3222_v8, %v3221_v7  ;;  %v3225_v20 = vmax.f32 %v3161_v9, 0.0  ;;  %v3226_v21 = vmax.f32 %v3162_v10, 0.0  ;;  %v3164_v22 = vadd.f32 %v5779_v4, %v3093_v6 }
 0x314   : > { %4468 = vst [vmem:[%s5211_s4 + $0xc8] sm:$0xff] %v4381_v13   ;;  %v4391_v23 = vpack.c.bf16 %v3224_v15, %v3223_v14  ;;  %v3227_v24 = vmax.f32 %v3163_v16, 0.0  ;;  %v3165_v25 = vadd.f32 %v5779_v4, %v3094_v11  ;;  %v3166_v26 = vadd.f32 %v5779_v4, %v3095_v12 }
 0x315   : > { %4469 = vst [vmem:[%s5211_s4 + $0xd0] sm:$0xff] %v4386_v19   ;;  %v4396_v27 = vpack.c.bf16 %v3226_v21, %v3225_v20  ;;  %v3228_v28 = vmax.f32 %v3164_v22, 0.0  ;;  %v3167_v29 = vadd.f32 %v5779_v4, %v3096_v17  ;;  %v3168_v30 = vadd.f32 %v5779_v4, %v3097_v18 }
 0x316   : > { %4470 = vst [vmem:[%s5211_s4 + $0xd8] sm:$0xff] %v4391_v23   ;;  %v3229_v31 = vmax.f32 %v3165_v25, 0.0  ;;  %v3230_v32 = vmax.f32 %v3166_v26, 0.0 }
 0x317   : > { %4471 = vst [vmem:[%s5211_s4 + $0xe0] sm:$0xff] %v4396_v27   ;;  %v4401_v33 = vpack.c.bf16 %v3228_v28, %v3227_v24  ;;  %v3231_v34 = vmax.f32 %v3167_v29, 0.0  ;;  %v3232_v35 = vmax.f32 %v3168_v30, 0.0 }
 0x318   : > { %v4406_v36 = vpack.c.bf16 %v3230_v32, %v3229_v31 }
 0x319   : > { %4472 = vst [vmem:[%s5211_s4 + $0xe8] sm:$0xff] %v4401_v33   ;;  %v4411_v37 = vpack.c.bf16 %v3232_v35, %v3231_v34 }
 0x31a   : > { %4473 = vst [vmem:[%s5211_s4 + $0xf0] sm:$0xff] %v4406_v36  }
 0x31b   : > { %4474 = vst [vmem:[%s5211_s4 + $0xf8] sm:$0xff] %v4411_v37  }
 0x31c PF: > { %s13_s20 = sadd.s32 1, %s4843_s20   ;;  %s5908_s12 = smov %s4815_s13 }
 0x31d   : > { %p10_p12 = scmp.ge.s32.totalorder %s13_s20, 10   ;;  %s5909_s13 = smov %s4932_s28 }
 0x31e   : > { %s5910_s14 = smov %s4831_s17  ;;  %s5911_s15 = smov %s4835_s18 }
 0x31f   : > { %s5912_s16 = smov %s4839_s19  ;;  %s5913_s17 = smov %s5917_s21 }
 0x320   : > { %s5914_s18 = smov %s5921_s22  ;;  %s5915_s19 = smov %s5925_s23 }
 0x321   :  { %12 = sbr.rel (!%p10_p12) target bundleno = 5 (0x5), region = 112 }

// kernel: sgc_forward.11
= control target key start
LH: loop header
LB: loop body
LE: loop exit
PB: predicated region body
PF: predicated region fallthrough
CT: control target
= control target key end

     0   :  { %s3996_s12 = smov 0   ;;  %s3998_s13 = smov 0   ;;  %s4936_s0 = inlined_call_operand.vmem [shape: bf16[1024,1024], index: 0, kind: input, shape index: {}]   ;;  %s4937_s1 = inlined_call_operand.vmem [shape: bf16[1024,128], index: 1, kind: input, shape index: {}]   ;;  %s4938_s2 = inlined_call_operand.vmem [shape: f32[1,128], index: 2, kind: input, shape index: {}]   ;;  %s4939_s3 = inlined_call_operand.vmem [shape: f32[1024,128], index: 3, kind: output, shape index: {}]  }
   0x1   :  { %s4000_s14 = smov 0   ;;  %s4002_s15 = smov 0  }
   0x2   :  { %s4004_s16 = smov 0   ;;  %s4006_s17 = smov 0  }
   0x3   :  { %s4008_s18 = smov 0  }
   0x4 LB: > { %s25_s19 = sadd.s32 1, %s3964_s16  ;;  %s28_s20 = sadd.s32 1, %s3968_s17  ;;  %s3972_s18 = sphi %s4008_s18, %s13_s18   ;;  %s3968_s17 = sphi %s4006_s17, %s4945_s17   ;;  %s3964_s16 = sphi %s4004_s16, %s4944_s16   ;;  %s3960_s15 = sphi %s4002_s15, %s4943_s15   ;;  %s3956_s14 = sphi %s4000_s14, %s4942_s14   ;;  %s3952_s13 = sphi %s3998_s13, %s4941_s13   ;;  %s3948_s12 = sphi %s3996_s12, %s4940_s12  }
   0x5   : > { %p26_p0 = scmp.ge.s32.totalorder %s25_s19, 2  ;;  %p48_p1 = scmp.ne.s32.totalorder %s3952_s13, %s3948_s12 }
   0x6   : > { %p49_p2 = scmp.eq.s32.totalorder %s3972_s18, 0  ;;  %s41_s24 = sadd.s32 1, %s3952_s13 }
   0x7   : > { %s4947_s19 = smov (%p26_p0, %s25_s19), 0  ;;  %s4949_s20 = smov (!%p26_p0, %s28_s20), %s3968_s17 }
   0x8   : > { %p50_p3 = por %p49_p2, %p48_p1  ;;  %p30_p4 = scmp.ge.s32.totalorder %s4949_s20, 2 }
   0x9   : > { %s37_s21 = ssub.s32 %s3964_s16, %s4947_s19  ;;  %p3323_p6 = scmp.ge.s32.totalorder %s3972_s18, 4 }
   0xa   : > { %s4951_s20 = smov (%p30_p4, %s4949_s20), 0 }
   0xb   : > { %s36_s22 = ssub.s32 %s3968_s17, %s4951_s20  ;;  %148 = sbr.rel (%p3323_p6) target bundleno = 87 (0x57), region = 24 }
   0xc   : > { %s38_s23 = sor.u32 %s37_s21, %s36_s22 }
   0xd   : > { %p39_p5 = scmp.eq.s32.totalorder %s38_s23, 0 }
   0xf   : > { %s4047_s25 = scalar_select %p39_p5, %s3952_s13, %s41_s24  }
  0x10   : > { %151 = sbr.rel (!%p50_p3) target bundleno = 87 (0x57), region = 28  ;;  %s153_s26 = sand.u32 (%p50_p3), 1, %s3952_s13  }
  0x11   : > { %s3326_s27 = sshll.u32 (%p50_p3), %s3964_s16, 2  ;;  %s3324_s28 = sshll.u32 (%p50_p3), %s153_s26, 10 }
  0x12   : > { %s3567_s29 = sshll.u32 (%p50_p3), %s3968_s17, 9  ;;  %s4061_s8 = scalar_lea.vmem (%p50_p3), [#allocation4], %s3324_s28 }
  0x13   : > { %s159_s30 = sadd.s32 (%p50_p3), %s3567_s29, %s3326_s27 }
  0x14   : > { %s3328_s4 = sshll.u32 (%p50_p3), %s159_s30, 2 }
  0x15   : > { %s4056_s7 = scalar_lea.vmem %s4936_s0, %s3328_s4 }
  0x16   : > { %v174_v0 = vld [vmem:[%s4056_s7] sm:$0xff]  ;;  %v176_v1 = vld [vmem:[%s4056_s7 + $0x8] sm:$0xff] }
  0x17   : > { %v178_v2 = vld [vmem:[%s4056_s7 + $0x20] sm:$0xff]  ;;  %175 = vst [vmem:[%s4061_s8] sm:$0xff] %v174_v0  ;;  %177 = vst [vmem:[%s4061_s8 + $0x8] sm:$0xff] %v176_v1  ;;  %v180_v3 = vld [vmem:[%s4056_s7 + $0x28] sm:$0xff] }
  0x18   : > { %179 = vst [vmem:[%s4061_s8 + $0x10] sm:$0xff] %v178_v2  ;;  %v182_v4 = vld [vmem:[%s4056_s7 + $0x40] sm:$0xff]  ;;  %v184_v5 = vld [vmem:[%s4056_s7 + $0x48] sm:$0xff]  ;;  %181 = vst [vmem:[%s4061_s8 + $0x18] sm:$0xff] %v180_v3 }
  0x19   : > { %183 = vst [vmem:[%s4061_s8 + $0x20] sm:$0xff] %v182_v4  ;;  %185 = vst [vmem:[%s4061_s8 + $0x28] sm:$0xff] %v184_v5  ;;  %v186_v6 = vld [vmem:[%s4056_s7 + $0x60] sm:$0xff]  ;;  %v188_v7 = vld [vmem:[%s4056_s7 + $0x68] sm:$0xff] }
  0x1a   : > { %v190_v8 = vld [vmem:[%s4056_s7 + $0x80] sm:$0xff]  ;;  %187 = vst [vmem:[%s4061_s8 + $0x30] sm:$0xff] %v186_v6  ;;  %189 = vst [vmem:[%s4061_s8 + $0x38] sm:$0xff] %v188_v7  ;;  %v192_v9 = vld [vmem:[%s4056_s7 + $0x88] sm:$0xff] }
  0x1b   : > { %191 = vst [vmem:[%s4061_s8 + $0x40] sm:$0xff] %v190_v8  ;;  %v194_v10 = vld [vmem:[%s4056_s7 + $0xa0] sm:$0xff]  ;;  %v196_v11 = vld [vmem:[%s4056_s7 + $0xa8] sm:$0xff]  ;;  %193 = vst [vmem:[%s4061_s8 + $0x48] sm:$0xff] %v192_v9 }
  0x1c   : > { %195 = vst [vmem:[%s4061_s8 + $0x50] sm:$0xff] %v194_v10  ;;  %197 = vst [vmem:[%s4061_s8 + $0x58] sm:$0xff] %v196_v11  ;;  %v198_v12 = vld [vmem:[%s4056_s7 + $0xc0] sm:$0xff]  ;;  %v200_v13 = vld [vmem:[%s4056_s7 + $0xc8] sm:$0xff] }
  0x1d   : > { %v202_v14 = vld [vmem:[%s4056_s7 + $0xe0] sm:$0xff]  ;;  %199 = vst [vmem:[%s4061_s8 + $0x60] sm:$0xff] %v198_v12  ;;  %201 = vst [vmem:[%s4061_s8 + $0x68] sm:$0xff] %v200_v13  ;;  %v204_v15 = vld [vmem:[%s4056_s7 + $0xe8] sm:$0xff] }
  0x1e   : > { %203 = vst [vmem:[%s4061_s8 + $0x70] sm:$0xff] %v202_v14  ;;  %v206_v16 = vld [vmem:[%s4056_s7 + $0x100] sm:$0xff]  ;;  %v208_v17 = vld [vmem:[%s4056_s7 + $0x108] sm:$0xff]  ;;  %205 = vst [vmem:[%s4061_s8 + $0x78] sm:$0xff] %v204_v15 }
  0x1f   : > { %207 = vst [vmem:[%s4061_s8 + $0x80] sm:$0xff] %v206_v16  ;;  %209 = vst [vmem:[%s4061_s8 + $0x88] sm:$0xff] %v208_v17  ;;  %v210_v18 = vld [vmem:[%s4056_s7 + $0x120] sm:$0xff]  ;;  %v212_v19 = vld [vmem:[%s4056_s7 + $0x128] sm:$0xff] }
  0x20   : > { %v214_v20 = vld [vmem:[%s4056_s7 + $0x140] sm:$0xff]  ;;  %211 = vst [vmem:[%s4061_s8 + $0x90] sm:$0xff] %v210_v18  ;;  %213 = vst [vmem:[%s4061_s8 + $0x98] sm:$0xff] %v212_v19  ;;  %v216_v21 = vld [vmem:[%s4056_s7 + $0x148] sm:$0xff] }
  0x21   : > { %215 = vst [vmem:[%s4061_s8 + $0xa0] sm:$0xff] %v214_v20  ;;  %v218_v22 = vld [vmem:[%s4056_s7 + $0x160] sm:$0xff]  ;;  %v220_v23 = vld [vmem:[%s4056_s7 + $0x168] sm:$0xff]  ;;  %217 = vst [vmem:[%s4061_s8 + $0xa8] sm:$0xff] %v216_v21 }
  0x22   : > { %219 = vst [vmem:[%s4061_s8 + $0xb0] sm:$0xff] %v218_v22  ;;  %221 = vst [vmem:[%s4061_s8 + $0xb8] sm:$0xff] %v220_v23  ;;  %v222_v24 = vld [vmem:[%s4056_s7 + $0x180] sm:$0xff]  ;;  %v224_v25 = vld [vmem:[%s4056_s7 + $0x188] sm:$0xff] }
  0x23   : > { %v226_v26 = vld [vmem:[%s4056_s7 + $0x1a0] sm:$0xff]  ;;  %223 = vst [vmem:[%s4061_s8 + $0xc0] sm:$0xff] %v222_v24  ;;  %225 = vst [vmem:[%s4061_s8 + $0xc8] sm:$0xff] %v224_v25  ;;  %v228_v27 = vld [vmem:[%s4056_s7 + $0x1a8] sm:$0xff] }
  0x24   : > { %227 = vst [vmem:[%s4061_s8 + $0xd0] sm:$0xff] %v226_v26  ;;  %v230_v28 = vld [vmem:[%s4056_s7 + $0x1c0] sm:$0xff]  ;;  %v232_v29 = vld [vmem:[%s4056_s7 + $0x1c8] sm:$0xff]  ;;  %229 = vst [vmem:[%s4061_s8 + $0xd8] sm:$0xff] %v228_v27 }
  0x25   : > { %231 = vst [vmem:[%s4061_s8 + $0xe0] sm:$0xff] %v230_v28  ;;  %233 = vst [vmem:[%s4061_s8 + $0xe8] sm:$0xff] %v232_v29  ;;  %v234_v30 = vld [vmem:[%s4056_s7 + $0x1e0] sm:$0xff]  ;;  %v236_v31 = vld [vmem:[%s4056_s7 + $0x1e8] sm:$0xff] }
  0x26   : > { %v238_v32 = vld [vmem:[%s4056_s7 + $0x200] sm:$0xff]  ;;  %235 = vst [vmem:[%s4061_s8 + $0xf0] sm:$0xff] %v234_v30  ;;  %237 = vst [vmem:[%s4061_s8 + $0xf8] sm:$0xff] %v236_v31  ;;  %v240_v33 = vld [vmem:[%s4056_s7 + $0x208] sm:$0xff] }
  0x27   : > { %239 = vst [vmem:[%s4061_s8 + $0x100] sm:$0xff] %v238_v32  ;;  %v242_v34 = vld [vmem:[%s4056_s7 + $0x220] sm:$0xff]  ;;  %v244_v35 = vld [vmem:[%s4056_s7 + $0x228] sm:$0xff]  ;;  %241 = vst [vmem:[%s4061_s8 + $0x108] sm:$0xff] %v240_v33 }
  0x28   : > { %243 = vst [vmem:[%s4061_s8 + $0x110] sm:$0xff] %v242_v34  ;;  %245 = vst [vmem:[%s4061_s8 + $0x118] sm:$0xff] %v244_v35  ;;  %v246_v36 = vld [vmem:[%s4056_s7 + $0x240] sm:$0xff]  ;;  %v248_v37 = vld [vmem:[%s4056_s7 + $0x248] sm:$0xff] }
  0x29   : > { %v250_v38 = vld [vmem:[%s4056_s7 + $0x260] sm:$0xff]  ;;  %247 = vst [vmem:[%s4061_s8 + $0x120] sm:$0xff] %v246_v36  ;;  %249 = vst [vmem:[%s4061_s8 + $0x128] sm:$0xff] %v248_v37  ;;  %v252_v39 = vld [vmem:[%s4056_s7 + $0x268] sm:$0xff] }
  0x2a   : > { %251 = vst [vmem:[%s4061_s8 + $0x130] sm:$0xff] %v250_v38  ;;  %v254_v40 = vld [vmem:[%s4056_s7 + $0x280] sm:$0xff]  ;;  %v256_v41 = vld [vmem:[%s4056_s7 + $0x288] sm:$0xff]  ;;  %253 = vst [vmem:[%s4061_s8 + $0x138] sm:$0xff] %v252_v39 }
  0x2b   : > { %255 = vst [vmem:[%s4061_s8 + $0x140] sm:$0xff] %v254_v40  ;;  %257 = vst [vmem:[%s4061_s8 + $0x148] sm:$0xff] %v256_v41  ;;  %v258_v42 = vld [vmem:[%s4056_s7 + $0x2a0] sm:$0xff]  ;;  %v260_v43 = vld [vmem:[%s4056_s7 + $0x2a8] sm:$0xff] }
  0x2c   : > { %v262_v44 = vld [vmem:[%s4056_s7 + $0x2c0] sm:$0xff]  ;;  %259 = vst [vmem:[%s4061_s8 + $0x150] sm:$0xff] %v258_v42  ;;  %261 = vst [vmem:[%s4061_s8 + $0x158] sm:$0xff] %v260_v43  ;;  %v264_v45 = vld [vmem:[%s4056_s7 + $0x2c8] sm:$0xff] }
  0x2d   : > { %263 = vst [vmem:[%s4061_s8 + $0x160] sm:$0xff] %v262_v44  ;;  %v266_v46 = vld [vmem:[%s4056_s7 + $0x2e0] sm:$0xff]  ;;  %v268_v47 = vld [vmem:[%s4056_s7 + $0x2e8] sm:$0xff]  ;;  %265 = vst [vmem:[%s4061_s8 + $0x168] sm:$0xff] %v264_v45 }
  0x2e   : > { %267 = vst [vmem:[%s4061_s8 + $0x170] sm:$0xff] %v266_v46  ;;  %269 = vst [vmem:[%s4061_s8 + $0x178] sm:$0xff] %v268_v47  ;;  %v270_v48 = vld [vmem:[%s4056_s7 + $0x300] sm:$0xff]  ;;  %v272_v49 = vld [vmem:[%s4056_s7 + $0x308] sm:$0xff] }
  0x2f   : > { %v274_v50 = vld [vmem:[%s4056_s7 + $0x320] sm:$0xff]  ;;  %271 = vst [vmem:[%s4061_s8 + $0x180] sm:$0xff] %v270_v48  ;;  %273 = vst [vmem:[%s4061_s8 + $0x188] sm:$0xff] %v272_v49  ;;  %v276_v51 = vld [vmem:[%s4056_s7 + $0x328] sm:$0xff] }
  0x30   : > { %275 = vst [vmem:[%s4061_s8 + $0x190] sm:$0xff] %v274_v50  ;;  %v278_v52 = vld [vmem:[%s4056_s7 + $0x340] sm:$0xff]  ;;  %v280_v53 = vld [vmem:[%s4056_s7 + $0x348] sm:$0xff]  ;;  %277 = vst [vmem:[%s4061_s8 + $0x198] sm:$0xff] %v276_v51 }
  0x31   : > { %279 = vst [vmem:[%s4061_s8 + $0x1a0] sm:$0xff] %v278_v52  ;;  %281 = vst [vmem:[%s4061_s8 + $0x1a8] sm:$0xff] %v280_v53  ;;  %v282_v54 = vld [vmem:[%s4056_s7 + $0x360] sm:$0xff]  ;;  %v284_v55 = vld [vmem:[%s4056_s7 + $0x368] sm:$0xff] }
  0x32   : > { %v286_v56 = vld [vmem:[%s4056_s7 + $0x380] sm:$0xff]  ;;  %283 = vst [vmem:[%s4061_s8 + $0x1b0] sm:$0xff] %v282_v54  ;;  %285 = vst [vmem:[%s4061_s8 + $0x1b8] sm:$0xff] %v284_v55  ;;  %v288_v57 = vld [vmem:[%s4056_s7 + $0x388] sm:$0xff] }
  0x33   : > { %287 = vst [vmem:[%s4061_s8 + $0x1c0] sm:$0xff] %v286_v56  ;;  %v290_v58 = vld [vmem:[%s4056_s7 + $0x3a0] sm:$0xff]  ;;  %v292_v59 = vld [vmem:[%s4056_s7 + $0x3a8] sm:$0xff]  ;;  %289 = vst [vmem:[%s4061_s8 + $0x1c8] sm:$0xff] %v288_v57 }
  0x34   : > { %291 = vst [vmem:[%s4061_s8 + $0x1d0] sm:$0xff] %v290_v58  ;;  %293 = vst [vmem:[%s4061_s8 + $0x1d8] sm:$0xff] %v292_v59  ;;  %v294_v60 = vld [vmem:[%s4056_s7 + $0x3c0] sm:$0xff]  ;;  %v296_v61 = vld [vmem:[%s4056_s7 + $0x3c8] sm:$0xff] }
  0x35   : > { %v298_v62 = vld [vmem:[%s4056_s7 + $0x3e0] sm:$0xff]  ;;  %295 = vst [vmem:[%s4061_s8 + $0x1e0] sm:$0xff] %v294_v60  ;;  %297 = vst [vmem:[%s4061_s8 + $0x1e8] sm:$0xff] %v296_v61  ;;  %v300_v63 = vld [vmem:[%s4056_s7 + $0x3e8] sm:$0xff] }
  0x36   : > { %299 = vst [vmem:[%s4061_s8 + $0x1f0] sm:$0xff] %v298_v62  ;;  %v302_v0 = vld [vmem:[%s4056_s7 + $0x400] sm:$0xff]  ;;  %v304_v1 = vld [vmem:[%s4056_s7 + $0x408] sm:$0xff]  ;;  %301 = vst [vmem:[%s4061_s8 + $0x1f8] sm:$0xff] %v300_v63 }
  0x37   : > { %303 = vst [vmem:[%s4061_s8 + $0x200] sm:$0xff] %v302_v0  ;;  %305 = vst [vmem:[%s4061_s8 + $0x208] sm:$0xff] %v304_v1  ;;  %v306_v2 = vld [vmem:[%s4056_s7 + $0x420] sm:$0xff]  ;;  %v308_v3 = vld [vmem:[%s4056_s7 + $0x428] sm:$0xff] }
  0x38   : > { %v310_v4 = vld [vmem:[%s4056_s7 + $0x440] sm:$0xff]  ;;  %307 = vst [vmem:[%s4061_s8 + $0x210] sm:$0xff] %v306_v2  ;;  %309 = vst [vmem:[%s4061_s8 + $0x218] sm:$0xff] %v308_v3  ;;  %v312_v5 = vld [vmem:[%s4056_s7 + $0x448] sm:$0xff] }
  0x39   : > { %311 = vst [vmem:[%s4061_s8 + $0x220] sm:$0xff] %v310_v4  ;;  %v314_v6 = vld [vmem:[%s4056_s7 + $0x460] sm:$0xff]  ;;  %v316_v7 = vld [vmem:[%s4056_s7 + $0x468] sm:$0xff]  ;;  %313 = vst [vmem:[%s4061_s8 + $0x228] sm:$0xff] %v312_v5 }
  0x3a   : > { %315 = vst [vmem:[%s4061_s8 + $0x230] sm:$0xff] %v314_v6  ;;  %317 = vst [vmem:[%s4061_s8 + $0x238] sm:$0xff] %v316_v7  ;;  %v318_v8 = vld [vmem:[%s4056_s7 + $0x480] sm:$0xff]  ;;  %v320_v9 = vld [vmem:[%s4056_s7 + $0x488] sm:$0xff] }
  0x3b   : > { %v322_v10 = vld [vmem:[%s4056_s7 + $0x4a0] sm:$0xff]  ;;  %319 = vst [vmem:[%s4061_s8 + $0x240] sm:$0xff] %v318_v8  ;;  %321 = vst [vmem:[%s4061_s8 + $0x248] sm:$0xff] %v320_v9  ;;  %v324_v11 = vld [vmem:[%s4056_s7 + $0x4a8] sm:$0xff] }
  0x3c   : > { %323 = vst [vmem:[%s4061_s8 + $0x250] sm:$0xff] %v322_v10  ;;  %v326_v12 = vld [vmem:[%s4056_s7 + $0x4c0] sm:$0xff]  ;;  %v328_v13 = vld [vmem:[%s4056_s7 + $0x4c8] sm:$0xff]  ;;  %325 = vst [vmem:[%s4061_s8 + $0x258] sm:$0xff] %v324_v11 }
  0x3d   : > { %327 = vst [vmem:[%s4061_s8 + $0x260] sm:$0xff] %v326_v12  ;;  %329 = vst [vmem:[%s4061_s8 + $0x268] sm:$0xff] %v328_v13  ;;  %v330_v14 = vld [vmem:[%s4056_s7 + $0x4e0] sm:$0xff]  ;;  %v332_v15 = vld [vmem:[%s4056_s7 + $0x4e8] sm:$0xff] }
  0x3e   : > { %v334_v16 = vld [vmem:[%s4056_s7 + $0x500] sm:$0xff]  ;;  %331 = vst [vmem:[%s4061_s8 + $0x270] sm:$0xff] %v330_v14  ;;  %333 = vst [vmem:[%s4061_s8 + $0x278] sm:$0xff] %v332_v15  ;;  %v336_v17 = vld [vmem:[%s4056_s7 + $0x508] sm:$0xff] }
  0x3f   : > { %335 = vst [vmem:[%s4061_s8 + $0x280] sm:$0xff] %v334_v16  ;;  %v338_v18 = vld [vmem:[%s4056_s7 + $0x520] sm:$0xff]  ;;  %v340_v19 = vld [vmem:[%s4056_s7 + $0x528] sm:$0xff]  ;;  %337 = vst [vmem:[%s4061_s8 + $0x288] sm:$0xff] %v336_v17 }
  0x40   : > { %339 = vst [vmem:[%s4061_s8 + $0x290] sm:$0xff] %v338_v18  ;;  %341 = vst [vmem:[%s4061_s8 + $0x298] sm:$0xff] %v340_v19  ;;  %v342_v20 = vld [vmem:[%s4056_s7 + $0x540] sm:$0xff]  ;;  %v344_v21 = vld [vmem:[%s4056_s7 + $0x548] sm:$0xff] }
  0x41   : > { %v346_v22 = vld [vmem:[%s4056_s7 + $0x560] sm:$0xff]  ;;  %343 = vst [vmem:[%s4061_s8 + $0x2a0] sm:$0xff] %v342_v20  ;;  %345 = vst [vmem:[%s4061_s8 + $0x2a8] sm:$0xff] %v344_v21  ;;  %v348_v23 = vld [vmem:[%s4056_s7 + $0x568] sm:$0xff] }
  0x42   : > { %347 = vst [vmem:[%s4061_s8 + $0x2b0] sm:$0xff] %v346_v22  ;;  %v350_v24 = vld [vmem:[%s4056_s7 + $0x580] sm:$0xff]  ;;  %v352_v25 = vld [vmem:[%s4056_s7 + $0x588] sm:$0xff]  ;;  %349 = vst [vmem:[%s4061_s8 + $0x2b8] sm:$0xff] %v348_v23 }
  0x43   : > { %351 = vst [vmem:[%s4061_s8 + $0x2c0] sm:$0xff] %v350_v24  ;;  %353 = vst [vmem:[%s4061_s8 + $0x2c8] sm:$0xff] %v352_v25  ;;  %v354_v26 = vld [vmem:[%s4056_s7 + $0x5a0] sm:$0xff]  ;;  %v356_v27 = vld [vmem:[%s4056_s7 + $0x5a8] sm:$0xff] }
  0x44   : > { %v358_v28 = vld [vmem:[%s4056_s7 + $0x5c0] sm:$0xff]  ;;  %355 = vst [vmem:[%s4061_s8 + $0x2d0] sm:$0xff] %v354_v26  ;;  %357 = vst [vmem:[%s4061_s8 + $0x2d8] sm:$0xff] %v356_v27  ;;  %v360_v29 = vld [vmem:[%s4056_s7 + $0x5c8] sm:$0xff] }
  0x45   : > { %359 = vst [vmem:[%s4061_s8 + $0x2e0] sm:$0xff] %v358_v28  ;;  %v362_v30 = vld [vmem:[%s4056_s7 + $0x5e0] sm:$0xff]  ;;  %v364_v31 = vld [vmem:[%s4056_s7 + $0x5e8] sm:$0xff]  ;;  %361 = vst [vmem:[%s4061_s8 + $0x2e8] sm:$0xff] %v360_v29 }
  0x46   : > { %363 = vst [vmem:[%s4061_s8 + $0x2f0] sm:$0xff] %v362_v30  ;;  %365 = vst [vmem:[%s4061_s8 + $0x2f8] sm:$0xff] %v364_v31  ;;  %v366_v32 = vld [vmem:[%s4056_s7 + $0x600] sm:$0xff]  ;;  %v368_v33 = vld [vmem:[%s4056_s7 + $0x608] sm:$0xff] }
  0x47   : > { %v370_v34 = vld [vmem:[%s4056_s7 + $0x620] sm:$0xff]  ;;  %367 = vst [vmem:[%s4061_s8 + $0x300] sm:$0xff] %v366_v32  ;;  %369 = vst [vmem:[%s4061_s8 + $0x308] sm:$0xff] %v368_v33  ;;  %v372_v35 = vld [vmem:[%s4056_s7 + $0x628] sm:$0xff] }
  0x48   : > { %371 = vst [vmem:[%s4061_s8 + $0x310] sm:$0xff] %v370_v34  ;;  %v374_v36 = vld [vmem:[%s4056_s7 + $0x640] sm:$0xff]  ;;  %v376_v37 = vld [vmem:[%s4056_s7 + $0x648] sm:$0xff]  ;;  %373 = vst [vmem:[%s4061_s8 + $0x318] sm:$0xff] %v372_v35 }
  0x49   : > { %375 = vst [vmem:[%s4061_s8 + $0x320] sm:$0xff] %v374_v36  ;;  %377 = vst [vmem:[%s4061_s8 + $0x328] sm:$0xff] %v376_v37  ;;  %v378_v38 = vld [vmem:[%s4056_s7 + $0x660] sm:$0xff]  ;;  %v380_v39 = vld [vmem:[%s4056_s7 + $0x668] sm:$0xff] }
  0x4a   : > { %v382_v40 = vld [vmem:[%s4056_s7 + $0x680] sm:$0xff]  ;;  %379 = vst [vmem:[%s4061_s8 + $0x330] sm:$0xff] %v378_v38  ;;  %381 = vst [vmem:[%s4061_s8 + $0x338] sm:$0xff] %v380_v39  ;;  %v384_v41 = vld [vmem:[%s4056_s7 + $0x688] sm:$0xff] }
  0x4b   : > { %383 = vst [vmem:[%s4061_s8 + $0x340] sm:$0xff] %v382_v40  ;;  %v386_v42 = vld [vmem:[%s4056_s7 + $0x6a0] sm:$0xff]  ;;  %v388_v43 = vld [vmem:[%s4056_s7 + $0x6a8] sm:$0xff]  ;;  %385 = vst [vmem:[%s4061_s8 + $0x348] sm:$0xff] %v384_v41 }
  0x4c   : > { %387 = vst [vmem:[%s4061_s8 + $0x350] sm:$0xff] %v386_v42  ;;  %389 = vst [vmem:[%s4061_s8 + $0x358] sm:$0xff] %v388_v43  ;;  %v390_v44 = vld [vmem:[%s4056_s7 + $0x6c0] sm:$0xff]  ;;  %v392_v45 = vld [vmem:[%s4056_s7 + $0x6c8] sm:$0xff] }
  0x4d   : > { %v394_v46 = vld [vmem:[%s4056_s7 + $0x6e0] sm:$0xff]  ;;  %391 = vst [vmem:[%s4061_s8 + $0x360] sm:$0xff] %v390_v44  ;;  %393 = vst [vmem:[%s4061_s8 + $0x368] sm:$0xff] %v392_v45  ;;  %v396_v47 = vld [vmem:[%s4056_s7 + $0x6e8] sm:$0xff] }
  0x4e   : > { %395 = vst [vmem:[%s4061_s8 + $0x370] sm:$0xff] %v394_v46  ;;  %v398_v48 = vld [vmem:[%s4056_s7 + $0x700] sm:$0xff]  ;;  %v400_v49 = vld [vmem:[%s4056_s7 + $0x708] sm:$0xff]  ;;  %397 = vst [vmem:[%s4061_s8 + $0x378] sm:$0xff] %v396_v47 }
  0x4f   : > { %399 = vst [vmem:[%s4061_s8 + $0x380] sm:$0xff] %v398_v48  ;;  %401 = vst [vmem:[%s4061_s8 + $0x388] sm:$0xff] %v400_v49  ;;  %v402_v50 = vld [vmem:[%s4056_s7 + $0x720] sm:$0xff]  ;;  %v404_v51 = vld [vmem:[%s4056_s7 + $0x728] sm:$0xff] }
  0x50   : > { %v406_v52 = vld [vmem:[%s4056_s7 + $0x740] sm:$0xff]  ;;  %403 = vst [vmem:[%s4061_s8 + $0x390] sm:$0xff] %v402_v50  ;;  %405 = vst [vmem:[%s4061_s8 + $0x398] sm:$0xff] %v404_v51  ;;  %v408_v53 = vld [vmem:[%s4056_s7 + $0x748] sm:$0xff] }
  0x51   : > { %407 = vst [vmem:[%s4061_s8 + $0x3a0] sm:$0xff] %v406_v52  ;;  %v410_v54 = vld [vmem:[%s4056_s7 + $0x760] sm:$0xff]  ;;  %v412_v55 = vld [vmem:[%s4056_s7 + $0x768] sm:$0xff]  ;;  %409 = vst [vmem:[%s4061_s8 + $0x3a8] sm:$0xff] %v408_v53 }
  0x52   : > { %411 = vst [vmem:[%s4061_s8 + $0x3b0] sm:$0xff] %v410_v54  ;;  %413 = vst [vmem:[%s4061_s8 + $0x3b8] sm:$0xff] %v412_v55  ;;  %v414_v56 = vld [vmem:[%s4056_s7 + $0x780] sm:$0xff]  ;;  %v416_v57 = vld [vmem:[%s4056_s7 + $0x788] sm:$0xff] }
  0x53   : > { %v418_v58 = vld [vmem:[%s4056_s7 + $0x7a0] sm:$0xff]  ;;  %415 = vst [vmem:[%s4061_s8 + $0x3c0] sm:$0xff] %v414_v56  ;;  %417 = vst [vmem:[%s4061_s8 + $0x3c8] sm:$0xff] %v416_v57  ;;  %v420_v59 = vld [vmem:[%s4056_s7 + $0x7a8] sm:$0xff] }
  0x54   : > { %419 = vst [vmem:[%s4061_s8 + $0x3d0] sm:$0xff] %v418_v58  ;;  %v422_v60 = vld [vmem:[%s4056_s7 + $0x7c0] sm:$0xff]  ;;  %v424_v61 = vld [vmem:[%s4056_s7 + $0x7c8] sm:$0xff]  ;;  %421 = vst [vmem:[%s4061_s8 + $0x3d8] sm:$0xff] %v420_v59 }
  0x55   : > { %423 = vst [vmem:[%s4061_s8 + $0x3e0] sm:$0xff] %v422_v60  ;;  %425 = vst [vmem:[%s4061_s8 + $0x3e8] sm:$0xff] %v424_v61  ;;  %v426_v62 = vld [vmem:[%s4056_s7 + $0x7e0] sm:$0xff]  ;;  %v428_v63 = vld [vmem:[%s4056_s7 + $0x7e8] sm:$0xff] }
  0x56   : > { %427 = vst [vmem:[%s4061_s8 + $0x3f0] sm:$0xff] %v426_v62  ;;  %429 = vst [vmem:[%s4061_s8 + $0x3f8] sm:$0xff] %v428_v63 }
  0x57 PF: > { %p3329_p7 = scmp.ge.s32.totalorder %s3972_s18, 1  ;;  %p434_p8 = scmp.lt.s32.totalorder %s3972_s18, 5 }
  0x59   : > { %p435_p9 = pnand %p3329_p7, %p434_p8 }
  0x5a   : > { %s441_s9 = sand.u32 (!%p435_p9), 1, %s3948_s12   ;;  %s3331_s10 = sshll.u32 (!%p435_p9), %s3960_s15, 6 }
  0x5b   : > { %438 = sbr.rel (%p435_p9) target bundleno = 729 (0x2d9), region = 51  ;;  %s3330_s11 = sshll.u32 (!%p435_p9), %s441_s9, 10 }
  0x5c   : > { %p467_p10 = scmp.lt.s32.totalorder (!%p435_p9), %s3331_s10, 127  ;;  %p474_p11 = scmp.eq.s32.totalorder (!%p435_p9), %s3960_s15, 0 }
  0x5d   : > { %p477_p12 = scmp.eq.s32.totalorder (!%p435_p9), %s3956_s14, 0  ;;  %s4327_s26 = scalar_lea.vmem (!%p435_p9), [#allocation4], %s3330_s11 }
  0x5f   : > { %p478_p13 = pnand (!%p435_p9), %p477_p12, %p474_p11 }
  0x60   : > { %s4953_s10 = smov (!%p467_p10, %s3331_s10), 127 }
  0x61   : > { %s3332_s21 = sshll.u32 %s4953_s10, 3  ;;  %481 = sbr.rel (%p478_p13) target bundleno = 135 (0x87), region = 59 }
  0x62   : > { %s4325_s24 = scalar_lea.vmem %s4939_s3, %s3332_s21 }
  0x66   : > { %v482_v0 = vld [vmem:[%s4937_s1] sm:$0xff]   ;;  %v484_v1 = vld [vmem:[%s4937_s1 + $0x8] sm:$0xff]   ;;  %v486_v2 = vld [vmem:[%s4937_s1 + $0x10] sm:$0xff]  }
  0x67   : > { %610 = vst [vmem:[#allocation2] sm:$0xff] %v482_v0   ;;  %612 = vst [vmem:[#allocation2 + $0x8] sm:$0xff] %v484_v1   ;;  %v488_v3 = vld [vmem:[%s4937_s1 + $0x18] sm:$0xff]   ;;  %v490_v4 = vld [vmem:[%s4937_s1 + $0x20] sm:$0xff]  }
  0x68   : > { %614 = vst [vmem:[#allocation2 + $0x10] sm:$0xff] %v486_v2   ;;  %v492_v5 = vld [vmem:[%s4937_s1 + $0x28] sm:$0xff]   ;;  %616 = vst [vmem:[#allocation2 + $0x18] sm:$0xff] %v488_v3   ;;  %v494_v6 = vld [vmem:[%s4937_s1 + $0x30] sm:$0xff]  }
  0x69   : > { %618 = vst [vmem:[#allocation2 + $0x20] sm:$0xff] %v490_v4   ;;  %620 = vst [vmem:[#allocation2 + $0x28] sm:$0xff] %v492_v5   ;;  %v496_v7 = vld [vmem:[%s4937_s1 + $0x38] sm:$0xff]   ;;  %v498_v8 = vld [vmem:[%s4937_s1 + $0x40] sm:$0xff]  }
  0x6a   : > { %622 = vst [vmem:[#allocation2 + $0x30] sm:$0xff] %v494_v6   ;;  %624 = vst [vmem:[#allocation2 + $0x38] sm:$0xff] %v496_v7   ;;  %v500_v9 = vld [vmem:[%s4937_s1 + $0x48] sm:$0xff]   ;;  %v502_v10 = vld [vmem:[%s4937_s1 + $0x50] sm:$0xff]  }
  0x6b   : > { %626 = vst [vmem:[#allocation2 + $0x40] sm:$0xff] %v498_v8   ;;  %v504_v11 = vld [vmem:[%s4937_s1 + $0x58] sm:$0xff]   ;;  %628 = vst [vmem:[#allocation2 + $0x48] sm:$0xff] %v500_v9   ;;  %v506_v12 = vld [vmem:[%s4937_s1 + $0x60] sm:$0xff]  }
  0x6c   : > { %630 = vst [vmem:[#allocation2 + $0x50] sm:$0xff] %v502_v10   ;;  %632 = vst [vmem:[#allocation2 + $0x58] sm:$0xff] %v504_v11   ;;  %v508_v13 = vld [vmem:[%s4937_s1 + $0x68] sm:$0xff]   ;;  %v510_v14 = vld [vmem:[%s4937_s1 + $0x70] sm:$0xff]  }
  0x6d   : > { %634 = vst [vmem:[#allocation2 + $0x60] sm:$0xff] %v506_v12   ;;  %636 = vst [vmem:[#allocation2 + $0x68] sm:$0xff] %v508_v13   ;;  %v512_v15 = vld [vmem:[%s4937_s1 + $0x78] sm:$0xff]   ;;  %v514_v16 = vld [vmem:[%s4937_s1 + $0x80] sm:$0xff]  }
  0x6e   : > { %638 = vst [vmem:[#allocation2 + $0x70] sm:$0xff] %v510_v14   ;;  %v516_v17 = vld [vmem:[%s4937_s1 + $0x88] sm:$0xff]   ;;  %640 = vst [vmem:[#allocation2 + $0x78] sm:$0xff] %v512_v15   ;;  %v518_v18 = vld [vmem:[%s4937_s1 + $0x90] sm:$0xff]  }
  0x6f   : > { %642 = vst [vmem:[#allocation2 + $0x80] sm:$0xff] %v514_v16   ;;  %644 = vst [vmem:[#allocation2 + $0x88] sm:$0xff] %v516_v17   ;;  %v520_v19 = vld [vmem:[%s4937_s1 + $0x98] sm:$0xff]   ;;  %v522_v20 = vld [vmem:[%s4937_s1 + $0xa0] sm:$0xff]  }
  0x70   : > { %646 = vst [vmem:[#allocation2 + $0x90] sm:$0xff] %v518_v18   ;;  %648 = vst [vmem:[#allocation2 + $0x98] sm:$0xff] %v520_v19   ;;  %v524_v21 = vld [vmem:[%s4937_s1 + $0xa8] sm:$0xff]   ;;  %v526_v22 = vld [vmem:[%s4937_s1 + $0xb0] sm:$0xff]  }
  0x71   : > { %650 = vst [vmem:[#allocation2 + $0xa0] sm:$0xff] %v522_v20   ;;  %v528_v23 = vld [vmem:[%s4937_s1 + $0xb8] sm:$0xff]   ;;  %652 = vst [vmem:[#allocation2 + $0xa8] sm:$0xff] %v524_v21   ;;  %v530_v24 = vld [vmem:[%s4937_s1 + $0xc0] sm:$0xff]  }
  0x72   : > { %654 = vst [vmem:[#allocation2 + $0xb0] sm:$0xff] %v526_v22   ;;  %656 = vst [vmem:[#allocation2 + $0xb8] sm:$0xff] %v528_v23   ;;  %v532_v25 = vld [vmem:[%s4937_s1 + $0xc8] sm:$0xff]   ;;  %v534_v26 = vld [vmem:[%s4937_s1 + $0xd0] sm:$0xff]  }
  0x73   : > { %658 = vst [vmem:[#allocation2 + $0xc0] sm:$0xff] %v530_v24   ;;  %660 = vst [vmem:[#allocation2 + $0xc8] sm:$0xff] %v532_v25   ;;  %v536_v27 = vld [vmem:[%s4937_s1 + $0xd8] sm:$0xff]   ;;  %v538_v28 = vld [vmem:[%s4937_s1 + $0xe0] sm:$0xff]  }
  0x74   : > { %662 = vst [vmem:[#allocation2 + $0xd0] sm:$0xff] %v534_v26   ;;  %v540_v29 = vld [vmem:[%s4937_s1 + $0xe8] sm:$0xff]   ;;  %664 = vst [vmem:[#allocation2 + $0xd8] sm:$0xff] %v536_v27   ;;  %v542_v30 = vld [vmem:[%s4937_s1 + $0xf0] sm:$0xff]  }
  0x75   : > { %666 = vst [vmem:[#allocation2 + $0xe0] sm:$0xff] %v538_v28   ;;  %668 = vst [vmem:[#allocation2 + $0xe8] sm:$0xff] %v540_v29   ;;  %v544_v31 = vld [vmem:[%s4937_s1 + $0xf8] sm:$0xff]   ;;  %v546_v32 = vld [vmem:[%s4937_s1 + $0x100] sm:$0xff]  }
  0x76   : > { %670 = vst [vmem:[#allocation2 + $0xf0] sm:$0xff] %v542_v30   ;;  %672 = vst [vmem:[#allocation2 + $0xf8] sm:$0xff] %v544_v31   ;;  %v548_v33 = vld [vmem:[%s4937_s1 + $0x108] sm:$0xff]   ;;  %v550_v34 = vld [vmem:[%s4937_s1 + $0x110] sm:$0xff]  }
  0x77   : > { %674 = vst [vmem:[#allocation2 + $0x100] sm:$0xff] %v546_v32   ;;  %v552_v35 = vld [vmem:[%s4937_s1 + $0x118] sm:$0xff]   ;;  %676 = vst [vmem:[#allocation2 + $0x108] sm:$0xff] %v548_v33   ;;  %v554_v36 = vld [vmem:[%s4937_s1 + $0x120] sm:$0xff]  }
  0x78   : > { %678 = vst [vmem:[#allocation2 + $0x110] sm:$0xff] %v550_v34   ;;  %680 = vst [vmem:[#allocation2 + $0x118] sm:$0xff] %v552_v35   ;;  %v556_v37 = vld [vmem:[%s4937_s1 + $0x128] sm:$0xff]   ;;  %v558_v38 = vld [vmem:[%s4937_s1 + $0x130] sm:$0xff]  }
  0x79   : > { %682 = vst [vmem:[#allocation2 + $0x120] sm:$0xff] %v554_v36   ;;  %684 = vst [vmem:[#allocation2 + $0x128] sm:$0xff] %v556_v37   ;;  %v560_v39 = vld [vmem:[%s4937_s1 + $0x138] sm:$0xff]   ;;  %v562_v40 = vld [vmem:[%s4937_s1 + $0x140] sm:$0xff]  }
  0x7a   : > { %686 = vst [vmem:[#allocation2 + $0x130] sm:$0xff] %v558_v38   ;;  %v564_v41 = vld [vmem:[%s4937_s1 + $0x148] sm:$0xff]   ;;  %688 = vst [vmem:[#allocation2 + $0x138] sm:$0xff] %v560_v39   ;;  %v566_v42 = vld [vmem:[%s4937_s1 + $0x150] sm:$0xff]  }
  0x7b   : > { %690 = vst [vmem:[#allocation2 + $0x140] sm:$0xff] %v562_v40   ;;  %692 = vst [vmem:[#allocation2 + $0x148] sm:$0xff] %v564_v41   ;;  %v568_v43 = vld [vmem:[%s4937_s1 + $0x158] sm:$0xff]   ;;  %v570_v44 = vld [vmem:[%s4937_s1 + $0x160] sm:$0xff]  }
  0x7c   : > { %694 = vst [vmem:[#allocation2 + $0x150] sm:$0xff] %v566_v42   ;;  %696 = vst [vmem:[#allocation2 + $0x158] sm:$0xff] %v568_v43   ;;  %v572_v45 = vld [vmem:[%s4937_s1 + $0x168] sm:$0xff]   ;;  %v574_v46 = vld [vmem:[%s4937_s1 + $0x170] sm:$0xff]  }
  0x7d   : > { %698 = vst [vmem:[#allocation2 + $0x160] sm:$0xff] %v570_v44   ;;  %v576_v47 = vld [vmem:[%s4937_s1 + $0x178] sm:$0xff]   ;;  %700 = vst [vmem:[#allocation2 + $0x168] sm:$0xff] %v572_v45   ;;  %v578_v48 = vld [vmem:[%s4937_s1 + $0x180] sm:$0xff]  }
  0x7e   : > { %702 = vst [vmem:[#allocation2 + $0x170] sm:$0xff] %v574_v46   ;;  %704 = vst [vmem:[#allocation2 + $0x178] sm:$0xff] %v576_v47   ;;  %v580_v49 = vld [vmem:[%s4937_s1 + $0x188] sm:$0xff]   ;;  %v582_v50 = vld [vmem:[%s4937_s1 + $0x190] sm:$0xff]  }
  0x7f   : > { %706 = vst [vmem:[#allocation2 + $0x180] sm:$0xff] %v578_v48   ;;  %708 = vst [vmem:[#allocation2 + $0x188] sm:$0xff] %v580_v49   ;;  %v584_v51 = vld [vmem:[%s4937_s1 + $0x198] sm:$0xff]   ;;  %v586_v52 = vld [vmem:[%s4937_s1 + $0x1a0] sm:$0xff]  }
  0x80   : > { %710 = vst [vmem:[#allocation2 + $0x190] sm:$0xff] %v582_v50   ;;  %v588_v53 = vld [vmem:[%s4937_s1 + $0x1a8] sm:$0xff]   ;;  %712 = vst [vmem:[#allocation2 + $0x198] sm:$0xff] %v584_v51   ;;  %v590_v54 = vld [vmem:[%s4937_s1 + $0x1b0] sm:$0xff]  }
  0x81   : > { %714 = vst [vmem:[#allocation2 + $0x1a0] sm:$0xff] %v586_v52   ;;  %716 = vst [vmem:[#allocation2 + $0x1a8] sm:$0xff] %v588_v53   ;;  %v592_v55 = vld [vmem:[%s4937_s1 + $0x1b8] sm:$0xff]   ;;  %v594_v56 = vld [vmem:[%s4937_s1 + $0x1c0] sm:$0xff]  }
  0x82   : > { %718 = vst [vmem:[#allocation2 + $0x1b0] sm:$0xff] %v590_v54   ;;  %720 = vst [vmem:[#allocation2 + $0x1b8] sm:$0xff] %v592_v55   ;;  %v596_v57 = vld [vmem:[%s4937_s1 + $0x1c8] sm:$0xff]   ;;  %v598_v58 = vld [vmem:[%s4937_s1 + $0x1d0] sm:$0xff]  }
  0x83   : > { %722 = vst [vmem:[#allocation2 + $0x1c0] sm:$0xff] %v594_v56   ;;  %v600_v59 = vld [vmem:[%s4937_s1 + $0x1d8] sm:$0xff]   ;;  %724 = vst [vmem:[#allocation2 + $0x1c8] sm:$0xff] %v596_v57   ;;  %v602_v60 = vld [vmem:[%s4937_s1 + $0x1e0] sm:$0xff]  }
  0x84   : > { %726 = vst [vmem:[#allocation2 + $0x1d0] sm:$0xff] %v598_v58   ;;  %728 = vst [vmem:[#allocation2 + $0x1d8] sm:$0xff] %v600_v59   ;;  %v604_v61 = vld [vmem:[%s4937_s1 + $0x1e8] sm:$0xff]   ;;  %v606_v62 = vld [vmem:[%s4937_s1 + $0x1f0] sm:$0xff]  }
  0x85   : > { %730 = vst [vmem:[#allocation2 + $0x1e0] sm:$0xff] %v602_v60   ;;  %732 = vst [vmem:[#allocation2 + $0x1e8] sm:$0xff] %v604_v61   ;;  %v608_v63 = vld [vmem:[%s4937_s1 + $0x1f8] sm:$0xff]  }
  0x86   : > { %734 = vst [vmem:[#allocation2 + $0x1f0] sm:$0xff] %v606_v62   ;;  %736 = vst [vmem:[#allocation2 + $0x1f8] sm:$0xff] %v608_v63  }
  0x87 PF: > { %p3334_p0 = scmp.ne.s32.totalorder %s3956_s14, 0 }
  0x89   : > { %740 = sbr.rel (%p3334_p0) target bundleno = 175 (0xaf), region = 63 }
  0x8e   : > { %v3974_v0 = vmov 0.0  }
  0x8f   : > { %741 = vst [vmem:[#allocation3 + $0xb0] sm:$0xff] %v3974_v0  ;;  %742 = vst [vmem:[#allocation3 + $0x1b0] sm:$0xff] %v3974_v0 }
  0x90   : > { %743 = vst [vmem:[#allocation3 + $0xd8] sm:$0xff] %v3974_v0  ;;  %744 = vst [vmem:[#allocation3 + $0x18] sm:$0xff] %v3974_v0 }
  0x91   : > { %745 = vst [vmem:[#allocation3 + $0x50] sm:$0xff] %v3974_v0  ;;  %746 = vst [vmem:[#allocation3 + $0x168] sm:$0xff] %v3974_v0 }
  0x92   : > { %747 = vst [vmem:[#allocation3 + $0x130] sm:$0xff] %v3974_v0  ;;  %748 = vst [vmem:[#allocation3 + $0x48] sm:$0xff] %v3974_v0 }
  0x93   : > { %749 = vst [vmem:[#allocation3 + $0x180] sm:$0xff] %v3974_v0  ;;  %750 = vst [vmem:[#allocation3 + $0x110] sm:$0xff] %v3974_v0 }
  0x94   : > { %751 = vst [vmem:[#allocation3 + $0x118] sm:$0xff] %v3974_v0  ;;  %752 = vst [vmem:[#allocation3 + $0x98] sm:$0xff] %v3974_v0 }
  0x95   : > { %753 = vst [vmem:[#allocation3 + $0x120] sm:$0xff] %v3974_v0  ;;  %754 = vst [vmem:[#allocation3 + $0x150] sm:$0xff] %v3974_v0 }
  0x96   : > { %755 = vst [vmem:[#allocation3 + $0x108] sm:$0xff] %v3974_v0  ;;  %756 = vst [vmem:[#allocation3 + $0x60] sm:$0xff] %v3974_v0 }
  0x97   : > { %757 = vst [vmem:[#allocation3 + $0xe0] sm:$0xff] %v3974_v0  ;;  %758 = vst [vmem:[#allocation3 + $0x188] sm:$0xff] %v3974_v0 }
  0x98   : > { %759 = vst [vmem:[#allocation3 + $0x138] sm:$0xff] %v3974_v0  ;;  %760 = vst [vmem:[#allocation3 + $0x140] sm:$0xff] %v3974_v0 }
  0x99   : > { %761 = vst [vmem:[#allocation3 + $0x80] sm:$0xff] %v3974_v0  ;;  %762 = vst [vmem:[#allocation3 + $0x1a8] sm:$0xff] %v3974_v0 }
  0x9a   : > { %763 = vst [vmem:[#allocation3 + $0x1b8] sm:$0xff] %v3974_v0  ;;  %764 = vst [vmem:[#allocation3 + $0x28] sm:$0xff] %v3974_v0 }
  0x9b   : > { %765 = vst [vmem:[#allocation3 + $0x1e8] sm:$0xff] %v3974_v0  ;;  %766 = vst [vmem:[#allocation3 + $0xf8] sm:$0xff] %v3974_v0 }
  0x9c   : > { %767 = vst [vmem:[#allocation3 + $0x160] sm:$0xff] %v3974_v0  ;;  %768 = vst [vmem:[#allocation3 + $0x30] sm:$0xff] %v3974_v0 }
  0x9d   : > { %769 = vst [vmem:[#allocation3 + $0x1e0] sm:$0xff] %v3974_v0  ;;  %770 = vst [vmem:[#allocation3] sm:$0xff] %v3974_v0 }
  0x9e   : > { %771 = vst [vmem:[#allocation3 + $0xf0] sm:$0xff] %v3974_v0  ;;  %772 = vst [vmem:[#allocation3 + $0x8] sm:$0xff] %v3974_v0 }
  0x9f   : > { %773 = vst [vmem:[#allocation3 + $0x148] sm:$0xff] %v3974_v0  ;;  %774 = vst [vmem:[#allocation3 + $0x1d0] sm:$0xff] %v3974_v0 }
  0xa0   : > { %775 = vst [vmem:[#allocation3 + $0x100] sm:$0xff] %v3974_v0  ;;  %776 = vst [vmem:[#allocation3 + $0xc8] sm:$0xff] %v3974_v0 }
  0xa1   : > { %777 = vst [vmem:[#allocation3 + $0x40] sm:$0xff] %v3974_v0  ;;  %778 = vst [vmem:[#allocation3 + $0x1f8] sm:$0xff] %v3974_v0 }
  0xa2   : > { %779 = vst [vmem:[#allocation3 + $0x20] sm:$0xff] %v3974_v0  ;;  %780 = vst [vmem:[#allocation3 + $0x128] sm:$0xff] %v3974_v0 }
  0xa3   : > { %781 = vst [vmem:[#allocation3 + $0x1a0] sm:$0xff] %v3974_v0  ;;  %782 = vst [vmem:[#allocation3 + $0x1f0] sm:$0xff] %v3974_v0 }
  0xa4   : > { %783 = vst [vmem:[#allocation3 + $0xe8] sm:$0xff] %v3974_v0  ;;  %784 = vst [vmem:[#allocation3 + $0x78] sm:$0xff] %v3974_v0 }
  0xa5   : > { %785 = vst [vmem:[#allocation3 + $0x70] sm:$0xff] %v3974_v0  ;;  %786 = vst [vmem:[#allocation3 + $0x90] sm:$0xff] %v3974_v0 }
  0xa6   : > { %787 = vst [vmem:[#allocation3 + $0x1d8] sm:$0xff] %v3974_v0  ;;  %788 = vst [vmem:[#allocation3 + $0xd0] sm:$0xff] %v3974_v0 }
  0xa7   : > { %789 = vst [vmem:[#allocation3 + $0xb8] sm:$0xff] %v3974_v0  ;;  %790 = vst [vmem:[#allocation3 + $0x88] sm:$0xff] %v3974_v0 }
  0xa8   : > { %791 = vst [vmem:[#allocation3 + $0xa8] sm:$0xff] %v3974_v0  ;;  %792 = vst [vmem:[#allocation3 + $0x1c8] sm:$0xff] %v3974_v0 }
  0xa9   : > { %793 = vst [vmem:[#allocation3 + $0x170] sm:$0xff] %v3974_v0  ;;  %794 = vst [vmem:[#allocation3 + $0x178] sm:$0xff] %v3974_v0 }
  0xaa   : > { %795 = vst [vmem:[#allocation3 + $0x68] sm:$0xff] %v3974_v0  ;;  %796 = vst [vmem:[#allocation3 + $0x190] sm:$0xff] %v3974_v0 }
  0xab   : > { %797 = vst [vmem:[#allocation3 + $0x198] sm:$0xff] %v3974_v0  ;;  %798 = vst [vmem:[#allocation3 + $0x38] sm:$0xff] %v3974_v0 }
  0xac   : > { %799 = vst [vmem:[#allocation3 + $0xc0] sm:$0xff] %v3974_v0  ;;  %800 = vst [vmem:[#allocation3 + $0x1c0] sm:$0xff] %v3974_v0 }
  0xad   : > { %801 = vst [vmem:[#allocation3 + $0x158] sm:$0xff] %v3974_v0  ;;  %802 = vst [vmem:[#allocation3 + $0x10] sm:$0xff] %v3974_v0 }
  0xae   : > { %803 = vst [vmem:[#allocation3 + $0x58] sm:$0xff] %v3974_v0  ;;  %804 = vst [vmem:[#allocation3 + $0xa0] sm:$0xff] %v3974_v0 }
  0xaf PF: > { %s3335_s7 = sshll.u32 %s3956_s14, 9  ;;  %v3975_v1 = vmov 0   ;;  %v3728_v2 = vld [vmem:[%s4327_s26 + $0x4] ss:$16 sps:$4 sm:$0xff]   ;;  %v3731_v3 = vld [vmem:[%s4327_s26 + $0xc] ss:$16 sps:$4 sm:$0xff]  }
  0xb0   : > { %1912 = vmatprep.subr.bf16.mxu0 %v3975_v1  ;;  %2201 = vmatprep.subr.bf16.mxu1 %v3975_v1  ;;  %s1010_s8 = sshra.s32 %s3335_s7, 3  ;;  %v3726_v36 = vld [vmem:[%s4327_s26] ss:$16 sps:$4 sm:$0xff]   ;;  %v3729_v37 = vld [vmem:[%s4327_s26 + $0x8] ss:$16 sps:$4 sm:$0xff]   ;;  %p3497_p1 = scmp.ne.s32.totalorder %s3956_s14, 1 }
  0xb1   : > { %s3336_s9 = sshll.u32 %s1010_s8, 2  ;;  %1944 = vmatprep.mubr.bf16.mxu0 %v3728_v2  ;;  %2233 = vmatprep.mubr.bf16.mxu1 %v3731_v3  ;;  %v3732_v38 = vld [vmem:[%s4327_s26 + $0x24] ss:$16 sps:$4 sm:$0xff]   ;;  %v3734_v39 = vld [vmem:[%s4327_s26 + $0x2c] ss:$16 sps:$4 sm:$0xff]  }
  0xb2   : > { %s4591_s10 = scalar_lea.vmem [#allocation2], %s3336_s9  ;;  %v3736_v40 = vld [vmem:[%s4327_s26 + $0x20] ss:$16 sps:$4 sm:$0xff]   ;;  %v3737_v41 = vld [vmem:[%s4327_s26 + $0x28] ss:$16 sps:$4 sm:$0xff]  }
  0xb3   : > { %v3694_v4 = vld [vmem:[%s4591_s10 + $0x38] sm:$0xff]   ;;  %v3696_v6 = vld [vmem:[%s4591_s10 + $0x30] sm:$0xff]   ;;  %v3698_v8 = vld [vmem:[%s4591_s10 + $0x28] sm:$0xff]  }
  0xb4   : > { %v3695_v5 = vld [vmem:[%s4591_s10 + $0xb8] sm:$0xff]   ;;  %1913 = vmatpush1.bf16.msra.mxu0 %v3694_v4  ;;  %v3697_v7 = vld [vmem:[%s4591_s10 + $0xb0] sm:$0xff]   ;;  %v3699_v9 = vld [vmem:[%s4591_s10 + $0xa8] sm:$0xff]  }
  0xb5   : > { %2202 = vmatpush1.bf16.msra.mxu1 %v3695_v5  ;;  %1914 = vmatprep.subr.bf16.mxu0 %v3975_v1  ;;  %v3700_v10 = vld [vmem:[%s4591_s10 + $0x20] sm:$0xff]   ;;  %v3702_v12 = vld [vmem:[%s4591_s10 + $0x18] sm:$0xff]   ;;  %v3704_v14 = vld [vmem:[%s4591_s10 + $0x10] sm:$0xff]  }
  0xb6   : > { %2203 = vmatprep.subr.bf16.mxu1 %v3975_v1  ;;  %v3701_v11 = vld [vmem:[%s4591_s10 + $0xa0] sm:$0xff]   ;;  %v3703_v13 = vld [vmem:[%s4591_s10 + $0x98] sm:$0xff]   ;;  %v3705_v15 = vld [vmem:[%s4591_s10 + $0x90] sm:$0xff]  }
  0xb7   : > { %v3706_v16 = vld [vmem:[%s4591_s10 + $0x8] sm:$0xff]   ;;  %v3708_v18 = vld [vmem:[%s4591_s10] sm:$0xff]   ;;  %v3710_v20 = vld [vmem:[%s4591_s10 + $0x78] sm:$0xff]  }
  0xb8   : > { %1915 = vmatpush1.bf16.msra.mxu0 %v3696_v6  ;;  %v3707_v17 = vld [vmem:[%s4591_s10 + $0x88] sm:$0xff]   ;;  %v3709_v19 = vld [vmem:[%s4591_s10 + $0x80] sm:$0xff]   ;;  %v3711_v21 = vld [vmem:[%s4591_s10 + $0xf8] sm:$0xff]  }
  0xb9   : > { %2204 = vmatpush1.bf16.msra.mxu1 %v3697_v7  ;;  %1916 = vmatprep.subr.bf16.mxu0 %v3975_v1  ;;  %v3712_v22 = vld [vmem:[%s4591_s10 + $0x70] sm:$0xff]   ;;  %v3714_v24 = vld [vmem:[%s4591_s10 + $0x68] sm:$0xff]   ;;  %v3716_v26 = vld [vmem:[%s4591_s10 + $0x60] sm:$0xff]  }
  0xba   : > { %2205 = vmatprep.subr.bf16.mxu1 %v3975_v1  ;;  %v3713_v23 = vld [vmem:[%s4591_s10 + $0xf0] sm:$0xff]   ;;  %v3715_v25 = vld [vmem:[%s4591_s10 + $0xe8] sm:$0xff]   ;;  %v3717_v27 = vld [vmem:[%s4591_s10 + $0xe0] sm:$0xff]  }
  0xbb   : > { %v3718_v28 = vld [vmem:[%s4591_s10 + $0x58] sm:$0xff]   ;;  %v3720_v30 = vld [vmem:[%s4591_s10 + $0x50] sm:$0xff]   ;;  %v3722_v32 = vld [vmem:[%s4591_s10 + $0x48] sm:$0xff]  }
  0xbc   : > { %1917 = vmatpush1.bf16.msra.mxu0 %v3698_v8  ;;  %v3719_v29 = vld [vmem:[%s4591_s10 + $0xd8] sm:$0xff]   ;;  %v3721_v31 = vld [vmem:[%s4591_s10 + $0xd0] sm:$0xff]   ;;  %v3723_v33 = vld [vmem:[%s4591_s10 + $0xc8] sm:$0xff]  }
  0xbd   : > { %2206 = vmatpush1.bf16.msra.mxu1 %v3699_v9  ;;  %1918 = vmatprep.subr.bf16.mxu0 %v3975_v1  ;;  %v3724_v34 = vld [vmem:[%s4591_s10 + $0x40] sm:$0xff]   ;;  %v3740_v43 = vld [vmem:[%s4327_s26 + $0x4c] ss:$16 sps:$4 sm:$0xff]   ;;  %v3743_v45 = vld [vmem:[%s4327_s26 + $0x48] ss:$16 sps:$4 sm:$0xff]  }
  0xbe   : > { %2207 = vmatprep.subr.bf16.mxu1 %v3975_v1  ;;  %v3725_v35 = vld [vmem:[%s4591_s10 + $0xc0] sm:$0xff]   ;;  %v3746_v47 = vld [vmem:[%s4327_s26 + $0x6c] ss:$16 sps:$4 sm:$0xff]   ;;  %v3749_v49 = vld [vmem:[%s4327_s26 + $0x68] ss:$16 sps:$4 sm:$0xff]  }
  0xbf   : > { %v3738_v42 = vld [vmem:[%s4327_s26 + $0x44] ss:$16 sps:$4 sm:$0xff]   ;;  %v3742_v44 = vld [vmem:[%s4327_s26 + $0x40] ss:$16 sps:$4 sm:$0xff]   ;;  %v3752_v51 = vld [vmem:[%s4327_s26 + $0x8c] ss:$16 sps:$4 sm:$0xff]  }
  0xc0   : > { %1919 = vmatpush1.bf16.msra.mxu0 %v3700_v10  ;;  %v3744_v46 = vld [vmem:[%s4327_s26 + $0x64] ss:$16 sps:$4 sm:$0xff]   ;;  %v3748_v48 = vld [vmem:[%s4327_s26 + $0x60] ss:$16 sps:$4 sm:$0xff]   ;;  %v3755_v53 = vld [vmem:[%s4327_s26 + $0x88] ss:$16 sps:$4 sm:$0xff]  }
  0xc1   : > { %2208 = vmatpush1.bf16.msra.mxu1 %v3701_v11  ;;  %1920 = vmatprep.subr.bf16.mxu0 %v3975_v1  ;;  %v3750_v50 = vld [vmem:[%s4327_s26 + $0x84] ss:$16 sps:$4 sm:$0xff]   ;;  %v3754_v52 = vld [vmem:[%s4327_s26 + $0x80] ss:$16 sps:$4 sm:$0xff]   ;;  %v3758_v55 = vld [vmem:[%s4327_s26 + $0xac] ss:$16 sps:$4 sm:$0xff]  }
  0xc2   : > { %2209 = vmatprep.subr.bf16.mxu1 %v3975_v1  ;;  %v3756_v54 = vld [vmem:[%s4327_s26 + $0xa4] ss:$16 sps:$4 sm:$0xff]   ;;  %v3760_v56 = vld [vmem:[%s4327_s26 + $0xa0] ss:$16 sps:$4 sm:$0xff]   ;;  %v3761_v57 = vld [vmem:[%s4327_s26 + $0xa8] ss:$16 sps:$4 sm:$0xff]  }
  0xc3   : > { %v3762_v58 = vld [vmem:[%s4327_s26 + $0xc4] ss:$16 sps:$4 sm:$0xff]   ;;  %v3764_v59 = vld [vmem:[%s4327_s26 + $0xcc] ss:$16 sps:$4 sm:$0xff]   ;;  %v3766_v60 = vld [vmem:[%s4327_s26 + $0xc0] ss:$16 sps:$4 sm:$0xff]  }
  0xc4   : > { %1921 = vmatpush1.bf16.msra.mxu0 %v3702_v12  ;;  %v3767_v61 = vld [vmem:[%s4327_s26 + $0xc8] ss:$16 sps:$4 sm:$0xff]   ;;  %v3768_v62 = vld [vmem:[%s4327_s26 + $0xe4] ss:$16 sps:$4 sm:$0xff]   ;;  %v3770_v63 = vld [vmem:[%s4327_s26 + $0xec] ss:$16 sps:$4 sm:$0xff]  }
  0xc5   : > { %2210 = vmatpush1.bf16.msra.mxu1 %v3703_v13  ;;  %1922 = vmatprep.subr.bf16.mxu0 %v3975_v1  ;;  %v3772_v0 = vld [vmem:[%s4327_s26 + $0xe0] ss:$16 sps:$4 sm:$0xff]   ;;  %v3774_v2 = vld [vmem:[%s4327_s26 + $0x104] ss:$16 sps:$4 sm:$0xff]   ;;  %v3776_v3 = vld [vmem:[%s4327_s26 + $0x10c] ss:$16 sps:$4 sm:$0xff]  }
  0xc6   : > { %2211 = vmatprep.subr.bf16.mxu1 %v3975_v1  ;;  %v3778_v4 = vld [vmem:[%s4327_s26 + $0x100] ss:$16 sps:$4 sm:$0xff]   ;;  %v3779_v5 = vld [vmem:[%s4327_s26 + $0x108] ss:$16 sps:$4 sm:$0xff]   ;;  %v3780_v6 = vld [vmem:[%s4327_s26 + $0x124] ss:$16 sps:$4 sm:$0xff]  }
  0xc7   : > { %v3782_v7 = vld [vmem:[%s4327_s26 + $0x12c] ss:$16 sps:$4 sm:$0xff]   ;;  %v3784_v8 = vld [vmem:[%s4327_s26 + $0x120] ss:$16 sps:$4 sm:$0xff]   ;;  %v3785_v9 = vld [vmem:[%s4327_s26 + $0x128] ss:$16 sps:$4 sm:$0xff]  }
  0xc8   : > { %1923 = vmatpush1.bf16.msra.mxu0 %v3704_v14  ;;  %v3786_v10 = vld [vmem:[%s4327_s26 + $0x144] ss:$16 sps:$4 sm:$0xff]   ;;  %v3788_v11 = vld [vmem:[%s4327_s26 + $0x14c] ss:$16 sps:$4 sm:$0xff]   ;;  %v3790_v12 = vld [vmem:[%s4327_s26 + $0x140] ss:$16 sps:$4 sm:$0xff]  }
  0xc9   : > { %2212 = vmatpush1.bf16.msra.mxu1 %v3705_v15  ;;  %1924 = vmatprep.subr.bf16.mxu0 %v3975_v1  ;;  %v3791_v13 = vld [vmem:[%s4327_s26 + $0x148] ss:$16 sps:$4 sm:$0xff]   ;;  %v3792_v14 = vld [vmem:[%s4327_s26 + $0x164] ss:$16 sps:$4 sm:$0xff]   ;;  %v3794_v15 = vld [vmem:[%s4327_s26 + $0x16c] ss:$16 sps:$4 sm:$0xff]  }
  0xca   : > { %2213 = vmatprep.subr.bf16.mxu1 %v3975_v1 }
  0xcc   : > { %1925 = vmatpush1.bf16.msra.mxu0 %v3706_v16  ;;  %v3796_v16 = vld [vmem:[%s4327_s26 + $0x160] ss:$16 sps:$4 sm:$0xff]  }
  0xcd   : > { %2214 = vmatpush1.bf16.msra.mxu1 %v3707_v17  ;;  %1926 = vmatprep.subr.bf16.mxu0 %v3975_v1  ;;  %v3797_v17 = vld [vmem:[%s4327_s26 + $0x168] ss:$16 sps:$4 sm:$0xff]  }
  0xce   : > { %2215 = vmatprep.subr.bf16.mxu1 %v3975_v1 }
  0xd0   : > { %1927 = vmatpush1.bf16.msra.mxu0 %v3708_v18  ;;  %v3798_v18 = vld [vmem:[%s4327_s26 + $0x184] ss:$16 sps:$4 sm:$0xff]  }
  0xd1   : > { %2216 = vmatpush1.bf16.msra.mxu1 %v3709_v19  ;;  %1928 = vmatprep.subr.bf16.mxu0 %v3975_v1  ;;  %v3800_v19 = vld [vmem:[%s4327_s26 + $0x18c] ss:$16 sps:$4 sm:$0xff]  }
  0xd2   : > { %2217 = vmatprep.subr.bf16.mxu1 %v3975_v1 }
  0xd4   : > { %1929 = vmatpush2.bf16.msra.mxu0 %v3710_v20  ;;  %v3802_v20 = vld [vmem:[%s4327_s26 + $0x180] ss:$16 sps:$4 sm:$0xff]  }
  0xd5   : > { %2218 = vmatpush2.bf16.msra.mxu1 %v3711_v21  ;;  %1930 = vmatprep.subr.bf16.mxu0 %v3975_v1  ;;  %v3803_v21 = vld [vmem:[%s4327_s26 + $0x188] ss:$16 sps:$4 sm:$0xff]  }
  0xd6   : > { %2219 = vmatprep.subr.bf16.mxu1 %v3975_v1 }
  0xd8   : > { %1931 = vmatpush2.bf16.msra.mxu0 %v3712_v22  ;;  %v3804_v22 = vld [vmem:[%s4327_s26 + $0x1a4] ss:$16 sps:$4 sm:$0xff]  }
  0xd9   : > { %2220 = vmatpush2.bf16.msra.mxu1 %v3713_v23  ;;  %1932 = vmatprep.subr.bf16.mxu0 %v3975_v1  ;;  %v3806_v23 = vld [vmem:[%s4327_s26 + $0x1ac] ss:$16 sps:$4 sm:$0xff]  }
  0xda   : > { %2221 = vmatprep.subr.bf16.mxu1 %v3975_v1 }
  0xdc   : > { %1933 = vmatpush2.bf16.msra.mxu0 %v3714_v24  ;;  %v3808_v24 = vld [vmem:[%s4327_s26 + $0x1a0] ss:$16 sps:$4 sm:$0xff]  }
  0xdd   : > { %2222 = vmatpush2.bf16.msra.mxu1 %v3715_v25  ;;  %1934 = vmatprep.subr.bf16.mxu0 %v3975_v1  ;;  %v3809_v25 = vld [vmem:[%s4327_s26 + $0x1a8] ss:$16 sps:$4 sm:$0xff]  }
  0xde   : > { %2223 = vmatprep.subr.bf16.mxu1 %v3975_v1 }
  0xe0   : > { %1935 = vmatpush2.bf16.msra.mxu0 %v3716_v26  ;;  %v3810_v26 = vld [vmem:[%s4327_s26 + $0x1c4] ss:$16 sps:$4 sm:$0xff]  }
  0xe1   : > { %2224 = vmatpush2.bf16.msra.mxu1 %v3717_v27  ;;  %1936 = vmatprep.subr.bf16.mxu0 %v3975_v1  ;;  %v3812_v27 = vld [vmem:[%s4327_s26 + $0x1cc] ss:$16 sps:$4 sm:$0xff]  }
  0xe2   : > { %2225 = vmatprep.subr.bf16.mxu1 %v3975_v1 }
  0xe4   : > { %1937 = vmatpush2.bf16.msra.mxu0 %v3718_v28  ;;  %v3814_v28 = vld [vmem:[%s4327_s26 + $0x1c0] ss:$16 sps:$4 sm:$0xff]  }
  0xe5   : > { %2226 = vmatpush2.bf16.msra.mxu1 %v3719_v29  ;;  %1938 = vmatprep.subr.bf16.mxu0 %v3975_v1  ;;  %v3815_v29 = vld [vmem:[%s4327_s26 + $0x1c8] ss:$16 sps:$4 sm:$0xff]  }
  0xe6   : > { %2227 = vmatprep.subr.bf16.mxu1 %v3975_v1 }
  0xe8   : > { %1939 = vmatpush2.bf16.msra.mxu0 %v3720_v30  ;;  %v3816_v30 = vld [vmem:[%s4327_s26 + $0x1e4] ss:$16 sps:$4 sm:$0xff]  }
  0xe9   : > { %2228 = vmatpush2.bf16.msra.mxu1 %v3721_v31  ;;  %1940 = vmatprep.subr.bf16.mxu0 %v3975_v1  ;;  %v3818_v31 = vld [vmem:[%s4327_s26 + $0x1ec] ss:$16 sps:$4 sm:$0xff]  }
  0xea   : > { %2229 = vmatprep.subr.bf16.mxu1 %v3975_v1 }
  0xec   : > { %1941 = vmatpush2.bf16.msra.mxu0 %v3722_v32  ;;  %v3820_v32 = vld [vmem:[%s4327_s26 + $0x1e0] ss:$16 sps:$4 sm:$0xff]  }
  0xed   : > { %2230 = vmatpush2.bf16.msra.mxu1 %v3723_v33  ;;  %1942 = vmatprep.subr.bf16.mxu0 %v3975_v1  ;;  %v3821_v33 = vld [vmem:[%s4327_s26 + $0x1e8] ss:$16 sps:$4 sm:$0xff]  }
  0xee   : > { %2231 = vmatprep.subr.bf16.mxu1 %v3975_v1  ;;  %v3773_v1 = vld [vmem:[%s4327_s26 + $0xe8] ss:$16 sps:$4 sm:$0xff]  }
  0xf0   : > { %1943 = vmatpush2.bf16.msra.mxu0 %v3724_v34  ;;  %v3822_v34 = vld [vmem:[%s4327_s26 + $0x204] ss:$16 sps:$4 sm:$0xff]  }
  0xf1   : > { %2232 = vmatpush2.bf16.msra.mxu1 %v3725_v35  ;;  %v3824_v35 = vld [vmem:[%s4327_s26 + $0x20c] ss:$16 sps:$4 sm:$0xff]  }
  0xf3   : > { %1945 = vmatmul.mubr.bf16.vlgmr.msra.gmra.mxu0 %v3726_v36  ;;  %v3826_v36 = vld [vmem:[%s4327_s26 + $0x200] ss:$16 sps:$4 sm:$0xff]  }
  0xf4   : > { %2234 = vmatmul.mubr.bf16.vlgmr.msra.gmra.mxu1 %v3729_v37  ;;  %1952 = vmatprep.mubr.bf16.mxu0 %v3732_v38  ;;  %v3827_v37 = vld [vmem:[%s4327_s26 + $0x208] ss:$16 sps:$4 sm:$0xff]   ;;  %v3828_v38 = vld [vmem:[%s4327_s26 + $0x224] ss:$16 sps:$4 sm:$0xff]  }
  0xf5   : > { %2241 = vmatprep.mubr.bf16.mxu1 %v3734_v39  ;;  %v3830_v39 = vld [vmem:[%s4327_s26 + $0x22c] ss:$16 sps:$4 sm:$0xff]  }
  0xfb   : > { %1953 = vmatmul.mubr.bf16.gmra.mxu0 %v3736_v40  ;;  %v3832_v40 = vld [vmem:[%s4327_s26 + $0x220] ss:$16 sps:$4 sm:$0xff]  }
  0xfc   : > { %2242 = vmatmul.mubr.bf16.gmra.mxu1 %v3737_v41  ;;  %1960 = vmatprep.mubr.bf16.mxu0 %v3738_v42  ;;  %v3833_v41 = vld [vmem:[%s4327_s26 + $0x228] ss:$16 sps:$4 sm:$0xff]   ;;  %v3834_v42 = vld [vmem:[%s4327_s26 + $0x244] ss:$16 sps:$4 sm:$0xff]  }
  0xfd   : > { %2249 = vmatprep.mubr.bf16.mxu1 %v3740_v43  ;;  %v3836_v43 = vld [vmem:[%s4327_s26 + $0x24c] ss:$16 sps:$4 sm:$0xff]  }
 0x103   : > { %1961 = vmatmul.mubr.bf16.gmra.mxu0 %v3742_v44  ;;  %v3838_v44 = vld [vmem:[%s4327_s26 + $0x240] ss:$16 sps:$4 sm:$0xff]  }
 0x104   : > { %2250 = vmatmul.mubr.bf16.gmra.mxu1 %v3743_v45  ;;  %1968 = vmatprep.mubr.bf16.mxu0 %v3744_v46  ;;  %v3839_v45 = vld [vmem:[%s4327_s26 + $0x248] ss:$16 sps:$4 sm:$0xff]   ;;  %v3840_v46 = vld [vmem:[%s4327_s26 + $0x264] ss:$16 sps:$4 sm:$0xff]  }
 0x105   : > { %2257 = vmatprep.mubr.bf16.mxu1 %v3746_v47  ;;  %v3842_v47 = vld [vmem:[%s4327_s26 + $0x26c] ss:$16 sps:$4 sm:$0xff]  }
 0x10b   : > { %1969 = vmatmul.mubr.bf16.gmra.mxu0 %v3748_v48  ;;  %v3844_v48 = vld [vmem:[%s4327_s26 + $0x260] ss:$16 sps:$4 sm:$0xff]  }
 0x10c   : > { %2258 = vmatmul.mubr.bf16.gmra.mxu1 %v3749_v49  ;;  %1976 = vmatprep.mubr.bf16.mxu0 %v3750_v50  ;;  %v3845_v49 = vld [vmem:[%s4327_s26 + $0x268] ss:$16 sps:$4 sm:$0xff]   ;;  %v3846_v50 = vld [vmem:[%s4327_s26 + $0x284] ss:$16 sps:$4 sm:$0xff]  }
 0x10d   : > { %2265 = vmatprep.mubr.bf16.mxu1 %v3752_v51  ;;  %v3848_v51 = vld [vmem:[%s4327_s26 + $0x28c] ss:$16 sps:$4 sm:$0xff]  }
 0x113   : > { %1977 = vmatmul.mubr.bf16.gmra.mxu0 %v3754_v52  ;;  %v3850_v52 = vld [vmem:[%s4327_s26 + $0x280] ss:$16 sps:$4 sm:$0xff]  }
 0x114   : > { %2266 = vmatmul.mubr.bf16.gmra.mxu1 %v3755_v53  ;;  %1984 = vmatprep.mubr.bf16.mxu0 %v3756_v54  ;;  %v3851_v53 = vld [vmem:[%s4327_s26 + $0x288] ss:$16 sps:$4 sm:$0xff]   ;;  %v3852_v54 = vld [vmem:[%s4327_s26 + $0x2a4] ss:$16 sps:$4 sm:$0xff]  }
 0x115   : > { %2273 = vmatprep.mubr.bf16.mxu1 %v3758_v55  ;;  %v3854_v55 = vld [vmem:[%s4327_s26 + $0x2ac] ss:$16 sps:$4 sm:$0xff]  }
 0x11b   : > { %1985 = vmatmul.mubr.bf16.gmra.mxu0 %v3760_v56  ;;  %v3856_v56 = vld [vmem:[%s4327_s26 + $0x2a0] ss:$16 sps:$4 sm:$0xff]  }
 0x11c   : > { %2274 = vmatmul.mubr.bf16.gmra.mxu1 %v3761_v57  ;;  %1992 = vmatprep.mubr.bf16.mxu0 %v3762_v58  ;;  %v3857_v57 = vld [vmem:[%s4327_s26 + $0x2a8] ss:$16 sps:$4 sm:$0xff]   ;;  %v3858_v58 = vld [vmem:[%s4327_s26 + $0x2c4] ss:$16 sps:$4 sm:$0xff]  }
 0x11d   : > { %2281 = vmatprep.mubr.bf16.mxu1 %v3764_v59  ;;  %v3860_v59 = vld [vmem:[%s4327_s26 + $0x2cc] ss:$16 sps:$4 sm:$0xff]  }
 0x123   : > { %1993 = vmatmul.mubr.bf16.gmra.mxu0 %v3766_v60  ;;  %v3862_v60 = vld [vmem:[%s4327_s26 + $0x2c0] ss:$16 sps:$4 sm:$0xff]  }
 0x124   : > { %2282 = vmatmul.mubr.bf16.gmra.mxu1 %v3767_v61  ;;  %2000 = vmatprep.mubr.bf16.mxu0 %v3768_v62  ;;  %v3863_v61 = vld [vmem:[%s4327_s26 + $0x2c8] ss:$16 sps:$4 sm:$0xff]   ;;  %v3864_v62 = vld [vmem:[%s4327_s26 + $0x2e4] ss:$16 sps:$4 sm:$0xff]  }
 0x125   : > { %2289 = vmatprep.mubr.bf16.mxu1 %v3770_v63  ;;  %v3866_v63 = vld [vmem:[%s4327_s26 + $0x2ec] ss:$16 sps:$4 sm:$0xff]  }
 0x12b   : > { %2001 = vmatmul.mubr.bf16.gmra.mxu0 %v3772_v0  ;;  %v3868_v0 = vld [vmem:[%s4327_s26 + $0x2e0] ss:$16 sps:$4 sm:$0xff]  }
 0x12c   : > { %2290 = vmatmul.mubr.bf16.gmra.mxu1 %v3773_v1  ;;  %2008 = vmatprep.mubr.bf16.mxu0 %v3774_v2  ;;  %v3869_v1 = vld [vmem:[%s4327_s26 + $0x2e8] ss:$16 sps:$4 sm:$0xff]   ;;  %v3870_v2 = vld [vmem:[%s4327_s26 + $0x304] ss:$16 sps:$4 sm:$0xff]  }
 0x12d   : > { %2297 = vmatprep.mubr.bf16.mxu1 %v3776_v3  ;;  %v3872_v3 = vld [vmem:[%s4327_s26 + $0x30c] ss:$16 sps:$4 sm:$0xff]  }
 0x133   : > { %2009 = vmatmul.mubr.bf16.gmra.mxu0 %v3778_v4  ;;  %v3874_v4 = vld [vmem:[%s4327_s26 + $0x300] ss:$16 sps:$4 sm:$0xff]  }
 0x134   : > { %2298 = vmatmul.mubr.bf16.gmra.mxu1 %v3779_v5  ;;  %2016 = vmatprep.mubr.bf16.mxu0 %v3780_v6  ;;  %v3875_v5 = vld [vmem:[%s4327_s26 + $0x308] ss:$16 sps:$4 sm:$0xff]   ;;  %v3876_v6 = vld [vmem:[%s4327_s26 + $0x324] ss:$16 sps:$4 sm:$0xff]  }
 0x135   : > { %2305 = vmatprep.mubr.bf16.mxu1 %v3782_v7  ;;  %v3878_v7 = vld [vmem:[%s4327_s26 + $0x32c] ss:$16 sps:$4 sm:$0xff]  }
 0x13b   : > { %2017 = vmatmul.mubr.bf16.gmra.mxu0 %v3784_v8 }
 0x13c   : > { %2306 = vmatmul.mubr.bf16.gmra.mxu1 %v3785_v9  ;;  %2024 = vmatprep.mubr.bf16.mxu0 %v3786_v10  ;;  %v818_v9 = vld [vmem:[#allocation3 + $0xb0] sm:$0xff] }
 0x13d   : > { %2313 = vmatprep.mubr.bf16.mxu1 %v3788_v11 }
 0x143   : > { %2025 = vmatmul.mubr.bf16.gmra.mxu0 %v3790_v12 }
 0x144   : > { %2314 = vmatmul.mubr.bf16.gmra.mxu1 %v3791_v13  ;;  %2032 = vmatprep.mubr.bf16.mxu0 %v3792_v14 }
 0x145   : > { %2321 = vmatprep.mubr.bf16.mxu1 %v3794_v15 }
 0x14b   : > { %2033 = vmatmul.mubr.bf16.gmra.mxu0 %v3796_v16  ;;  %v3880_v16 = vld [vmem:[%s4327_s26 + $0x320] ss:$16 sps:$4 sm:$0xff]  }
 0x14c   : > { %2322 = vmatmul.mubr.bf16.gmra.mxu1 %v3797_v17  ;;  %2040 = vmatprep.mubr.bf16.mxu0 %v3798_v18  ;;  %v819_v17 = vld [vmem:[#allocation3 + $0x1b0] sm:$0xff] }
 0x14d   : > { %2329 = vmatprep.mubr.bf16.mxu1 %v3800_v19  ;;  %v3881_v19 = vld [vmem:[%s4327_s26 + $0x328] ss:$16 sps:$4 sm:$0xff]  }
 0x153   : > { %2041 = vmatmul.mubr.bf16.gmra.mxu0 %v3802_v20  ;;  %v3882_v20 = vld [vmem:[%s4327_s26 + $0x344] ss:$16 sps:$4 sm:$0xff]  }
 0x154   : > { %2330 = vmatmul.mubr.bf16.gmra.mxu1 %v3803_v21  ;;  %2048 = vmatprep.mubr.bf16.mxu0 %v3804_v22 }
 0x155   : > { %2337 = vmatprep.mubr.bf16.mxu1 %v3806_v23  ;;  %v3884_v23 = vld [vmem:[%s4327_s26 + $0x34c] ss:$16 sps:$4 sm:$0xff]  }
 0x15b   : > { %2049 = vmatmul.mubr.bf16.gmra.mxu0 %v3808_v24 }
 0x15c   : > { %2338 = vmatmul.mubr.bf16.gmra.mxu1 %v3809_v25  ;;  %2056 = vmatprep.mubr.bf16.mxu0 %v3810_v26 }
 0x15d   : > { %2345 = vmatprep.mubr.bf16.mxu1 %v3812_v27  ;;  %v820_v27 = vld [vmem:[#allocation3 + $0xd8] sm:$0xff] }
 0x163   : > { %2057 = vmatmul.mubr.bf16.gmra.mxu0 %v3814_v28 }
 0x164   : > { %2346 = vmatmul.mubr.bf16.gmra.mxu1 %v3815_v29  ;;  %2064 = vmatprep.mubr.bf16.mxu0 %v3816_v30 }
 0x165   : > { %2353 = vmatprep.mubr.bf16.mxu1 %v3818_v31 }
 0x16b   : > { %2065 = vmatmul.mubr.bf16.gmra.mxu0 %v3820_v32 }
 0x16c   : > { %2354 = vmatmul.mubr.bf16.gmra.mxu1 %v3821_v33  ;;  %2072 = vmatprep.mubr.bf16.mxu0 %v3822_v34  ;;  %v3886_v34 = vld [vmem:[%s4327_s26 + $0x340] ss:$16 sps:$4 sm:$0xff]  }
 0x16d   : > { %2361 = vmatprep.mubr.bf16.mxu1 %v3824_v35  ;;  %v821_v35 = vld [vmem:[#allocation3 + $0x18] sm:$0xff] }
 0x173   : > { %2073 = vmatmul.mubr.bf16.gmra.mxu0 %v3826_v36 }
 0x174   : > { %2362 = vmatmul.mubr.bf16.gmra.mxu1 %v3827_v37  ;;  %2080 = vmatprep.mubr.bf16.mxu0 %v3828_v38  ;;  %v3887_v37 = vld [vmem:[%s4327_s26 + $0x348] ss:$16 sps:$4 sm:$0xff]   ;;  %v3888_v38 = vld [vmem:[%s4327_s26 + $0x364] ss:$16 sps:$4 sm:$0xff]  }
 0x175   : > { %2369 = vmatprep.mubr.bf16.mxu1 %v3830_v39 }
 0x17b   : > { %2081 = vmatmul.mubr.bf16.gmra.mxu0 %v3832_v40 }
 0x17c   : > { %2370 = vmatmul.mubr.bf16.gmra.mxu1 %v3833_v41  ;;  %2088 = vmatprep.mubr.bf16.mxu0 %v3834_v42  ;;  %v3890_v41 = vld [vmem:[%s4327_s26 + $0x36c] ss:$16 sps:$4 sm:$0xff]  }
 0x17d   : > { %2377 = vmatprep.mubr.bf16.mxu1 %v3836_v43 }
 0x183   : > { %2089 = vmatmul.mubr.bf16.gmra.mxu0 %v3838_v44 }
 0x184   : > { %2378 = vmatmul.mubr.bf16.gmra.mxu1 %v3839_v45  ;;  %2096 = vmatprep.mubr.bf16.mxu0 %v3840_v46  ;;  %v822_v45 = vld [vmem:[#allocation3 + $0x50] sm:$0xff] }
 0x185   : > { %2385 = vmatprep.mubr.bf16.mxu1 %v3842_v47 }
 0x18b   : > { %2097 = vmatmul.mubr.bf16.gmra.mxu0 %v3844_v48 }
 0x18c   : > { %2386 = vmatmul.mubr.bf16.gmra.mxu1 %v3845_v49  ;;  %2104 = vmatprep.mubr.bf16.mxu0 %v3846_v50 }
 0x18d   : > { %2393 = vmatprep.mubr.bf16.mxu1 %v3848_v51 }
 0x193   : > { %2105 = vmatmul.mubr.bf16.gmra.mxu0 %v3850_v52  ;;  %v3892_v52 = vld [vmem:[%s4327_s26 + $0x360] ss:$16 sps:$4 sm:$0xff]  }
 0x194   : > { %2394 = vmatmul.mubr.bf16.gmra.mxu1 %v3851_v53  ;;  %2112 = vmatprep.mubr.bf16.mxu0 %v3852_v54  ;;  %v823_v53 = vld [vmem:[#allocation3 + $0x168] sm:$0xff] }
 0x195   : > { %2401 = vmatprep.mubr.bf16.mxu1 %v3854_v55  ;;  %v3893_v55 = vld [vmem:[%s4327_s26 + $0x368] ss:$16 sps:$4 sm:$0xff]  }
 0x19b   : > { %2113 = vmatmul.mubr.bf16.gmra.mxu0 %v3856_v56  ;;  %v3896_v56 = vld [vmem:[%s4327_s26 + $0x384] ss:$16 sps:$4 sm:$0xff]  }
 0x19c   : > { %2402 = vmatmul.mubr.bf16.gmra.mxu1 %v3857_v57  ;;  %2120 = vmatprep.mubr.bf16.mxu0 %v3858_v58 }
 0x19d   : > { %2409 = vmatprep.mubr.bf16.mxu1 %v3860_v59  ;;  %v3899_v59 = vld [vmem:[%s4327_s26 + $0x38c] ss:$16 sps:$4 sm:$0xff]  }
 0x1a3   : > { %2121 = vmatmul.mubr.bf16.gmra.mxu0 %v3862_v60 }
 0x1a4   : > { %2410 = vmatmul.mubr.bf16.gmra.mxu1 %v3863_v61  ;;  %2128 = vmatprep.mubr.bf16.mxu0 %v3864_v62 }
 0x1a5   : > { %2417 = vmatprep.mubr.bf16.mxu1 %v3866_v63  ;;  %v824_v63 = vld [vmem:[#allocation3 + $0x130] sm:$0xff] }
 0x1ab   : > { %2129 = vmatmul.mubr.bf16.gmra.mxu0 %v3868_v0 }
 0x1ac   : > { %2418 = vmatmul.mubr.bf16.gmra.mxu1 %v3869_v1  ;;  %2136 = vmatprep.mubr.bf16.mxu0 %v3870_v2 }
 0x1ad   : > { %2425 = vmatprep.mubr.bf16.mxu1 %v3872_v3 }
 0x1b3   : > { %v1946_v8 = vpop.f32.mrf.mxu0  ;;  %2137 = vmatmul.mubr.bf16.gmra.mxu0 %v3874_v4 }
 0x1b4   : > { %v2235_v10 = vpop.f32.mrf.mxu1  ;;  %2426 = vmatmul.mubr.bf16.gmra.mxu1 %v3875_v5  ;;  %2144 = vmatprep.mubr.bf16.mxu0 %v3876_v6  ;;  %v3894_v6 = vld [vmem:[%s4327_s26 + $0x380] ss:$16 sps:$4 sm:$0xff]  }
 0x1b5   : > { %v2236_v11 = vadd.f32 %v2235_v10, %v1946_v8  ;;  %v1948_v12 = vpop.f32.mrf.mxu0  ;;  %2433 = vmatprep.mubr.bf16.mxu1 %v3878_v7  ;;  %v825_v7 = vld [vmem:[#allocation3 + $0x48] sm:$0xff]  ;;  %v3902_v10 = vld [vmem:[%s4327_s26 + $0x3a4] ss:$16 sps:$4 sm:$0xff]  }
 0x1b6   : > { %v2237_v13 = vpop.f32.mrf.mxu1 }
 0x1b7   : > { %v2490_v14 = vadd.f32 %v2236_v11, %v818_v9  ;;  %v1949_v15 = vpop.f32.mrf.mxu0  ;;  %v3897_v9 = vld [vmem:[%s4327_s26 + $0x388] ss:$16 sps:$4 sm:$0xff]   ;;  %v3905_v13 = vld [vmem:[%s4327_s26 + $0x3ac] ss:$16 sps:$4 sm:$0xff]  }
 0x1b8   : > { %v2238_v18 = vpop.f32.mrf.mxu1 }
 0x1b9   : > { %2554 = vst [vmem:[#allocation3 + $0xb0] sm:$0xff] %v2490_v14  ;;  %v2239_v21 = vadd.f32 %v2238_v18, %v1949_v15  ;;  %v1951_v22 = vpop.f32.mrf.mxu0 }
 0x1ba   : > { %v2240_v24 = vpop.f32.mrf.mxu1 }
 0x1bb   : > { %v2491_v25 = vadd.f32 %v2239_v21, %v819_v17  ;;  %v1954_v26 = vpop.f32.mrf.mxu0  ;;  %2145 = vmatmul.mubr.bf16.gmra.mxu0 %v3880_v16  ;;  %v826_v17 = vld [vmem:[#allocation3 + $0x180] sm:$0xff] }
 0x1bc   : > { %v2243_v28 = vpop.f32.mrf.mxu1  ;;  %2434 = vmatmul.mubr.bf16.gmra.mxu1 %v3881_v19  ;;  %2152 = vmatprep.mubr.bf16.mxu0 %v3882_v20  ;;  %v3900_v24 = vld [vmem:[%s4327_s26 + $0x3a0] ss:$16 sps:$4 sm:$0xff]  }
 0x1bd   : > { %2555 = vst [vmem:[#allocation3 + $0x1b0] sm:$0xff] %v2491_v25  ;;  %v2244_v29 = vadd.f32 %v2243_v28, %v1954_v26  ;;  %v1956_v30 = vpop.f32.mrf.mxu0  ;;  %2441 = vmatprep.mubr.bf16.mxu1 %v3884_v23  ;;  %v827_v25 = vld [vmem:[#allocation3 + $0x110] sm:$0xff] }
 0x1be   : > { %v2245_v31 = vpop.f32.mrf.mxu1  ;;  %v3908_v28 = vld [vmem:[%s4327_s26 + $0x3c4] ss:$16 sps:$4 sm:$0xff]  }
 0x1bf   : > { %v2492_v32 = vadd.f32 %v2244_v29, %v820_v27  ;;  %v1957_v33 = vpop.f32.mrf.mxu0  ;;  %v3903_v27 = vld [vmem:[%s4327_s26 + $0x3a8] ss:$16 sps:$4 sm:$0xff]   ;;  %v3911_v31 = vld [vmem:[%s4327_s26 + $0x3cc] ss:$16 sps:$4 sm:$0xff]  }
 0x1c0   : > { %v2246_v36 = vpop.f32.mrf.mxu1 }
 0x1c1   : > { %2556 = vst [vmem:[#allocation3 + $0xd8] sm:$0xff] %v2492_v32  ;;  %v2247_v39 = vadd.f32 %v2246_v36, %v1957_v33  ;;  %v1959_v40 = vpop.f32.mrf.mxu0 }
 0x1c2   : > { %v2248_v42 = vpop.f32.mrf.mxu1 }
 0x1c3   : > { %v2493_v43 = vadd.f32 %v2247_v39, %v821_v35  ;;  %v1962_v44 = vpop.f32.mrf.mxu0  ;;  %2153 = vmatmul.mubr.bf16.gmra.mxu0 %v3886_v34  ;;  %v828_v35 = vld [vmem:[#allocation3 + $0x118] sm:$0xff]  ;;  %v3906_v42 = vld [vmem:[%s4327_s26 + $0x3c0] ss:$16 sps:$4 sm:$0xff]  }
 0x1c4   : > { %v2251_v46 = vpop.f32.mrf.mxu1  ;;  %2442 = vmatmul.mubr.bf16.gmra.mxu1 %v3887_v37  ;;  %2160 = vmatprep.mubr.bf16.mxu0 %v3888_v38 }
 0x1c5   : > { %2557 = vst [vmem:[#allocation3 + $0x18] sm:$0xff] %v2493_v43  ;;  %v2252_v47 = vadd.f32 %v2251_v46, %v1962_v44  ;;  %v1964_v48 = vpop.f32.mrf.mxu0  ;;  %2449 = vmatprep.mubr.bf16.mxu1 %v3890_v41  ;;  %v829_v43 = vld [vmem:[#allocation3 + $0x98] sm:$0xff]  ;;  %v3914_v46 = vld [vmem:[%s4327_s26 + $0x3e4] ss:$16 sps:$4 sm:$0xff]  }
 0x1c6   : > { %v2253_v49 = vpop.f32.mrf.mxu1 }
 0x1c7   : > { %v2494_v50 = vadd.f32 %v2252_v47, %v822_v45  ;;  %v1965_v51 = vpop.f32.mrf.mxu0  ;;  %v3909_v45 = vld [vmem:[%s4327_s26 + $0x3c8] ss:$16 sps:$4 sm:$0xff]   ;;  %v3917_v49 = vld [vmem:[%s4327_s26 + $0x3ec] ss:$16 sps:$4 sm:$0xff]  }
 0x1c8   : > { %v2254_v54 = vpop.f32.mrf.mxu1 }
 0x1c9   : > { %2558 = vst [vmem:[#allocation3 + $0x50] sm:$0xff] %v2494_v50  ;;  %v2255_v57 = vadd.f32 %v2254_v54, %v1965_v51  ;;  %v1967_v58 = vpop.f32.mrf.mxu0 }
 0x1ca   : > { %v2256_v60 = vpop.f32.mrf.mxu1 }
 0x1cb   : > { %v2495_v61 = vadd.f32 %v2255_v57, %v823_v53  ;;  %v1970_v62 = vpop.f32.mrf.mxu0  ;;  %2161 = vmatmul.mubr.bf16.gmra.mxu0 %v3892_v52  ;;  %v830_v53 = vld [vmem:[#allocation3 + $0x120] sm:$0xff] }
 0x1cc   : > { %v2259_v0 = vpop.f32.mrf.mxu1  ;;  %2450 = vmatmul.mubr.bf16.gmra.mxu1 %v3893_v55  ;;  %2168 = vmatprep.mubr.bf16.mxu0 %v3896_v56  ;;  %v3912_v60 = vld [vmem:[%s4327_s26 + $0x3e0] ss:$16 sps:$4 sm:$0xff]  }
 0x1cd   : > { %2559 = vst [vmem:[#allocation3 + $0x168] sm:$0xff] %v2495_v61  ;;  %v2260_v1 = vadd.f32 %v2259_v0, %v1970_v62  ;;  %v1972_v2 = vpop.f32.mrf.mxu0  ;;  %2457 = vmatprep.mubr.bf16.mxu1 %v3899_v59  ;;  %v831_v61 = vld [vmem:[#allocation3 + $0x150] sm:$0xff] }
 0x1ce   : > { %v2261_v3 = vpop.f32.mrf.mxu1 }
 0x1cf   : > { %v2496_v4 = vadd.f32 %v2260_v1, %v824_v63  ;;  %v1973_v5 = vpop.f32.mrf.mxu0  ;;  %v3915_v63 = vld [vmem:[%s4327_s26 + $0x3e8] ss:$16 sps:$4 sm:$0xff]  }
 0x1d0   : > { %v2262_v8 = vpop.f32.mrf.mxu1 }
 0x1d1   : > { %2560 = vst [vmem:[#allocation3 + $0x130] sm:$0xff] %v2496_v4  ;;  %v2263_v11 = vadd.f32 %v2262_v8, %v1973_v5  ;;  %v1975_v12 = vpop.f32.mrf.mxu0  ;;  %v832_v5 = vld [vmem:[#allocation3 + $0x108] sm:$0xff] }
 0x1d2   : > { %v2264_v14 = vpop.f32.mrf.mxu1  ;;  %v833_v12 = vld [vmem:[#allocation3 + $0x60] sm:$0xff] }
 0x1d3   : > { %v2497_v15 = vadd.f32 %v2263_v11, %v825_v7  ;;  %v1978_v16 = vpop.f32.mrf.mxu0  ;;  %2169 = vmatmul.mubr.bf16.gmra.mxu0 %v3894_v6 }
 0x1d4   : > { %v2267_v18 = vpop.f32.mrf.mxu1  ;;  %2458 = vmatmul.mubr.bf16.gmra.mxu1 %v3897_v9  ;;  %2176 = vmatprep.mubr.bf16.mxu0 %v3902_v10 }
 0x1d5   : > { %2561 = vst [vmem:[#allocation3 + $0x48] sm:$0xff] %v2497_v15  ;;  %v2268_v19 = vadd.f32 %v2267_v18, %v1978_v16  ;;  %v1980_v20 = vpop.f32.mrf.mxu0  ;;  %2465 = vmatprep.mubr.bf16.mxu1 %v3905_v13 }
 0x1d6   : > { %v2269_v21 = vpop.f32.mrf.mxu1 }
 0x1d7   : > { %v2498_v22 = vadd.f32 %v2268_v19, %v826_v17  ;;  %v1981_v23 = vpop.f32.mrf.mxu0  ;;  %v834_v19 = vld [vmem:[#allocation3 + $0xe0] sm:$0xff] }
 0x1d8   : > { %v2270_v26 = vpop.f32.mrf.mxu1 }
 0x1d9   : > { %2562 = vst [vmem:[#allocation3 + $0x180] sm:$0xff] %v2498_v22  ;;  %v2271_v29 = vadd.f32 %v2270_v26, %v1981_v23  ;;  %v1983_v30 = vpop.f32.mrf.mxu0  ;;  %v835_v26 = vld [vmem:[#allocation3 + $0x188] sm:$0xff] }
 0x1da   : > { %v2272_v32 = vpop.f32.mrf.mxu1 }
 0x1db   : > { %v2499_v33 = vadd.f32 %v2271_v29, %v827_v25  ;;  %v1986_v34 = vpop.f32.mrf.mxu0  ;;  %2177 = vmatmul.mubr.bf16.gmra.mxu0 %v3900_v24 }
 0x1dc   : > { %v2275_v36 = vpop.f32.mrf.mxu1  ;;  %2466 = vmatmul.mubr.bf16.gmra.mxu1 %v3903_v27  ;;  %2184 = vmatprep.mubr.bf16.mxu0 %v3908_v28 }
 0x1dd   : > { %2563 = vst [vmem:[#allocation3 + $0x110] sm:$0xff] %v2499_v33  ;;  %v2276_v37 = vadd.f32 %v2275_v36, %v1986_v34  ;;  %v1988_v38 = vpop.f32.mrf.mxu0  ;;  %2473 = vmatprep.mubr.bf16.mxu1 %v3911_v31  ;;  %v836_v33 = vld [vmem:[#allocation3 + $0x138] sm:$0xff] }
 0x1de   : > { %v2277_v39 = vpop.f32.mrf.mxu1 }
 0x1df   : > { %v2500_v40 = vadd.f32 %v2276_v37, %v828_v35  ;;  %v1989_v41 = vpop.f32.mrf.mxu0 }
 0x1e0   : > { %v2278_v44 = vpop.f32.mrf.mxu1 }
 0x1e1   : > { %2564 = vst [vmem:[#allocation3 + $0x118] sm:$0xff] %v2500_v40  ;;  %v2279_v47 = vadd.f32 %v2278_v44, %v1989_v41  ;;  %v1991_v48 = vpop.f32.mrf.mxu0  ;;  %v837_v40 = vld [vmem:[#allocation3 + $0x140] sm:$0xff] }
 0x1e2   : > { %v2280_v50 = vpop.f32.mrf.mxu1 }
 0x1e3   : > { %v2501_v51 = vadd.f32 %v2279_v47, %v829_v43  ;;  %v1994_v52 = vpop.f32.mrf.mxu0  ;;  %2185 = vmatmul.mubr.bf16.gmra.mxu0 %v3906_v42  ;;  %v838_v47 = vld [vmem:[#allocation3 + $0x80] sm:$0xff] }
 0x1e4   : > { %v2283_v54 = vpop.f32.mrf.mxu1  ;;  %2474 = vmatmul.mubr.bf16.gmra.mxu1 %v3909_v45  ;;  %2192 = vmatprep.mubr.bf16.mxu0 %v3914_v46 }
 0x1e5   : > { %2565 = vst [vmem:[#allocation3 + $0x98] sm:$0xff] %v2501_v51  ;;  %v2284_v55 = vadd.f32 %v2283_v54, %v1994_v52  ;;  %v1996_v56 = vpop.f32.mrf.mxu0  ;;  %2481 = vmatprep.mubr.bf16.mxu1 %v3917_v49  ;;  %v839_v54 = vld [vmem:[#allocation3 + $0x1a8] sm:$0xff] }
 0x1e6   : > { %v2285_v57 = vpop.f32.mrf.mxu1 }
 0x1e7   : > { %v2502_v58 = vadd.f32 %v2284_v55, %v830_v53  ;;  %v1997_v59 = vpop.f32.mrf.mxu0 }
 0x1e8   : > { %v2286_v62 = vpop.f32.mrf.mxu1 }
 0x1e9   : > { %2566 = vst [vmem:[#allocation3 + $0x120] sm:$0xff] %v2502_v58  ;;  %v2287_v0 = vadd.f32 %v2286_v62, %v1997_v59  ;;  %v1999_v1 = vpop.f32.mrf.mxu0 }
 0x1ea   : > { %v2288_v2 = vpop.f32.mrf.mxu1 }
 0x1eb   : > { %v2503_v3 = vadd.f32 %v2287_v0, %v831_v61  ;;  %v2002_v4 = vpop.f32.mrf.mxu0  ;;  %2193 = vmatmul.mubr.bf16.gmra.mxu0 %v3912_v60  ;;  %v840_v61 = vld [vmem:[#allocation3 + $0x1b8] sm:$0xff] }
 0x1ec   : > { %v2291_v6 = vpop.f32.mrf.mxu1  ;;  %2482 = vmatmul.mubr.bf16.gmra.mxu1 %v3915_v63 }
 0x1ed   : > { %2567 = vst [vmem:[#allocation3 + $0x150] sm:$0xff] %v2503_v3  ;;  %v2292_v7 = vadd.f32 %v2291_v6, %v2002_v4  ;;  %v2004_v8 = vpop.f32.mrf.mxu0  ;;  %v841_v4 = vld [vmem:[#allocation3 + $0x28] sm:$0xff] }
 0x1ee   : > { %v2293_v9 = vpop.f32.mrf.mxu1 }
 0x1ef   : > { %v2504_v10 = vadd.f32 %v2292_v7, %v832_v5  ;;  %v2005_v11 = vpop.f32.mrf.mxu0 }
 0x1f0   : > { %v2294_v13 = vpop.f32.mrf.mxu1 }
 0x1f1   : > { %2568 = vst [vmem:[#allocation3 + $0x108] sm:$0xff] %v2504_v10  ;;  %v2295_v14 = vadd.f32 %v2294_v13, %v2005_v11  ;;  %v2007_v15 = vpop.f32.mrf.mxu0  ;;  %v842_v11 = vld [vmem:[#allocation3 + $0x1e8] sm:$0xff] }
 0x1f2   : > { %v2296_v16 = vpop.f32.mrf.mxu1 }
 0x1f3   : > { %v2505_v17 = vadd.f32 %v2295_v14, %v833_v12  ;;  %v2010_v18 = vpop.f32.mrf.mxu0 }
 0x1f4   : > { %v2299_v20 = vpop.f32.mrf.mxu1 }
 0x1f5   : > { %2569 = vst [vmem:[#allocation3 + $0x60] sm:$0xff] %v2505_v17  ;;  %v2300_v21 = vadd.f32 %v2299_v20, %v2010_v18  ;;  %v2012_v22 = vpop.f32.mrf.mxu0  ;;  %v843_v18 = vld [vmem:[#allocation3 + $0xf8] sm:$0xff] }
 0x1f6   : > { %v2301_v23 = vpop.f32.mrf.mxu1 }
 0x1f7   : > { %v2506_v24 = vadd.f32 %v2300_v21, %v834_v19  ;;  %v2013_v25 = vpop.f32.mrf.mxu0 }
 0x1f8   : > { %v2302_v27 = vpop.f32.mrf.mxu1 }
 0x1f9   : > { %2570 = vst [vmem:[#allocation3 + $0xe0] sm:$0xff] %v2506_v24  ;;  %v2303_v28 = vadd.f32 %v2302_v27, %v2013_v25  ;;  %v2015_v29 = vpop.f32.mrf.mxu0  ;;  %v844_v25 = vld [vmem:[#allocation3 + $0x160] sm:$0xff] }
 0x1fa   : > { %v2304_v30 = vpop.f32.mrf.mxu1 }
 0x1fb   : > { %v2507_v31 = vadd.f32 %v2303_v28, %v835_v26  ;;  %v2018_v32 = vpop.f32.mrf.mxu0 }
 0x1fc   : > { %v2307_v34 = vpop.f32.mrf.mxu1 }
 0x1fd   : > { %2571 = vst [vmem:[#allocation3 + $0x188] sm:$0xff] %v2507_v31  ;;  %v2308_v35 = vadd.f32 %v2307_v34, %v2018_v32  ;;  %v2020_v36 = vpop.f32.mrf.mxu0  ;;  %v845_v32 = vld [vmem:[#allocation3 + $0x30] sm:$0xff] }
 0x1fe   : > { %v2309_v37 = vpop.f32.mrf.mxu1 }
 0x1ff   : > { %v2508_v38 = vadd.f32 %v2308_v35, %v836_v33  ;;  %v2021_v39 = vpop.f32.mrf.mxu0 }
 0x200   : > { %v2310_v41 = vpop.f32.mrf.mxu1 }
 0x201   : > { %2572 = vst [vmem:[#allocation3 + $0x138] sm:$0xff] %v2508_v38  ;;  %v2311_v42 = vadd.f32 %v2310_v41, %v2021_v39  ;;  %v2023_v43 = vpop.f32.mrf.mxu0  ;;  %v846_v39 = vld [vmem:[#allocation3 + $0x1e0] sm:$0xff] }
 0x202   : > { %v2312_v44 = vpop.f32.mrf.mxu1 }
 0x203   : > { %v2509_v45 = vadd.f32 %v2311_v42, %v837_v40  ;;  %v2026_v46 = vpop.f32.mrf.mxu0 }
 0x204   : > { %v2315_v48 = vpop.f32.mrf.mxu1 }
 0x205   : > { %2573 = vst [vmem:[#allocation3 + $0x140] sm:$0xff] %v2509_v45  ;;  %v2316_v49 = vadd.f32 %v2315_v48, %v2026_v46  ;;  %v2028_v50 = vpop.f32.mrf.mxu0  ;;  %v847_v46 = vld [vmem:[#allocation3] sm:$0xff] }
 0x206   : > { %v2317_v51 = vpop.f32.mrf.mxu1 }
 0x207   : > { %v2510_v52 = vadd.f32 %v2316_v49, %v838_v47  ;;  %v2029_v53 = vpop.f32.mrf.mxu0 }
 0x208   : > { %v2318_v55 = vpop.f32.mrf.mxu1 }
 0x209   : > { %2574 = vst [vmem:[#allocation3 + $0x80] sm:$0xff] %v2510_v52  ;;  %v2319_v56 = vadd.f32 %v2318_v55, %v2029_v53  ;;  %v2031_v57 = vpop.f32.mrf.mxu0  ;;  %v848_v53 = vld [vmem:[#allocation3 + $0xf0] sm:$0xff] }
 0x20a   : > { %v2320_v58 = vpop.f32.mrf.mxu1 }
 0x20b   : > { %v2511_v59 = vadd.f32 %v2319_v56, %v839_v54  ;;  %v2034_v60 = vpop.f32.mrf.mxu0 }
 0x20c   : > { %v2323_v62 = vpop.f32.mrf.mxu1 }
 0x20d   : > { %2575 = vst [vmem:[#allocation3 + $0x1a8] sm:$0xff] %v2511_v59  ;;  %v2324_v63 = vadd.f32 %v2323_v62, %v2034_v60  ;;  %v2036_v0 = vpop.f32.mrf.mxu0  ;;  %v849_v60 = vld [vmem:[#allocation3 + $0x8] sm:$0xff] }
 0x20e   : > { %v2325_v1 = vpop.f32.mrf.mxu1 }
 0x20f   : > { %v2512_v2 = vadd.f32 %v2324_v63, %v840_v61  ;;  %v2037_v3 = vpop.f32.mrf.mxu0 }
 0x210   : > { %v2326_v5 = vpop.f32.mrf.mxu1 }
 0x211   : > { %2576 = vst [vmem:[#allocation3 + $0x1b8] sm:$0xff] %v2512_v2  ;;  %v2327_v6 = vadd.f32 %v2326_v5, %v2037_v3  ;;  %v2039_v7 = vpop.f32.mrf.mxu0  ;;  %v850_v3 = vld [vmem:[#allocation3 + $0x148] sm:$0xff] }
 0x212   : > { %v2328_v8 = vpop.f32.mrf.mxu1 }
 0x213   : > { %v2513_v9 = vadd.f32 %v2327_v6, %v841_v4  ;;  %v2042_v10 = vpop.f32.mrf.mxu0 }
 0x214   : > { %v2331_v12 = vpop.f32.mrf.mxu1 }
 0x215   : > { %2577 = vst [vmem:[#allocation3 + $0x28] sm:$0xff] %v2513_v9  ;;  %v2332_v13 = vadd.f32 %v2331_v12, %v2042_v10  ;;  %v2044_v14 = vpop.f32.mrf.mxu0  ;;  %v851_v10 = vld [vmem:[#allocation3 + $0x1d0] sm:$0xff] }
 0x216   : > { %v2333_v15 = vpop.f32.mrf.mxu1 }
 0x217   : > { %v2514_v16 = vadd.f32 %v2332_v13, %v842_v11  ;;  %v2045_v17 = vpop.f32.mrf.mxu0 }
 0x218   : > { %v2334_v19 = vpop.f32.mrf.mxu1 }
 0x219   : > { %2578 = vst [vmem:[#allocation3 + $0x1e8] sm:$0xff] %v2514_v16  ;;  %v2335_v20 = vadd.f32 %v2334_v19, %v2045_v17  ;;  %v2047_v21 = vpop.f32.mrf.mxu0  ;;  %v852_v17 = vld [vmem:[#allocation3 + $0x100] sm:$0xff] }
 0x21a   : > { %v2336_v22 = vpop.f32.mrf.mxu1 }
 0x21b   : > { %v2515_v23 = vadd.f32 %v2335_v20, %v843_v18  ;;  %v2050_v24 = vpop.f32.mrf.mxu0 }
 0x21c   : > { %v2339_v26 = vpop.f32.mrf.mxu1 }
 0x21d   : > { %2579 = vst [vmem:[#allocation3 + $0xf8] sm:$0xff] %v2515_v23  ;;  %v2340_v27 = vadd.f32 %v2339_v26, %v2050_v24  ;;  %v2052_v28 = vpop.f32.mrf.mxu0  ;;  %v853_v24 = vld [vmem:[#allocation3 + $0xc8] sm:$0xff] }
 0x21e   : > { %v2341_v29 = vpop.f32.mrf.mxu1 }
 0x21f   : > { %v2516_v30 = vadd.f32 %v2340_v27, %v844_v25  ;;  %v2053_v31 = vpop.f32.mrf.mxu0 }
 0x220   : > { %v2342_v33 = vpop.f32.mrf.mxu1 }
 0x221   : > { %2580 = vst [vmem:[#allocation3 + $0x160] sm:$0xff] %v2516_v30  ;;  %v2343_v34 = vadd.f32 %v2342_v33, %v2053_v31  ;;  %v2055_v35 = vpop.f32.mrf.mxu0  ;;  %v854_v31 = vld [vmem:[#allocation3 + $0x40] sm:$0xff] }
 0x222   : > { %v2344_v36 = vpop.f32.mrf.mxu1 }
 0x223   : > { %v2517_v37 = vadd.f32 %v2343_v34, %v845_v32  ;;  %v2058_v38 = vpop.f32.mrf.mxu0 }
 0x224   : > { %v2347_v40 = vpop.f32.mrf.mxu1 }
 0x225   : > { %2581 = vst [vmem:[#allocation3 + $0x30] sm:$0xff] %v2517_v37  ;;  %v2348_v41 = vadd.f32 %v2347_v40, %v2058_v38  ;;  %v2060_v42 = vpop.f32.mrf.mxu0  ;;  %v855_v38 = vld [vmem:[#allocation3 + $0x1f8] sm:$0xff] }
 0x226   : > { %v2349_v43 = vpop.f32.mrf.mxu1 }
 0x227   : > { %v2518_v44 = vadd.f32 %v2348_v41, %v846_v39  ;;  %v2061_v45 = vpop.f32.mrf.mxu0 }
 0x228   : > { %v2350_v47 = vpop.f32.mrf.mxu1 }
 0x229   : > { %2582 = vst [vmem:[#allocation3 + $0x1e0] sm:$0xff] %v2518_v44  ;;  %v2351_v48 = vadd.f32 %v2350_v47, %v2061_v45  ;;  %v2063_v49 = vpop.f32.mrf.mxu0  ;;  %v856_v45 = vld [vmem:[#allocation3 + $0x20] sm:$0xff] }
 0x22a   : > { %v2352_v50 = vpop.f32.mrf.mxu1 }
 0x22b   : > { %v2519_v51 = vadd.f32 %v2351_v48, %v847_v46  ;;  %v2066_v52 = vpop.f32.mrf.mxu0 }
 0x22c   : > { %v2355_v54 = vpop.f32.mrf.mxu1 }
 0x22d   : > { %2583 = vst [vmem:[#allocation3] sm:$0xff] %v2519_v51  ;;  %v2356_v55 = vadd.f32 %v2355_v54, %v2066_v52  ;;  %v2068_v56 = vpop.f32.mrf.mxu0  ;;  %v857_v52 = vld [vmem:[#allocation3 + $0x128] sm:$0xff] }
 0x22e   : > { %v2357_v57 = vpop.f32.mrf.mxu1 }
 0x22f   : > { %v2520_v58 = vadd.f32 %v2356_v55, %v848_v53  ;;  %v2069_v59 = vpop.f32.mrf.mxu0 }
 0x230   : > { %v2358_v61 = vpop.f32.mrf.mxu1 }
 0x231   : > { %2584 = vst [vmem:[#allocation3 + $0xf0] sm:$0xff] %v2520_v58  ;;  %v2359_v62 = vadd.f32 %v2358_v61, %v2069_v59  ;;  %v2071_v63 = vpop.f32.mrf.mxu0  ;;  %v858_v59 = vld [vmem:[#allocation3 + $0x1a0] sm:$0xff] }
 0x232   : > { %v2360_v0 = vpop.f32.mrf.mxu1 }
 0x233   : > { %v2521_v1 = vadd.f32 %v2359_v62, %v849_v60  ;;  %v2074_v2 = vpop.f32.mrf.mxu0 }
 0x234   : > { %v2363_v4 = vpop.f32.mrf.mxu1 }
 0x235   : > { %2585 = vst [vmem:[#allocation3 + $0x8] sm:$0xff] %v2521_v1  ;;  %v2364_v5 = vadd.f32 %v2363_v4, %v2074_v2  ;;  %v2076_v6 = vpop.f32.mrf.mxu0  ;;  %v859_v2 = vld [vmem:[#allocation3 + $0x1f0] sm:$0xff] }
 0x236   : > { %v2365_v7 = vpop.f32.mrf.mxu1 }
 0x237   : > { %v2522_v8 = vadd.f32 %v2364_v5, %v850_v3  ;;  %v2077_v9 = vpop.f32.mrf.mxu0 }
 0x238   : > { %v2366_v11 = vpop.f32.mrf.mxu1 }
 0x239   : > { %2586 = vst [vmem:[#allocation3 + $0x148] sm:$0xff] %v2522_v8  ;;  %v2367_v12 = vadd.f32 %v2366_v11, %v2077_v9  ;;  %v2079_v13 = vpop.f32.mrf.mxu0  ;;  %v860_v9 = vld [vmem:[#allocation3 + $0xe8] sm:$0xff] }
 0x23a   : > { %v2368_v14 = vpop.f32.mrf.mxu1 }
 0x23b   : > { %v2523_v15 = vadd.f32 %v2367_v12, %v851_v10  ;;  %v2082_v16 = vpop.f32.mrf.mxu0 }
 0x23c   : > { %v2371_v18 = vpop.f32.mrf.mxu1 }
 0x23d   : > { %2587 = vst [vmem:[#allocation3 + $0x1d0] sm:$0xff] %v2523_v15  ;;  %v2372_v19 = vadd.f32 %v2371_v18, %v2082_v16  ;;  %v2084_v20 = vpop.f32.mrf.mxu0  ;;  %v861_v16 = vld [vmem:[#allocation3 + $0x78] sm:$0xff] }
 0x23e   : > { %v2373_v21 = vpop.f32.mrf.mxu1 }
 0x23f   : > { %v2524_v22 = vadd.f32 %v2372_v19, %v852_v17  ;;  %v2085_v23 = vpop.f32.mrf.mxu0 }
 0x240   : > { %v2374_v25 = vpop.f32.mrf.mxu1 }
 0x241   : > { %2588 = vst [vmem:[#allocation3 + $0x100] sm:$0xff] %v2524_v22  ;;  %v2375_v26 = vadd.f32 %v2374_v25, %v2085_v23  ;;  %v2087_v27 = vpop.f32.mrf.mxu0  ;;  %v862_v23 = vld [vmem:[#allocation3 + $0x70] sm:$0xff] }
 0x242   : > { %v2376_v28 = vpop.f32.mrf.mxu1 }
 0x243   : > { %v2525_v29 = vadd.f32 %v2375_v26, %v853_v24  ;;  %v2090_v30 = vpop.f32.mrf.mxu0 }
 0x244   : > { %v2379_v32 = vpop.f32.mrf.mxu1 }
 0x245   : > { %2589 = vst [vmem:[#allocation3 + $0xc8] sm:$0xff] %v2525_v29  ;;  %v2380_v33 = vadd.f32 %v2379_v32, %v2090_v30  ;;  %v2092_v34 = vpop.f32.mrf.mxu0  ;;  %v863_v30 = vld [vmem:[#allocation3 + $0x90] sm:$0xff] }
 0x246   : > { %v2381_v35 = vpop.f32.mrf.mxu1 }
 0x247   : > { %v2526_v36 = vadd.f32 %v2380_v33, %v854_v31  ;;  %v2093_v37 = vpop.f32.mrf.mxu0 }
 0x248   : > { %v2382_v39 = vpop.f32.mrf.mxu1 }
 0x249   : > { %2590 = vst [vmem:[#allocation3 + $0x40] sm:$0xff] %v2526_v36  ;;  %v2383_v40 = vadd.f32 %v2382_v39, %v2093_v37  ;;  %v2095_v41 = vpop.f32.mrf.mxu0  ;;  %v864_v37 = vld [vmem:[#allocation3 + $0x1d8] sm:$0xff] }
 0x24a   : > { %v2384_v42 = vpop.f32.mrf.mxu1 }
 0x24b   : > { %v2527_v43 = vadd.f32 %v2383_v40, %v855_v38  ;;  %v2098_v44 = vpop.f32.mrf.mxu0 }
 0x24c   : > { %v2387_v46 = vpop.f32.mrf.mxu1 }
 0x24d   : > { %2591 = vst [vmem:[#allocation3 + $0x1f8] sm:$0xff] %v2527_v43  ;;  %v2388_v47 = vadd.f32 %v2387_v46, %v2098_v44  ;;  %v2100_v48 = vpop.f32.mrf.mxu0  ;;  %v865_v44 = vld [vmem:[#allocation3 + $0xd0] sm:$0xff] }
 0x24e   : > { %v2389_v49 = vpop.f32.mrf.mxu1 }
 0x24f   : > { %v2528_v50 = vadd.f32 %v2388_v47, %v856_v45  ;;  %v2101_v51 = vpop.f32.mrf.mxu0 }
 0x250   : > { %v2390_v53 = vpop.f32.mrf.mxu1 }
 0x251   : > { %2592 = vst [vmem:[#allocation3 + $0x20] sm:$0xff] %v2528_v50  ;;  %v2391_v54 = vadd.f32 %v2390_v53, %v2101_v51  ;;  %v2103_v55 = vpop.f32.mrf.mxu0  ;;  %v866_v51 = vld [vmem:[#allocation3 + $0xb8] sm:$0xff] }
 0x252   : > { %v2392_v56 = vpop.f32.mrf.mxu1 }
 0x253   : > { %v2529_v57 = vadd.f32 %v2391_v54, %v857_v52  ;;  %v2106_v58 = vpop.f32.mrf.mxu0 }
 0x254   : > { %v2395_v60 = vpop.f32.mrf.mxu1 }
 0x255   : > { %2593 = vst [vmem:[#allocation3 + $0x128] sm:$0xff] %v2529_v57  ;;  %v2396_v61 = vadd.f32 %v2395_v60, %v2106_v58  ;;  %v2108_v62 = vpop.f32.mrf.mxu0  ;;  %v867_v58 = vld [vmem:[#allocation3 + $0x88] sm:$0xff] }
 0x256   : > { %v2397_v63 = vpop.f32.mrf.mxu1 }
 0x257   : > { %v2530_v0 = vadd.f32 %v2396_v61, %v858_v59  ;;  %v2109_v1 = vpop.f32.mrf.mxu0 }
 0x258   : > { %v2398_v3 = vpop.f32.mrf.mxu1 }
 0x259   : > { %2594 = vst [vmem:[#allocation3 + $0x1a0] sm:$0xff] %v2530_v0  ;;  %v2399_v4 = vadd.f32 %v2398_v3, %v2109_v1  ;;  %v2111_v5 = vpop.f32.mrf.mxu0  ;;  %v868_v1 = vld [vmem:[#allocation3 + $0xa8] sm:$0xff] }
 0x25a   : > { %v2400_v6 = vpop.f32.mrf.mxu1 }
 0x25b   : > { %v2531_v7 = vadd.f32 %v2399_v4, %v859_v2  ;;  %v2114_v8 = vpop.f32.mrf.mxu0 }
 0x25c   : > { %v2403_v10 = vpop.f32.mrf.mxu1 }
 0x25d   : > { %2595 = vst [vmem:[#allocation3 + $0x1f0] sm:$0xff] %v2531_v7  ;;  %v2404_v11 = vadd.f32 %v2403_v10, %v2114_v8  ;;  %v2116_v12 = vpop.f32.mrf.mxu0  ;;  %v869_v8 = vld [vmem:[#allocation3 + $0x1c8] sm:$0xff] }
 0x25e   : > { %v2405_v13 = vpop.f32.mrf.mxu1 }
 0x25f   : > { %v2532_v14 = vadd.f32 %v2404_v11, %v860_v9  ;;  %v2117_v15 = vpop.f32.mrf.mxu0 }
 0x260   : > { %v2406_v17 = vpop.f32.mrf.mxu1 }
 0x261   : > { %2596 = vst [vmem:[#allocation3 + $0xe8] sm:$0xff] %v2532_v14  ;;  %v2407_v18 = vadd.f32 %v2406_v17, %v2117_v15  ;;  %v2119_v19 = vpop.f32.mrf.mxu0  ;;  %v870_v15 = vld [vmem:[#allocation3 + $0x170] sm:$0xff] }
 0x262   : > { %v2408_v20 = vpop.f32.mrf.mxu1 }
 0x263   : > { %v2533_v21 = vadd.f32 %v2407_v18, %v861_v16  ;;  %v2122_v22 = vpop.f32.mrf.mxu0 }
 0x264   : > { %v2411_v24 = vpop.f32.mrf.mxu1 }
 0x265   : > { %2597 = vst [vmem:[#allocation3 + $0x78] sm:$0xff] %v2533_v21  ;;  %v2412_v25 = vadd.f32 %v2411_v24, %v2122_v22  ;;  %v2124_v26 = vpop.f32.mrf.mxu0  ;;  %v871_v22 = vld [vmem:[#allocation3 + $0x178] sm:$0xff] }
 0x266   : > { %v2413_v27 = vpop.f32.mrf.mxu1 }
 0x267   : > { %v2534_v28 = vadd.f32 %v2412_v25, %v862_v23  ;;  %v2125_v29 = vpop.f32.mrf.mxu0 }
 0x268   : > { %v2414_v31 = vpop.f32.mrf.mxu1 }
 0x269   : > { %2598 = vst [vmem:[#allocation3 + $0x70] sm:$0xff] %v2534_v28  ;;  %v2415_v32 = vadd.f32 %v2414_v31, %v2125_v29  ;;  %v2127_v33 = vpop.f32.mrf.mxu0  ;;  %v872_v29 = vld [vmem:[#allocation3 + $0x68] sm:$0xff] }
 0x26a   : > { %v2416_v34 = vpop.f32.mrf.mxu1 }
 0x26b   : > { %v2535_v35 = vadd.f32 %v2415_v32, %v863_v30  ;;  %v2130_v36 = vpop.f32.mrf.mxu0 }
 0x26c   : > { %v2419_v38 = vpop.f32.mrf.mxu1 }
 0x26d   : > { %2599 = vst [vmem:[#allocation3 + $0x90] sm:$0xff] %v2535_v35  ;;  %v2420_v39 = vadd.f32 %v2419_v38, %v2130_v36  ;;  %v2132_v40 = vpop.f32.mrf.mxu0  ;;  %v873_v36 = vld [vmem:[#allocation3 + $0x190] sm:$0xff] }
 0x26e   : > { %v2421_v41 = vpop.f32.mrf.mxu1 }
 0x26f   : > { %v2536_v42 = vadd.f32 %v2420_v39, %v864_v37  ;;  %v2133_v43 = vpop.f32.mrf.mxu0 }
 0x270   : > { %v2422_v45 = vpop.f32.mrf.mxu1 }
 0x271   : > { %2600 = vst [vmem:[#allocation3 + $0x1d8] sm:$0xff] %v2536_v42  ;;  %v2423_v46 = vadd.f32 %v2422_v45, %v2133_v43  ;;  %v2135_v47 = vpop.f32.mrf.mxu0  ;;  %v874_v43 = vld [vmem:[#allocation3 + $0x198] sm:$0xff] }
 0x272   : > { %v2424_v48 = vpop.f32.mrf.mxu1 }
 0x273   : > { %v2537_v49 = vadd.f32 %v2423_v46, %v865_v44  ;;  %v2138_v50 = vpop.f32.mrf.mxu0 }
 0x274   : > { %v2427_v52 = vpop.f32.mrf.mxu1 }
 0x275   : > { %2601 = vst [vmem:[#allocation3 + $0xd0] sm:$0xff] %v2537_v49  ;;  %v2428_v53 = vadd.f32 %v2427_v52, %v2138_v50  ;;  %v2140_v54 = vpop.f32.mrf.mxu0  ;;  %v875_v50 = vld [vmem:[#allocation3 + $0x38] sm:$0xff] }
 0x276   : > { %v2429_v55 = vpop.f32.mrf.mxu1 }
 0x277   : > { %v2538_v56 = vadd.f32 %v2428_v53, %v866_v51  ;;  %v2141_v57 = vpop.f32.mrf.mxu0 }
 0x278   : > { %v2430_v59 = vpop.f32.mrf.mxu1 }
 0x279   : > { %2602 = vst [vmem:[#allocation3 + $0xb8] sm:$0xff] %v2538_v56  ;;  %v2431_v60 = vadd.f32 %v2430_v59, %v2141_v57  ;;  %v2143_v61 = vpop.f32.mrf.mxu0  ;;  %v876_v57 = vld [vmem:[#allocation3 + $0xc0] sm:$0xff] }
 0x27a   : > { %v2432_v62 = vpop.f32.mrf.mxu1 }
 0x27b   : > { %v2539_v63 = vadd.f32 %v2431_v60, %v867_v58  ;;  %v2146_v0 = vpop.f32.mrf.mxu0 }
 0x27c   : > { %v2435_v2 = vpop.f32.mrf.mxu1 }
 0x27d   : > { %2603 = vst [vmem:[#allocation3 + $0x88] sm:$0xff] %v2539_v63  ;;  %v2436_v3 = vadd.f32 %v2435_v2, %v2146_v0  ;;  %v2148_v4 = vpop.f32.mrf.mxu0  ;;  %v877_v0 = vld [vmem:[#allocation3 + $0x1c0] sm:$0xff] }
 0x27e   : > { %v2437_v5 = vpop.f32.mrf.mxu1 }
 0x27f   : > { %v2540_v6 = vadd.f32 %v2436_v3, %v868_v1  ;;  %v2149_v7 = vpop.f32.mrf.mxu0 }
 0x280   : > { %v2438_v9 = vpop.f32.mrf.mxu1 }
 0x281   : > { %2604 = vst [vmem:[#allocation3 + $0xa8] sm:$0xff] %v2540_v6  ;;  %v2439_v10 = vadd.f32 %v2438_v9, %v2149_v7  ;;  %v2151_v11 = vpop.f32.mrf.mxu0  ;;  %v878_v7 = vld [vmem:[#allocation3 + $0x158] sm:$0xff] }
 0x282   : > { %v2440_v12 = vpop.f32.mrf.mxu1 }
 0x283   : > { %v2541_v13 = vadd.f32 %v2439_v10, %v869_v8  ;;  %v2154_v14 = vpop.f32.mrf.mxu0 }
 0x284   : > { %v2443_v16 = vpop.f32.mrf.mxu1 }
 0x285   : > { %2605 = vst [vmem:[#allocation3 + $0x1c8] sm:$0xff] %v2541_v13  ;;  %v2444_v17 = vadd.f32 %v2443_v16, %v2154_v14  ;;  %v2156_v18 = vpop.f32.mrf.mxu0  ;;  %v879_v14 = vld [vmem:[#allocation3 + $0x10] sm:$0xff] }
 0x286   : > { %v2445_v19 = vpop.f32.mrf.mxu1 }
 0x287   : > { %v2542_v20 = vadd.f32 %v2444_v17, %v870_v15  ;;  %v2157_v21 = vpop.f32.mrf.mxu0 }
 0x288   : > { %v2446_v23 = vpop.f32.mrf.mxu1 }
 0x289   : > { %2606 = vst [vmem:[#allocation3 + $0x170] sm:$0xff] %v2542_v20  ;;  %v2447_v24 = vadd.f32 %v2446_v23, %v2157_v21  ;;  %v2159_v25 = vpop.f32.mrf.mxu0  ;;  %v880_v21 = vld [vmem:[#allocation3 + $0x58] sm:$0xff] }
 0x28a   : > { %v2448_v26 = vpop.f32.mrf.mxu1 }
 0x28b   : > { %v2543_v27 = vadd.f32 %v2447_v24, %v871_v22  ;;  %v2162_v28 = vpop.f32.mrf.mxu0 }
 0x28c   : > { %v2451_v30 = vpop.f32.mrf.mxu1 }
 0x28d   : > { %2607 = vst [vmem:[#allocation3 + $0x178] sm:$0xff] %v2543_v27  ;;  %v2452_v31 = vadd.f32 %v2451_v30, %v2162_v28  ;;  %v2164_v32 = vpop.f32.mrf.mxu0  ;;  %v881_v28 = vld [vmem:[#allocation3 + $0xa0] sm:$0xff] }
 0x28e   : > { %v2453_v33 = vpop.f32.mrf.mxu1 }
 0x28f   : > { %v2544_v34 = vadd.f32 %v2452_v31, %v872_v29  ;;  %v2165_v35 = vpop.f32.mrf.mxu0 }
 0x290   : > { %v2454_v37 = vpop.f32.mrf.mxu1 }
 0x291   : > { %2608 = vst [vmem:[#allocation3 + $0x68] sm:$0xff] %v2544_v34  ;;  %v2455_v38 = vadd.f32 %v2454_v37, %v2165_v35  ;;  %v2167_v39 = vpop.f32.mrf.mxu0 }
 0x292   : > { %v2456_v40 = vpop.f32.mrf.mxu1 }
 0x293   : > { %v2545_v41 = vadd.f32 %v2455_v38, %v873_v36  ;;  %v2170_v42 = vpop.f32.mrf.mxu0 }
 0x294   : > { %v2459_v44 = vpop.f32.mrf.mxu1 }
 0x295   : > { %2609 = vst [vmem:[#allocation3 + $0x190] sm:$0xff] %v2545_v41  ;;  %v2460_v45 = vadd.f32 %v2459_v44, %v2170_v42  ;;  %v2172_v46 = vpop.f32.mrf.mxu0 }
 0x296   : > { %v2461_v47 = vpop.f32.mrf.mxu1 }
 0x297   : > { %v2546_v48 = vadd.f32 %v2460_v45, %v874_v43  ;;  %v2173_v49 = vpop.f32.mrf.mxu0 }
 0x298   : > { %v2462_v51 = vpop.f32.mrf.mxu1 }
 0x299   : > { %2610 = vst [vmem:[#allocation3 + $0x198] sm:$0xff] %v2546_v48  ;;  %v2463_v52 = vadd.f32 %v2462_v51, %v2173_v49  ;;  %v2175_v53 = vpop.f32.mrf.mxu0 }
 0x29a   : > { %v2464_v54 = vpop.f32.mrf.mxu1 }
 0x29b   : > { %v2547_v55 = vadd.f32 %v2463_v52, %v875_v50  ;;  %v2178_v56 = vpop.f32.mrf.mxu0 }
 0x29c   : > { %v2467_v58 = vpop.f32.mrf.mxu1 }
 0x29d   : > { %2611 = vst [vmem:[#allocation3 + $0x38] sm:$0xff] %v2547_v55  ;;  %v2468_v59 = vadd.f32 %v2467_v58, %v2178_v56  ;;  %v2180_v60 = vpop.f32.mrf.mxu0 }
 0x29e   : > { %v2469_v61 = vpop.f32.mrf.mxu1 }
 0x29f   : > { %v2548_v62 = vadd.f32 %v2468_v59, %v876_v57  ;;  %v2181_v63 = vpop.f32.mrf.mxu0 }
 0x2a0   : > { %v2470_v1 = vpop.f32.mrf.mxu1 }
 0x2a1   : > { %2612 = vst [vmem:[#allocation3 + $0xc0] sm:$0xff] %v2548_v62  ;;  %v2471_v2 = vadd.f32 %v2470_v1, %v2181_v63  ;;  %v2183_v3 = vpop.f32.mrf.mxu0 }
 0x2a2   : > { %v2472_v4 = vpop.f32.mrf.mxu1 }
 0x2a3   : > { %v2549_v5 = vadd.f32 %v2471_v2, %v877_v0  ;;  %v2186_v6 = vpop.f32.mrf.mxu0 }
 0x2a4   : > { %v2475_v8 = vpop.f32.mrf.mxu1 }
 0x2a5   : > { %2613 = vst [vmem:[#allocation3 + $0x1c0] sm:$0xff] %v2549_v5  ;;  %v2476_v9 = vadd.f32 %v2475_v8, %v2186_v6  ;;  %v2188_v10 = vpop.f32.mrf.mxu0 }
 0x2a6   : > { %v2477_v11 = vpop.f32.mrf.mxu1 }
 0x2a7   : > { %v2550_v12 = vadd.f32 %v2476_v9, %v878_v7  ;;  %v2189_v13 = vpop.f32.mrf.mxu0 }
 0x2a8   : > { %v2478_v15 = vpop.f32.mrf.mxu1 }
 0x2a9   : > { %2614 = vst [vmem:[#allocation3 + $0x158] sm:$0xff] %v2550_v12  ;;  %v2479_v16 = vadd.f32 %v2478_v15, %v2189_v13  ;;  %v2191_v17 = vpop.f32.mrf.mxu0 }
 0x2aa   : > { %v2480_v18 = vpop.f32.mrf.mxu1 }
 0x2ab   : > { %v2551_v19 = vadd.f32 %v2479_v16, %v879_v14  ;;  %v2194_v20 = vpop.f32.mrf.mxu0 }
 0x2ac   : > { %v2483_v22 = vpop.f32.mrf.mxu1 }
 0x2ad   : > { %2615 = vst [vmem:[#allocation3 + $0x10] sm:$0xff] %v2551_v19  ;;  %v2484_v23 = vadd.f32 %v2483_v22, %v2194_v20  ;;  %v2196_v24 = vpop.f32.mrf.mxu0 }
 0x2ae   : > { %v2485_v25 = vpop.f32.mrf.mxu1 }
 0x2af   : > { %v2552_v26 = vadd.f32 %v2484_v23, %v880_v21  ;;  %v2197_v27 = vpop.f32.mrf.mxu0 }
 0x2b0   : > { %v2486_v29 = vpop.f32.mrf.mxu1 }
 0x2b1   : > { %2616 = vst [vmem:[#allocation3 + $0x58] sm:$0xff] %v2552_v26  ;;  %v2487_v30 = vadd.f32 %v2486_v29, %v2197_v27  ;;  %v2199_v31 = vpop.f32.mrf.mxu0  ;;  %2621 = sbr.rel (%p3497_p1) target bundleno = 729 (0x2d9), region = 67 }
 0x2b2   : > { %v2488_v32 = vpop.f32.mrf.mxu1 }
 0x2b3   : > { %v2553_v33 = vadd.f32 %v2487_v30, %v881_v28 }
 0x2b5   : > { %2617 = vst [vmem:[#allocation3 + $0xa0] sm:$0xff] %v2553_v33 }
 0x2b6   : > { %v3033_v34 = vld [vmem:[#allocation3 + $0xb0] sm:$0xff]  ;;  %v4785_v35 = vld [vmem:[%s4938_s2] ss:$0 sm:$0xff]  ;;  %v3035_v39 = vld [vmem:[#allocation3 + $0xd8] sm:$0xff] }
 0x2b7   : > { %v3034_v36 = vld [vmem:[#allocation3 + $0x1b0] sm:$0xff]  ;;  %v3104_v37 = vadd.f32 %v4785_v35, %v3033_v34  ;;  %v3036_v40 = vld [vmem:[#allocation3 + $0x18] sm:$0xff]  ;;  %v3106_v42 = vadd.f32 %v4785_v35, %v3035_v39  ;;  %v3038_v45 = vld [vmem:[#allocation3 + $0x168] sm:$0xff] }
 0x2b8   : > { %v3105_v38 = vadd.f32 %v4785_v35, %v3034_v36  ;;  %v3037_v41 = vld [vmem:[#allocation3 + $0x50] sm:$0xff]  ;;  %v3107_v43 = vadd.f32 %v4785_v35, %v3036_v40  ;;  %v3040_v47 = vld [vmem:[#allocation3 + $0x48] sm:$0xff]  ;;  %v3109_v48 = vadd.f32 %v4785_v35, %v3038_v45  ;;  %v3041_v51 = vld [vmem:[#allocation3 + $0x180] sm:$0xff] }
 0x2b9   : > { %v3108_v44 = vadd.f32 %v4785_v35, %v3037_v41  ;;  %v3039_v46 = vld [vmem:[#allocation3 + $0x130] sm:$0xff]  ;;  %3168 = vst [vmem:[%s4325_s24] sm:$0xff] %v3104_v37  ;;  %v3111_v50 = vadd.f32 %v4785_v35, %v3040_v47  ;;  %v3043_v53 = vld [vmem:[#allocation3 + $0x118] sm:$0xff]  ;;  %3170 = vst [vmem:[%s4325_s24 + $0x10] sm:$0xff] %v3106_v42  ;;  %v3112_v54 = vadd.f32 %v4785_v35, %v3041_v51 }
 0x2ba   : > { %3169 = vst [vmem:[%s4325_s24 + $0x8] sm:$0xff] %v3105_v38  ;;  %v3110_v49 = vadd.f32 %v4785_v35, %v3039_v46  ;;  %v3042_v52 = vld [vmem:[#allocation3 + $0x110] sm:$0xff]  ;;  %3171 = vst [vmem:[%s4325_s24 + $0x18] sm:$0xff] %v3107_v43  ;;  %v3114_v56 = vadd.f32 %v4785_v35, %v3043_v53  ;;  %v3044_v57 = vld [vmem:[#allocation3 + $0x98] sm:$0xff] }
 0x2bb   : > { %3172 = vst [vmem:[%s4325_s24 + $0x20] sm:$0xff] %v3108_v44  ;;  %v3113_v55 = vadd.f32 %v4785_v35, %v3042_v52  ;;  %v3045_v58 = vld [vmem:[#allocation3 + $0x120] sm:$0xff]  ;;  %v3046_v59 = vld [vmem:[#allocation3 + $0x150] sm:$0xff]  ;;  %3173 = vst [vmem:[%s4325_s24 + $0x28] sm:$0xff] %v3109_v48  ;;  %v3115_v60 = vadd.f32 %v4785_v35, %v3044_v57 }
 0x2bc   : > { %3174 = vst [vmem:[%s4325_s24 + $0x30] sm:$0xff] %v3110_v49  ;;  %3175 = vst [vmem:[%s4325_s24 + $0x38] sm:$0xff] %v3111_v50  ;;  %v3116_v61 = vadd.f32 %v4785_v35, %v3045_v58  ;;  %v3117_v62 = vadd.f32 %v4785_v35, %v3046_v59  ;;  %v3047_v63 = vld [vmem:[#allocation3 + $0x108] sm:$0xff]  ;;  %v3048_v0 = vld [vmem:[#allocation3 + $0x60] sm:$0xff] }
 0x2bd   : > { %v3049_v1 = vld [vmem:[#allocation3 + $0xe0] sm:$0xff]  ;;  %3176 = vst [vmem:[%s4325_s24 + $0x40] sm:$0xff] %v3112_v54  ;;  %3177 = vst [vmem:[%s4325_s24 + $0x48] sm:$0xff] %v3113_v55  ;;  %v3118_v2 = vadd.f32 %v4785_v35, %v3047_v63  ;;  %v3119_v3 = vadd.f32 %v4785_v35, %v3048_v0  ;;  %v3050_v5 = vld [vmem:[#allocation3 + $0x188] sm:$0xff] }
 0x2be   : > { %3178 = vst [vmem:[%s4325_s24 + $0x50] sm:$0xff] %v3114_v56  ;;  %v3120_v4 = vadd.f32 %v4785_v35, %v3049_v1  ;;  %v3051_v6 = vld [vmem:[#allocation3 + $0x138] sm:$0xff]  ;;  %v3052_v7 = vld [vmem:[#allocation3 + $0x140] sm:$0xff]  ;;  %3179 = vst [vmem:[%s4325_s24 + $0x58] sm:$0xff] %v3115_v60  ;;  %v3121_v8 = vadd.f32 %v4785_v35, %v3050_v5 }
 0x2bf   : > { %3180 = vst [vmem:[%s4325_s24 + $0x60] sm:$0xff] %v3116_v61  ;;  %3181 = vst [vmem:[%s4325_s24 + $0x68] sm:$0xff] %v3117_v62  ;;  %v3122_v9 = vadd.f32 %v4785_v35, %v3051_v6  ;;  %v3123_v10 = vadd.f32 %v4785_v35, %v3052_v7  ;;  %v3053_v11 = vld [vmem:[#allocation3 + $0x80] sm:$0xff]  ;;  %v3054_v12 = vld [vmem:[#allocation3 + $0x1a8] sm:$0xff] }
 0x2c0   : > { %v3055_v13 = vld [vmem:[#allocation3 + $0x1b8] sm:$0xff]  ;;  %3182 = vst [vmem:[%s4325_s24 + $0x70] sm:$0xff] %v3118_v2  ;;  %3183 = vst [vmem:[%s4325_s24 + $0x78] sm:$0xff] %v3119_v3  ;;  %v3124_v14 = vadd.f32 %v4785_v35, %v3053_v11  ;;  %v3125_v15 = vadd.f32 %v4785_v35, %v3054_v12  ;;  %v3056_v17 = vld [vmem:[#allocation3 + $0x28] sm:$0xff] }
 0x2c1   : > { %3184 = vst [vmem:[%s4325_s24 + $0x80] sm:$0xff] %v3120_v4  ;;  %v3126_v16 = vadd.f32 %v4785_v35, %v3055_v13  ;;  %v3057_v18 = vld [vmem:[#allocation3 + $0x1e8] sm:$0xff]  ;;  %v3058_v19 = vld [vmem:[#allocation3 + $0xf8] sm:$0xff]  ;;  %3185 = vst [vmem:[%s4325_s24 + $0x88] sm:$0xff] %v3121_v8  ;;  %v3127_v20 = vadd.f32 %v4785_v35, %v3056_v17 }
 0x2c2   : > { %3186 = vst [vmem:[%s4325_s24 + $0x90] sm:$0xff] %v3122_v9  ;;  %3187 = vst [vmem:[%s4325_s24 + $0x98] sm:$0xff] %v3123_v10  ;;  %v3128_v21 = vadd.f32 %v4785_v35, %v3057_v18  ;;  %v3129_v22 = vadd.f32 %v4785_v35, %v3058_v19  ;;  %v3059_v23 = vld [vmem:[#allocation3 + $0x160] sm:$0xff]  ;;  %v3060_v24 = vld [vmem:[#allocation3 + $0x30] sm:$0xff] }
 0x2c3   : > { %v3061_v25 = vld [vmem:[#allocation3 + $0x1e0] sm:$0xff]  ;;  %3188 = vst [vmem:[%s4325_s24 + $0xa0] sm:$0xff] %v3124_v14  ;;  %3189 = vst [vmem:[%s4325_s24 + $0xa8] sm:$0xff] %v3125_v15  ;;  %v3130_v26 = vadd.f32 %v4785_v35, %v3059_v23  ;;  %v3131_v27 = vadd.f32 %v4785_v35, %v3060_v24  ;;  %v3063_v30 = vld [vmem:[#allocation3 + $0xf0] sm:$0xff] }
 0x2c4   : > { %3190 = vst [vmem:[%s4325_s24 + $0xb0] sm:$0xff] %v3126_v16  ;;  %v3132_v28 = vadd.f32 %v4785_v35, %v3061_v25  ;;  %v3062_v29 = vld [vmem:[#allocation3] sm:$0xff]  ;;  %v3064_v31 = vld [vmem:[#allocation3 + $0x8] sm:$0xff]  ;;  %3191 = vst [vmem:[%s4325_s24 + $0xb8] sm:$0xff] %v3127_v20  ;;  %v3134_v33 = vadd.f32 %v4785_v35, %v3063_v30 }
 0x2c5   : > { %3192 = vst [vmem:[%s4325_s24 + $0xc0] sm:$0xff] %v3128_v21  ;;  %3193 = vst [vmem:[%s4325_s24 + $0xc8] sm:$0xff] %v3129_v22  ;;  %v3133_v32 = vadd.f32 %v4785_v35, %v3062_v29  ;;  %v3135_v34 = vadd.f32 %v4785_v35, %v3064_v31  ;;  %v3065_v36 = vld [vmem:[#allocation3 + $0x148] sm:$0xff]  ;;  %v3066_v37 = vld [vmem:[#allocation3 + $0x1d0] sm:$0xff] }
 0x2c6   : > { %v3067_v38 = vld [vmem:[#allocation3 + $0x100] sm:$0xff]  ;;  %3194 = vst [vmem:[%s4325_s24 + $0xd0] sm:$0xff] %v3130_v26  ;;  %3195 = vst [vmem:[%s4325_s24 + $0xd8] sm:$0xff] %v3131_v27  ;;  %v3136_v39 = vadd.f32 %v4785_v35, %v3065_v36  ;;  %v3137_v40 = vadd.f32 %v4785_v35, %v3066_v37  ;;  %v3068_v42 = vld [vmem:[#allocation3 + $0xc8] sm:$0xff] }
 0x2c7   : > { %3196 = vst [vmem:[%s4325_s24 + $0xe0] sm:$0xff] %v3132_v28  ;;  %v3138_v41 = vadd.f32 %v4785_v35, %v3067_v38  ;;  %v3069_v43 = vld [vmem:[#allocation3 + $0x40] sm:$0xff]  ;;  %v3070_v44 = vld [vmem:[#allocation3 + $0x1f8] sm:$0xff]  ;;  %3197 = vst [vmem:[%s4325_s24 + $0xe8] sm:$0xff] %v3133_v32  ;;  %v3139_v45 = vadd.f32 %v4785_v35, %v3068_v42 }
 0x2c8   : > { %3198 = vst [vmem:[%s4325_s24 + $0xf0] sm:$0xff] %v3134_v33  ;;  %3199 = vst [vmem:[%s4325_s24 + $0xf8] sm:$0xff] %v3135_v34  ;;  %v3140_v46 = vadd.f32 %v4785_v35, %v3069_v43  ;;  %v3141_v47 = vadd.f32 %v4785_v35, %v3070_v44  ;;  %v3071_v48 = vld [vmem:[#allocation3 + $0x20] sm:$0xff]  ;;  %v3072_v49 = vld [vmem:[#allocation3 + $0x128] sm:$0xff] }
 0x2c9   : > { %v3073_v50 = vld [vmem:[#allocation3 + $0x1a0] sm:$0xff]  ;;  %3200 = vst [vmem:[%s4325_s24 + $0x100] sm:$0xff] %v3136_v39  ;;  %3201 = vst [vmem:[%s4325_s24 + $0x108] sm:$0xff] %v3137_v40  ;;  %v3142_v51 = vadd.f32 %v4785_v35, %v3071_v48  ;;  %v3143_v52 = vadd.f32 %v4785_v35, %v3072_v49  ;;  %v3074_v54 = vld [vmem:[#allocation3 + $0x1f0] sm:$0xff] }
 0x2ca   : > { %3202 = vst [vmem:[%s4325_s24 + $0x110] sm:$0xff] %v3138_v41  ;;  %v3144_v53 = vadd.f32 %v4785_v35, %v3073_v50  ;;  %v3075_v55 = vld [vmem:[#allocation3 + $0xe8] sm:$0xff]  ;;  %v3076_v56 = vld [vmem:[#allocation3 + $0x78] sm:$0xff]  ;;  %3203 = vst [vmem:[%s4325_s24 + $0x118] sm:$0xff] %v3139_v45  ;;  %v3145_v57 = vadd.f32 %v4785_v35, %v3074_v54 }
 0x2cb   : > { %3204 = vst [vmem:[%s4325_s24 + $0x120] sm:$0xff] %v3140_v46  ;;  %3205 = vst [vmem:[%s4325_s24 + $0x128] sm:$0xff] %v3141_v47  ;;  %v3146_v58 = vadd.f32 %v4785_v35, %v3075_v55  ;;  %v3147_v59 = vadd.f32 %v4785_v35, %v3076_v56  ;;  %v3077_v60 = vld [vmem:[#allocation3 + $0x70] sm:$0xff]  ;;  %v3079_v62 = vld [vmem:[#allocation3 + $0x1d8] sm:$0xff] }
 0x2cc   : > { %v3078_v61 = vld [vmem:[#allocation3 + $0x90] sm:$0xff]  ;;  %3206 = vst [vmem:[%s4325_s24 + $0x130] sm:$0xff] %v3142_v51  ;;  %3207 = vst [vmem:[%s4325_s24 + $0x138] sm:$0xff] %v3143_v52  ;;  %v3148_v63 = vadd.f32 %v4785_v35, %v3077_v60  ;;  %v3150_v1 = vadd.f32 %v4785_v35, %v3079_v62  ;;  %v3081_v3 = vld [vmem:[#allocation3 + $0xb8] sm:$0xff] }
 0x2cd   : > { %3208 = vst [vmem:[%s4325_s24 + $0x140] sm:$0xff] %v3144_v53  ;;  %v3149_v0 = vadd.f32 %v4785_v35, %v3078_v61  ;;  %v3080_v2 = vld [vmem:[#allocation3 + $0xd0] sm:$0xff]  ;;  %v3082_v4 = vld [vmem:[#allocation3 + $0x88] sm:$0xff]  ;;  %3209 = vst [vmem:[%s4325_s24 + $0x148] sm:$0xff] %v3145_v57  ;;  %v3152_v6 = vadd.f32 %v4785_v35, %v3081_v3 }
 0x2ce   : > { %3210 = vst [vmem:[%s4325_s24 + $0x150] sm:$0xff] %v3146_v58  ;;  %3211 = vst [vmem:[%s4325_s24 + $0x158] sm:$0xff] %v3147_v59  ;;  %v3151_v5 = vadd.f32 %v4785_v35, %v3080_v2  ;;  %v3153_v7 = vadd.f32 %v4785_v35, %v3082_v4  ;;  %v3083_v8 = vld [vmem:[#allocation3 + $0xa8] sm:$0xff]  ;;  %v3085_v10 = vld [vmem:[#allocation3 + $0x170] sm:$0xff] }
 0x2cf   : > { %v3084_v9 = vld [vmem:[#allocation3 + $0x1c8] sm:$0xff]  ;;  %3212 = vst [vmem:[%s4325_s24 + $0x160] sm:$0xff] %v3148_v63  ;;  %3213 = vst [vmem:[%s4325_s24 + $0x168] sm:$0xff] %v3149_v0  ;;  %v3154_v11 = vadd.f32 %v4785_v35, %v3083_v8  ;;  %v3156_v13 = vadd.f32 %v4785_v35, %v3085_v10  ;;  %v3086_v14 = vld [vmem:[#allocation3 + $0x178] sm:$0xff] }
 0x2d0   : > { %3214 = vst [vmem:[%s4325_s24 + $0x170] sm:$0xff] %v3150_v1  ;;  %v3155_v12 = vadd.f32 %v4785_v35, %v3084_v9  ;;  %v3087_v15 = vld [vmem:[#allocation3 + $0x68] sm:$0xff]  ;;  %v3088_v16 = vld [vmem:[#allocation3 + $0x190] sm:$0xff]  ;;  %3215 = vst [vmem:[%s4325_s24 + $0x178] sm:$0xff] %v3151_v5  ;;  %v3157_v17 = vadd.f32 %v4785_v35, %v3086_v14 }
 0x2d1   : > { %3216 = vst [vmem:[%s4325_s24 + $0x180] sm:$0xff] %v3152_v6  ;;  %3217 = vst [vmem:[%s4325_s24 + $0x188] sm:$0xff] %v3153_v7  ;;  %v3158_v18 = vadd.f32 %v4785_v35, %v3087_v15  ;;  %v3159_v19 = vadd.f32 %v4785_v35, %v3088_v16  ;;  %v3089_v20 = vld [vmem:[#allocation3 + $0x198] sm:$0xff]  ;;  %v3091_v22 = vld [vmem:[#allocation3 + $0xc0] sm:$0xff] }
 0x2d2   : > { %v3090_v21 = vld [vmem:[#allocation3 + $0x38] sm:$0xff]  ;;  %3218 = vst [vmem:[%s4325_s24 + $0x190] sm:$0xff] %v3154_v11  ;;  %3219 = vst [vmem:[%s4325_s24 + $0x198] sm:$0xff] %v3155_v12  ;;  %v3160_v23 = vadd.f32 %v4785_v35, %v3089_v20  ;;  %v3162_v25 = vadd.f32 %v4785_v35, %v3091_v22  ;;  %v3092_v26 = vld [vmem:[#allocation3 + $0x1c0] sm:$0xff] }
 0x2d3   : > { %3220 = vst [vmem:[%s4325_s24 + $0x1a0] sm:$0xff] %v3156_v13  ;;  %v3161_v24 = vadd.f32 %v4785_v35, %v3090_v21  ;;  %v3093_v27 = vld [vmem:[#allocation3 + $0x158] sm:$0xff]  ;;  %v3094_v28 = vld [vmem:[#allocation3 + $0x10] sm:$0xff]  ;;  %3221 = vst [vmem:[%s4325_s24 + $0x1a8] sm:$0xff] %v3157_v17  ;;  %v3163_v29 = vadd.f32 %v4785_v35, %v3092_v26 }
 0x2d4   : > { %3222 = vst [vmem:[%s4325_s24 + $0x1b0] sm:$0xff] %v3158_v18  ;;  %3223 = vst [vmem:[%s4325_s24 + $0x1b8] sm:$0xff] %v3159_v19  ;;  %v3164_v30 = vadd.f32 %v4785_v35, %v3093_v27  ;;  %v3165_v31 = vadd.f32 %v4785_v35, %v3094_v28  ;;  %v3095_v32 = vld [vmem:[#allocation3 + $0x58] sm:$0xff]  ;;  %v3096_v33 = vld [vmem:[#allocation3 + $0xa0] sm:$0xff] }
 0x2d5   : > { %3224 = vst [vmem:[%s4325_s24 + $0x1c0] sm:$0xff] %v3160_v23  ;;  %3225 = vst [vmem:[%s4325_s24 + $0x1c8] sm:$0xff] %v3161_v24  ;;  %v3166_v34 = vadd.f32 %v4785_v35, %v3095_v32  ;;  %v3167_v36 = vadd.f32 %v4785_v35, %v3096_v33 }
 0x2d6   : > { %3226 = vst [vmem:[%s4325_s24 + $0x1d0] sm:$0xff] %v3162_v25  ;;  %3227 = vst [vmem:[%s4325_s24 + $0x1d8] sm:$0xff] %v3163_v29 }
 0x2d7   : > { %3228 = vst [vmem:[%s4325_s24 + $0x1e0] sm:$0xff] %v3164_v30  ;;  %3229 = vst [vmem:[%s4325_s24 + $0x1e8] sm:$0xff] %v3165_v31 }
 0x2d8   : > { %3230 = vst [vmem:[%s4325_s24 + $0x1f0] sm:$0xff] %v3166_v34  ;;  %3231 = vst [vmem:[%s4325_s24 + $0x1f8] sm:$0xff] %v3167_v36 }
 0x2d9 PF: > { %s13_s18 = sadd.s32 1, %s3972_s18   ;;  %s4940_s12 = smov %s3952_s13 }
 0x2da   : > { %p10_p2 = scmp.ge.s32.totalorder %s13_s18, 6   ;;  %s4941_s13 = smov %s4047_s25 }
 0x2db   : > { %s4942_s14 = smov %s3964_s16  ;;  %s4943_s15 = smov %s3968_s17 }
 0x2dc   : > { %s4944_s16 = smov %s4947_s19  ;;  %s4945_s17 = smov %s4951_s20 }
 0x2dd   :  { %12 = sbr.rel (!%p10_p2) target bundleno = 4 (0x4), region = 112 }

</bundles_post_ra>
